<compile_context>
chip_gen: v7x
topology: tpu7x:2x2x1
jax: 0.10.0
libtpu: 0.0.40
codegen_flags: <defaults>
</compile_context>

<pallas_src>
import jax
import jax.numpy as jnp
import numpy as np
from jax.experimental import pallas as pl
from jax.experimental.pallas import tpu as pltpu

NUM_FEATURES = 1000                       # torchvision classifiers emit 1000 logits
NUM_BACKBONES = 3
K_CAT = NUM_BACKBONES * NUM_FEATURES      # 3000  (fc1 contraction dim)
HID = 2 * NUM_FEATURES                    # 2000  (fc1 out / fc2 contraction)
HID_PAD = 2048                            # padded once at init (16 * 128)
N_H_TILES = 2                             # parallel hidden-dim tiles (megacore)
TH = HID_PAD // N_H_TILES                 # 1024


def _resident_spec(block_shape, index_map):
    """BlockSpec for operands whose block index never changes: single-buffer
    them to save VMEM (falls back to default double-buffering if this jax
    version has no pipeline_mode kwarg)."""
    if hasattr(pl, "Buffered"):
        try:
            return pl.BlockSpec(block_shape, index_map,
                                pipeline_mode=pl.Buffered(1))
        except TypeError:
            pass
    return pl.BlockSpec(block_shape, index_map)


# ----------------------------------------------------------------------------
# Fused kernel: backbones -> (implicit concat) -> fc1 -> ReLU -> fc2 (partial)
# grid = (N_H_TILES, NUM_BACKBONES); the last axis is the fc1 reduction.
# ----------------------------------------------------------------------------
def _fused_combo_kernel(x_ref, mw_ref, mb_ref, w1_ref, b1_ref, w2_ref,
                        o_ref, h_acc):
    # x_ref  : [B, IN]          f32   resident flattened image
    # mw_ref : [3, IN, 1000]    bf16  resident backbone stub weights
    # mb_ref : [3, 1000]        f32   resident backbone stub biases
    # w1_ref : [1000, TH]       bf16  fc1 block (row block k, col block h)
    # b1_ref : [1, TH]          f32   fc1 bias block h
    # w2_ref : [TH, 1000]       bf16  fc2 row block h
    # o_ref  : [1, B, 1000]     f32   fc2 partial output for this h tile
    # h_acc  : [B, TH]          f32   fc1 accumulator (VMEM scratch)
    k = pl.program_id(1)

    # Backbone stub k: x_k = x @ mW[k] + mB[k]  -> [B, 1000] (f32 accumulate).
    xk = (
        jnp.dot(x_ref[...].astype(jnp.bfloat16), mw_ref[k],
                preferred_element_type=jnp.float32)
        + mb_ref[pl.ds(k, 1), :]
    )

    # Contribution of this 1000-wide K block to fc1 columns [h*TH, (h+1)*TH).
    part = jnp.dot(xk.astype(jnp.bfloat16), w1_ref[...],
                   preferred_element_type=jnp.float32)

    @pl.when(k == 0)
    def _init():
        h_acc[...] = part                 # direct write; no zero-fill needed

    @pl.when(k != 0)
    def _accumulate():
        h_acc[...] += part

    @pl.when(k == pl.num_programs(1) - 1)
    def _finalize():
        hidden = jnp.maximum(h_acc[...] + b1_ref[...], 0.0)        # fc1 bias + ReLU
        o_ref[0] = jnp.dot(hidden.astype(jnp.bfloat16), w2_ref[...],
                           preferred_element_type=jnp.float32)      # fc2 partial


def model_combo_forward(packed, x_nchw):
    B = x_nchw.shape[0]
    x_flat = x_nchw.reshape(B, -1)        # NCHW row-major flatten
    IN = x_flat.shape[1]

    partial_out = pl.pallas_call(
        _fused_combo_kernel,
        out_shape=jax.ShapeDtypeStruct((N_H_TILES, B, NUM_FEATURES), jnp.float32),
        grid_spec=pltpu.PrefetchScalarGridSpec(
            num_scalar_prefetch=0,
            grid=(N_H_TILES, NUM_BACKBONES),
            in_specs=[
                # resident operands (constant block index across the grid)
                _resident_spec((B, IN), lambda h, k: (0, 0)),
                _resident_spec((NUM_BACKBONES, IN, NUM_FEATURES),
                               lambda h, k: (0, 0, 0)),
                _resident_spec((NUM_BACKBONES, NUM_FEATURES),
                               lambda h, k: (0, 0)),
                # streamed head-weight blocks
                pl.BlockSpec((NUM_FEATURES, TH), lambda h, k: (k, h)),   # fc1_w
                pl.BlockSpec((1, TH), lambda h, k: (0, h)),              # fc1_b
                pl.BlockSpec((TH, NUM_FEATURES), lambda h, k: (h, 0)),   # fc2_w
            ],
            out_specs=pl.BlockSpec((1, B, NUM_FEATURES), lambda h, k: (h, 0, 0)),
            scratch_shapes=[pltpu.VMEM((B, TH), jnp.float32)],
        ),
        compiler_params=pltpu.CompilerParams(
            dimension_semantics=("parallel", "arbitrary"),
            vmem_limit_bytes=48 * 1024 * 1024,   # <= 64 MiB physical on v7x
        ),
    )(x_flat, packed["m_w"], packed["m_b"],
      packed["fc1_w"], packed["fc1_b"], packed["fc2_w"])

    # Sum the per-h-tile fc2 partials and add the fc2 bias (tiny XLA op).
    return partial_out.sum(axis=0) + packed["fc2_b"]


# ----------------------------------------------------------------------------
# Parameters
# ----------------------------------------------------------------------------
def init_params(key, in_features):
    """Logical (unpadded) parameters; weights stored in bfloat16."""
    ks = jax.random.split(key, 8)
    s = 0.02
    bf16 = jnp.bfloat16
    return {
        # backbone stubs: flattened NCHW image -> 1000 "logits" each
        "m_w": (s * jax.random.normal(
            ks[0], (NUM_BACKBONES, in_features, NUM_FEATURES), jnp.float32)
        ).astype(bf16),
        "m_b": jnp.zeros((NUM_BACKBONES, NUM_FEATURES), jnp.float32),
        # head: fc1 (3000 -> 2000), fc2 (2000 -> 1000), as in the PyTorch module
        "fc1_w": (s * jax.random.normal(ks[3], (K_CAT, HID), jnp.float32)).astype(bf16),
        "fc1_b": s * jax.random.normal(ks[4], (HID,), jnp.float32),
        "fc2_w": (s * jax.random.normal(ks[5], (HID, NUM_FEATURES), jnp.float32)).astype(bf16),
        "fc2_b": s * jax.random.normal(ks[6], (NUM_FEATURES,), jnp.float32),
    }


def pack_params(params):
    """One-time packing for the kernel (NOT per forward pass): zero-pad the
    hidden dim 2000 -> 2048 (padded fc2 rows are zero, so the padding is
    mathematically inert) and reshape fc1 bias to a lane-dense 2-D layout."""
    pad_h = HID_PAD - HID
    return {
        "m_w": params["m_w"],
        "m_b": params["m_b"],
        "fc1_w": jnp.pad(params["fc1_w"], ((0, 0), (0, pad_h))),
        "fc1_b": jnp.pad(params["fc1_b"], ((0, pad_h),)).reshape(1, HID_PAD),
        "fc2_w": jnp.pad(params["fc2_w"], ((0, pad_h), (0, 0))),
        "fc2_b": params["fc2_b"],
    }


def model_combo_reference(params, x_nchw):
    """Pure-JAX f32 reference (same bf16-rounded weights) for correctness."""
    f32 = jnp.float32
    B = x_nchw.shape[0]
    x_flat = x_nchw.reshape(B, -1).astype(f32)
    feats = [x_flat @ params["m_w"][i].astype(f32) + params["m_b"][i]
             for i in range(NUM_BACKBONES)]
    x_cat = jnp.concatenate(feats, axis=1)                      # [B, 3000]
    h = jnp.maximum(x_cat @ params["fc1_w"].astype(f32) + params["fc1_b"], 0.0)
    return h @ params["fc2_w"].astype(f32) + params["fc2_b"]


if __name__ == "__main__":
    key = jax.random.PRNGKey(0)

    # Small NCHW image batch consistent with a vision module (RGB input).
    B, C, H, W = 2, 3, 16, 16
    x = jax.random.normal(jax.random.fold_in(key, 99), (B, C, H, W), jnp.float32)

    params = init_params(key, C * H * W)
    packed = pack_params(params)          # one-time padding/packing

    out = jax.jit(model_combo_forward)(packed, x)
    out = jax.block_until_ready(out)

    assert out.shape == (B, NUM_FEATURES), out.shape
    assert out.dtype == jnp.float32

    ref = model_combo_reference(params, x)
    np.testing.assert_allclose(np.asarray(out), np.asarray(ref), rtol=2e-2, atol=2e-2)

    print("KERNEL_OK")
</pallas_src>

<mosaic_0001>
module attributes {stable_mosaic.version = 11 : i64} {
  func.func @_fused_combo_kernel(%arg0: i32, %arg1: i32, %arg2: memref<2x768xf32, #tpu.memory_space<vmem>>, %arg3: memref<3x768x1000xbf16, #tpu.memory_space<vmem>>, %arg4: memref<3x1000xf32, #tpu.memory_space<vmem>>, %arg5: memref<1000x1024xbf16, #tpu.memory_space<vmem>>, %arg6: memref<1x1024xf32, #tpu.memory_space<vmem>>, %arg7: memref<1024x1000xbf16, #tpu.memory_space<vmem>>, %arg8: memref<1x2x1000xf32, #tpu.memory_space<vmem>>, %arg9: memref<2x1024xf32, #tpu.memory_space<vmem>>) attributes {dimension_semantics = [#tpu.dimension_semantics<parallel>, #tpu.dimension_semantics<arbitrary>], iteration_bounds = array<i64: 2, 3>, scalar_prefetch = 0 : i64, scratch_operands = 1 : i64, tpu.core_type = #tpu.core_type<tc>, window_params = [{pipeline_mode = #tpu.pipeline_mode<synchronous>, transform_indices = @transform_0, window_bounds = array<i64: 2, 768>}, {pipeline_mode = #tpu.pipeline_mode<synchronous>, transform_indices = @transform_1, window_bounds = array<i64: 3, 768, 1000>}, {pipeline_mode = #tpu.pipeline_mode<synchronous>, transform_indices = @transform_2, window_bounds = array<i64: 3, 1000>}, {transform_indices = @transform_3, window_bounds = array<i64: 1000, 1024>}, {transform_indices = @transform_4, window_bounds = array<i64: 1, 1024>}, {transform_indices = @transform_5, window_bounds = array<i64: 1024, 1000>}, {transform_indices = @transform_6, window_bounds = array<i64: 1, 2, 1000>}]} {
    %c0 = arith.constant 0 : index
    %c0_0 = arith.constant 0 : index
    %0 = vector.load %arg2[%c0, %c0_0] : memref<2x768xf32, #tpu.memory_space<vmem>>, vector<2x768xf32>
    %1 = arith.truncf %0 : vector<2x768xf32> to vector<2x768xbf16>
    %2 = arith.index_cast %arg1 : i32 to index
    %c0_1 = arith.constant 0 : index
    %c0_2 = arith.constant 0 : index
    %3 = vector.load %arg3[%2, %c0_1, %c0_2] : memref<3x768x1000xbf16, #tpu.memory_space<vmem>>, vector<1x768x1000xbf16>
    %4 = vector.shape_cast %3 : vector<1x768x1000xbf16> to vector<768x1000xbf16>
    %cst = arith.constant dense<0.000000e+00> : vector<2x1000xf32>
    %5 = tpu.matmul %1, %4, %cst {dimension_numbers = #tpu.dot_dimension_numbers<[1], [0], [0], [1], [0, 0, 1, 1], [], []>} : vector<2x768xbf16>, vector<768x1000xbf16>, vector<2x1000xf32> -> vector<2x1000xf32>
    %6 = arith.index_cast %arg1 : i32 to index
    %c0_3 = arith.constant 0 : index
    %7 = vector.load %arg4[%6, %c0_3] : memref<3x1000xf32, #tpu.memory_space<vmem>>, vector<1x1000xf32>
    %8 = vector.broadcast %7 : vector<1x1000xf32> to vector<2x1000xf32>
    %9 = arith.addf %5, %8 : vector<2x1000xf32>
    %10 = arith.truncf %9 : vector<2x1000xf32> to vector<2x1000xbf16>
    %c0_4 = arith.constant 0 : index
    %c0_5 = arith.constant 0 : index
    %11 = vector.load %arg5[%c0_4, %c0_5] : memref<1000x1024xbf16, #tpu.memory_space<vmem>>, vector<1000x1024xbf16>
    %cst_6 = arith.constant dense<0.000000e+00> : vector<2x1024xf32>
    %12 = tpu.matmul %10, %11, %cst_6 {dimension_numbers = #tpu.dot_dimension_numbers<[1], [0], [0], [1], [0, 0, 1, 1], [], []>} : vector<2x1000xbf16>, vector<1000x1024xbf16>, vector<2x1024xf32> -> vector<2x1024xf32>
    %c0_i32 = arith.constant 0 : i32
    %13 = arith.cmpi eq, %arg1, %c0_i32 : i32
    %14 = arith.extui %13 : i1 to i32
    %c0_i32_7 = arith.constant 0 : i32
    %15 = arith.cmpi ne, %14, %c0_i32_7 : i32
    scf.if %15 {
      %c0_11 = arith.constant 0 : index
      %c0_12 = arith.constant 0 : index
      %22 = vector.load %arg9[%c0_11, %c0_12] : memref<2x1024xf32, #tpu.memory_space<vmem>>, vector<2x1024xf32>
      tpu.vector_store %arg9[%c0_11, %c0_12], %12 {strides = array<i32>} : memref<2x1024xf32, #tpu.memory_space<vmem>>, vector<2x1024xf32>,
    } else {
    }
    %c0_i32_8 = arith.constant 0 : i32
    %16 = arith.cmpi ne, %arg1, %c0_i32_8 : i32
    %17 = arith.extui %16 : i1 to i32
    %c0_i32_9 = arith.constant 0 : i32
    %18 = arith.cmpi ne, %17, %c0_i32_9 : i32
    scf.if %18 {
      %c0_11 = arith.constant 0 : index
      %c0_12 = arith.constant 0 : index
      %22 = vector.load %arg9[%c0_11, %c0_12] : memref<2x1024xf32, #tpu.memory_space<vmem>>, vector<2x1024xf32>
      %23 = arith.addf %22, %12 : vector<2x1024xf32>
      %c0_13 = arith.constant 0 : index
      %c0_14 = arith.constant 0 : index
      %24 = vector.load %arg9[%c0_13, %c0_14] : memref<2x1024xf32, #tpu.memory_space<vmem>>, vector<2x1024xf32>
      tpu.vector_store %arg9[%c0_13, %c0_14], %23 {strides = array<i32>} : memref<2x1024xf32, #tpu.memory_space<vmem>>, vector<2x1024xf32>,
    } else {
    }
    %c2_i32 = arith.constant 2 : i32
    %19 = arith.cmpi eq, %arg1, %c2_i32 : i32
    %20 = arith.extui %19 : i1 to i32
    %c0_i32_10 = arith.constant 0 : i32
    %21 = arith.cmpi ne, %20, %c0_i32_10 : i32
    scf.if %21 {
      %c0_11 = arith.constant 0 : index
      %c0_12 = arith.constant 0 : index
      %22 = vector.load %arg9[%c0_11, %c0_12] : memref<2x1024xf32, #tpu.memory_space<vmem>>, vector<2x1024xf32>
      %c0_13 = arith.constant 0 : index
      %c0_14 = arith.constant 0 : index
      %23 = vector.load %arg6[%c0_13, %c0_14] : memref<1x1024xf32, #tpu.memory_space<vmem>>, vector<1x1024xf32>
      %24 = vector.broadcast %23 : vector<1x1024xf32> to vector<2x1024xf32>
      %25 = arith.addf %22, %24 : vector<2x1024xf32>
      %cst_15 = arith.constant 0.000000e+00 : f32
      %26 = vector.broadcast %cst_15 : f32 to vector<2x1024xf32>
      %27 = arith.maximumf %25, %26 : vector<2x1024xf32>
      %28 = arith.truncf %27 : vector<2x1024xf32> to vector<2x1024xbf16>
      %c0_16 = arith.constant 0 : index
      %c0_17 = arith.constant 0 : index
      %29 = vector.load %arg7[%c0_16, %c0_17] : memref<1024x1000xbf16, #tpu.memory_space<vmem>>, vector<1024x1000xbf16>
      %cst_18 = arith.constant dense<0.000000e+00> : vector<2x1000xf32>
      %30 = tpu.matmul %28, %29, %cst_18 {dimension_numbers = #tpu.dot_dimension_numbers<[1], [0], [0], [1], [0, 0, 1, 1], [], []>} : vector<2x1024xbf16>, vector<1024x1000xbf16>, vector<2x1000xf32> -> vector<2x1000xf32>
      %c0_19 = arith.constant 0 : index
      %c0_20 = arith.constant 0 : index
      %c0_21 = arith.constant 0 : index
      %31 = vector.load %arg8[%c0_19, %c0_20, %c0_21] : memref<1x2x1000xf32, #tpu.memory_space<vmem>>, vector<1x2x1000xf32>
      %32 = vector.shape_cast %31 : vector<1x2x1000xf32> to vector<2x1000xf32>
      %33 = vector.shape_cast %30 : vector<2x1000xf32> to vector<1x2x1000xf32>
      tpu.vector_store %arg8[%c0_19, %c0_20, %c0_21], %33 {strides = array<i32>} : memref<1x2x1000xf32, #tpu.memory_space<vmem>>, vector<1x2x1000xf32>,
    } else {
    }
    return
  }
  func.func @transform_0(%arg0: i32, %arg1: i32) -> (i32, i32) {
    %c0_i32 = arith.constant 0 : i32
    %c0_i32_0 = arith.constant 0 : i32
    %c0_i32_1 = arith.constant 0 : i32
    return %c0_i32, %c0_i32_0 : i32, i32
  }
  func.func @transform_1(%arg0: i32, %arg1: i32) -> (i32, i32, i32) {
    %c0_i32 = arith.constant 0 : i32
    %c0_i32_0 = arith.constant 0 : i32
    %c0_i32_1 = arith.constant 0 : i32
    %c0_i32_2 = arith.constant 0 : i32
    return %c0_i32, %c0_i32_0, %c0_i32_1 : i32, i32, i32
  }
  func.func @transform_2(%arg0: i32, %arg1: i32) -> (i32, i32) {
    %c0_i32 = arith.constant 0 : i32
    %c0_i32_0 = arith.constant 0 : i32
    %c0_i32_1 = arith.constant 0 : i32
    return %c0_i32, %c0_i32_0 : i32, i32
  }
  func.func @transform_3(%arg0: i32, %arg1: i32) -> (i32, i32) {
    %c0_i32 = arith.constant 0 : i32
    return %arg1, %arg0 : i32, i32
  }
  func.func @transform_4(%arg0: i32, %arg1: i32) -> (i32, i32) {
    %c0_i32 = arith.constant 0 : i32
    %c0_i32_0 = arith.constant 0 : i32
    return %c0_i32, %arg0 : i32, i32
  }
  func.func @transform_5(%arg0: i32, %arg1: i32) -> (i32, i32) {
    %c0_i32 = arith.constant 0 : i32
    %c0_i32_0 = arith.constant 0 : i32
    return %arg0, %c0_i32 : i32, i32
  }
  func.func @transform_6(%arg0: i32, %arg1: i32) -> (i32, i32, i32) {
    %c0_i32 = arith.constant 0 : i32
    %c0_i32_0 = arith.constant 0 : i32
    %c0_i32_1 = arith.constant 0 : i32
    return %arg0, %c0_i32, %c0_i32_0 : i32, i32, i32
  }
}

</mosaic_0001>

<bundles_post_ra>
// kernel: model_combo_forward.1
= control target key start
LH: loop header
LB: loop body
LE: loop exit
PB: predicated region body
PF: predicated region fallthrough
CT: control target
= control target key end

     0   :  { %11 = vsyncpa [#allocation4], 0  ;;  %s14749_s0 = inlined_call_operand.vmem [shape: f32[2,768], index: 0, kind: input, shape index: {}]   ;;  %s14750_s1 = inlined_call_operand.vmem [shape: bf16[3,768,1000], index: 1, kind: input, shape index: {}]   ;;  %s14751_s2 = inlined_call_operand.vmem [shape: f32[3,1000], index: 2, kind: input, shape index: {}]   ;;  %s14752_s3 = inlined_call_operand.hbm [shape: bf16[3000,2048], index: 3, kind: input, shape index: {}]   ;;  %s14753_s4 = inlined_call_operand.vmem [shape: f32[1,2048], index: 4, kind: input, shape index: {}]   ;;  %s14754_s5 = inlined_call_operand.vmem [shape: bf16[2048,1000], index: 5, kind: input, shape index: {}]   ;;  %s14755_s6 = inlined_call_operand.vmem [shape: f32[2,2,1000], index: 6, kind: output, shape index: {}]  }
   0x1   :  { %13 = vsyncpa [#allocation4 + $0x1], 0  ;;  %s12840_s21 = smov 0   ;;  %s12842_s22 = smov 0  }
   0x2   :  { %s12844_s23 = smov 0   ;;  %s12846_s24 = smov 0  }
   0x3   :  { %s12848_s25 = smov 0   ;;  %s12850_s26 = smov 0  }
   0x4   :  { %s12852_s27 = smov 0   ;;  %s12854_s28 = smov 0  }
   0x5 LB: > { %s11043_s29 = sadd.s32 4294967295, %s12798_s28   ;;  %s28_s30 = sadd.s32 1, %s12790_s26  ;;  %s12798_s28 = sphi %s12854_s28, %s19_s28   ;;  %s12794_s27 = sphi %s12852_s27, %s14768_s27   ;;  %s12790_s26 = sphi %s12850_s26, %s14767_s26   ;;  %s12786_s25 = sphi %s12848_s25, %s14766_s25   ;;  %s12782_s24 = sphi %s12846_s24, %s14765_s24   ;;  %s12778_s23 = sphi %s12844_s23, %s14764_s23   ;;  %s12774_s22 = sphi %s12842_s22, %s14763_s22   ;;  %s12770_s21 = sphi %s12840_s21, %s14762_s21  }
   0x6   : > { %p29_p0 = scmp.ge.s32.totalorder %s28_s30, 3  ;;  %s31_s7 = sadd.s32 1, %s12794_s27 }
   0x7   : > { %s103_s8 = sadd.s32 1, %s12778_s23  ;;  %p110_p1 = scmp.ne.s32.totalorder %s12778_s23, %s12774_s22 }
   0x8   : > { %s14770_s30 = smov (%p29_p0, %s28_s30), 0  ;;  %s14772_s7 = smov (!%p29_p0, %s31_s7), %s12794_s27 }
   0x9   : > { %s98_s9 = ssub.s32 %s12790_s26, %s14770_s30  ;;  %p111_p2 = scmp.eq.s32.totalorder %s12798_s28, 0 }
   0xa   : > { %p33_p3 = scmp.ge.s32.totalorder %s14772_s7, 2  ;;  %p116_p4 = scmp.ne.s32.totalorder %s12774_s22, %s12770_s21 }
   0xb   : > { %p12891_p5 = por %p111_p2, %p110_p1  ;;  %p117_p6 = scmp.eq.s32.totalorder %s11043_s29, 0 }
   0xc   : > { %s14774_s7 = smov (%p33_p3, %s14772_s7), 0  ;;  %p12623_p8 = scmp.lt.s32.totalorder %s12798_s28, 6 }
   0xd   : > { %14758 = sst [smem:[#allocation6_spill]] %s14774_s7  ;;  %p12897_p7 = por %p117_p6, %p116_p4 }
   0xe   : > { %s99_s12 = ssub.s32 %s12794_s27, %s14774_s7  ;;  %s227_s14 = sand.u32 1, %s12778_s23  }
   0xf   : > { %s100_s13 = sor.u32 %s99_s12, %s98_s9  ;;  %s12615_s15 = smul.u32 4000, %s227_s14 }
  0x10   : > { %p101_p9 = scmp.eq.s32.totalorder %s100_s13, 0  ;;  %s11047_s16 = sshll.u32 %s12794_s27, 3 }
  0x11   : > { %s12474_s18 = smul.u32 2000, %s12790_s26  ;;  %s231_s19 = scalar_lea.vmem [#allocation3], %s12615_s15 }
  0x12   : > { %s12907_s17 = scalar_select %p101_p9, %s12778_s23, %s103_s8  }
  0x13   : > { %s241_s20 = sshll.u32 %s231_s19, 4  ;;  %p12912_p10 = pnand %p12623_p8, %p12891_p5  ;;  %s12916_s20 = int_to_ptr.vmem [resolvable:$true] %s241_s20 }
  0x14   : > { %s238_s29 = sadd.s32 %s12474_s18, %s11047_s16  ;;  %s12923_s8 = scalar_lea.sflag [#allocation4], %s227_s14 }
  0x15   : > { %s11049_s9 = sshll.u32 %s238_s29, 6  ;;  %p12704_p12 = pneg %p12912_p10 }
  0x16   : > { %s12921_s7 = scalar_lea.hbm %s14752_s3, %s11049_s9  ;;  %s12707_s18 = scalar_lea.hbm %s14752_s3, 384000 }
  0x17   : > { %s12702_s10 = scalar_lea.hbm %s12921_s7, 64000  ;;  %p12708_p1 = scmp.lt.u32.totalorder %s12921_s7, %s14752_s3 }
  0x18   : > { %p12703_p11 = scmp.ne.s32.totalorder %s12921_s7, %s12702_s10  ;;  %p12709_p2 = scmp.lt.u32.totalorder %s12707_s18, %s12702_s10 }
  0x19   : > { %p12711_p4 = scmp.lt.u32.totalorder %s12702_s10, %s12921_s7 }
  0x1a   : > { %p12705_p13 = pnand %p12704_p12, %p12703_p11  ;;  %p12710_p3 = por %p12709_p2, %p12708_p1 }
  0x1c   : > { %p12706_p0 = pneg %p12705_p13  ;;  %p12712_p5 = por %p12711_p4, %p12710_p3 }
  0x1e   : > { %p12713_p6 = pnand %p12712_p5, %p12706_p0 }
  0x20   : > { %12716 = shalt.err (!%p12713_p6)
}
  0x21   : > { %s12717_s14 = scalar_lea.vmem %s12916_s20, 64000  ;;  %s12800_s9 = smov [#allocation3]  }
  0x22   : > { %p12718_p8 = scmp.ne.s32.totalorder %s12916_s20, %s12717_s14  ;;  %s12722_s12 = sshll.u32 %s12800_s9, 4  ;;  %s12723_s12 = int_to_ptr.vmem [resolvable:$false] %s12722_s12 }
  0x23   : > { %s12724_s13 = scalar_lea.vmem %s12723_s12, 128000  ;;  %p12725_p13 = scmp.lt.s32.totalorder %s12916_s20, %s12723_s12 }
  0x24   : > { %p12720_p9 = pnand %p12718_p8, %p12704_p12  ;;  %p12726_p1 = scmp.lt.s32.totalorder %s12724_s13, %s12717_s14 }
  0x26   : > { %p12721_p11 = pneg %p12720_p9  ;;  %p12727_p2 = por %p12726_p1, %p12725_p13 }
  0x28   : > { %p12728_p3 = pnand %p12727_p2, %p12721_p11 }
  0x2a   : > { %12731 = shalt.err (!%p12728_p3)
}
  0x2b   : > { %s12801_s10 = smov 1024   ;;  %s12802_s15 = smov 512  }
  0x2c   : > { %s12803_s16 = smov 32   ;;  %p11050_p12 = scmp.ge.s32.totalorder %s12798_s28, 1 }
  0x2d   : > { %12622 = dma.hbm_to_vmem [thread:$0]  (!%p12912_p10), %s12921_s7, 64000, %s12916_s20, %s12923_s8, %s12801_s10, %s12802_s15, %s12803_s16  }
  0x2e   : > { %p267_p0 = scmp.lt.s32.totalorder %s12798_s28, 7 }
  0x30   : > { %p268_p4 = pnand %p11050_p12, %p267_p0 }
  0x31   : > { %s273_s18 = sand.u32 (!%p268_p4), 1, %s12774_s22  }
  0x32   : > { %271 = sbr.rel (%p268_p4) target bundleno = 1949 (0x79d), region = 44  ;;  %s274_s29 = scalar_lea.sflag (!%p268_p4), [#allocation4], %s273_s18 }
  0x33   : > { %s12616_s19 = smul.u32 (!%p268_p4), 4000, %s273_s18 }
  0x35   : > { %s12954_s14 = scalar_lea.vmem (!%p268_p4), [#allocation3], %s12616_s19 }
  0x39   : > { %12765 = dma.done.wait (%p12897_p7), %s274_s29, 64000  }
  0x3a   : > { %12767 = vsyncadd (%p12897_p7), %s274_s29, 4294903296  ;;  %s11051_s7 = sshll.u32 %s12786_s25, 3  ;;  %s11052_s20 = sshll.u32 %s12786_s25, 7  ;;  %v12804_v32 = vmov 1983009808   ;;  %v344_v34 = vlaneseq  ;;  %v13022_v59 = vld [vmem:[%s14749_s0] sm:$0xff] }
  0x3b   : > { %p319_p10 = scmp.lt.s32.totalorder %s11051_s7, 15  ;;  %p324_p5 = scmp.lt.s32.totalorder %s11052_s20, 255  ;;  %v342_v33 = vunpack.c.l.s4 %v12804_v32  ;;  %vm6234_vm0 = vcmask 850944   ;;  %vm6238_vm1 = vcmask 1043456  }
  0x3c   : > { %p330_p6 = scmp.lt.s32.totalorder %s12786_s25, 1  ;;  %s12477_s21 = smul.u32 3072, %s12782_s24  ;;  %v13008_v44 = vshrl.u32 %v344_v34, 7 }
  0x3d   : > { %s14776_s7 = smov (!%p319_p10, %s11051_s7), 15  ;;  %s14778_s20 = smov (!%p324_p5, %s11052_s20), 255  ;;  %v343_v43 = vunpack.c.0.s8 %v342_v33 }
  0x3e   : > { %s321_s11 = scalar_lea.vmem %s14753_s4, %s14776_s7  ;;  %s12973_s10 = scalar_lea.vmem %s14750_s1, %s12477_s21 }
  0x3f   : > { %s12475_s15 = sshll.u32 %s14778_s20, 5  ;;  %v380_v0 = vld [vmem:[%s12973_s10] sm:$0xff]  ;;  %v381_v2 = vld [vmem:[%s12973_s10 + $0x8] sm:$0xff]  ;;  %s14780_s25 = smov (!%p330_p6, %s12786_s25), 1  ;;  %v13015_v53 = vsub.s32 %v343_v43, %v13008_v44 }
  0x40   : > { %s12978_s19 = scalar_lea.vmem %s14754_s5, %s12475_s15  ;;  %v384_v1 = vld [vmem:[%s12973_s10 + $0x20] sm:$0xff]  ;;  %v385_v4 = vld [vmem:[%s12973_s10 + $0x28] sm:$0xff]  ;;  %s12476_s29 = sshll.u32 %s14780_s25, 4 }
  0x41   : > { %v11062_v3 = vcombine.high %v380_v0, %v384_v1  ;;  %v11061_v5 = vcombine.low %v380_v0, %v384_v1  ;;  %v388_v6 = vld [vmem:[%s12973_s10 + $0x40] sm:$0xff]  ;;  %v11064_v8 = vcombine.high %v381_v2, %v385_v4  ;;  %v11063_v9 = vcombine.low %v381_v2, %v385_v4  ;;  %v389_v11 = vld [vmem:[%s12973_s10 + $0x48] sm:$0xff]  ;;  %s12996_s8 = scalar_lea.vmem %s14755_s6, %s12476_s29  ;;  %s767_s15 = sand.u32 3, %s12782_s24 }
  0x42   : > { %v392_v7 = vld [vmem:[%s12973_s10 + $0x60] sm:$0xff]  ;;  %v393_v12 = vld [vmem:[%s12973_s10 + $0x68] sm:$0xff]  ;;  %v13028_v63 = vrot.slane %v13022_v59, %v13015_v53  ;;  %p11957_p7 = scmp.ne.s32.totalorder %s12782_s24, 0 }
  0x43   : > { %v11070_v10 = vcombine.high %v388_v6, %v392_v7  ;;  %v396_v13 = vld [vmem:[%s12973_s10 + $0x80] sm:$0xff]  ;;  %2734 = vmatprep.subr.bf16.mxu0 %v11062_v3  ;;  %v11072_v14 = vcombine.high %v389_v11, %v393_v12  ;;  %v397_v16 = vld [vmem:[%s12973_s10 + $0x88] sm:$0xff]  ;;  %2857 = vmatprep.subr.bf16.mxu1 %v11064_v8  ;;  %v11069_v18 = vcombine.low %v388_v6, %v392_v7 }
  0x44   : > { %v400_v15 = vld [vmem:[%s12973_s10 + $0xa0] sm:$0xff]  ;;  %v401_v17 = vld [vmem:[%s12973_s10 + $0xa8] sm:$0xff]  ;;  %2735 = vmatpush1.bf16.msra.mxu0 %v11061_v5  ;;  %2858 = vmatpush1.bf16.msra.mxu1 %v11063_v9  ;;  %v11071_v19 = vcombine.low %v389_v11, %v393_v12  ;;  %v355_v3 = vcombine.high %v13028_v63, %v13028_v63 }
  0x45   : > { %2736 = vmatprep.subr.bf16.mxu0 %v11070_v10  ;;  %v11078_v20 = vcombine.high %v396_v13, %v400_v15  ;;  %2859 = vmatprep.subr.bf16.mxu1 %v11072_v14  ;;  %v11080_v21 = vcombine.high %v397_v16, %v401_v17  ;;  %v404_v22 = vld [vmem:[%s12973_s10 + $0xc0] sm:$0xff]  ;;  %v405_v24 = vld [vmem:[%s12973_s10 + $0xc8] sm:$0xff]  ;;  %v11077_v26 = vcombine.low %v396_v13, %v400_v15 }
  0x46   : > { %v408_v23 = vld [vmem:[%s12973_s10 + $0xe0] sm:$0xff]  ;;  %v409_v25 = vld [vmem:[%s12973_s10 + $0xe8] sm:$0xff]  ;;  %v11079_v27 = vcombine.low %v397_v16, %v401_v17  ;;  %v13036_v9 = vpack.c.bf16 %v355_v3, %v355_v3 }
  0x47   : > { %v11086_v28 = vcombine.high %v404_v22, %v408_v23  ;;  %v11088_v29 = vcombine.high %v405_v24, %v409_v25  ;;  %v412_v30 = vld [vmem:[%s12973_s10 + $0x100] sm:$0xff]  ;;  %v413_v35 = vld [vmem:[%s12973_s10 + $0x108] sm:$0xff]  ;;  %v11085_v37 = vcombine.low %v404_v22, %v408_v23  ;;  %v11087_v38 = vcombine.low %v405_v24, %v409_v25 }
  0x48   : > { %2737 = vmatpush1.bf16.msra.mxu0 %v11069_v18  ;;  %2860 = vmatpush1.bf16.msra.mxu1 %v11071_v19  ;;  %v416_v31 = vld [vmem:[%s12973_s10 + $0x120] sm:$0xff]  ;;  %v417_v36 = vld [vmem:[%s12973_s10 + $0x128] sm:$0xff] }
  0x49   : > { %2738 = vmatprep.subr.bf16.mxu0 %v11078_v20  ;;  %2861 = vmatprep.subr.bf16.mxu1 %v11080_v21  ;;  %v11094_v39 = vcombine.high %v412_v30, %v416_v31  ;;  %v11096_v40 = vcombine.high %v413_v35, %v417_v36  ;;  %v420_v41 = vld [vmem:[%s12973_s10 + $0x140] sm:$0xff]  ;;  %v421_v45 = vld [vmem:[%s12973_s10 + $0x148] sm:$0xff]  ;;  %v11093_v47 = vcombine.low %v412_v30, %v416_v31 }
  0x4a   : > { %v424_v42 = vld [vmem:[%s12973_s10 + $0x160] sm:$0xff]  ;;  %v425_v46 = vld [vmem:[%s12973_s10 + $0x168] sm:$0xff]  ;;  %v11095_v48 = vcombine.low %v413_v35, %v417_v36  ;;  %2766 = vmatprep.mubr.bf16.mxu0 %v13036_v9  ;;  %2889 = vmatprep.mubr.bf16.mxu1 %v13036_v9 }
  0x4b   : > { %v11102_v49 = vcombine.high %v420_v41, %v424_v42  ;;  %v11104_v50 = vcombine.high %v421_v45, %v425_v46  ;;  %v428_v51 = vld [vmem:[%s12973_s10 + $0x180] sm:$0xff]  ;;  %v429_v54 = vld [vmem:[%s12973_s10 + $0x188] sm:$0xff]  ;;  %v11101_v56 = vcombine.low %v420_v41, %v424_v42  ;;  %v11103_v57 = vcombine.low %v421_v45, %v425_v46 }
  0x4c   : > { %2739 = vmatpush1.bf16.msra.mxu0 %v11077_v26  ;;  %2862 = vmatpush1.bf16.msra.mxu1 %v11079_v27  ;;  %v432_v52 = vld [vmem:[%s12973_s10 + $0x1a0] sm:$0xff]  ;;  %v433_v55 = vld [vmem:[%s12973_s10 + $0x1a8] sm:$0xff] }
  0x4d   : > { %2740 = vmatprep.subr.bf16.mxu0 %v11086_v28  ;;  %2863 = vmatprep.subr.bf16.mxu1 %v11088_v29  ;;  %v11110_v58 = vcombine.high %v428_v51, %v432_v52  ;;  %v11112_v60 = vcombine.high %v429_v54, %v433_v55  ;;  %v436_v61 = vld [vmem:[%s12973_s10 + $0x1c0] sm:$0xff]  ;;  %v437_v0 = vld [vmem:[%s12973_s10 + $0x1c8] sm:$0xff]  ;;  %v11109_v2 = vcombine.low %v428_v51, %v432_v52 }
  0x4e   : > { %v440_v62 = vld [vmem:[%s12973_s10 + $0x1e0] sm:$0xff]  ;;  %v441_v1 = vld [vmem:[%s12973_s10 + $0x1e8] sm:$0xff]  ;;  %v11111_v4 = vcombine.low %v429_v54, %v433_v55 }
  0x4f   : > { %v11118_v5 = vcombine.high %v436_v61, %v440_v62  ;;  %v11120_v6 = vcombine.high %v437_v0, %v441_v1  ;;  %v444_v7 = vld [vmem:[%s12973_s10 + $0x200] sm:$0xff]  ;;  %v445_v10 = vld [vmem:[%s12973_s10 + $0x208] sm:$0xff]  ;;  %v11117_v12 = vcombine.low %v436_v61, %v440_v62  ;;  %v11119_v13 = vcombine.low %v437_v0, %v441_v1 }
  0x50   : > { %2741 = vmatpush1.bf16.msra.mxu0 %v11085_v37  ;;  %2864 = vmatpush1.bf16.msra.mxu1 %v11087_v38  ;;  %v448_v8 = vld [vmem:[%s12973_s10 + $0x220] sm:$0xff]  ;;  %v449_v11 = vld [vmem:[%s12973_s10 + $0x228] sm:$0xff] }
  0x51   : > { %2742 = vmatprep.subr.bf16.mxu0 %v11094_v39  ;;  %2865 = vmatprep.subr.bf16.mxu1 %v11096_v40  ;;  %v11126_v14 = vcombine.high %v444_v7, %v448_v8  ;;  %v11128_v15 = vcombine.high %v445_v10, %v449_v11  ;;  %v452_v16 = vld [vmem:[%s12973_s10 + $0x240] sm:$0xff]  ;;  %v453_v18 = vld [vmem:[%s12973_s10 + $0x248] sm:$0xff]  ;;  %v11125_v20 = vcombine.low %v444_v7, %v448_v8 }
  0x52   : > { %v456_v17 = vld [vmem:[%s12973_s10 + $0x260] sm:$0xff]  ;;  %v457_v19 = vld [vmem:[%s12973_s10 + $0x268] sm:$0xff]  ;;  %v11127_v21 = vcombine.low %v445_v10, %v449_v11 }
  0x53   : > { %v11134_v22 = vcombine.high %v452_v16, %v456_v17  ;;  %v11136_v23 = vcombine.high %v453_v18, %v457_v19  ;;  %v460_v24 = vld [vmem:[%s12973_s10 + $0x280] sm:$0xff]  ;;  %v461_v26 = vld [vmem:[%s12973_s10 + $0x288] sm:$0xff]  ;;  %v11133_v28 = vcombine.low %v452_v16, %v456_v17  ;;  %v11135_v29 = vcombine.low %v453_v18, %v457_v19 }
  0x54   : > { %2743 = vmatpush1.bf16.msra.mxu0 %v11093_v47  ;;  %2866 = vmatpush1.bf16.msra.mxu1 %v11095_v48  ;;  %v464_v25 = vld [vmem:[%s12973_s10 + $0x2a0] sm:$0xff]  ;;  %v465_v27 = vld [vmem:[%s12973_s10 + $0x2a8] sm:$0xff] }
  0x55   : > { %2744 = vmatprep.subr.bf16.mxu0 %v11102_v49  ;;  %2867 = vmatprep.subr.bf16.mxu1 %v11104_v50  ;;  %v11142_v30 = vcombine.high %v460_v24, %v464_v25  ;;  %v11144_v31 = vcombine.high %v461_v26, %v465_v27  ;;  %v468_v32 = vld [vmem:[%s12973_s10 + $0x2c0] sm:$0xff]  ;;  %v469_v34 = vld [vmem:[%s12973_s10 + $0x2c8] sm:$0xff]  ;;  %v11141_v36 = vcombine.low %v460_v24, %v464_v25 }
  0x56   : > { %v472_v33 = vld [vmem:[%s12973_s10 + $0x2e0] sm:$0xff]  ;;  %v473_v35 = vld [vmem:[%s12973_s10 + $0x2e8] sm:$0xff]  ;;  %v11143_v37 = vcombine.low %v461_v26, %v465_v27  ;;  %v13085_v25 = vpack.c.bf16 %v13028_v63, %v13028_v63 }
  0x57   : > { %v11150_v38 = vcombine.high %v468_v32, %v472_v33  ;;  %v11152_v39 = vcombine.high %v469_v34, %v473_v35  ;;  %v476_v40 = vld [vmem:[%s12973_s10 + $0x300] sm:$0xff]  ;;  %v477_v42 = vld [vmem:[%s12973_s10 + $0x308] sm:$0xff]  ;;  %v11149_v45 = vcombine.low %v468_v32, %v472_v33  ;;  %v11151_v46 = vcombine.low %v469_v34, %v473_v35 }
  0x58   : > { %2745 = vmatpush1.bf16.msra.mxu0 %v11101_v56  ;;  %2868 = vmatpush1.bf16.msra.mxu1 %v11103_v57  ;;  %v480_v41 = vld [vmem:[%s12973_s10 + $0x320] sm:$0xff]  ;;  %v481_v43 = vld [vmem:[%s12973_s10 + $0x328] sm:$0xff] }
  0x59   : > { %2746 = vmatprep.subr.bf16.mxu0 %v11110_v58  ;;  %2869 = vmatprep.subr.bf16.mxu1 %v11112_v60  ;;  %v11158_v47 = vcombine.high %v476_v40, %v480_v41  ;;  %v11160_v48 = vcombine.high %v477_v42, %v481_v43  ;;  %v484_v49 = vld [vmem:[%s12973_s10 + $0x340] sm:$0xff]  ;;  %v485_v51 = vld [vmem:[%s12973_s10 + $0x348] sm:$0xff]  ;;  %v11157_v54 = vcombine.low %v476_v40, %v480_v41 }
  0x5a   : > { %v488_v50 = vld [vmem:[%s12973_s10 + $0x360] sm:$0xff]  ;;  %v489_v52 = vld [vmem:[%s12973_s10 + $0x368] sm:$0xff]  ;;  %v11159_v55 = vcombine.low %v477_v42, %v481_v43 }
  0x5b   : > { %v11166_v56 = vcombine.high %v484_v49, %v488_v50  ;;  %v11168_v57 = vcombine.high %v485_v51, %v489_v52  ;;  %v492_v58 = vld [vmem:[%s12973_s10 + $0x380] sm:$0xff]  ;;  %v493_v61 = vld [vmem:[%s12973_s10 + $0x388] sm:$0xff]  ;;  %v11165_v0 = vcombine.low %v484_v49, %v488_v50  ;;  %v11167_v1 = vcombine.low %v485_v51, %v489_v52 }
  0x5c   : > { %2747 = vmatpush1.bf16.msra.mxu0 %v11109_v2  ;;  %2870 = vmatpush1.bf16.msra.mxu1 %v11111_v4  ;;  %v496_v60 = vld [vmem:[%s12973_s10 + $0x3a0] sm:$0xff]  ;;  %v497_v62 = vld [vmem:[%s12973_s10 + $0x3a8] sm:$0xff] }
  0x5d   : > { %2748 = vmatprep.subr.bf16.mxu0 %v11118_v5  ;;  %2871 = vmatprep.subr.bf16.mxu1 %v11120_v6  ;;  %v11174_v2 = vcombine.high %v492_v58, %v496_v60  ;;  %v11176_v3 = vcombine.high %v493_v61, %v497_v62  ;;  %v500_v4 = vld [vmem:[%s12973_s10 + $0x3c0] sm:$0xff]  ;;  %v340_v6 = vcombine.high %v13022_v59, %v13022_v59  ;;  %v501_v7 = vld [vmem:[%s12973_s10 + $0x3c8] sm:$0xff] }
  0x5e   : > { %v504_v5 = vld [vmem:[%s12973_s10 + $0x3e0] sm:$0xff]  ;;  %v505_v8 = vld [vmem:[%s12973_s10 + $0x3e8] sm:$0xff]  ;;  %v11173_v10 = vcombine.low %v492_v58, %v496_v60  ;;  %v11175_v11 = vcombine.low %v493_v61, %v497_v62 }
  0x5f   : > { %v13075_v16 = vrot.slane %v340_v6, %v13015_v53  ;;  %v509_v59 = vld [vmem:[%s12973_s10 + $0x408] sm:$0xff]  ;;  %v11181_v18 = vcombine.low %v500_v4, %v504_v5  ;;  %v11183_v19 = vcombine.low %v501_v7, %v505_v8  ;;  %v524_v32 = vld [vmem:[%s12973_s10 + $0x480] sm:$0xff] }
  0x60   : > { %2749 = vmatpush1.bf16.msra.mxu0 %v11117_v12  ;;  %2872 = vmatpush1.bf16.msra.mxu1 %v11119_v13  ;;  %v11182_v12 = vcombine.high %v500_v4, %v504_v5  ;;  %v11184_v13 = vcombine.high %v501_v7, %v505_v8  ;;  %v513_v17 = vld [vmem:[%s12973_s10 + $0x428] sm:$0xff]  ;;  %v528_v33 = vld [vmem:[%s12973_s10 + $0x4a0] sm:$0xff] }
  0x61   : > { %2750 = vmatprep.subr.bf16.mxu0 %v11126_v14  ;;  %2873 = vmatprep.subr.bf16.mxu1 %v11128_v15  ;;  %v508_v14 = vld [vmem:[%s12973_s10 + $0x400] sm:$0xff]  ;;  %v356_v24 = vcombine.high %v13075_v16, %v13075_v16  ;;  %v517_v26 = vld [vmem:[%s12973_s10 + $0x448] sm:$0xff] }
  0x62   : > { %v512_v15 = vld [vmem:[%s12973_s10 + $0x420] sm:$0xff]  ;;  %v521_v27 = vld [vmem:[%s12973_s10 + $0x468] sm:$0xff] }
  0x63   : > { %v13091_v34 = vpack.c.bf16 %v356_v24, %v356_v24  ;;  %v525_v63 = vld [vmem:[%s12973_s10 + $0x488] sm:$0xff]  ;;  %v532_v40 = vld [vmem:[%s12973_s10 + $0x4c0] sm:$0xff] }
  0x64   : > { %2751 = vmatpush1.bf16.msra.mxu0 %v11125_v20  ;;  %2874 = vmatpush1.bf16.msra.mxu1 %v11127_v21  ;;  %v11190_v20 = vcombine.high %v508_v14, %v512_v15  ;;  %v11192_v21 = vcombine.high %v509_v59, %v513_v17  ;;  %v529_v35 = vld [vmem:[%s12973_s10 + $0x4a8] sm:$0xff]  ;;  %v536_v41 = vld [vmem:[%s12973_s10 + $0x4e0] sm:$0xff] }
  0x65   : > { %2752 = vmatprep.subr.bf16.mxu0 %v11134_v22  ;;  %2875 = vmatprep.subr.bf16.mxu1 %v11136_v23  ;;  %v516_v22 = vld [vmem:[%s12973_s10 + $0x440] sm:$0xff]  ;;  %v533_v42 = vld [vmem:[%s12973_s10 + $0x4c8] sm:$0xff] }
  0x66   : > { %v520_v23 = vld [vmem:[%s12973_s10 + $0x460] sm:$0xff]  ;;  %v537_v43 = vld [vmem:[%s12973_s10 + $0x4e8] sm:$0xff] }
  0x67   : > { %v540_v49 = vld [vmem:[%s12973_s10 + $0x500] sm:$0xff]  ;;  %v541_v51 = vld [vmem:[%s12973_s10 + $0x508] sm:$0xff] }
  0x68   : > { %2753 = vmatpush1.bf16.msra.mxu0 %v11133_v28  ;;  %2876 = vmatpush1.bf16.msra.mxu1 %v11135_v29  ;;  %v11189_v28 = vcombine.low %v508_v14, %v512_v15  ;;  %v11191_v29 = vcombine.low %v509_v59, %v513_v17  ;;  %v544_v50 = vld [vmem:[%s12973_s10 + $0x520] sm:$0xff]  ;;  %v545_v52 = vld [vmem:[%s12973_s10 + $0x528] sm:$0xff] }
  0x69   : > { %2754 = vmatprep.subr.bf16.mxu0 %v11142_v30  ;;  %2877 = vmatprep.subr.bf16.mxu1 %v11144_v31  ;;  %v11198_v30 = vcombine.high %v516_v22, %v520_v23  ;;  %v11200_v31 = vcombine.high %v517_v26, %v521_v27  ;;  %v548_v58 = vld [vmem:[%s12973_s10 + $0x540] sm:$0xff]  ;;  %v549_v61 = vld [vmem:[%s12973_s10 + $0x548] sm:$0xff] }
  0x6a   : > { %v552_v60 = vld [vmem:[%s12973_s10 + $0x560] sm:$0xff]  ;;  %v553_v62 = vld [vmem:[%s12973_s10 + $0x568] sm:$0xff] }
  0x6b   : > { %v556_v4 = vld [vmem:[%s12973_s10 + $0x580] sm:$0xff]  ;;  %v557_v6 = vld [vmem:[%s12973_s10 + $0x588] sm:$0xff]  ;;  %v11229_v8 = vcombine.low %v548_v58, %v552_v60 }
  0x6c   : > { %2755 = vmatpush1.bf16.msra.mxu0 %v11141_v36  ;;  %2878 = vmatpush1.bf16.msra.mxu1 %v11143_v37  ;;  %v11197_v36 = vcombine.low %v516_v22, %v520_v23  ;;  %v11199_v37 = vcombine.low %v517_v26, %v521_v27  ;;  %v560_v5 = vld [vmem:[%s12973_s10 + $0x5a0] sm:$0xff]  ;;  %v561_v7 = vld [vmem:[%s12973_s10 + $0x5a8] sm:$0xff] }
  0x6d   : > { %2756 = vmatprep.subr.bf16.mxu0 %v11150_v38  ;;  %2879 = vmatprep.subr.bf16.mxu1 %v11152_v39  ;;  %v11206_v38 = vcombine.high %v524_v32, %v528_v33  ;;  %v11208_v39 = vcombine.high %v525_v63, %v529_v35  ;;  %v568_v14 = vld [vmem:[%s12973_s10 + $0x5e0] sm:$0xff]  ;;  %v565_v15 = vld [vmem:[%s12973_s10 + $0x5c8] sm:$0xff]  ;;  %v11237_v17 = vcombine.low %v556_v4, %v560_v5 }
  0x6e   : > { %v569_v59 = vld [vmem:[%s12973_s10 + $0x5e8] sm:$0xff]  ;;  %v576_v22 = vld [vmem:[%s12973_s10 + $0x620] sm:$0xff] }
  0x6f   : > { %v573_v23 = vld [vmem:[%s12973_s10 + $0x608] sm:$0xff]  ;;  %v11247_v27 = vcombine.low %v565_v15, %v569_v59 }
  0x70   : > { %2757 = vmatpush1.bf16.msra.mxu0 %v11149_v45  ;;  %2880 = vmatpush1.bf16.msra.mxu1 %v11151_v46  ;;  %v11205_v45 = vcombine.low %v524_v32, %v528_v33  ;;  %v11207_v46 = vcombine.low %v525_v63, %v529_v35  ;;  %v577_v24 = vld [vmem:[%s12973_s10 + $0x628] sm:$0xff] }
  0x71   : > { %2758 = vmatprep.subr.bf16.mxu0 %v11158_v47  ;;  %2881 = vmatprep.subr.bf16.mxu1 %v11160_v48  ;;  %v11214_v47 = vcombine.high %v532_v40, %v536_v41  ;;  %v11216_v48 = vcombine.high %v533_v42, %v537_v43  ;;  %v581_v32 = vld [vmem:[%s12973_s10 + $0x648] sm:$0xff]  ;;  %v11255_v35 = vcombine.low %v573_v23, %v577_v24 }
  0x72   : > { %v585_v33 = vld [vmem:[%s12973_s10 + $0x668] sm:$0xff] }
  0x74   : > { %2759 = vmatpush1.bf16.msra.mxu0 %v11157_v54  ;;  %2882 = vmatpush1.bf16.msra.mxu1 %v11159_v55  ;;  %v11213_v54 = vcombine.low %v532_v40, %v536_v41  ;;  %v11215_v55 = vcombine.low %v533_v42, %v537_v43  ;;  %v589_v40 = vld [vmem:[%s12973_s10 + $0x688] sm:$0xff]  ;;  %v11263_v43 = vcombine.low %v581_v32, %v585_v33 }
  0x75   : > { %2760 = vmatprep.subr.bf16.mxu0 %v11166_v56  ;;  %2883 = vmatprep.subr.bf16.mxu1 %v11168_v57  ;;  %v11222_v56 = vcombine.high %v540_v49, %v544_v50  ;;  %v11224_v57 = vcombine.high %v541_v51, %v545_v52  ;;  %v593_v41 = vld [vmem:[%s12973_s10 + $0x6a8] sm:$0xff] }
  0x78   : > { %2761 = vmatpush1.bf16.msra.mxu0 %v11165_v0  ;;  %2884 = vmatpush1.bf16.msra.mxu1 %v11167_v1  ;;  %v11221_v0 = vcombine.low %v540_v49, %v544_v50  ;;  %v11223_v1 = vcombine.low %v541_v51, %v545_v52  ;;  %v597_v49 = vld [vmem:[%s12973_s10 + $0x6c8] sm:$0xff]  ;;  %v11271_v52 = vcombine.low %v589_v40, %v593_v41 }
  0x79   : > { %2762 = vmatprep.subr.bf16.mxu0 %v11174_v2  ;;  %2885 = vmatprep.subr.bf16.mxu1 %v11176_v3  ;;  %v11230_v2 = vcombine.high %v548_v58, %v552_v60  ;;  %v11232_v3 = vcombine.high %v549_v61, %v553_v62  ;;  %v601_v50 = vld [vmem:[%s12973_s10 + $0x6e8] sm:$0xff] }
  0x7a   : > { %v605_v58 = vld [vmem:[%s12973_s10 + $0x708] sm:$0xff] }
  0x7b   : > { %v609_v60 = vld [vmem:[%s12973_s10 + $0x728] sm:$0xff] }
  0x7c   : > { %2763 = vmatpush1.bf16.msra.mxu0 %v11173_v10  ;;  %2886 = vmatpush1.bf16.msra.mxu1 %v11175_v11  ;;  %v11231_v10 = vcombine.low %v549_v61, %v553_v62  ;;  %v11238_v11 = vcombine.high %v556_v4, %v560_v5  ;;  %v11279_v62 = vcombine.low %v597_v49, %v601_v50  ;;  %v613_v4 = vld [vmem:[%s12973_s10 + $0x748] sm:$0xff] }
  0x7d   : > { %2764 = vmatprep.subr.bf16.mxu0 %v11182_v12  ;;  %2887 = vmatprep.subr.bf16.mxu1 %v11184_v13  ;;  %v11240_v12 = vcombine.high %v557_v6, %v561_v7  ;;  %v564_v13 = vld [vmem:[%s12973_s10 + $0x5c0] sm:$0xff]  ;;  %v617_v5 = vld [vmem:[%s12973_s10 + $0x768] sm:$0xff] }
  0x7e   : > { %v11245_v26 = vcombine.low %v564_v13, %v568_v14 }
  0x80   : > { %2765 = vmatpush1.bf16.msra.mxu0 %v11181_v18  ;;  %2888 = vmatpush1.bf16.msra.mxu1 %v11183_v19  ;;  %v11239_v18 = vcombine.low %v557_v6, %v561_v7  ;;  %v11246_v19 = vcombine.high %v564_v13, %v568_v14  ;;  %v11287_v7 = vcombine.low %v605_v58, %v609_v60  ;;  %v621_v13 = vld [vmem:[%s12973_s10 + $0x788] sm:$0xff] }
  0x81   : > { %2775 = vmatprep.subr.bf16.mxu0 %v11190_v20  ;;  %2898 = vmatprep.subr.bf16.mxu1 %v11192_v21  ;;  %v11248_v20 = vcombine.high %v565_v15, %v569_v59  ;;  %v572_v21 = vld [vmem:[%s12973_s10 + $0x600] sm:$0xff]  ;;  %v625_v14 = vld [vmem:[%s12973_s10 + $0x7a8] sm:$0xff]  ;;  %v11295_v59 = vcombine.low %v613_v4, %v617_v5 }
  0x82   : > { %v11253_v63 = vcombine.low %v572_v21, %v576_v22 }
  0x83   : > { %2767 = vmatmul.mubr.bf16.vlgmr.msra.gmra.mrb[0].mxu0 %v13085_v25  ;;  %2890 = vmatmul.mubr.bf16.vlgmr.msra.gmra.mrb[0].mxu1 %v13085_v25 }
  0x84   : > { %2776 = vmatpush1.bf16.msra.mxu0 %v11189_v28  ;;  %2899 = vmatpush1.bf16.msra.mxu1 %v11191_v29  ;;  %v11254_v28 = vcombine.high %v572_v21, %v576_v22  ;;  %v11256_v29 = vcombine.high %v573_v23, %v577_v24  ;;  %v629_v21 = vld [vmem:[%s12973_s10 + $0x7c8] sm:$0xff]  ;;  %v11303_v24 = vcombine.low %v621_v13, %v625_v14 }
  0x85   : > { %2777 = vmatprep.subr.bf16.mxu0 %v11198_v30  ;;  %2900 = vmatprep.subr.bf16.mxu1 %v11200_v31  ;;  %v580_v30 = vld [vmem:[%s12973_s10 + $0x640] sm:$0xff]  ;;  %v633_v22 = vld [vmem:[%s12973_s10 + $0x7e8] sm:$0xff] }
  0x86   : > { %2807 = vmatprep.mubr.bf16.mxu0 %v13091_v34  ;;  %2930 = vmatprep.mubr.bf16.mxu1 %v13091_v34  ;;  %v584_v31 = vld [vmem:[%s12973_s10 + $0x660] sm:$0xff] }
  0x87   : > { %v11261_v42 = vcombine.low %v580_v30, %v584_v31 }
  0x88   : > { %2778 = vmatpush1.bf16.msra.mxu0 %v11197_v36  ;;  %2901 = vmatpush1.bf16.msra.mxu1 %v11199_v37  ;;  %v11262_v36 = vcombine.high %v580_v30, %v584_v31  ;;  %v11264_v37 = vcombine.high %v581_v32, %v585_v33  ;;  %v637_v30 = vld [vmem:[%s12973_s10 + $0x808] sm:$0xff] }
  0x89   : > { %2779 = vmatprep.subr.bf16.mxu0 %v11206_v38  ;;  %2902 = vmatprep.subr.bf16.mxu1 %v11208_v39  ;;  %v588_v38 = vld [vmem:[%s12973_s10 + $0x680] sm:$0xff]  ;;  %v641_v31 = vld [vmem:[%s12973_s10 + $0x828] sm:$0xff] }
  0x8a   : > { %v592_v39 = vld [vmem:[%s12973_s10 + $0x6a0] sm:$0xff]  ;;  %v13158_v32 = vld.sshfl [vmem:[%s14749_s0 + $0x8] sm:$0x33 pattern:$0x76325410] }
  0x8b   : > { %v11269_v51 = vcombine.low %v588_v38, %v592_v39 }
  0x8c   : > { %2780 = vmatpush1.bf16.msra.mxu0 %v11205_v45  ;;  %2903 = vmatpush1.bf16.msra.mxu1 %v11207_v46  ;;  %v11270_v45 = vcombine.high %v588_v38, %v592_v39  ;;  %v11272_v46 = vcombine.high %v589_v40, %v593_v41  ;;  %v648_v38 = vld [vmem:[%s12973_s10 + $0x860] sm:$0xff]  ;;  %v364_v39 = vcombine.high %v13158_v32, %v13158_v32  ;;  %v645_v41 = vld [vmem:[%s12973_s10 + $0x848] sm:$0xff] }
  0x8d   : > { %2781 = vmatprep.subr.bf16.mxu0 %v11214_v47  ;;  %2904 = vmatprep.subr.bf16.mxu1 %v11216_v48  ;;  %v596_v47 = vld [vmem:[%s12973_s10 + $0x6c0] sm:$0xff]  ;;  %v13166_v40 = vpack.c.bf16 %v13075_v16, %v13075_v16  ;;  %v653_v16 = vld [vmem:[%s12973_s10 + $0x888] sm:$0xff] }
  0x8e   : > { %v600_v48 = vld [vmem:[%s12973_s10 + $0x6e0] sm:$0xff] }
  0x8f   : > { %v11277_v61 = vcombine.low %v596_v47, %v600_v48 }
  0x90   : > { %2782 = vmatpush1.bf16.msra.mxu0 %v11213_v54  ;;  %2905 = vmatpush1.bf16.msra.mxu1 %v11215_v55  ;;  %v11278_v54 = vcombine.high %v596_v47, %v600_v48  ;;  %v11280_v55 = vcombine.high %v597_v49, %v601_v50  ;;  %v652_v48 = vld [vmem:[%s12973_s10 + $0x880] sm:$0xff]  ;;  %v13172_v50 = vpack.c.bf16 %v364_v39, %v364_v39 }
  0x91   : > { %2783 = vmatprep.subr.bf16.mxu0 %v11222_v56  ;;  %2906 = vmatprep.subr.bf16.mxu1 %v11224_v57  ;;  %v604_v56 = vld [vmem:[%s12973_s10 + $0x700] sm:$0xff] }
  0x92   : > { %v608_v57 = vld [vmem:[%s12973_s10 + $0x720] sm:$0xff] }
  0x93   : > { %v11285_v6 = vcombine.low %v604_v56, %v608_v57  ;;  %v656_v49 = vld [vmem:[%s12973_s10 + $0x8a0] sm:$0xff] }
  0x94   : > { %2784 = vmatpush1.bf16.msra.mxu0 %v11221_v0  ;;  %2907 = vmatpush1.bf16.msra.mxu1 %v11223_v1  ;;  %v11286_v0 = vcombine.high %v604_v56, %v608_v57  ;;  %v11288_v1 = vcombine.high %v605_v58, %v609_v60  ;;  %v660_v57 = vld [vmem:[%s12973_s10 + $0x8c0] sm:$0xff]  ;;  %v661_v60 = vld [vmem:[%s12973_s10 + $0x8c8] sm:$0xff] }
  0x95   : > { %2785 = vmatprep.subr.bf16.mxu0 %v11230_v2  ;;  %2908 = vmatprep.subr.bf16.mxu1 %v11232_v3  ;;  %v612_v2 = vld [vmem:[%s12973_s10 + $0x740] sm:$0xff] }
  0x96   : > { %v616_v3 = vld [vmem:[%s12973_s10 + $0x760] sm:$0xff] }
  0x97   : > { %v11293_v15 = vcombine.low %v612_v2, %v616_v3  ;;  %v664_v58 = vld [vmem:[%s12973_s10 + $0x8e0] sm:$0xff] }
  0x98   : > { %2786 = vmatpush1.bf16.msra.mxu0 %v11229_v8  ;;  %2909 = vmatpush1.bf16.msra.mxu1 %v11231_v10  ;;  %v11294_v8 = vcombine.high %v612_v2, %v616_v3  ;;  %v11296_v10 = vcombine.high %v613_v4, %v617_v5  ;;  %v668_v3 = vld [vmem:[%s12973_s10 + $0x900] sm:$0xff]  ;;  %v669_v5 = vld [vmem:[%s12973_s10 + $0x908] sm:$0xff] }
  0x99   : > { %2787 = vmatprep.subr.bf16.mxu0 %v11238_v11  ;;  %2910 = vmatprep.subr.bf16.mxu1 %v11240_v12  ;;  %v620_v11 = vld [vmem:[%s12973_s10 + $0x780] sm:$0xff] }
  0x9a   : > { %v624_v12 = vld [vmem:[%s12973_s10 + $0x7a0] sm:$0xff] }
  0x9b   : > { %v11301_v23 = vcombine.low %v620_v11, %v624_v12  ;;  %v672_v4 = vld [vmem:[%s12973_s10 + $0x920] sm:$0xff] }
  0x9c   : > { %2788 = vmatpush1.bf16.msra.mxu0 %v11237_v17  ;;  %2911 = vmatpush1.bf16.msra.mxu1 %v11239_v18  ;;  %v11302_v17 = vcombine.high %v620_v11, %v624_v12  ;;  %v11304_v18 = vcombine.high %v621_v13, %v625_v14  ;;  %v676_v12 = vld [vmem:[%s12973_s10 + $0x940] sm:$0xff]  ;;  %v677_v14 = vld [vmem:[%s12973_s10 + $0x948] sm:$0xff] }
  0x9d   : > { %2789 = vmatprep.subr.bf16.mxu0 %v11246_v19  ;;  %2912 = vmatprep.subr.bf16.mxu1 %v11248_v20  ;;  %v628_v19 = vld [vmem:[%s12973_s10 + $0x7c0] sm:$0xff] }
  0x9e   : > { %v632_v20 = vld [vmem:[%s12973_s10 + $0x7e0] sm:$0xff] }
  0x9f   : > { %v11309_v33 = vcombine.low %v628_v19, %v632_v20  ;;  %v680_v13 = vld [vmem:[%s12973_s10 + $0x960] sm:$0xff] }
  0xa0   : > { %2790 = vmatpush1.bf16.msra.mxu0 %v11245_v26  ;;  %2913 = vmatpush1.bf16.msra.mxu1 %v11247_v27  ;;  %v11310_v26 = vcombine.high %v628_v19, %v632_v20  ;;  %v11312_v27 = vcombine.high %v629_v21, %v633_v22  ;;  %v684_v20 = vld [vmem:[%s12973_s10 + $0x980] sm:$0xff] }
  0xa1   : > { %2791 = vmatprep.subr.bf16.mxu0 %v11254_v28  ;;  %2914 = vmatprep.subr.bf16.mxu1 %v11256_v29  ;;  %v636_v28 = vld [vmem:[%s12973_s10 + $0x800] sm:$0xff] }
  0xa2   : > { %v640_v29 = vld [vmem:[%s12973_s10 + $0x820] sm:$0xff] }
  0xa3   : > { %v704_v39 = vld [vmem:[%s12973_s10 + $0xa20] sm:$0xff] }
  0xa4   : > { %2792 = vmatpush1.bf16.msra.mxu0 %v11253_v63  ;;  %2915 = vmatpush1.bf16.msra.mxu1 %v11255_v35  ;;  %v11311_v63 = vcombine.low %v629_v21, %v633_v22  ;;  %v11318_v35 = vcombine.high %v636_v28, %v640_v29  ;;  %v688_v21 = vld [vmem:[%s12973_s10 + $0x9a0] sm:$0xff]  ;;  %v685_v22 = vld [vmem:[%s12973_s10 + $0x988] sm:$0xff] }
  0xa5   : > { %2793 = vmatprep.subr.bf16.mxu0 %v11262_v36  ;;  %2916 = vmatprep.subr.bf16.mxu1 %v11264_v37  ;;  %v11320_v36 = vcombine.high %v637_v30, %v641_v31  ;;  %v644_v37 = vld [vmem:[%s12973_s10 + $0x840] sm:$0xff] }
  0xa8   : > { %2794 = vmatpush1.bf16.msra.mxu0 %v11261_v42  ;;  %2917 = vmatpush1.bf16.msra.mxu1 %v11263_v43  ;;  %v649_v42 = vld [vmem:[%s12973_s10 + $0x868] sm:$0xff]  ;;  %v11317_v43 = vcombine.low %v636_v28, %v640_v29  ;;  %v692_v29 = vld [vmem:[%s12973_s10 + $0x9c0] sm:$0xff] }
  0xa9   : > { %2795 = vmatprep.subr.bf16.mxu0 %v11270_v45  ;;  %2918 = vmatprep.subr.bf16.mxu1 %v11272_v46  ;;  %v11319_v45 = vcombine.low %v637_v30, %v641_v31  ;;  %v11326_v46 = vcombine.high %v644_v37, %v648_v38  ;;  %v11328_v47 = vcombine.high %v645_v41, %v649_v42  ;;  %v696_v30 = vld [vmem:[%s12973_s10 + $0x9e0] sm:$0xff]  ;;  %v693_v31 = vld [vmem:[%s12973_s10 + $0x9c8] sm:$0xff] }
  0xac   : > { %2796 = vmatpush1.bf16.msra.mxu0 %v11269_v51  ;;  %2919 = vmatpush1.bf16.msra.mxu1 %v11271_v52  ;;  %v657_v51 = vld [vmem:[%s12973_s10 + $0x8a8] sm:$0xff]  ;;  %v11325_v52 = vcombine.low %v644_v37, %v648_v38  ;;  %v700_v38 = vld [vmem:[%s12973_s10 + $0xa00] sm:$0xff] }
  0xad   : > { %2797 = vmatprep.subr.bf16.mxu0 %v11278_v54  ;;  %2920 = vmatprep.subr.bf16.mxu1 %v11280_v55  ;;  %v11327_v54 = vcombine.low %v645_v41, %v649_v42  ;;  %v11334_v55 = vcombine.high %v652_v48, %v656_v49  ;;  %v11336_v56 = vcombine.high %v653_v16, %v657_v51  ;;  %v701_v41 = vld [vmem:[%s12973_s10 + $0xa08] sm:$0xff] }
  0xae   : > { %v705_v42 = vld [vmem:[%s12973_s10 + $0xa28] sm:$0xff] }
  0xb0   : > { %2798 = vmatpush1.bf16.msra.mxu0 %v11277_v61  ;;  %2921 = vmatpush1.bf16.msra.mxu1 %v11279_v62  ;;  %v665_v61 = vld [vmem:[%s12973_s10 + $0x8e8] sm:$0xff]  ;;  %v11333_v62 = vcombine.low %v652_v48, %v656_v49  ;;  %v708_v48 = vld [vmem:[%s12973_s10 + $0xa40] sm:$0xff] }
  0xb1   : > { %2799 = vmatprep.subr.bf16.mxu0 %v11286_v0  ;;  %2922 = vmatprep.subr.bf16.mxu1 %v11288_v1  ;;  %v11335_v0 = vcombine.low %v653_v16, %v657_v51  ;;  %v11342_v1 = vcombine.high %v660_v57, %v664_v58  ;;  %v11344_v2 = vcombine.high %v661_v60, %v665_v61  ;;  %v712_v49 = vld [vmem:[%s12973_s10 + $0xa60] sm:$0xff]  ;;  %v709_v16 = vld [vmem:[%s12973_s10 + $0xa48] sm:$0xff] }
  0xb2   : > { %v713_v51 = vld [vmem:[%s12973_s10 + $0xa68] sm:$0xff] }
  0xb4   : > { %2800 = vmatpush1.bf16.msra.mxu0 %v11285_v6  ;;  %2923 = vmatpush1.bf16.msra.mxu1 %v11287_v7  ;;  %v673_v6 = vld [vmem:[%s12973_s10 + $0x928] sm:$0xff]  ;;  %v11341_v7 = vcombine.low %v660_v57, %v664_v58  ;;  %v716_v57 = vld [vmem:[%s12973_s10 + $0xa80] sm:$0xff] }
  0xb5   : > { %2801 = vmatprep.subr.bf16.mxu0 %v11294_v8  ;;  %2924 = vmatprep.subr.bf16.mxu1 %v11296_v10  ;;  %v11343_v8 = vcombine.low %v661_v60, %v665_v61  ;;  %v11350_v10 = vcombine.high %v668_v3, %v672_v4  ;;  %v11352_v11 = vcombine.high %v669_v5, %v673_v6  ;;  %v720_v58 = vld [vmem:[%s12973_s10 + $0xaa0] sm:$0xff]  ;;  %v717_v60 = vld [vmem:[%s12973_s10 + $0xa88] sm:$0xff] }
  0xb6   : > { %v721_v61 = vld [vmem:[%s12973_s10 + $0xaa8] sm:$0xff] }
  0xb8   : > { %2802 = vmatpush1.bf16.msra.mxu0 %v11293_v15  ;;  %2925 = vmatpush1.bf16.msra.mxu1 %v11295_v59  ;;  %v681_v15 = vld [vmem:[%s12973_s10 + $0x968] sm:$0xff]  ;;  %v11349_v59 = vcombine.low %v668_v3, %v672_v4  ;;  %v724_v3 = vld [vmem:[%s12973_s10 + $0xac0] sm:$0xff] }
  0xb9   : > { %2803 = vmatprep.subr.bf16.mxu0 %v11302_v17  ;;  %2926 = vmatprep.subr.bf16.mxu1 %v11304_v18  ;;  %v11351_v17 = vcombine.low %v669_v5, %v673_v6  ;;  %v11358_v18 = vcombine.high %v676_v12, %v680_v13  ;;  %v11360_v19 = vcombine.high %v677_v14, %v681_v15  ;;  %v728_v4 = vld [vmem:[%s12973_s10 + $0xae0] sm:$0xff]  ;;  %v725_v5 = vld [vmem:[%s12973_s10 + $0xac8] sm:$0xff] }
  0xba   : > { %v729_v6 = vld [vmem:[%s12973_s10 + $0xae8] sm:$0xff] }
  0xbc   : > { %2804 = vmatpush1.bf16.msra.mxu0 %v11301_v23  ;;  %2927 = vmatpush1.bf16.msra.mxu1 %v11303_v24  ;;  %v689_v23 = vld [vmem:[%s12973_s10 + $0x9a8] sm:$0xff]  ;;  %v11357_v24 = vcombine.low %v676_v12, %v680_v13  ;;  %v732_v12 = vld [vmem:[%s12973_s10 + $0xb00] sm:$0xff] }
  0xbd   : > { %2805 = vmatprep.subr.bf16.mxu0 %v11310_v26  ;;  %2928 = vmatprep.subr.bf16.mxu1 %v11312_v27  ;;  %v11359_v26 = vcombine.low %v677_v14, %v681_v15  ;;  %v11366_v27 = vcombine.high %v684_v20, %v688_v21  ;;  %v11368_v28 = vcombine.high %v685_v22, %v689_v23  ;;  %v736_v13 = vld [vmem:[%s12973_s10 + $0xb20] sm:$0xff]  ;;  %v733_v14 = vld [vmem:[%s12973_s10 + $0xb08] sm:$0xff] }
  0xbe   : > { %v737_v15 = vld [vmem:[%s12973_s10 + $0xb28] sm:$0xff] }
  0xc0   : > { %2806 = vmatpush1.bf16.msra.mxu0 %v11309_v33  ;;  %2929 = vmatpush1.bf16.msra.mxu1 %v11311_v63  ;;  %v697_v33 = vld [vmem:[%s12973_s10 + $0x9e8] sm:$0xff]  ;;  %v11365_v63 = vcombine.low %v684_v20, %v688_v21  ;;  %v740_v20 = vld [vmem:[%s12973_s10 + $0xb40] sm:$0xff] }
  0xc1   : > { %2816 = vmatprep.subr.bf16.mxu0 %v11318_v35  ;;  %2939 = vmatprep.subr.bf16.mxu1 %v11320_v36  ;;  %v11367_v35 = vcombine.low %v685_v22, %v689_v23  ;;  %v11374_v36 = vcombine.high %v692_v29, %v696_v30  ;;  %v11376_v37 = vcombine.high %v693_v31, %v697_v33  ;;  %v744_v21 = vld [vmem:[%s12973_s10 + $0xb60] sm:$0xff]  ;;  %v741_v22 = vld [vmem:[%s12973_s10 + $0xb48] sm:$0xff] }
  0xc2   : > { %v745_v23 = vld [vmem:[%s12973_s10 + $0xb68] sm:$0xff] }
  0xc3   : > { %2808 = vmatmul.mubr.bf16.vlgmr.msra.gmra.mrb[0].mxu0 %v13166_v40  ;;  %2931 = vmatmul.mubr.bf16.vlgmr.msra.gmra.mrb[0].mxu1 %v13166_v40 }
  0xc4   : > { %2817 = vmatpush1.bf16.msra.mxu0 %v11317_v43  ;;  %2940 = vmatpush1.bf16.msra.mxu1 %v11319_v45  ;;  %v11373_v43 = vcombine.low %v692_v29, %v696_v30  ;;  %v11375_v45 = vcombine.low %v693_v31, %v697_v33  ;;  %v748_v29 = vld [vmem:[%s12973_s10 + $0xb80] sm:$0xff]  ;;  %v749_v31 = vld [vmem:[%s12973_s10 + $0xb88] sm:$0xff] }
  0xc5   : > { %2818 = vmatprep.subr.bf16.mxu0 %v11326_v46  ;;  %2941 = vmatprep.subr.bf16.mxu1 %v11328_v47  ;;  %v11382_v46 = vcombine.high %v700_v38, %v704_v39  ;;  %v11384_v47 = vcombine.high %v701_v41, %v705_v42  ;;  %v752_v30 = vld [vmem:[%s12973_s10 + $0xba0] sm:$0xff]  ;;  %v753_v33 = vld [vmem:[%s12973_s10 + $0xba8] sm:$0xff] }
  0xc6   : > { %2848 = vmatprep.mubr.bf16.mxu0 %v13172_v50  ;;  %2971 = vmatprep.mubr.bf16.mxu1 %v13172_v50 }
  0xc8   : > { %2819 = vmatpush1.bf16.msra.mxu0 %v11325_v52  ;;  %2942 = vmatpush1.bf16.msra.mxu1 %v11327_v54  ;;  %v11381_v52 = vcombine.low %v700_v38, %v704_v39  ;;  %v11383_v54 = vcombine.low %v701_v41, %v705_v42  ;;  %v756_v38 = vld [vmem:[%s12973_s10 + $0xbc0] sm:$0xff]  ;;  %v757_v41 = vld [vmem:[%s12973_s10 + $0xbc8] sm:$0xff] }
  0xc9   : > { %2820 = vmatprep.subr.bf16.mxu0 %v11334_v55  ;;  %2943 = vmatprep.subr.bf16.mxu1 %v11336_v56  ;;  %v11390_v55 = vcombine.high %v708_v48, %v712_v49  ;;  %v11392_v56 = vcombine.high %v709_v16, %v713_v51  ;;  %v760_v39 = vld [vmem:[%s12973_s10 + $0xbe0] sm:$0xff]  ;;  %v761_v42 = vld [vmem:[%s12973_s10 + $0xbe8] sm:$0xff] }
  0xcc   : > { %2821 = vmatpush1.bf16.msra.mxu0 %v11333_v62  ;;  %2944 = vmatpush1.bf16.msra.mxu1 %v11335_v0  ;;  %v11389_v62 = vcombine.low %v708_v48, %v712_v49  ;;  %v11391_v0 = vcombine.low %v709_v16, %v713_v51  ;;  %v382_v48 = vld [vmem:[%s12973_s10 + $0x10] sm:$0xff]  ;;  %v383_v16 = vld [vmem:[%s12973_s10 + $0x18] sm:$0xff] }
  0xcd   : > { %2822 = vmatprep.subr.bf16.mxu0 %v11342_v1  ;;  %2945 = vmatprep.subr.bf16.mxu1 %v11344_v2  ;;  %v11398_v1 = vcombine.high %v716_v57, %v720_v58  ;;  %v11400_v2 = vcombine.high %v717_v60, %v721_v61  ;;  %v386_v49 = vld [vmem:[%s12973_s10 + $0x30] sm:$0xff]  ;;  %v387_v51 = vld [vmem:[%s12973_s10 + $0x38] sm:$0xff] }
  0xd0   : > { %2823 = vmatpush1.bf16.msra.mxu0 %v11341_v7  ;;  %2946 = vmatpush1.bf16.msra.mxu1 %v11343_v8  ;;  %v11397_v7 = vcombine.low %v716_v57, %v720_v58  ;;  %v11399_v8 = vcombine.low %v717_v60, %v721_v61  ;;  %v390_v57 = vld [vmem:[%s12973_s10 + $0x50] sm:$0xff]  ;;  %v13240_v60 = vpack.c.bf16 %v13158_v32, %v13158_v32  ;;  %v391_v61 = vld [vmem:[%s12973_s10 + $0x58] sm:$0xff] }
  0xd1   : > { %2824 = vmatprep.subr.bf16.mxu0 %v11350_v10  ;;  %2947 = vmatprep.subr.bf16.mxu1 %v11352_v11  ;;  %v11406_v10 = vcombine.high %v724_v3, %v728_v4  ;;  %v11408_v11 = vcombine.high %v725_v5, %v729_v6  ;;  %v394_v58 = vld [vmem:[%s12973_s10 + $0x70] sm:$0xff]  ;;  %v399_v32 = vld [vmem:[%s12973_s10 + $0x98] sm:$0xff] }
  0xd4   : > { %2825 = vmatpush1.bf16.msra.mxu0 %v11349_v59  ;;  %2948 = vmatpush1.bf16.msra.mxu1 %v11351_v17  ;;  %v11405_v59 = vcombine.low %v724_v3, %v728_v4  ;;  %v11407_v17 = vcombine.low %v725_v5, %v729_v6  ;;  %v398_v4 = vld [vmem:[%s12973_s10 + $0x90] sm:$0xff]  ;;  %v403_v6 = vld [vmem:[%s12973_s10 + $0xb8] sm:$0xff] }
  0xd5   : > { %2826 = vmatprep.subr.bf16.mxu0 %v11358_v18  ;;  %2949 = vmatprep.subr.bf16.mxu1 %v11360_v19  ;;  %v11414_v18 = vcombine.high %v732_v12, %v736_v13  ;;  %v11416_v19 = vcombine.high %v733_v14, %v737_v15  ;;  %v402_v5 = vld [vmem:[%s12973_s10 + $0xb0] sm:$0xff] }
  0xd8   : > { %2827 = vmatpush1.bf16.msra.mxu0 %v11357_v24  ;;  %2950 = vmatpush1.bf16.msra.mxu1 %v11359_v26  ;;  %v11413_v24 = vcombine.low %v732_v12, %v736_v13  ;;  %v11415_v26 = vcombine.low %v733_v14, %v737_v15  ;;  %v406_v12 = vld [vmem:[%s12973_s10 + $0xd0] sm:$0xff]  ;;  %v407_v14 = vld [vmem:[%s12973_s10 + $0xd8] sm:$0xff] }
  0xd9   : > { %2828 = vmatprep.subr.bf16.mxu0 %v11366_v27  ;;  %2951 = vmatprep.subr.bf16.mxu1 %v11368_v28  ;;  %v11422_v27 = vcombine.high %v740_v20, %v744_v21  ;;  %v11424_v28 = vcombine.high %v741_v22, %v745_v23  ;;  %v410_v13 = vld [vmem:[%s12973_s10 + $0xf0] sm:$0xff]  ;;  %v411_v15 = vld [vmem:[%s12973_s10 + $0xf8] sm:$0xff] }
  0xdc   : > { %2829 = vmatpush1.bf16.msra.mxu0 %v11365_v63  ;;  %2952 = vmatpush1.bf16.msra.mxu1 %v11367_v35  ;;  %v11421_v63 = vcombine.low %v740_v20, %v744_v21  ;;  %v11423_v35 = vcombine.low %v741_v22, %v745_v23  ;;  %v414_v20 = vld [vmem:[%s12973_s10 + $0x110] sm:$0xff]  ;;  %v415_v22 = vld [vmem:[%s12973_s10 + $0x118] sm:$0xff] }
  0xdd   : > { %2830 = vmatprep.subr.bf16.mxu0 %v11374_v36  ;;  %2953 = vmatprep.subr.bf16.mxu1 %v11376_v37  ;;  %v11430_v36 = vcombine.high %v748_v29, %v752_v30  ;;  %v11432_v37 = vcombine.high %v749_v31, %v753_v33  ;;  %v418_v21 = vld [vmem:[%s12973_s10 + $0x130] sm:$0xff]  ;;  %v419_v23 = vld [vmem:[%s12973_s10 + $0x138] sm:$0xff] }
  0xe0   : > { %2831 = vmatpush1.bf16.msra.mxu0 %v11373_v43  ;;  %2954 = vmatpush1.bf16.msra.mxu1 %v11375_v45  ;;  %v11429_v43 = vcombine.low %v748_v29, %v752_v30  ;;  %v11431_v45 = vcombine.low %v749_v31, %v753_v33  ;;  %v426_v29 = vld [vmem:[%s12973_s10 + $0x170] sm:$0xff]  ;;  %v423_v30 = vld [vmem:[%s12973_s10 + $0x158] sm:$0xff]  ;;  %v11097_v33 = vcombine.low %v414_v20, %v418_v21 }
  0xe1   : > { %2832 = vmatprep.subr.bf16.mxu0 %v11382_v46  ;;  %2955 = vmatprep.subr.bf16.mxu1 %v11384_v47  ;;  %v11438_v46 = vcombine.high %v756_v38, %v760_v39  ;;  %v11440_v47 = vcombine.high %v757_v41, %v761_v42  ;;  %v427_v31 = vld [vmem:[%s12973_s10 + $0x178] sm:$0xff] }
  0xe4   : > { %2833 = vmatpush1.bf16.msra.mxu0 %v11381_v52  ;;  %2956 = vmatpush1.bf16.msra.mxu1 %v11383_v54  ;;  %v11437_v52 = vcombine.low %v756_v38, %v760_v39  ;;  %v11439_v54 = vcombine.low %v757_v41, %v761_v42  ;;  %v434_v38 = vld [vmem:[%s12973_s10 + $0x1b0] sm:$0xff]  ;;  %v431_v39 = vld [vmem:[%s12973_s10 + $0x198] sm:$0xff] }
  0xe5   : > { %2834 = vmatprep.subr.bf16.mxu0 %v11390_v55  ;;  %2957 = vmatprep.subr.bf16.mxu1 %v11392_v56  ;;  %v11066_v55 = vcombine.high %v382_v48, %v386_v49  ;;  %v11068_v56 = vcombine.high %v383_v16, %v387_v51  ;;  %v435_v41 = vld [vmem:[%s12973_s10 + $0x1b8] sm:$0xff] }
  0xe8   : > { %2835 = vmatpush1.bf16.msra.mxu0 %v11389_v62  ;;  %2958 = vmatpush1.bf16.msra.mxu1 %v11391_v0  ;;  %v395_v62 = vld [vmem:[%s12973_s10 + $0x78] sm:$0xff]  ;;  %v11065_v0 = vcombine.low %v382_v48, %v386_v49  ;;  %v442_v48 = vld [vmem:[%s12973_s10 + $0x1f0] sm:$0xff] }
  0xe9   : > { %2836 = vmatprep.subr.bf16.mxu0 %v11398_v1  ;;  %2959 = vmatprep.subr.bf16.mxu1 %v11400_v2  ;;  %v11067_v1 = vcombine.low %v383_v16, %v387_v51  ;;  %v11074_v2 = vcombine.high %v390_v57, %v394_v58  ;;  %v11076_v3 = vcombine.high %v391_v61, %v395_v62  ;;  %v439_v49 = vld [vmem:[%s12973_s10 + $0x1d8] sm:$0xff] }
  0xea   : > { %v443_v16 = vld [vmem:[%s12973_s10 + $0x1f8] sm:$0xff] }
  0xec   : > { %2837 = vmatpush1.bf16.msra.mxu0 %v11397_v7  ;;  %2960 = vmatpush1.bf16.msra.mxu1 %v11399_v8  ;;  %v11073_v7 = vcombine.low %v390_v57, %v394_v58  ;;  %v11075_v8 = vcombine.low %v391_v61, %v395_v62  ;;  %v450_v57 = vld [vmem:[%s12973_s10 + $0x230] sm:$0xff]  ;;  %v447_v58 = vld [vmem:[%s12973_s10 + $0x218] sm:$0xff] }
  0xed   : > { %2838 = vmatprep.subr.bf16.mxu0 %v11406_v10  ;;  %2961 = vmatprep.subr.bf16.mxu1 %v11408_v11  ;;  %v11082_v10 = vcombine.high %v398_v4, %v402_v5  ;;  %v11084_v11 = vcombine.high %v399_v32, %v403_v6  ;;  %v451_v61 = vld [vmem:[%s12973_s10 + $0x238] sm:$0xff] }
  0xf0   : > { %2839 = vmatpush1.bf16.msra.mxu0 %v11405_v59  ;;  %2962 = vmatpush1.bf16.msra.mxu1 %v11407_v17  ;;  %v11081_v59 = vcombine.low %v398_v4, %v402_v5  ;;  %v11083_v17 = vcombine.low %v399_v32, %v403_v6  ;;  %v458_v4 = vld [vmem:[%s12973_s10 + $0x270] sm:$0xff]  ;;  %v455_v5 = vld [vmem:[%s12973_s10 + $0x258] sm:$0xff] }
  0xf1   : > { %2840 = vmatprep.subr.bf16.mxu0 %v11414_v18  ;;  %2963 = vmatprep.subr.bf16.mxu1 %v11416_v19  ;;  %v11090_v18 = vcombine.high %v406_v12, %v410_v13  ;;  %v11092_v19 = vcombine.high %v407_v14, %v411_v15  ;;  %v459_v32 = vld [vmem:[%s12973_s10 + $0x278] sm:$0xff] }
  0xf4   : > { %2841 = vmatpush1.bf16.msra.mxu0 %v11413_v24  ;;  %2964 = vmatpush1.bf16.msra.mxu1 %v11415_v26  ;;  %v11089_v24 = vcombine.low %v406_v12, %v410_v13  ;;  %v11098_v26 = vcombine.high %v414_v20, %v418_v21  ;;  %v466_v12 = vld [vmem:[%s12973_s10 + $0x2b0] sm:$0xff]  ;;  %v463_v13 = vld [vmem:[%s12973_s10 + $0x298] sm:$0xff] }
  0xf5   : > { %2842 = vmatprep.subr.bf16.mxu0 %v11422_v27  ;;  %2965 = vmatprep.subr.bf16.mxu1 %v11424_v28  ;;  %v11100_v27 = vcombine.high %v415_v22, %v419_v23  ;;  %v422_v28 = vld [vmem:[%s12973_s10 + $0x150] sm:$0xff]  ;;  %v471_v21 = vld [vmem:[%s12973_s10 + $0x2d8] sm:$0xff] }
  0xf6   : > { %v11105_v42 = vcombine.low %v422_v28, %v426_v29  ;;  %v474_v20 = vld [vmem:[%s12973_s10 + $0x2f0] sm:$0xff] }
  0xf8   : > { %2843 = vmatpush1.bf16.msra.mxu0 %v11421_v63  ;;  %2966 = vmatpush1.bf16.msra.mxu1 %v11423_v35  ;;  %v11099_v63 = vcombine.low %v415_v22, %v419_v23  ;;  %v11106_v35 = vcombine.high %v422_v28, %v426_v29  ;;  %v475_v22 = vld [vmem:[%s12973_s10 + $0x2f8] sm:$0xff]  ;;  %v482_v28 = vld [vmem:[%s12973_s10 + $0x330] sm:$0xff] }
  0xf9   : > { %2844 = vmatprep.subr.bf16.mxu0 %v11430_v36  ;;  %2967 = vmatprep.subr.bf16.mxu1 %v11432_v37  ;;  %v11108_v36 = vcombine.high %v423_v30, %v427_v31  ;;  %v430_v37 = vld [vmem:[%s12973_s10 + $0x190] sm:$0xff]  ;;  %v479_v29 = vld [vmem:[%s12973_s10 + $0x318] sm:$0xff] }
  0xfa   : > { %v11113_v51 = vcombine.low %v430_v37, %v434_v38 }
  0xfc   : > { %2845 = vmatpush1.bf16.msra.mxu0 %v11429_v43  ;;  %2968 = vmatpush1.bf16.msra.mxu1 %v11431_v45  ;;  %v11107_v43 = vcombine.low %v423_v30, %v427_v31  ;;  %v11114_v45 = vcombine.high %v430_v37, %v434_v38  ;;  %v483_v30 = vld [vmem:[%s12973_s10 + $0x338] sm:$0xff]  ;;  %v490_v37 = vld [vmem:[%s12973_s10 + $0x370] sm:$0xff] }
  0xfd   : > { %2846 = vmatprep.subr.bf16.mxu0 %v11438_v46  ;;  %2969 = vmatprep.subr.bf16.mxu1 %v11440_v47  ;;  %v11116_v46 = vcombine.high %v431_v39, %v435_v41  ;;  %v438_v47 = vld [vmem:[%s12973_s10 + $0x1d0] sm:$0xff]  ;;  %v487_v38 = vld [vmem:[%s12973_s10 + $0x358] sm:$0xff] }
  0xfe   : > { %v11121_v62 = vcombine.low %v438_v47, %v442_v48 }
 0x100   : > { %2847 = vmatpush1.bf16.msra.mxu0 %v11437_v52  ;;  %2970 = vmatpush1.bf16.msra.mxu1 %v11439_v54  ;;  %v11115_v52 = vcombine.low %v431_v39, %v435_v41  ;;  %v11122_v54 = vcombine.high %v438_v47, %v442_v48  ;;  %v491_v39 = vld [vmem:[%s12973_s10 + $0x378] sm:$0xff]  ;;  %v498_v47 = vld [vmem:[%s12973_s10 + $0x3b0] sm:$0xff] }
 0x101   : > { %2980 = vmatprep.subr.bf16.mxu0 %v11066_v55  ;;  %3103 = vmatprep.subr.bf16.mxu1 %v11068_v56  ;;  %v11124_v55 = vcombine.high %v439_v49, %v443_v16  ;;  %v446_v56 = vld [vmem:[%s12973_s10 + $0x210] sm:$0xff]  ;;  %v495_v48 = vld [vmem:[%s12973_s10 + $0x398] sm:$0xff] }
 0x102   : > { %v11129_v6 = vcombine.low %v446_v56, %v450_v57 }
 0x103   : > { %2849 = vmatmul.mubr.bf16.vlgmr.msra.gmra.mrb[0].mxu0 %v13240_v60  ;;  %2972 = vmatmul.mubr.bf16.vlgmr.msra.gmra.mrb[0].mxu1 %v13240_v60 }
 0x104   : > { %2981 = vmatpush1.bf16.msra.mxu0 %v11065_v0  ;;  %3104 = vmatpush1.bf16.msra.mxu1 %v11067_v1  ;;  %v11123_v0 = vcombine.low %v439_v49, %v443_v16  ;;  %v11130_v1 = vcombine.high %v446_v56, %v450_v57  ;;  %v499_v49 = vld [vmem:[%s12973_s10 + $0x3b8] sm:$0xff]  ;;  %v506_v56 = vld [vmem:[%s12973_s10 + $0x3f0] sm:$0xff] }
 0x105   : > { %2982 = vmatprep.subr.bf16.mxu0 %v11074_v2  ;;  %3105 = vmatprep.subr.bf16.mxu1 %v11076_v3  ;;  %v11132_v2 = vcombine.high %v447_v58, %v451_v61  ;;  %v454_v3 = vld [vmem:[%s12973_s10 + $0x250] sm:$0xff]  ;;  %v503_v57 = vld [vmem:[%s12973_s10 + $0x3d8] sm:$0xff] }
 0x106   : > { %3012 = vmatprep.mubr.bf16.mxu0 %v13036_v9  ;;  %3135 = vmatprep.mubr.bf16.mxu1 %v13036_v9  ;;  %v11091_v9 = vcombine.low %v407_v14, %v411_v15  ;;  %v467_v14 = vld [vmem:[%s12973_s10 + $0x2b8] sm:$0xff]  ;;  %v11137_v15 = vcombine.low %v454_v3, %v458_v4 }
 0x108   : > { %2983 = vmatpush1.bf16.msra.mxu0 %v11073_v7  ;;  %3106 = vmatpush1.bf16.msra.mxu1 %v11075_v8  ;;  %v11131_v7 = vcombine.low %v447_v58, %v451_v61  ;;  %v11138_v8 = vcombine.high %v454_v3, %v458_v4  ;;  %v507_v58 = vld [vmem:[%s12973_s10 + $0x3f8] sm:$0xff]  ;;  %v514_v3 = vld [vmem:[%s12973_s10 + $0x430] sm:$0xff] }
 0x109   : > { %2984 = vmatprep.subr.bf16.mxu0 %v11082_v10  ;;  %3107 = vmatprep.subr.bf16.mxu1 %v11084_v11  ;;  %v11140_v10 = vcombine.high %v455_v5, %v459_v32  ;;  %v462_v11 = vld [vmem:[%s12973_s10 + $0x290] sm:$0xff]  ;;  %v511_v4 = vld [vmem:[%s12973_s10 + $0x418] sm:$0xff] }
 0x10a   : > { %v11145_v23 = vcombine.low %v462_v11, %v466_v12 }
 0x10c   : > { %2985 = vmatpush1.bf16.msra.mxu0 %v11081_v59  ;;  %3108 = vmatpush1.bf16.msra.mxu1 %v11083_v17  ;;  %v11139_v59 = vcombine.low %v455_v5, %v459_v32  ;;  %v11146_v17 = vcombine.high %v462_v11, %v466_v12  ;;  %v515_v5 = vld [vmem:[%s12973_s10 + $0x438] sm:$0xff]  ;;  %v522_v11 = vld [vmem:[%s12973_s10 + $0x470] sm:$0xff] }
 0x10d   : > { %2986 = vmatprep.subr.bf16.mxu0 %v11090_v18  ;;  %3109 = vmatprep.subr.bf16.mxu1 %v11092_v19  ;;  %v11148_v18 = vcombine.high %v463_v13, %v467_v14  ;;  %v470_v19 = vld [vmem:[%s12973_s10 + $0x2d0] sm:$0xff]  ;;  %v519_v12 = vld [vmem:[%s12973_s10 + $0x458] sm:$0xff] }
 0x10e   : > { %v11153_v31 = vcombine.low %v470_v19, %v474_v20 }
 0x110   : > { %2987 = vmatpush1.bf16.msra.mxu0 %v11089_v24  ;;  %3110 = vmatpush1.bf16.msra.mxu1 %v11091_v9  ;;  %v11147_v24 = vcombine.low %v463_v13, %v467_v14  ;;  %v11154_v9 = vcombine.high %v470_v19, %v474_v20  ;;  %v523_v13 = vld [vmem:[%s12973_s10 + $0x478] sm:$0xff]  ;;  %v530_v19 = vld [vmem:[%s12973_s10 + $0x4b0] sm:$0xff] }
 0x111   : > { %2988 = vmatprep.subr.bf16.mxu0 %v11098_v26  ;;  %3111 = vmatprep.subr.bf16.mxu1 %v11100_v27  ;;  %v11156_v26 = vcombine.high %v471_v21, %v475_v22  ;;  %v478_v27 = vld [vmem:[%s12973_s10 + $0x310] sm:$0xff]  ;;  %v527_v20 = vld [vmem:[%s12973_s10 + $0x498] sm:$0xff] }
 0x112   : > { %v11161_v41 = vcombine.low %v478_v27, %v482_v28 }
 0x114   : > { %2989 = vmatpush1.bf16.msra.mxu0 %v11097_v33  ;;  %3112 = vmatpush1.bf16.msra.mxu1 %v11099_v63  ;;  %v11155_v33 = vcombine.low %v471_v21, %v475_v22  ;;  %v11162_v63 = vcombine.high %v478_v27, %v482_v28  ;;  %v531_v21 = vld [vmem:[%s12973_s10 + $0x4b8] sm:$0xff]  ;;  %v538_v27 = vld [vmem:[%s12973_s10 + $0x4f0] sm:$0xff] }
 0x115   : > { %2990 = vmatprep.subr.bf16.mxu0 %v11106_v35  ;;  %3113 = vmatprep.subr.bf16.mxu1 %v11108_v36  ;;  %v11164_v35 = vcombine.high %v479_v29, %v483_v30  ;;  %v486_v36 = vld [vmem:[%s12973_s10 + $0x350] sm:$0xff]  ;;  %v535_v28 = vld [vmem:[%s12973_s10 + $0x4d8] sm:$0xff] }
 0x116   : > { %v11169_v16 = vcombine.low %v486_v36, %v490_v37 }
 0x118   : > { %2991 = vmatpush1.bf16.msra.mxu0 %v11105_v42  ;;  %3114 = vmatpush1.bf16.msra.mxu1 %v11107_v43  ;;  %v11163_v42 = vcombine.low %v479_v29, %v483_v30  ;;  %v11170_v43 = vcombine.high %v486_v36, %v490_v37  ;;  %v539_v29 = vld [vmem:[%s12973_s10 + $0x4f8] sm:$0xff]  ;;  %v11211_v30 = vcombine.low %v527_v20, %v531_v21 }
 0x119   : > { %2992 = vmatprep.subr.bf16.mxu0 %v11114_v45  ;;  %3115 = vmatprep.subr.bf16.mxu1 %v11116_v46  ;;  %v11172_v45 = vcombine.high %v487_v38, %v491_v39  ;;  %v494_v46 = vld [vmem:[%s12973_s10 + $0x390] sm:$0xff]  ;;  %v543_v36 = vld [vmem:[%s12973_s10 + $0x518] sm:$0xff] }
 0x11a   : > { %v11177_v61 = vcombine.low %v494_v46, %v498_v47  ;;  %v547_v37 = vld [vmem:[%s12973_s10 + $0x538] sm:$0xff] }
 0x11c   : > { %2993 = vmatpush1.bf16.msra.mxu0 %v11113_v51  ;;  %3116 = vmatpush1.bf16.msra.mxu1 %v11115_v52  ;;  %v11171_v51 = vcombine.low %v487_v38, %v491_v39  ;;  %v11178_v52 = vcombine.high %v494_v46, %v498_v47  ;;  %v555_v46 = vld [vmem:[%s12973_s10 + $0x578] sm:$0xff] }
 0x11d   : > { %2994 = vmatprep.subr.bf16.mxu0 %v11122_v54  ;;  %3117 = vmatprep.subr.bf16.mxu1 %v11124_v55  ;;  %v11180_v54 = vcombine.high %v495_v48, %v499_v49  ;;  %v502_v55 = vld [vmem:[%s12973_s10 + $0x3d0] sm:$0xff] }
 0x11e   : > { %v11185_v32 = vcombine.low %v502_v55, %v506_v56 }
 0x120   : > { %2995 = vmatpush1.bf16.msra.mxu0 %v11121_v62  ;;  %3118 = vmatpush1.bf16.msra.mxu1 %v11123_v0  ;;  %v11179_v62 = vcombine.low %v495_v48, %v499_v49  ;;  %v11186_v0 = vcombine.high %v502_v55, %v506_v56  ;;  %v11227_v48 = vcombine.low %v543_v36, %v547_v37  ;;  %v563_v55 = vld [vmem:[%s12973_s10 + $0x5b8] sm:$0xff] }
 0x121   : > { %2996 = vmatprep.subr.bf16.mxu0 %v11130_v1  ;;  %3119 = vmatprep.subr.bf16.mxu1 %v11132_v2  ;;  %v11188_v1 = vcombine.high %v503_v57, %v507_v58  ;;  %v510_v2 = vld [vmem:[%s12973_s10 + $0x410] sm:$0xff] }
 0x122   : > { %v11193_v14 = vcombine.low %v510_v2, %v514_v3 }
 0x124   : > { %2997 = vmatpush1.bf16.msra.mxu0 %v11129_v6  ;;  %3120 = vmatpush1.bf16.msra.mxu1 %v11131_v7  ;;  %v11187_v6 = vcombine.low %v503_v57, %v507_v58  ;;  %v11194_v7 = vcombine.high %v510_v2, %v514_v3  ;;  %v571_v2 = vld [vmem:[%s12973_s10 + $0x5f8] sm:$0xff] }
 0x125   : > { %2998 = vmatprep.subr.bf16.mxu0 %v11138_v8  ;;  %3121 = vmatprep.subr.bf16.mxu1 %v11140_v10  ;;  %v11196_v8 = vcombine.high %v511_v4, %v515_v5  ;;  %v518_v10 = vld [vmem:[%s12973_s10 + $0x450] sm:$0xff] }
 0x126   : > { %v11201_v22 = vcombine.low %v518_v10, %v522_v11 }
 0x128   : > { %2999 = vmatpush1.bf16.msra.mxu0 %v11137_v15  ;;  %3122 = vmatpush1.bf16.msra.mxu1 %v11139_v59  ;;  %v11195_v15 = vcombine.low %v511_v4, %v515_v5  ;;  %v11202_v59 = vcombine.high %v518_v10, %v522_v11  ;;  %v579_v10 = vld [vmem:[%s12973_s10 + $0x638] sm:$0xff] }
 0x129   : > { %3000 = vmatprep.subr.bf16.mxu0 %v11146_v17  ;;  %3123 = vmatprep.subr.bf16.mxu1 %v11148_v18  ;;  %v11204_v17 = vcombine.high %v519_v12, %v523_v13  ;;  %v526_v18 = vld [vmem:[%s12973_s10 + $0x490] sm:$0xff] }
 0x12c   : > { %3001 = vmatpush1.bf16.msra.mxu0 %v11145_v23  ;;  %3124 = vmatpush1.bf16.msra.mxu1 %v11147_v24  ;;  %v11203_v23 = vcombine.low %v519_v12, %v523_v13  ;;  %v11210_v24 = vcombine.high %v526_v18, %v530_v19 }
 0x12d   : > { %3002 = vmatprep.subr.bf16.mxu0 %v11154_v9  ;;  %3125 = vmatprep.subr.bf16.mxu1 %v11156_v26  ;;  %v11212_v9 = vcombine.high %v527_v20, %v531_v21  ;;  %v534_v26 = vld [vmem:[%s12973_s10 + $0x4d0] sm:$0xff] }
 0x12e   : > { %v11217_v38 = vcombine.low %v534_v26, %v538_v27 }
 0x130   : > { %3003 = vmatpush1.bf16.msra.mxu0 %v11153_v31  ;;  %3126 = vmatpush1.bf16.msra.mxu1 %v11155_v33  ;;  %v11218_v31 = vcombine.high %v534_v26, %v538_v27  ;;  %v11220_v33 = vcombine.high %v535_v28, %v539_v29  ;;  %v595_v26 = vld [vmem:[%s12973_s10 + $0x6b8] sm:$0xff] }
 0x131   : > { %3004 = vmatprep.subr.bf16.mxu0 %v11162_v63  ;;  %3127 = vmatprep.subr.bf16.mxu1 %v11164_v35  ;;  %v542_v63 = vld [vmem:[%s12973_s10 + $0x510] sm:$0xff] }
 0x132   : > { %v546_v35 = vld [vmem:[%s12973_s10 + $0x530] sm:$0xff] }
 0x133   : > { %v11226_v39 = vcombine.high %v542_v63, %v546_v35  ;;  %v11225_v47 = vcombine.low %v542_v63, %v546_v35  ;;  %v603_v63 = vld [vmem:[%s12973_s10 + $0x6f8] sm:$0xff] }
 0x134   : > { %3005 = vmatpush1.bf16.msra.mxu0 %v11161_v41  ;;  %3128 = vmatpush1.bf16.msra.mxu1 %v11163_v42  ;;  %v11228_v41 = vcombine.high %v543_v36, %v547_v37  ;;  %v550_v42 = vld [vmem:[%s12973_s10 + $0x550] sm:$0xff] }
 0x135   : > { %3006 = vmatprep.subr.bf16.mxu0 %v11170_v43  ;;  %3129 = vmatprep.subr.bf16.mxu1 %v11172_v45  ;;  %v554_v43 = vld [vmem:[%s12973_s10 + $0x570] sm:$0xff]  ;;  %v551_v45 = vld [vmem:[%s12973_s10 + $0x558] sm:$0xff] }
 0x136   : > { %v11234_v49 = vcombine.high %v550_v42, %v554_v43  ;;  %v11233_v56 = vcombine.low %v550_v42, %v554_v43  ;;  %v11235_v57 = vcombine.low %v551_v45, %v555_v46  ;;  %v611_v42 = vld [vmem:[%s12973_s10 + $0x738] sm:$0xff] }
 0x138   : > { %3007 = vmatpush1.bf16.msra.mxu0 %v11169_v16  ;;  %3130 = vmatpush1.bf16.msra.mxu1 %v11171_v51  ;;  %v11236_v16 = vcombine.high %v551_v45, %v555_v46  ;;  %v558_v51 = vld [vmem:[%s12973_s10 + $0x590] sm:$0xff] }
 0x139   : > { %3008 = vmatprep.subr.bf16.mxu0 %v11178_v52  ;;  %3131 = vmatprep.subr.bf16.mxu1 %v11180_v54  ;;  %v562_v52 = vld [vmem:[%s12973_s10 + $0x5b0] sm:$0xff]  ;;  %v559_v54 = vld [vmem:[%s12973_s10 + $0x598] sm:$0xff] }
 0x13a   : > { %v11242_v58 = vcombine.high %v558_v51, %v562_v52  ;;  %v11241_v3 = vcombine.low %v558_v51, %v562_v52  ;;  %v11243_v4 = vcombine.low %v559_v54, %v563_v55  ;;  %v619_v51 = vld [vmem:[%s12973_s10 + $0x778] sm:$0xff] }
 0x13c   : > { %3009 = vmatpush1.bf16.msra.mxu0 %v11177_v61  ;;  %3132 = vmatpush1.bf16.msra.mxu1 %v11179_v62  ;;  %v11244_v61 = vcombine.high %v559_v54, %v563_v55  ;;  %v566_v62 = vld [vmem:[%s12973_s10 + $0x5d0] sm:$0xff] }
 0x13d   : > { %3010 = vmatprep.subr.bf16.mxu0 %v11186_v0  ;;  %3133 = vmatprep.subr.bf16.mxu1 %v11188_v1  ;;  %v570_v0 = vld [vmem:[%s12973_s10 + $0x5f0] sm:$0xff]  ;;  %v567_v1 = vld [vmem:[%s12973_s10 + $0x5d8] sm:$0xff] }
 0x13e   : > { %v11250_v5 = vcombine.high %v566_v62, %v570_v0  ;;  %v11249_v11 = vcombine.low %v566_v62, %v570_v0  ;;  %v11251_v12 = vcombine.low %v567_v1, %v571_v2  ;;  %v627_v62 = vld [vmem:[%s12973_s10 + $0x7b8] sm:$0xff] }
 0x140   : > { %3011 = vmatpush1.bf16.msra.mxu0 %v11185_v32  ;;  %3134 = vmatpush1.bf16.msra.mxu1 %v11187_v6  ;;  %v11252_v32 = vcombine.high %v567_v1, %v571_v2  ;;  %v574_v6 = vld [vmem:[%s12973_s10 + $0x610] sm:$0xff] }
 0x141   : > { %3021 = vmatprep.subr.bf16.mxu0 %v11194_v7  ;;  %3144 = vmatprep.subr.bf16.mxu1 %v11196_v8  ;;  %v578_v7 = vld [vmem:[%s12973_s10 + $0x630] sm:$0xff]  ;;  %v575_v8 = vld [vmem:[%s12973_s10 + $0x618] sm:$0xff] }
 0x142   : > { %v11258_v13 = vcombine.high %v574_v6, %v578_v7  ;;  %v11259_v20 = vcombine.low %v575_v8, %v579_v10 }
 0x143   : > { %3013 = vmatmul.mubr.bf16.vlgmr.msra.gmra.mrb[4].mxu0 %v13085_v25  ;;  %3136 = vmatmul.mubr.bf16.vlgmr.msra.gmra.mrb[4].mxu1 %v13085_v25  ;;  %v11209_v25 = vcombine.low %v526_v18, %v530_v19  ;;  %v587_v18 = vld [vmem:[%s12973_s10 + $0x678] sm:$0xff]  ;;  %v11257_v19 = vcombine.low %v574_v6, %v578_v7 }
 0x144   : > { %3022 = vmatpush1.bf16.msra.mxu0 %v11193_v14  ;;  %3145 = vmatpush1.bf16.msra.mxu1 %v11195_v15  ;;  %v11260_v14 = vcombine.high %v575_v8, %v579_v10  ;;  %v582_v15 = vld [vmem:[%s12973_s10 + $0x650] sm:$0xff]  ;;  %v635_v6 = vld [vmem:[%s12973_s10 + $0x7f8] sm:$0xff] }
 0x145   : > { %3023 = vmatprep.subr.bf16.mxu0 %v11202_v59  ;;  %3146 = vmatprep.subr.bf16.mxu1 %v11204_v17  ;;  %v586_v59 = vld [vmem:[%s12973_s10 + $0x670] sm:$0xff]  ;;  %v583_v17 = vld [vmem:[%s12973_s10 + $0x658] sm:$0xff] }
 0x146   : > { %3053 = vmatprep.mubr.bf16.mxu0 %v13091_v34  ;;  %3176 = vmatprep.mubr.bf16.mxu1 %v13091_v34  ;;  %v11219_v34 = vcombine.low %v535_v28, %v539_v29  ;;  %v11266_v21 = vcombine.high %v582_v15, %v586_v59  ;;  %v11265_v27 = vcombine.low %v582_v15, %v586_v59  ;;  %v643_v15 = vld [vmem:[%s12973_s10 + $0x838] sm:$0xff] }
 0x147   : > { %v11267_v28 = vcombine.low %v583_v17, %v587_v18 }
 0x148   : > { %3024 = vmatpush1.bf16.msra.mxu0 %v11201_v22  ;;  %3147 = vmatpush1.bf16.msra.mxu1 %v11203_v23  ;;  %v11268_v22 = vcombine.high %v583_v17, %v587_v18  ;;  %v590_v23 = vld [vmem:[%s12973_s10 + $0x690] sm:$0xff] }
 0x149   : > { %3025 = vmatprep.subr.bf16.mxu0 %v11210_v24  ;;  %3148 = vmatprep.subr.bf16.mxu1 %v11212_v9  ;;  %v594_v24 = vld [vmem:[%s12973_s10 + $0x6b0] sm:$0xff]  ;;  %v591_v9 = vld [vmem:[%s12973_s10 + $0x698] sm:$0xff] }
 0x14a   : > { %v11274_v29 = vcombine.high %v590_v23, %v594_v24  ;;  %v11273_v35 = vcombine.low %v590_v23, %v594_v24  ;;  %v11275_v36 = vcombine.low %v591_v9, %v595_v26  ;;  %v651_v23 = vld [vmem:[%s12973_s10 + $0x878] sm:$0xff] }
 0x14c   : > { %3026 = vmatpush1.bf16.msra.mxu0 %v11209_v25  ;;  %3149 = vmatpush1.bf16.msra.mxu1 %v11211_v30  ;;  %v11276_v25 = vcombine.high %v591_v9, %v595_v26  ;;  %v598_v30 = vld [vmem:[%s12973_s10 + $0x6d0] sm:$0xff] }
 0x14d   : > { %3027 = vmatprep.subr.bf16.mxu0 %v11218_v31  ;;  %3150 = vmatprep.subr.bf16.mxu1 %v11220_v33  ;;  %v602_v31 = vld [vmem:[%s12973_s10 + $0x6f0] sm:$0xff]  ;;  %v599_v33 = vld [vmem:[%s12973_s10 + $0x6d8] sm:$0xff] }
 0x14e   : > { %v11282_v37 = vcombine.high %v598_v30, %v602_v31  ;;  %v11281_v43 = vcombine.low %v598_v30, %v602_v31  ;;  %v11283_v45 = vcombine.low %v599_v33, %v603_v63  ;;  %v659_v30 = vld [vmem:[%s12973_s10 + $0x8b8] sm:$0xff] }
 0x150   : > { %3028 = vmatpush1.bf16.msra.mxu0 %v11217_v38  ;;  %3151 = vmatpush1.bf16.msra.mxu1 %v11219_v34  ;;  %v11284_v38 = vcombine.high %v599_v33, %v603_v63  ;;  %v606_v34 = vld [vmem:[%s12973_s10 + $0x710] sm:$0xff] }
 0x151   : > { %3029 = vmatprep.subr.bf16.mxu0 %v11226_v39  ;;  %3152 = vmatprep.subr.bf16.mxu1 %v11228_v41  ;;  %v610_v39 = vld [vmem:[%s12973_s10 + $0x730] sm:$0xff]  ;;  %v607_v41 = vld [vmem:[%s12973_s10 + $0x718] sm:$0xff] }
 0x152   : > { %v11290_v46 = vcombine.high %v606_v34, %v610_v39  ;;  %v11289_v52 = vcombine.low %v606_v34, %v610_v39  ;;  %v11291_v54 = vcombine.low %v607_v41, %v611_v42  ;;  %v667_v34 = vld [vmem:[%s12973_s10 + $0x8f8] sm:$0xff] }
 0x154   : > { %3030 = vmatpush1.bf16.msra.mxu0 %v11225_v47  ;;  %3153 = vmatpush1.bf16.msra.mxu1 %v11227_v48  ;;  %v11292_v47 = vcombine.high %v607_v41, %v611_v42  ;;  %v614_v48 = vld [vmem:[%s12973_s10 + $0x750] sm:$0xff] }
 0x155   : > { %3031 = vmatprep.subr.bf16.mxu0 %v11234_v49  ;;  %3154 = vmatprep.subr.bf16.mxu1 %v11236_v16  ;;  %v618_v49 = vld [vmem:[%s12973_s10 + $0x770] sm:$0xff]  ;;  %v615_v16 = vld [vmem:[%s12973_s10 + $0x758] sm:$0xff] }
 0x156   : > { %v11298_v55 = vcombine.high %v614_v48, %v618_v49  ;;  %v11297_v0 = vcombine.low %v614_v48, %v618_v49  ;;  %v11299_v1 = vcombine.low %v615_v16, %v619_v51 }
 0x158   : > { %3032 = vmatpush1.bf16.msra.mxu0 %v11233_v56  ;;  %3155 = vmatpush1.bf16.msra.mxu1 %v11235_v57  ;;  %v11300_v56 = vcombine.high %v615_v16, %v619_v51  ;;  %v622_v57 = vld [vmem:[%s12973_s10 + $0x790] sm:$0xff] }
 0x159   : > { %3033 = vmatprep.subr.bf16.mxu0 %v11242_v58  ;;  %3156 = vmatprep.subr.bf16.mxu1 %v11244_v61  ;;  %v626_v58 = vld [vmem:[%s12973_s10 + $0x7b0] sm:$0xff]  ;;  %v623_v61 = vld [vmem:[%s12973_s10 + $0x798] sm:$0xff] }
 0x15a   : > { %v11306_v2 = vcombine.high %v622_v57, %v626_v58  ;;  %v11305_v7 = vcombine.low %v622_v57, %v626_v58  ;;  %v11307_v8 = vcombine.low %v623_v61, %v627_v62  ;;  %v678_v51 = vld [vmem:[%s12973_s10 + $0x950] sm:$0xff] }
 0x15c   : > { %3034 = vmatpush1.bf16.msra.mxu0 %v11241_v3  ;;  %3157 = vmatpush1.bf16.msra.mxu1 %v11243_v4  ;;  %v11308_v3 = vcombine.high %v623_v61, %v627_v62  ;;  %v630_v4 = vld [vmem:[%s12973_s10 + $0x7d0] sm:$0xff] }
 0x15d   : > { %3035 = vmatprep.subr.bf16.mxu0 %v11250_v5  ;;  %3158 = vmatprep.subr.bf16.mxu1 %v11252_v32  ;;  %v634_v5 = vld [vmem:[%s12973_s10 + $0x7f0] sm:$0xff]  ;;  %v631_v32 = vld [vmem:[%s12973_s10 + $0x7d8] sm:$0xff] }
 0x15e   : > { %v11314_v10 = vcombine.high %v630_v4, %v634_v5  ;;  %v11313_v59 = vcombine.low %v630_v4, %v634_v5  ;;  %v11315_v17 = vcombine.low %v631_v32, %v635_v6  ;;  %v686_v62 = vld [vmem:[%s12973_s10 + $0x990] sm:$0xff] }
 0x160   : > { %3036 = vmatpush1.bf16.msra.mxu0 %v11249_v11  ;;  %3159 = vmatpush1.bf16.msra.mxu1 %v11251_v12  ;;  %v11316_v11 = vcombine.high %v631_v32, %v635_v6  ;;  %v638_v12 = vld [vmem:[%s12973_s10 + $0x810] sm:$0xff] }
 0x161   : > { %3037 = vmatprep.subr.bf16.mxu0 %v11258_v13  ;;  %3160 = vmatprep.subr.bf16.mxu1 %v11260_v14  ;;  %v642_v13 = vld [vmem:[%s12973_s10 + $0x830] sm:$0xff]  ;;  %v639_v14 = vld [vmem:[%s12973_s10 + $0x818] sm:$0xff] }
 0x162   : > { %v11322_v18 = vcombine.high %v638_v12, %v642_v13  ;;  %v11321_v24 = vcombine.low %v638_v12, %v642_v13  ;;  %v11323_v9 = vcombine.low %v639_v14, %v643_v15  ;;  %v694_v6 = vld [vmem:[%s12973_s10 + $0x9d0] sm:$0xff] }
 0x164   : > { %3038 = vmatpush1.bf16.msra.mxu0 %v11257_v19  ;;  %3161 = vmatpush1.bf16.msra.mxu1 %v11259_v20  ;;  %v11324_v19 = vcombine.high %v639_v14, %v643_v15  ;;  %v646_v20 = vld [vmem:[%s12973_s10 + $0x850] sm:$0xff] }
 0x165   : > { %3039 = vmatprep.subr.bf16.mxu0 %v11266_v21  ;;  %3162 = vmatprep.subr.bf16.mxu1 %v11268_v22  ;;  %v650_v21 = vld [vmem:[%s12973_s10 + $0x870] sm:$0xff]  ;;  %v647_v22 = vld [vmem:[%s12973_s10 + $0x858] sm:$0xff] }
 0x166   : > { %v11330_v26 = vcombine.high %v646_v20, %v650_v21  ;;  %v11329_v31 = vcombine.low %v646_v20, %v650_v21  ;;  %v11331_v33 = vcombine.low %v647_v22, %v651_v23  ;;  %v702_v15 = vld [vmem:[%s12973_s10 + $0xa10] sm:$0xff] }
 0x168   : > { %3040 = vmatpush1.bf16.msra.mxu0 %v11265_v27  ;;  %3163 = vmatpush1.bf16.msra.mxu1 %v11267_v28  ;;  %v11332_v27 = vcombine.high %v647_v22, %v651_v23  ;;  %v654_v28 = vld [vmem:[%s12973_s10 + $0x890] sm:$0xff] }
 0x169   : > { %3041 = vmatprep.subr.bf16.mxu0 %v11274_v29  ;;  %3164 = vmatprep.subr.bf16.mxu1 %v11276_v25  ;;  %v658_v29 = vld [vmem:[%s12973_s10 + $0x8b0] sm:$0xff]  ;;  %v655_v25 = vld [vmem:[%s12973_s10 + $0x898] sm:$0xff] }
 0x16a   : > { %v11338_v63 = vcombine.high %v654_v28, %v658_v29  ;;  %v11339_v39 = vcombine.low %v655_v25, %v659_v30  ;;  %v710_v23 = vld [vmem:[%s12973_s10 + $0xa50] sm:$0xff] }
 0x16c   : > { %3042 = vmatpush1.bf16.msra.mxu0 %v11273_v35  ;;  %3165 = vmatpush1.bf16.msra.mxu1 %v11275_v36  ;;  %v11340_v35 = vcombine.high %v655_v25, %v659_v30  ;;  %v662_v36 = vld [vmem:[%s12973_s10 + $0x8d0] sm:$0xff] }
 0x16d   : > { %3043 = vmatprep.subr.bf16.mxu0 %v11282_v37  ;;  %3166 = vmatprep.subr.bf16.mxu1 %v11284_v38  ;;  %v666_v37 = vld [vmem:[%s12973_s10 + $0x8f0] sm:$0xff]  ;;  %v663_v38 = vld [vmem:[%s12973_s10 + $0x8d8] sm:$0xff] }
 0x16e   : > { %v11346_v41 = vcombine.high %v662_v36, %v666_v37  ;;  %v11348_v42 = vcombine.high %v663_v38, %v667_v34  ;;  %v11345_v48 = vcombine.low %v662_v36, %v666_v37  ;;  %v718_v30 = vld [vmem:[%s12973_s10 + $0xa90] sm:$0xff] }
 0x170   : > { %3044 = vmatpush1.bf16.msra.mxu0 %v11281_v43  ;;  %3167 = vmatpush1.bf16.msra.mxu1 %v11283_v45  ;;  %v670_v43 = vld [vmem:[%s12973_s10 + $0x910] sm:$0xff] }
 0x171   : > { %3045 = vmatprep.subr.bf16.mxu0 %v11290_v46  ;;  %3168 = vmatprep.subr.bf16.mxu1 %v11292_v47  ;;  %v674_v45 = vld [vmem:[%s12973_s10 + $0x930] sm:$0xff]  ;;  %v671_v46 = vld [vmem:[%s12973_s10 + $0x918] sm:$0xff] }
 0x172   : > { %v675_v47 = vld [vmem:[%s12973_s10 + $0x938] sm:$0xff]  ;;  %v11354_v49 = vcombine.high %v670_v43, %v674_v45 }
 0x173   : > { %v11356_v16 = vcombine.high %v671_v46, %v675_v47  ;;  %v11355_v57 = vcombine.low %v671_v46, %v675_v47  ;;  %v734_v47 = vld [vmem:[%s12973_s10 + $0xb10] sm:$0xff] }
 0x174   : > { %3046 = vmatpush1.bf16.msra.mxu0 %v11289_v52  ;;  %3169 = vmatpush1.bf16.msra.mxu1 %v11291_v54  ;;  %v682_v52 = vld [vmem:[%s12973_s10 + $0x970] sm:$0xff]  ;;  %v679_v54 = vld [vmem:[%s12973_s10 + $0x958] sm:$0xff] }
 0x175   : > { %3047 = vmatprep.subr.bf16.mxu0 %v11298_v55  ;;  %3170 = vmatprep.subr.bf16.mxu1 %v11300_v56  ;;  %v683_v55 = vld [vmem:[%s12973_s10 + $0x978] sm:$0xff]  ;;  %v11353_v56 = vcombine.low %v670_v43, %v674_v45  ;;  %v11362_v58 = vcombine.high %v678_v51, %v682_v52 }
 0x176   : > { %v11364_v61 = vcombine.high %v679_v54, %v683_v55  ;;  %v11363_v4 = vcombine.low %v679_v54, %v683_v55  ;;  %v742_v55 = vld [vmem:[%s12973_s10 + $0xb50] sm:$0xff] }
 0x178   : > { %3048 = vmatpush1.bf16.msra.mxu0 %v11297_v0  ;;  %3171 = vmatpush1.bf16.msra.mxu1 %v11299_v1  ;;  %v690_v0 = vld [vmem:[%s12973_s10 + $0x9b0] sm:$0xff]  ;;  %v687_v1 = vld [vmem:[%s12973_s10 + $0x998] sm:$0xff] }
 0x179   : > { %3049 = vmatprep.subr.bf16.mxu0 %v11306_v2  ;;  %3172 = vmatprep.subr.bf16.mxu1 %v11308_v3  ;;  %v691_v2 = vld [vmem:[%s12973_s10 + $0x9b8] sm:$0xff]  ;;  %v11361_v3 = vcombine.low %v678_v51, %v682_v52  ;;  %v11370_v5 = vcombine.high %v686_v62, %v690_v0 }
 0x17a   : > { %v11372_v32 = vcombine.high %v687_v1, %v691_v2  ;;  %v11371_v12 = vcombine.low %v687_v1, %v691_v2  ;;  %v750_v2 = vld [vmem:[%s12973_s10 + $0xb90] sm:$0xff] }
 0x17c   : > { %3050 = vmatpush1.bf16.msra.mxu0 %v11305_v7  ;;  %3173 = vmatpush1.bf16.msra.mxu1 %v11307_v8  ;;  %v698_v7 = vld [vmem:[%s12973_s10 + $0x9f0] sm:$0xff]  ;;  %v695_v8 = vld [vmem:[%s12973_s10 + $0x9d8] sm:$0xff] }
 0x17d   : > { %3051 = vmatprep.subr.bf16.mxu0 %v11314_v10  ;;  %3174 = vmatprep.subr.bf16.mxu1 %v11316_v11  ;;  %v699_v10 = vld [vmem:[%s12973_s10 + $0x9f8] sm:$0xff]  ;;  %v11369_v11 = vcombine.low %v686_v62, %v690_v0  ;;  %v11378_v13 = vcombine.high %v694_v6, %v698_v7 }
 0x17e   : > { %v11380_v14 = vcombine.high %v695_v8, %v699_v10  ;;  %v11379_v20 = vcombine.low %v695_v8, %v699_v10  ;;  %v758_v10 = vld [vmem:[%s12973_s10 + $0xbd0] sm:$0xff] }
 0x180   : > { %3052 = vmatpush1.bf16.msra.mxu0 %v11313_v59  ;;  %3175 = vmatpush1.bf16.msra.mxu1 %v11315_v17  ;;  %v706_v59 = vld [vmem:[%s12973_s10 + $0xa30] sm:$0xff]  ;;  %v703_v17 = vld [vmem:[%s12973_s10 + $0xa18] sm:$0xff] }
 0x181   : > { %3062 = vmatprep.subr.bf16.mxu0 %v11322_v18  ;;  %3185 = vmatprep.subr.bf16.mxu1 %v11324_v19  ;;  %v707_v18 = vld [vmem:[%s12973_s10 + $0xa38] sm:$0xff]  ;;  %v11377_v19 = vcombine.low %v694_v6, %v698_v7  ;;  %v11386_v21 = vcombine.high %v702_v15, %v706_v59 }
 0x182   : > { %v11388_v22 = vcombine.high %v703_v17, %v707_v18 }
 0x183   : > { %3054 = vmatmul.mubr.bf16.vlgmr.msra.gmra.mrb[4].mxu0 %v13166_v40  ;;  %3177 = vmatmul.mubr.bf16.vlgmr.msra.gmra.mrb[4].mxu1 %v13166_v40  ;;  %v11337_v40 = vcombine.low %v654_v28, %v658_v29  ;;  %v11387_v28 = vcombine.low %v703_v17, %v707_v18  ;;  %v3234_v18 = vld [vmem:[%s12954_s14] sm:$0xff] }
 0x184   : > { %3063 = vmatpush1.bf16.msra.mxu0 %v11321_v24  ;;  %3186 = vmatpush1.bf16.msra.mxu1 %v11323_v9  ;;  %v714_v24 = vld [vmem:[%s12973_s10 + $0xa70] sm:$0xff]  ;;  %v711_v9 = vld [vmem:[%s12973_s10 + $0xa58] sm:$0xff] }
 0x185   : > { %3064 = vmatprep.subr.bf16.mxu0 %v11330_v26  ;;  %3187 = vmatprep.subr.bf16.mxu1 %v11332_v27  ;;  %v715_v26 = vld [vmem:[%s12973_s10 + $0xa78] sm:$0xff]  ;;  %v11385_v27 = vcombine.low %v702_v15, %v706_v59  ;;  %v11394_v29 = vcombine.high %v710_v23, %v714_v24 }
 0x186   : > { %3094 = vmatprep.mubr.bf16.mxu0 %v13172_v50  ;;  %3217 = vmatprep.mubr.bf16.mxu1 %v13172_v50  ;;  %v11347_v50 = vcombine.low %v663_v38, %v667_v34  ;;  %v11396_v25 = vcombine.high %v711_v9, %v715_v26  ;;  %v11395_v36 = vcombine.low %v711_v9, %v715_v26  ;;  %v726_v34 = vld [vmem:[%s12973_s10 + $0xad0] sm:$0xff] }
 0x187   : > { %v3242_v26 = vld [vmem:[%s12954_s14 + $0x40] sm:$0xff] }
 0x188   : > { %3065 = vmatpush1.bf16.msra.mxu0 %v11329_v31  ;;  %3188 = vmatpush1.bf16.msra.mxu1 %v11331_v33  ;;  %v722_v31 = vld [vmem:[%s12973_s10 + $0xab0] sm:$0xff]  ;;  %v719_v33 = vld [vmem:[%s12973_s10 + $0xa98] sm:$0xff] }
 0x189   : > { %3066 = vmatprep.subr.bf16.mxu0 %v11338_v63  ;;  %3189 = vmatprep.subr.bf16.mxu1 %v11340_v35  ;;  %v723_v63 = vld [vmem:[%s12973_s10 + $0xab8] sm:$0xff]  ;;  %v11393_v35 = vcombine.low %v710_v23, %v714_v24  ;;  %v11402_v37 = vcombine.high %v718_v30, %v722_v31 }
 0x18a   : > { %v11404_v38 = vcombine.high %v719_v33, %v723_v63  ;;  %v11403_v43 = vcombine.low %v719_v33, %v723_v63  ;;  %v3250_v63 = vld [vmem:[%s12954_s14 + $0x80] sm:$0xff] }
 0x18c   : > { %3067 = vmatpush1.bf16.msra.mxu0 %v11337_v40  ;;  %3190 = vmatpush1.bf16.msra.mxu1 %v11339_v39  ;;  %v730_v40 = vld [vmem:[%s12973_s10 + $0xaf0] sm:$0xff]  ;;  %v727_v39 = vld [vmem:[%s12973_s10 + $0xad8] sm:$0xff] }
 0x18d   : > { %3068 = vmatprep.subr.bf16.mxu0 %v11346_v41  ;;  %3191 = vmatprep.subr.bf16.mxu1 %v11348_v42  ;;  %v731_v41 = vld [vmem:[%s12973_s10 + $0xaf8] sm:$0xff]  ;;  %v11401_v42 = vcombine.low %v718_v30, %v722_v31  ;;  %v11410_v45 = vcombine.high %v726_v34, %v730_v40 }
 0x18e   : > { %v11412_v46 = vcombine.high %v727_v39, %v731_v41  ;;  %v11411_v51 = vcombine.low %v727_v39, %v731_v41  ;;  %v3258_v41 = vld [vmem:[%s12954_s14 + $0xc0] sm:$0xff] }
 0x190   : > { %3069 = vmatpush1.bf16.msra.mxu0 %v11345_v48  ;;  %3192 = vmatpush1.bf16.msra.mxu1 %v11347_v50  ;;  %v738_v48 = vld [vmem:[%s12973_s10 + $0xb30] sm:$0xff]  ;;  %v735_v50 = vld [vmem:[%s12973_s10 + $0xb18] sm:$0xff] }
 0x191   : > { %3070 = vmatprep.subr.bf16.mxu0 %v11354_v49  ;;  %3193 = vmatprep.subr.bf16.mxu1 %v11356_v16  ;;  %v739_v49 = vld [vmem:[%s12973_s10 + $0xb38] sm:$0xff]  ;;  %v11409_v16 = vcombine.low %v726_v34, %v730_v40  ;;  %v11418_v52 = vcombine.high %v734_v47, %v738_v48 }
 0x192   : > { %v11420_v54 = vcombine.high %v735_v50, %v739_v49  ;;  %v11419_v62 = vcombine.low %v735_v50, %v739_v49  ;;  %v3266_v50 = vld [vmem:[%s12954_s14 + $0x100] sm:$0xff] }
 0x193   : > { %v3270_v49 = vld [vmem:[%s12954_s14 + $0x120] sm:$0xff] }
 0x194   : > { %3071 = vmatpush1.bf16.msra.mxu0 %v11353_v56  ;;  %3194 = vmatpush1.bf16.msra.mxu1 %v11355_v57  ;;  %v746_v56 = vld [vmem:[%s12973_s10 + $0xb70] sm:$0xff]  ;;  %v743_v57 = vld [vmem:[%s12973_s10 + $0xb58] sm:$0xff] }
 0x195   : > { %3072 = vmatprep.subr.bf16.mxu0 %v11362_v58  ;;  %3195 = vmatprep.subr.bf16.mxu1 %v11364_v61  ;;  %v747_v58 = vld [vmem:[%s12973_s10 + $0xb78] sm:$0xff]  ;;  %v11417_v61 = vcombine.low %v734_v47, %v738_v48  ;;  %v11426_v0 = vcombine.high %v742_v55, %v746_v56 }
 0x196   : > { %v11428_v1 = vcombine.high %v743_v57, %v747_v58  ;;  %v11427_v6 = vcombine.low %v743_v57, %v747_v58  ;;  %v3274_v57 = vld [vmem:[%s12954_s14 + $0x140] sm:$0xff] }
 0x197   : > { %v3278_v58 = vld [vmem:[%s12954_s14 + $0x160] sm:$0xff] }
 0x198   : > { %3073 = vmatpush1.bf16.msra.mxu0 %v11361_v3  ;;  %3196 = vmatpush1.bf16.msra.mxu1 %v11363_v4  ;;  %v754_v3 = vld [vmem:[%s12973_s10 + $0xbb0] sm:$0xff]  ;;  %v751_v4 = vld [vmem:[%s12973_s10 + $0xb98] sm:$0xff] }
 0x199   : > { %3074 = vmatprep.subr.bf16.mxu0 %v11370_v5  ;;  %3197 = vmatprep.subr.bf16.mxu1 %v11372_v32  ;;  %v755_v5 = vld [vmem:[%s12973_s10 + $0xbb8] sm:$0xff]  ;;  %v11425_v32 = vcombine.low %v742_v55, %v746_v56  ;;  %v11434_v7 = vcombine.high %v750_v2, %v754_v3  ;;  %v11478_v55 = vcombine.high %v3266_v50, %v3270_v49 }
 0x19a   : > { %v11436_v8 = vcombine.high %v751_v4, %v755_v5  ;;  %v11435_v15 = vcombine.low %v751_v4, %v755_v5  ;;  %v11486_v4 = vcombine.high %v3274_v57, %v3278_v58 }
 0x19c   : > { %3075 = vmatpush1.bf16.msra.mxu0 %v11369_v11  ;;  %3198 = vmatpush1.bf16.msra.mxu1 %v11371_v12  ;;  %v762_v11 = vld [vmem:[%s12973_s10 + $0xbf0] sm:$0xff]  ;;  %v759_v12 = vld [vmem:[%s12973_s10 + $0xbd8] sm:$0xff] }
 0x19d   : > { %3076 = vmatprep.subr.bf16.mxu0 %v11378_v13  ;;  %3199 = vmatprep.subr.bf16.mxu1 %v11380_v14  ;;  %v763_v13 = vld [vmem:[%s12973_s10 + $0xbf8] sm:$0xff]  ;;  %v11433_v14 = vcombine.low %v750_v2, %v754_v3  ;;  %v11442_v59 = vcombine.high %v758_v10, %v762_v11  ;;  %s764_s10 = sshra.s32 %s12782_s24, 2 }
 0x19e   : > { %v11444_v17 = vcombine.high %v759_v12, %v763_v13  ;;  %v11443_v23 = vcombine.low %v759_v12, %v763_v13  ;;  %s12478_s16 = sshll.u32 %s764_s10, 5 }
 0x19f   : > { %s770_s18 = sadd.s32 %s12478_s16, %s767_s15 }
 0x1a0   : > { %3077 = vmatpush1.bf16.msra.mxu0 %v11377_v19  ;;  %3200 = vmatpush1.bf16.msra.mxu1 %v11379_v20  ;;  %v3238_v19 = vld [vmem:[%s12954_s14 + $0x20] sm:$0xff]  ;;  %v3235_v20 = vld [vmem:[%s12954_s14 + $0x8] sm:$0xff]  ;;  %s13467_s21 = scalar_lea.vmem %s14751_s2, %s770_s18 }
 0x1a1   : > { %3078 = vmatprep.subr.bf16.mxu0 %v11386_v21  ;;  %3201 = vmatprep.subr.bf16.mxu1 %v11388_v22  ;;  %v3239_v21 = vld [vmem:[%s12954_s14 + $0x28] sm:$0xff]  ;;  %v11441_v22 = vcombine.low %v758_v10, %v762_v11  ;;  %v11446_v24 = vcombine.high %v3234_v18, %v3238_v19  ;;  %v11485_v11 = vcombine.low %v3274_v57, %v3278_v58  ;;  %v3326_v57 = vld [vmem:[%s12954_s14 + $0x2e0] sm:$0xff] }
 0x1a2   : > { %v11448_v9 = vcombine.high %v3235_v20, %v3239_v21  ;;  %v11447_v30 = vcombine.low %v3235_v20, %v3239_v21  ;;  %v13475_v3 = vld [vmem:[%s13467_s21] ss:$4 sm:$0xff] }
 0x1a3   : > { %v3291_v20 = vld [vmem:[%s12954_s14 + $0x1c8] sm:$0xff] }
 0x1a4   : > { %3079 = vmatpush1.bf16.msra.mxu0 %v11385_v27  ;;  %3202 = vmatpush1.bf16.msra.mxu1 %v11387_v28  ;;  %v3246_v27 = vld [vmem:[%s12954_s14 + $0x60] sm:$0xff]  ;;  %v3243_v28 = vld [vmem:[%s12954_s14 + $0x48] sm:$0xff] }
 0x1a5   : > { %3080 = vmatprep.subr.bf16.mxu0 %v11394_v29  ;;  %3203 = vmatprep.subr.bf16.mxu1 %v11396_v25  ;;  %v3247_v29 = vld [vmem:[%s12954_s14 + $0x68] sm:$0xff]  ;;  %v11445_v25 = vcombine.low %v3234_v18, %v3238_v19  ;;  %v11454_v31 = vcombine.high %v3242_v26, %v3246_v27  ;;  %v3294_v19 = vld [vmem:[%s12954_s14 + $0x1e0] sm:$0xff] }
 0x1a6   : > { %v11456_v33 = vcombine.high %v3243_v28, %v3247_v29  ;;  %v11455_v34 = vcombine.low %v3243_v28, %v3247_v29  ;;  %v3295_v21 = vld [vmem:[%s12954_s14 + $0x1e8] sm:$0xff] }
 0x1a7   : > { %v3323_v58 = vld [vmem:[%s12954_s14 + $0x2c8] sm:$0xff] }
 0x1a8   : > { %3081 = vmatpush1.bf16.msra.mxu0 %v11393_v35  ;;  %3204 = vmatpush1.bf16.msra.mxu1 %v11395_v36  ;;  %v3254_v35 = vld [vmem:[%s12954_s14 + $0xa0] sm:$0xff]  ;;  %v3251_v36 = vld [vmem:[%s12954_s14 + $0x88] sm:$0xff] }
 0x1a9   : > { %3082 = vmatprep.subr.bf16.mxu0 %v11402_v37  ;;  %3205 = vmatprep.subr.bf16.mxu1 %v11404_v38  ;;  %v3255_v37 = vld [vmem:[%s12954_s14 + $0xa8] sm:$0xff]  ;;  %v11453_v38 = vcombine.low %v3242_v26, %v3246_v27  ;;  %v11462_v40 = vcombine.high %v3250_v63, %v3254_v35 }
 0x1aa   : > { %v11464_v39 = vcombine.high %v3251_v36, %v3255_v37 }
 0x1ac   : > { %3083 = vmatpush1.bf16.msra.mxu0 %v11401_v42  ;;  %3206 = vmatpush1.bf16.msra.mxu1 %v11403_v43  ;;  %v3262_v42 = vld [vmem:[%s12954_s14 + $0xe0] sm:$0xff]  ;;  %v3259_v43 = vld [vmem:[%s12954_s14 + $0xc8] sm:$0xff] }
 0x1ad   : > { %3084 = vmatprep.subr.bf16.mxu0 %v11410_v45  ;;  %3207 = vmatprep.subr.bf16.mxu1 %v11412_v46  ;;  %v3263_v45 = vld [vmem:[%s12954_s14 + $0xe8] sm:$0xff]  ;;  %v11463_v46 = vcombine.low %v3251_v36, %v3255_v37  ;;  %v11470_v47 = vcombine.high %v3258_v41, %v3262_v42 }
 0x1ae   : > { %v11472_v48 = vcombine.high %v3259_v43, %v3263_v45  ;;  %v3303_v36 = vld [vmem:[%s12954_s14 + $0x228] sm:$0xff] }
 0x1b0   : > { %3085 = vmatpush1.bf16.msra.mxu0 %v11409_v16  ;;  %3208 = vmatpush1.bf16.msra.mxu1 %v11411_v51  ;;  %v3267_v16 = vld [vmem:[%s12954_s14 + $0x108] sm:$0xff] }
 0x1b1   : > { %3086 = vmatprep.subr.bf16.mxu0 %v11418_v52  ;;  %3209 = vmatprep.subr.bf16.mxu1 %v11420_v54  ;;  %v3271_v51 = vld [vmem:[%s12954_s14 + $0x128] sm:$0xff]  ;;  %v11469_v52 = vcombine.low %v3258_v41, %v3262_v42  ;;  %v11471_v54 = vcombine.low %v3259_v43, %v3263_v45  ;;  %v3310_v41 = vld [vmem:[%s12954_s14 + $0x260] sm:$0xff] }
 0x1b2   : > { %v11480_v56 = vcombine.high %v3267_v16, %v3271_v51  ;;  %v11479_v2 = vcombine.low %v3267_v16, %v3271_v51  ;;  %v3307_v42 = vld [vmem:[%s12954_s14 + $0x248] sm:$0xff] }
 0x1b3   : > { %v3311_v43 = vld [vmem:[%s12954_s14 + $0x268] sm:$0xff] }
 0x1b4   : > { %3087 = vmatpush1.bf16.msra.mxu0 %v11417_v61  ;;  %3210 = vmatpush1.bf16.msra.mxu1 %v11419_v62  ;;  %v3275_v61 = vld [vmem:[%s12954_s14 + $0x148] sm:$0xff] }
 0x1b5   : > { %3088 = vmatprep.subr.bf16.mxu0 %v11426_v0  ;;  %3211 = vmatprep.subr.bf16.mxu1 %v11428_v1  ;;  %v3279_v62 = vld [vmem:[%s12954_s14 + $0x168] sm:$0xff]  ;;  %v11477_v0 = vcombine.low %v3266_v50, %v3270_v49  ;;  %v780_v1 = vsub.s32 1, %v13008_v44  ;;  %v3318_v50 = vld [vmem:[%s12954_s14 + $0x2a0] sm:$0xff] }
 0x1b6   : > { %v11488_v5 = vcombine.high %v3275_v61, %v3279_v62  ;;  %v11487_v12 = vcombine.low %v3275_v61, %v3279_v62  ;;  %v3315_v49 = vld [vmem:[%s12954_s14 + $0x288] sm:$0xff] }
 0x1b7   : > { %v781_v10 = vrot.slane %v13475_v3, %v780_v1  ;;  %v3319_v16 = vld [vmem:[%s12954_s14 + $0x2a8] sm:$0xff] }
 0x1b8   : > { %3089 = vmatpush1.bf16.msra.mxu0 %v11425_v32  ;;  %3212 = vmatpush1.bf16.msra.mxu1 %v11427_v6  ;;  %v3282_v32 = vld [vmem:[%s12954_s14 + $0x180] sm:$0xff]  ;;  %v3327_v61 = vld [vmem:[%s12954_s14 + $0x2e8] sm:$0xff] }
 0x1b9   : > { %3090 = vmatprep.subr.bf16.mxu0 %v11434_v7  ;;  %3213 = vmatprep.subr.bf16.mxu1 %v11436_v8  ;;  %v3286_v6 = vld [vmem:[%s12954_s14 + $0x1a0] sm:$0xff]  ;;  %v3283_v7 = vld [vmem:[%s12954_s14 + $0x188] sm:$0xff] }
 0x1ba   : > { %v3287_v8 = vld [vmem:[%s12954_s14 + $0x1a8] sm:$0xff]  ;;  %v11494_v13 = vcombine.high %v3282_v32, %v3286_v6 }
 0x1bb   : > { %v11495_v28 = vcombine.low %v3283_v7, %v3287_v8 }
 0x1bc   : > { %3091 = vmatpush1.bf16.msra.mxu0 %v11433_v14  ;;  %3214 = vmatpush1.bf16.msra.mxu1 %v11435_v15  ;;  %v11496_v15 = vcombine.high %v3283_v7, %v3287_v8  ;;  %v3335_v7 = vld [vmem:[%s12954_s14 + $0x328] sm:$0xff] }
 0x1bd   : > { %3092 = vmatprep.subr.bf16.mxu0 %v11442_v59  ;;  %3215 = vmatprep.subr.bf16.mxu1 %v11444_v17  ;;  %v3290_v59 = vld [vmem:[%s12954_s14 + $0x1c0] sm:$0xff] }
 0x1be   : > { %v11501_v37 = vcombine.low %v3290_v59, %v3294_v19 }
 0x1c0   : > { %3093 = vmatpush1.bf16.msra.mxu0 %v11441_v22  ;;  %3216 = vmatpush1.bf16.msra.mxu1 %v11443_v23 }
 0x1c1   : > { %6263 = vmatprep.subr.bf16.mxu0 %v11446_v24  ;;  %6427 = vmatprep.subr.bf16.mxu1 %v11448_v9  ;;  %v11493_v9 = vcombine.low %v3282_v32, %v3286_v6  ;;  %v3334_v32 = vld [vmem:[%s12954_s14 + $0x320] sm:$0xff]  ;;  %v3331_v6 = vld [vmem:[%s12954_s14 + $0x308] sm:$0xff] }
 0x1c3   : > { %3095 = vmatmul.mubr.bf16.vlgmr.msra.gmra.mrb[4].mxu0 %v13240_v60  ;;  %3218 = vmatmul.mubr.bf16.vlgmr.msra.gmra.mrb[4].mxu1 %v13240_v60  ;;  %v11461_v60 = vcombine.low %v3250_v63, %v3254_v35  ;;  %v3302_v63 = vld [vmem:[%s12954_s14 + $0x220] sm:$0xff]  ;;  %v3299_v35 = vld [vmem:[%s12954_s14 + $0x208] sm:$0xff] }
 0x1c4   : > { %6264 = vmatpush1.bf16.msra.mxu0 %v11445_v25  ;;  %6428 = vmatpush1.bf16.msra.mxu1 %v11447_v30  ;;  %v11502_v30 = vcombine.high %v3290_v59, %v3294_v19  ;;  %v3339_v59 = vld [vmem:[%s12954_s14 + $0x348] sm:$0xff] }
 0x1c5   : > { %6265 = vmatprep.subr.bf16.mxu0 %v11454_v31  ;;  %6429 = vmatprep.subr.bf16.mxu1 %v11456_v33  ;;  %v11504_v31 = vcombine.high %v3291_v20, %v3295_v21  ;;  %v3298_v33 = vld [vmem:[%s12954_s14 + $0x200] sm:$0xff] }
 0x1c6   : > { %v11509_v45 = vcombine.low %v3298_v33, %v3302_v63 }
 0x1c8   : > { %6266 = vmatpush1.bf16.msra.mxu0 %v11453_v38  ;;  %6430 = vmatpush1.bf16.msra.mxu1 %v11455_v34  ;;  %v11503_v38 = vcombine.low %v3291_v20, %v3295_v21  ;;  %v11510_v34 = vcombine.high %v3298_v33, %v3302_v63  ;;  %v11543_v20 = vcombine.low %v3331_v6, %v3335_v7  ;;  %v3354_v63 = vld [vmem:[%s12954_s14 + $0x3c0] sm:$0xff] }
 0x1c9   : > { %6267 = vmatprep.subr.bf16.mxu0 %v11462_v40  ;;  %6431 = vmatprep.subr.bf16.mxu1 %v11464_v39  ;;  %v11512_v40 = vcombine.high %v3299_v35, %v3303_v36  ;;  %v3306_v39 = vld [vmem:[%s12954_s14 + $0x240] sm:$0xff] }
 0x1ca   : > { %v11517_v51 = vcombine.low %v3306_v39, %v3310_v41 }
 0x1cc   : > { %6268 = vmatpush1.bf16.msra.mxu0 %v11461_v60  ;;  %6432 = vmatpush1.bf16.msra.mxu1 %v11463_v46  ;;  %v11511_v60 = vcombine.low %v3299_v35, %v3303_v36  ;;  %v11518_v46 = vcombine.high %v3306_v39, %v3310_v41  ;;  %v3358_v35 = vld [vmem:[%s12954_s14 + $0x3e0] sm:$0xff]  ;;  %v788_v36 = vsub.s32 3, %v13008_v44 }
 0x1cd   : > { %6269 = vmatprep.subr.bf16.mxu0 %v11470_v47  ;;  %6433 = vmatprep.subr.bf16.mxu1 %v11472_v48  ;;  %v11520_v47 = vcombine.high %v3307_v42, %v3311_v43  ;;  %v3314_v48 = vld [vmem:[%s12954_s14 + $0x280] sm:$0xff]  ;;  %v11566_v41 = vcombine.high %v3354_v63, %v3358_v35 }
 0x1ce   : > { %v11525_v62 = vcombine.low %v3314_v48, %v3318_v50 }
 0x1d0   : > { %6270 = vmatpush1.bf16.msra.mxu0 %v11469_v52  ;;  %6434 = vmatpush1.bf16.msra.mxu1 %v11471_v54  ;;  %v11519_v52 = vcombine.low %v3307_v42, %v3311_v43  ;;  %v11526_v54 = vcombine.high %v3314_v48, %v3318_v50  ;;  %v3362_v43 = vld [vmem:[%s12954_s14 + $0x400] sm:$0xff]  ;;  %v11565_v48 = vcombine.low %v3354_v63, %v3358_v35  ;;  %v3403_v63 = vld [vmem:[%s12954_s14 + $0x548] sm:$0xff] }
 0x1d1   : > { %6271 = vmatprep.subr.bf16.mxu0 %v11478_v55  ;;  %6435 = vmatprep.subr.bf16.mxu1 %v11480_v56  ;;  %v11528_v55 = vcombine.high %v3315_v49, %v3319_v16  ;;  %v3322_v56 = vld [vmem:[%s12954_s14 + $0x2c0] sm:$0xff]  ;;  %v3407_v35 = vld [vmem:[%s12954_s14 + $0x568] sm:$0xff] }
 0x1d2   : > { %v11533_v8 = vcombine.low %v3322_v56, %v3326_v57 }
 0x1d4   : > { %6272 = vmatpush1.bf16.msra.mxu0 %v11477_v0  ;;  %6436 = vmatpush1.bf16.msra.mxu1 %v11479_v2  ;;  %v11527_v0 = vcombine.low %v3315_v49, %v3319_v16  ;;  %v11534_v2 = vcombine.high %v3322_v56, %v3326_v57  ;;  %v3371_v57 = vld [vmem:[%s12954_s14 + $0x448] sm:$0xff] }
 0x1d5   : > { %6273 = vmatprep.subr.bf16.mxu0 %v11486_v4  ;;  %6437 = vmatprep.subr.bf16.mxu1 %v11488_v5  ;;  %v11536_v4 = vcombine.high %v3323_v58, %v3327_v61  ;;  %v3330_v5 = vld [vmem:[%s12954_s14 + $0x300] sm:$0xff] }
 0x1d6   : > { %v13484_v14 = vpop.f32.mrb[0].mxu0  ;;  %v13487_v17 = vpop.f32.mrb[0].mxu1  ;;  %v11541_v19 = vcombine.low %v3330_v5, %v3334_v32 }
 0x1d7   : > { %v2852_v18 = vpop.f32.mrb[1].mxu0  ;;  %v13492_v23 = vpop.f32.mrb[1].mxu1 }
 0x1d8   : > { %v12480_v22 = vadd.f32 %v2852_v18, %v781_v10  ;;  %v2854_v24 = vpop.f32.mrb[2].mxu0  ;;  %6274 = vmatpush1.bf16.msra.mxu0 %v11485_v11  ;;  %v2977_v26 = vpop.f32.mrb[2].mxu1  ;;  %6438 = vmatpush1.bf16.msra.mxu1 %v11487_v12  ;;  %v11535_v10 = vcombine.low %v3323_v58, %v3327_v61  ;;  %v11542_v11 = vcombine.high %v3330_v5, %v3334_v32  ;;  %v3343_v18 = vld [vmem:[%s12954_s14 + $0x368] sm:$0xff] }
 0x1d9   : > { %v2855_v27 = vpop.f32.mrb[3].mxu0  ;;  %6275 = vmatprep.subr.bf16.mxu0 %v11494_v13  ;;  %v2978_v25 = vpop.f32.mrb[3].mxu1  ;;  %6439 = vmatprep.subr.bf16.mxu1 %v11496_v15  ;;  %v11544_v12 = vcombine.high %v3331_v6, %v3335_v7  ;;  %v3338_v13 = vld [vmem:[%s12954_s14 + $0x340] sm:$0xff]  ;;  %v3347_v26 = vld [vmem:[%s12954_s14 + $0x388] sm:$0xff] }
 0x1da   : > { %v13494_v29 = vpack.c.bf16 %v12480_v22, %v12480_v22  ;;  %v3342_v15 = vld [vmem:[%s12954_s14 + $0x360] sm:$0xff]  ;;  %v11552_v22 = vcombine.high %v3339_v59, %v3343_v18  ;;  %v3351_v27 = vld [vmem:[%s12954_s14 + $0x3a8] sm:$0xff]  ;;  %v776_v25 = vsub.s32 0, %v13008_v44 }
 0x1db   : > { %v11550_v21 = vcombine.high %v3338_v13, %v3342_v15  ;;  %v3346_v24 = vld [vmem:[%s12954_s14 + $0x380] sm:$0xff]  ;;  %v11560_v33 = vcombine.high %v3347_v26, %v3351_v27  ;;  %v11559_v39 = vcombine.low %v3347_v26, %v3351_v27  ;;  %v3375_v58 = vld [vmem:[%s12954_s14 + $0x468] sm:$0xff] }
 0x1dc   : > { %6276 = vmatpush1.bf16.msra.mxu0 %v11493_v9  ;;  %6295 = vmatprep.mubr.bf16.mxu0 %v13494_v29  ;;  %v3350_v9 = vld [vmem:[%s12954_s14 + $0x3a0] sm:$0xff]  ;;  %v3379_v5 = vld [vmem:[%s12954_s14 + $0x488] sm:$0xff]  ;;  %v11583_v7 = vcombine.low %v3371_v57, %v3375_v58 }
 0x1dd   : > { %6440 = vmatpush1.bf16.msra.mxu1 %v11495_v28  ;;  %6459 = vmatprep.mubr.bf16.mxu1 %v13494_v29  ;;  %v11549_v28 = vcombine.low %v3338_v13, %v3342_v15  ;;  %v3383_v32 = vld [vmem:[%s12954_s14 + $0x4a8] sm:$0xff] }
 0x1de   : > { %6277 = vmatprep.subr.bf16.mxu0 %v11502_v30  ;;  %6441 = vmatprep.subr.bf16.mxu1 %v11504_v31  ;;  %v11551_v30 = vcombine.low %v3339_v59, %v3343_v18  ;;  %v11558_v31 = vcombine.high %v3346_v24, %v3350_v9  ;;  %v3387_v13 = vld [vmem:[%s12954_s14 + $0x4c8] sm:$0xff]  ;;  %v11591_v18 = vcombine.low %v3379_v5, %v3383_v32 }
 0x1df   : > { %v3391_v15 = vld [vmem:[%s12954_s14 + $0x4e8] sm:$0xff] }
 0x1e0   : > { %6278 = vmatpush1.bf16.msra.mxu0 %v11501_v37  ;;  %v3355_v37 = vld [vmem:[%s12954_s14 + $0x3c8] sm:$0xff]  ;;  %v11599_v27 = vcombine.low %v3387_v13, %v3391_v15 }
 0x1e1   : > { %6442 = vmatpush1.bf16.msra.mxu1 %v11503_v38  ;;  %6279 = vmatprep.subr.bf16.mxu0 %v11510_v34  ;;  %v3359_v38 = vld [vmem:[%s12954_s14 + $0x3e8] sm:$0xff]  ;;  %v11557_v34 = vcombine.low %v3346_v24, %v3350_v9 }
 0x1e2   : > { %6443 = vmatprep.subr.bf16.mxu1 %v11512_v40  ;;  %v777_v40 = vrot.slane %v13475_v3, %v776_v25  ;;  %v11568_v42 = vcombine.high %v3355_v37, %v3359_v38  ;;  %v11567_v49 = vcombine.low %v3355_v37, %v3359_v38  ;;  %v3395_v24 = vld [vmem:[%s12954_s14 + $0x508] sm:$0xff] }
 0x1e3   : > { %v3399_v9 = vld [vmem:[%s12954_s14 + $0x528] sm:$0xff] }
 0x1e4   : > { %6280 = vmatpush1.bf16.msra.mxu0 %v11509_v45  ;;  %v3366_v45 = vld [vmem:[%s12954_s14 + $0x420] sm:$0xff]  ;;  %v12479_v50 = vadd.f32 %v13484_v14, %v777_v40  ;;  %v11607_v38 = vcombine.low %v3395_v24, %v3399_v9  ;;  %v11616_v40 = vcombine.high %v3403_v63, %v3407_v35 }
 0x1e5   : > { %6444 = vmatpush1.bf16.msra.mxu1 %v11511_v60  ;;  %6281 = vmatprep.subr.bf16.mxu0 %v11518_v46  ;;  %v789_v60 = vrot.slane %v13475_v3, %v788_v36  ;;  %v3363_v46 = vld [vmem:[%s12954_s14 + $0x408] sm:$0xff]  ;;  %v11574_v16 = vcombine.high %v3362_v43, %v3366_v45  ;;  %v11573_v56 = vcombine.low %v3362_v43, %v3366_v45 }
 0x1e6   : > { %6445 = vmatprep.subr.bf16.mxu1 %v11520_v47  ;;  %v3367_v47 = vld [vmem:[%s12954_s14 + $0x428] sm:$0xff]  ;;  %v13548_v61 = vpack.c.bf16 %v12479_v50, %v12479_v50  ;;  %v3422_v50 = vld [vmem:[%s12954_s14 + $0x5e0] sm:$0xff] }
 0x1e7   : > { %v11575_v14 = vcombine.low %v3363_v46, %v3367_v47  ;;  %v3415_v43 = vld [vmem:[%s12954_s14 + $0x5a8] sm:$0xff] }
 0x1e8   : > { %6282 = vmatpush1.bf16.msra.mxu0 %v11517_v51  ;;  %v11576_v51 = vcombine.high %v3363_v46, %v3367_v47 }
 0x1e9   : > { %6446 = vmatpush1.bf16.msra.mxu1 %v11519_v52  ;;  %6283 = vmatprep.subr.bf16.mxu0 %v11526_v54  ;;  %v12482_v52 = vadd.f32 %v13492_v23, %v789_v60  ;;  %v3370_v54 = vld [vmem:[%s12954_s14 + $0x440] sm:$0xff]  ;;  %v11584_v23 = vcombine.high %v3371_v57, %v3375_v58  ;;  %v11615_v60 = vcombine.low %v3403_v63, %v3407_v35  ;;  %v3427_v58 = vld [vmem:[%s12954_s14 + $0x608] sm:$0xff] }
 0x1ea   : > { %6447 = vmatprep.subr.bf16.mxu1 %v11528_v55  ;;  %v3374_v55 = vld [vmem:[%s12954_s14 + $0x460] sm:$0xff] }
 0x1eb   : > { %v11581_v6 = vcombine.low %v3370_v54, %v3374_v55  ;;  %v3430_v57 = vld [vmem:[%s12954_s14 + $0x620] sm:$0xff] }
 0x1ec   : > { %6284 = vmatpush1.bf16.msra.mxu0 %v11525_v62  ;;  %v11582_v62 = vcombine.high %v3370_v54, %v3374_v55  ;;  %v3458_v63 = vld [vmem:[%s12954_s14 + $0x700] sm:$0xff] }
 0x1ed   : > { %6448 = vmatpush1.bf16.msra.mxu1 %v11527_v0  ;;  %6285 = vmatprep.subr.bf16.mxu0 %v11534_v2  ;;  %v3378_v0 = vld [vmem:[%s12954_s14 + $0x480] sm:$0xff] }
 0x1ee   : > { %6449 = vmatprep.subr.bf16.mxu1 %v11536_v4  ;;  %v3382_v2 = vld [vmem:[%s12954_s14 + $0x4a0] sm:$0xff]  ;;  %v13552_v4 = vpack.c.bf16 %v12482_v52, %v12482_v52 }
 0x1ef   : > { %v11589_v59 = vcombine.low %v3378_v0, %v3382_v2  ;;  %v3462_v35 = vld [vmem:[%s12954_s14 + $0x720] sm:$0xff] }
 0x1f0   : > { %6286 = vmatpush1.bf16.msra.mxu0 %v11533_v8  ;;  %v11590_v8 = vcombine.high %v3378_v0, %v3382_v2 }
 0x1f1   : > { %6450 = vmatpush1.bf16.msra.mxu1 %v11535_v10  ;;  %6287 = vmatprep.subr.bf16.mxu0 %v11542_v11  ;;  %v11592_v10 = vcombine.high %v3379_v5, %v3383_v32  ;;  %v3386_v11 = vld [vmem:[%s12954_s14 + $0x4c0] sm:$0xff] }
 0x1f2   : > { %6451 = vmatprep.subr.bf16.mxu1 %v11544_v12  ;;  %v3390_v12 = vld [vmem:[%s12954_s14 + $0x4e0] sm:$0xff] }
 0x1f3   : > { %v11597_v26 = vcombine.low %v3386_v11, %v3390_v12  ;;  %v3434_v5 = vld [vmem:[%s12954_s14 + $0x640] sm:$0xff] }
 0x1f4   : > { %6288 = vmatpush1.bf16.msra.mxu0 %v11541_v19  ;;  %v11598_v19 = vcombine.high %v3386_v11, %v3390_v12  ;;  %v3438_v32 = vld [vmem:[%s12954_s14 + $0x660] sm:$0xff] }
 0x1f5   : > { %6452 = vmatpush1.bf16.msra.mxu1 %v11543_v20  ;;  %6289 = vmatprep.subr.bf16.mxu0 %v11550_v21  ;;  %v11600_v20 = vcombine.high %v3387_v13, %v3391_v15  ;;  %v3394_v21 = vld [vmem:[%s12954_s14 + $0x500] sm:$0xff]  ;;  %v11646_v11 = vcombine.high %v3434_v5, %v3438_v32 }
 0x1f6   : > { %6453 = vmatprep.subr.bf16.mxu1 %v11552_v22  ;;  %v3398_v22 = vld [vmem:[%s12954_s14 + $0x520] sm:$0xff] }
 0x1f7   : > { %v11605_v37 = vcombine.low %v3394_v21, %v3398_v22  ;;  %v3442_v13 = vld [vmem:[%s12954_s14 + $0x680] sm:$0xff] }
 0x1f8   : > { %6290 = vmatpush1.bf16.msra.mxu0 %v11549_v28  ;;  %v11606_v28 = vcombine.high %v3394_v21, %v3398_v22  ;;  %v3446_v15 = vld [vmem:[%s12954_s14 + $0x6a0] sm:$0xff] }
 0x1f9   : > { %6454 = vmatpush1.bf16.msra.mxu1 %v11551_v30  ;;  %6291 = vmatprep.subr.bf16.mxu0 %v11558_v31  ;;  %v11608_v30 = vcombine.high %v3395_v24, %v3399_v9  ;;  %v3402_v31 = vld [vmem:[%s12954_s14 + $0x540] sm:$0xff]  ;;  %v11654_v21 = vcombine.high %v3442_v13, %v3446_v15 }
 0x1fa   : > { %6455 = vmatprep.subr.bf16.mxu1 %v11560_v33  ;;  %v3406_v33 = vld [vmem:[%s12954_s14 + $0x560] sm:$0xff] }
 0x1fb   : > { %v11613_v45 = vcombine.low %v3402_v31, %v3406_v33  ;;  %v3450_v24 = vld [vmem:[%s12954_s14 + $0x6c0] sm:$0xff] }
 0x1fc   : > { %6292 = vmatpush1.bf16.msra.mxu0 %v11557_v34  ;;  %v11614_v34 = vcombine.high %v3402_v31, %v3406_v33  ;;  %v3454_v9 = vld [vmem:[%s12954_s14 + $0x6e0] sm:$0xff] }
 0x1fd   : > { %6456 = vmatpush1.bf16.msra.mxu1 %v11559_v39  ;;  %6293 = vmatprep.subr.bf16.mxu0 %v11566_v41  ;;  %v3410_v39 = vld [vmem:[%s12954_s14 + $0x580] sm:$0xff]  ;;  %v11662_v31 = vcombine.high %v3450_v24, %v3454_v9 }
 0x1fe   : > { %6457 = vmatprep.subr.bf16.mxu1 %v11568_v42  ;;  %v3414_v41 = vld [vmem:[%s12954_s14 + $0x5a0] sm:$0xff]  ;;  %v3411_v42 = vld [vmem:[%s12954_s14 + $0x588] sm:$0xff] }
 0x1ff   : > { %v11622_v46 = vcombine.high %v3410_v39, %v3414_v41  ;;  %v11624_v47 = vcombine.high %v3411_v42, %v3415_v43  ;;  %v11623_v52 = vcombine.low %v3411_v42, %v3415_v43  ;;  %v3466_v42 = vld [vmem:[%s12954_s14 + $0x740] sm:$0xff] }
 0x200   : > { %6294 = vmatpush1.bf16.msra.mxu0 %v11565_v48  ;;  %v3418_v48 = vld [vmem:[%s12954_s14 + $0x5c0] sm:$0xff] }
 0x201   : > { %6458 = vmatpush1.bf16.msra.mxu1 %v11567_v49  ;;  %6304 = vmatprep.subr.bf16.mxu0 %v11574_v16  ;;  %v3419_v49 = vld [vmem:[%s12954_s14 + $0x5c8] sm:$0xff]  ;;  %v11630_v54 = vcombine.high %v3418_v48, %v3422_v50  ;;  %v3470_v43 = vld [vmem:[%s12954_s14 + $0x760] sm:$0xff] }
 0x202   : > { %6468 = vmatprep.subr.bf16.mxu1 %v11576_v51  ;;  %v3423_v16 = vld [vmem:[%s12954_s14 + $0x5e8] sm:$0xff]  ;;  %v11621_v51 = vcombine.low %v3410_v39, %v3414_v41  ;;  %v11670_v39 = vcombine.high %v3458_v63, %v3462_v35 }
 0x203   : > { %6296 = vmatmul.mubr.bf16.vlgmr.msra.gmra.mrb[8].mxu0 %v13548_v61  ;;  %v11632_v55 = vcombine.high %v3419_v49, %v3423_v16  ;;  %v11631_v0 = vcombine.low %v3419_v49, %v3423_v16  ;;  %v3474_v49 = vld [vmem:[%s12954_s14 + $0x780] sm:$0xff] }
 0x204   : > { %6460 = vmatmul.mubr.bf16.vlgmr.msra.gmra.mrb[8].mxu1 %v13548_v61  ;;  %6305 = vmatpush1.bf16.msra.mxu0 %v11573_v56  ;;  %v3426_v56 = vld [vmem:[%s12954_s14 + $0x600] sm:$0xff] }
 0x205   : > { %6336 = vmatprep.mubr.bf16.mxu0 %v13552_v4  ;;  %6469 = vmatpush1.bf16.msra.mxu1 %v11575_v14  ;;  %v3431_v14 = vld [vmem:[%s12954_s14 + $0x628] sm:$0xff]  ;;  %v11638_v2 = vcombine.high %v3426_v56, %v3430_v57  ;;  %v3478_v16 = vld [vmem:[%s12954_s14 + $0x7a0] sm:$0xff] }
 0x206   : > { %6500 = vmatprep.mubr.bf16.mxu1 %v13552_v4  ;;  %6306 = vmatprep.subr.bf16.mxu0 %v11582_v62  ;;  %v11629_v62 = vcombine.low %v3418_v48, %v3422_v50  ;;  %v11678_v48 = vcombine.high %v3466_v42, %v3470_v43 }
 0x207   : > { %6470 = vmatprep.subr.bf16.mxu1 %v11584_v23  ;;  %v11640_v23 = vcombine.high %v3427_v58, %v3431_v14 }
 0x208   : > { %6307 = vmatpush1.bf16.msra.mxu0 %v11581_v6  ;;  %v3435_v6 = vld [vmem:[%s12954_s14 + $0x648] sm:$0xff] }
 0x209   : > { %6471 = vmatpush1.bf16.msra.mxu1 %v11583_v7  ;;  %6308 = vmatprep.subr.bf16.mxu0 %v11590_v8  ;;  %v3439_v7 = vld [vmem:[%s12954_s14 + $0x668] sm:$0xff]  ;;  %v11637_v8 = vcombine.low %v3426_v56, %v3430_v57  ;;  %v11686_v57 = vcombine.high %v3474_v49, %v3478_v16 }
 0x20a   : > { %6472 = vmatprep.subr.bf16.mxu1 %v11592_v10  ;;  %v11639_v10 = vcombine.low %v3427_v58, %v3431_v14  ;;  %v11648_v12 = vcombine.high %v3435_v6, %v3439_v7  ;;  %v3482_v14 = vld [vmem:[%s12954_s14 + $0x7c0] sm:$0xff] }
 0x20c   : > { %6309 = vmatpush1.bf16.msra.mxu0 %v11589_v59  ;;  %v3443_v59 = vld [vmem:[%s12954_s14 + $0x688] sm:$0xff] }
 0x20d   : > { %6473 = vmatpush1.bf16.msra.mxu1 %v11591_v18  ;;  %6310 = vmatprep.subr.bf16.mxu0 %v11598_v19  ;;  %v3447_v18 = vld [vmem:[%s12954_s14 + $0x6a8] sm:$0xff]  ;;  %v11645_v19 = vcombine.low %v3434_v5, %v3438_v32 }
 0x20e   : > { %6474 = vmatprep.subr.bf16.mxu1 %v11600_v20  ;;  %v11647_v20 = vcombine.low %v3435_v6, %v3439_v7  ;;  %v11656_v22 = vcombine.high %v3443_v59, %v3447_v18 }
 0x210   : > { %6311 = vmatpush1.bf16.msra.mxu0 %v11597_v26  ;;  %v3451_v26 = vld [vmem:[%s12954_s14 + $0x6c8] sm:$0xff] }
 0x211   : > { %6475 = vmatpush1.bf16.msra.mxu1 %v11599_v27  ;;  %6312 = vmatprep.subr.bf16.mxu0 %v11606_v28  ;;  %v3455_v27 = vld [vmem:[%s12954_s14 + $0x6e8] sm:$0xff]  ;;  %v11653_v28 = vcombine.low %v3442_v13, %v3446_v15 }
 0x212   : > { %6476 = vmatprep.subr.bf16.mxu1 %v11608_v30  ;;  %v11655_v30 = vcombine.low %v3443_v59, %v3447_v18  ;;  %v11664_v33 = vcombine.high %v3451_v26, %v3455_v27 }
 0x214   : > { %6313 = vmatpush1.bf16.msra.mxu0 %v11605_v37  ;;  %v3459_v37 = vld [vmem:[%s12954_s14 + $0x708] sm:$0xff] }
 0x215   : > { %6477 = vmatpush1.bf16.msra.mxu1 %v11607_v38  ;;  %6314 = vmatprep.subr.bf16.mxu0 %v11614_v34  ;;  %v3463_v38 = vld [vmem:[%s12954_s14 + $0x728] sm:$0xff]  ;;  %v11661_v34 = vcombine.low %v3450_v24, %v3454_v9 }
 0x216   : > { %6478 = vmatprep.subr.bf16.mxu1 %v11616_v40  ;;  %v11663_v40 = vcombine.low %v3451_v26, %v3455_v27  ;;  %v11672_v41 = vcombine.high %v3459_v37, %v3463_v38 }
 0x218   : > { %6315 = vmatpush1.bf16.msra.mxu0 %v11613_v45  ;;  %v3467_v45 = vld [vmem:[%s12954_s14 + $0x748] sm:$0xff] }
 0x219   : > { %6479 = vmatpush1.bf16.msra.mxu1 %v11615_v60  ;;  %6316 = vmatprep.subr.bf16.mxu0 %v11622_v46  ;;  %v3471_v60 = vld [vmem:[%s12954_s14 + $0x768] sm:$0xff]  ;;  %v11669_v46 = vcombine.low %v3458_v63, %v3462_v35 }
 0x21a   : > { %6480 = vmatprep.subr.bf16.mxu1 %v11624_v47  ;;  %v11671_v47 = vcombine.low %v3459_v37, %v3463_v38  ;;  %v11680_v50 = vcombine.high %v3467_v45, %v3471_v60  ;;  %v11679_v56 = vcombine.low %v3467_v45, %v3471_v60 }
 0x21c   : > { %6317 = vmatpush1.bf16.msra.mxu0 %v11621_v51  ;;  %v3475_v51 = vld [vmem:[%s12954_s14 + $0x788] sm:$0xff] }
 0x21d   : > { %6481 = vmatpush1.bf16.msra.mxu1 %v11623_v52  ;;  %6318 = vmatprep.subr.bf16.mxu0 %v11630_v54  ;;  %v3479_v52 = vld [vmem:[%s12954_s14 + $0x7a8] sm:$0xff]  ;;  %v11677_v54 = vcombine.low %v3466_v42, %v3470_v43 }
 0x21e   : > { %6482 = vmatprep.subr.bf16.mxu1 %v11632_v55  ;;  %v784_v55 = vsub.s32 2, %v13008_v44  ;;  %v11688_v58 = vcombine.high %v3475_v51, %v3479_v52  ;;  %v11687_v32 = vcombine.low %v3475_v51, %v3479_v52 }
 0x220   : > { %6319 = vmatpush1.bf16.msra.mxu0 %v11629_v62  ;;  %v3486_v62 = vld [vmem:[%s12954_s14 + $0x7e0] sm:$0xff]  ;;  %v785_v5 = vrot.slane %v13475_v3, %v784_v55 }
 0x221   : > { %6483 = vmatpush1.bf16.msra.mxu1 %v11631_v0  ;;  %6320 = vmatprep.subr.bf16.mxu0 %v11638_v2  ;;  %v3483_v0 = vld [vmem:[%s12954_s14 + $0x7c8] sm:$0xff]  ;;  %v11694_v6 = vcombine.high %v3482_v14, %v3486_v62  ;;  %v11693_v13 = vcombine.low %v3482_v14, %v3486_v62 }
 0x222   : > { %6484 = vmatprep.subr.bf16.mxu1 %v11640_v23  ;;  %v3487_v2 = vld [vmem:[%s12954_s14 + $0x7e8] sm:$0xff]  ;;  %v11685_v23 = vcombine.low %v3474_v49, %v3478_v16  ;;  %v12481_v15 = vadd.f32 %v13487_v17, %v785_v5  ;;  %v3542_v5 = vld [vmem:[%s12954_s14 + $0x9a0] sm:$0xff] }
 0x223   : > { %v11696_v7 = vcombine.high %v3483_v0, %v3487_v2  ;;  %v11695_v3 = vcombine.low %v3483_v0, %v3487_v2 }
 0x224   : > { %6321 = vmatpush1.bf16.msra.mxu0 %v11637_v8  ;;  %v3490_v8 = vld [vmem:[%s12954_s14 + $0x800] sm:$0xff]  ;;  %v13625_v9 = vpack.c.bf16 %v12481_v15, %v12481_v15  ;;  %v3547_v15 = vld [vmem:[%s12954_s14 + $0x9c8] sm:$0xff] }
 0x225   : > { %6485 = vmatpush1.bf16.msra.mxu1 %v11639_v10  ;;  %6322 = vmatprep.subr.bf16.mxu0 %v11646_v11  ;;  %v3494_v10 = vld [vmem:[%s12954_s14 + $0x820] sm:$0xff]  ;;  %v3491_v11 = vld [vmem:[%s12954_s14 + $0x808] sm:$0xff] }
 0x226   : > { %6486 = vmatprep.subr.bf16.mxu1 %v11648_v12  ;;  %v3495_v12 = vld [vmem:[%s12954_s14 + $0x828] sm:$0xff]  ;;  %v11702_v59 = vcombine.high %v3490_v8, %v3494_v10  ;;  %v11701_v24 = vcombine.low %v3490_v8, %v3494_v10 }
 0x227   : > { %v11704_v18 = vcombine.high %v3491_v11, %v3495_v12  ;;  %v11703_v17 = vcombine.low %v3491_v11, %v3495_v12  ;;  %v3546_v12 = vld [vmem:[%s12954_s14 + $0x9c0] sm:$0xff] }
 0x228   : > { %6323 = vmatpush1.bf16.msra.mxu0 %v11645_v19  ;;  %v3498_v19 = vld [vmem:[%s12954_s14 + $0x840] sm:$0xff] }
 0x229   : > { %6487 = vmatpush1.bf16.msra.mxu1 %v11647_v20  ;;  %6324 = vmatprep.subr.bf16.mxu0 %v11654_v21  ;;  %v3502_v20 = vld [vmem:[%s12954_s14 + $0x860] sm:$0xff]  ;;  %v3499_v21 = vld [vmem:[%s12954_s14 + $0x848] sm:$0xff] }
 0x22a   : > { %6488 = vmatprep.subr.bf16.mxu1 %v11656_v22  ;;  %v3503_v22 = vld [vmem:[%s12954_s14 + $0x868] sm:$0xff]  ;;  %v11710_v26 = vcombine.high %v3498_v19, %v3502_v20  ;;  %v11709_v63 = vcombine.low %v3498_v19, %v3502_v20 }
 0x22b   : > { %v11712_v27 = vcombine.high %v3499_v21, %v3503_v22  ;;  %v11711_v35 = vcombine.low %v3499_v21, %v3503_v22  ;;  %v3554_v21 = vld [vmem:[%s12954_s14 + $0xa00] sm:$0xff] }
 0x22c   : > { %6325 = vmatpush1.bf16.msra.mxu0 %v11653_v28  ;;  %v3506_v28 = vld [vmem:[%s12954_s14 + $0x880] sm:$0xff] }
 0x22d   : > { %6489 = vmatpush1.bf16.msra.mxu1 %v11655_v30  ;;  %6326 = vmatprep.subr.bf16.mxu0 %v11662_v31  ;;  %v3510_v30 = vld [vmem:[%s12954_s14 + $0x8a0] sm:$0xff]  ;;  %v3507_v31 = vld [vmem:[%s12954_s14 + $0x888] sm:$0xff] }
 0x22e   : > { %6490 = vmatprep.subr.bf16.mxu1 %v11664_v33  ;;  %v3511_v33 = vld [vmem:[%s12954_s14 + $0x8a8] sm:$0xff]  ;;  %v11718_v37 = vcombine.high %v3506_v28, %v3510_v30  ;;  %v11717_v42 = vcombine.low %v3506_v28, %v3510_v30  ;;  %v3558_v22 = vld [vmem:[%s12954_s14 + $0xa20] sm:$0xff] }
 0x22f   : > { %v11720_v38 = vcombine.high %v3507_v31, %v3511_v33  ;;  %v11719_v43 = vcombine.low %v3507_v31, %v3511_v33  ;;  %v11766_v28 = vcombine.high %v3554_v21, %v3558_v22  ;;  %v3562_v31 = vld [vmem:[%s12954_s14 + $0xa40] sm:$0xff] }
 0x230   : > { %6327 = vmatpush1.bf16.msra.mxu0 %v11661_v34  ;;  %v3514_v34 = vld [vmem:[%s12954_s14 + $0x8c0] sm:$0xff] }
 0x231   : > { %6491 = vmatpush1.bf16.msra.mxu1 %v11663_v40  ;;  %6328 = vmatprep.subr.bf16.mxu0 %v11670_v39  ;;  %v3518_v40 = vld [vmem:[%s12954_s14 + $0x8e0] sm:$0xff]  ;;  %v3515_v39 = vld [vmem:[%s12954_s14 + $0x8c8] sm:$0xff] }
 0x232   : > { %6492 = vmatprep.subr.bf16.mxu1 %v11672_v41  ;;  %v3519_v41 = vld [vmem:[%s12954_s14 + $0x8e8] sm:$0xff]  ;;  %v11726_v45 = vcombine.high %v3514_v34, %v3518_v40  ;;  %v11725_v49 = vcombine.low %v3514_v34, %v3518_v40  ;;  %v3566_v33 = vld [vmem:[%s12954_s14 + $0xa60] sm:$0xff] }
 0x233   : > { %v11728_v60 = vcombine.high %v3515_v39, %v3519_v41  ;;  %v11727_v16 = vcombine.low %v3515_v39, %v3519_v41  ;;  %v11774_v34 = vcombine.high %v3562_v31, %v3566_v33  ;;  %v3570_v39 = vld [vmem:[%s12954_s14 + $0xa80] sm:$0xff] }
 0x234   : > { %6329 = vmatpush1.bf16.msra.mxu0 %v11669_v46  ;;  %v3522_v46 = vld [vmem:[%s12954_s14 + $0x900] sm:$0xff] }
 0x235   : > { %6493 = vmatpush1.bf16.msra.mxu1 %v11671_v47  ;;  %6330 = vmatprep.subr.bf16.mxu0 %v11678_v48  ;;  %v3526_v47 = vld [vmem:[%s12954_s14 + $0x920] sm:$0xff]  ;;  %v3523_v48 = vld [vmem:[%s12954_s14 + $0x908] sm:$0xff] }
 0x236   : > { %6494 = vmatprep.subr.bf16.mxu1 %v11680_v50  ;;  %v3527_v50 = vld [vmem:[%s12954_s14 + $0x928] sm:$0xff]  ;;  %v11734_v51 = vcombine.high %v3522_v46, %v3526_v47  ;;  %v11733_v14 = vcombine.low %v3522_v46, %v3526_v47  ;;  %v3574_v41 = vld [vmem:[%s12954_s14 + $0xaa0] sm:$0xff] }
 0x237   : > { %v11736_v52 = vcombine.high %v3523_v48, %v3527_v50  ;;  %v11735_v62 = vcombine.low %v3523_v48, %v3527_v50  ;;  %v11782_v46 = vcombine.high %v3570_v39, %v3574_v41  ;;  %v3578_v48 = vld [vmem:[%s12954_s14 + $0xac0] sm:$0xff] }
 0x238   : > { %6331 = vmatpush1.bf16.msra.mxu0 %v11677_v54  ;;  %v3530_v54 = vld [vmem:[%s12954_s14 + $0x940] sm:$0xff] }
 0x239   : > { %6495 = vmatpush1.bf16.msra.mxu1 %v11679_v56  ;;  %6332 = vmatprep.subr.bf16.mxu0 %v11686_v57  ;;  %v3534_v56 = vld [vmem:[%s12954_s14 + $0x960] sm:$0xff]  ;;  %v3531_v57 = vld [vmem:[%s12954_s14 + $0x948] sm:$0xff] }
 0x23a   : > { %6496 = vmatprep.subr.bf16.mxu1 %v11688_v58  ;;  %v3535_v58 = vld [vmem:[%s12954_s14 + $0x968] sm:$0xff]  ;;  %v11742_v0 = vcombine.high %v3530_v54, %v3534_v56  ;;  %v3582_v50 = vld [vmem:[%s12954_s14 + $0xae0] sm:$0xff] }
 0x23b   : > { %v11744_v2 = vcombine.high %v3531_v57, %v3535_v58  ;;  %v11743_v8 = vcombine.low %v3531_v57, %v3535_v58  ;;  %v3586_v57 = vld [vmem:[%s12954_s14 + $0xb00] sm:$0xff] }
 0x23c   : > { %6333 = vmatpush1.bf16.msra.mxu0 %v11685_v23  ;;  %v3538_v23 = vld [vmem:[%s12954_s14 + $0x980] sm:$0xff] }
 0x23d   : > { %6497 = vmatpush1.bf16.msra.mxu1 %v11687_v32  ;;  %6334 = vmatprep.subr.bf16.mxu0 %v11694_v6  ;;  %v3539_v32 = vld [vmem:[%s12954_s14 + $0x988] sm:$0xff]  ;;  %v11750_v10 = vcombine.high %v3538_v23, %v3542_v5  ;;  %v3590_v58 = vld [vmem:[%s12954_s14 + $0xb20] sm:$0xff] }
 0x23e   : > { %6498 = vmatprep.subr.bf16.mxu1 %v11696_v7  ;;  %v3543_v6 = vld [vmem:[%s12954_s14 + $0x9a8] sm:$0xff]  ;;  %v11741_v7 = vcombine.low %v3530_v54, %v3534_v56  ;;  %v11790_v54 = vcombine.high %v3578_v48, %v3582_v50 }
 0x23f   : > { %v11752_v11 = vcombine.high %v3539_v32, %v3543_v6 }
 0x240   : > { %6335 = vmatpush1.bf16.msra.mxu0 %v11693_v13  ;;  %v3550_v13 = vld [vmem:[%s12954_s14 + $0x9e0] sm:$0xff] }
 0x241   : > { %6499 = vmatpush1.bf16.msra.mxu1 %v11695_v3  ;;  %6345 = vmatprep.subr.bf16.mxu0 %v11702_v59  ;;  %v3551_v3 = vld [vmem:[%s12954_s14 + $0x9e8] sm:$0xff]  ;;  %v11749_v59 = vcombine.low %v3538_v23, %v3542_v5  ;;  %v11758_v19 = vcombine.high %v3546_v12, %v3550_v13  ;;  %v11798_v23 = vcombine.high %v3586_v57, %v3590_v58 }
 0x242   : > { %6509 = vmatprep.subr.bf16.mxu1 %v11704_v18  ;;  %v11751_v18 = vcombine.low %v3539_v32, %v3543_v6  ;;  %v11760_v20 = vcombine.high %v3547_v15, %v3551_v3  ;;  %v3594_v32 = vld [vmem:[%s12954_s14 + $0xb40] sm:$0xff] }
 0x243   : > { %6337 = vmatmul.mubr.bf16.vlgmr.msra.gmra.mrb[8].mxu0 %v13625_v9  ;;  %v3598_v6 = vld [vmem:[%s12954_s14 + $0xb60] sm:$0xff] }
 0x244   : > { %6501 = vmatmul.mubr.bf16.vlgmr.msra.gmra.mrb[8].mxu1 %v13625_v9  ;;  %6346 = vmatpush1.bf16.msra.mxu0 %v11701_v24  ;;  %v3555_v24 = vld [vmem:[%s12954_s14 + $0xa08] sm:$0xff] }
 0x245   : > { %6510 = vmatpush1.bf16.msra.mxu1 %v11703_v17  ;;  %6347 = vmatprep.subr.bf16.mxu0 %v11710_v26  ;;  %v3559_v17 = vld [vmem:[%s12954_s14 + $0xa28] sm:$0xff]  ;;  %v11757_v26 = vcombine.low %v3546_v12, %v3550_v13  ;;  %v11806_v12 = vcombine.high %v3594_v32, %v3598_v6 }
 0x246   : > { %6511 = vmatprep.subr.bf16.mxu1 %v11712_v27  ;;  %v11759_v27 = vcombine.low %v3547_v15, %v3551_v3  ;;  %v11768_v30 = vcombine.high %v3555_v24, %v3559_v17  ;;  %v3602_v15 = vld [vmem:[%s12954_s14 + $0xb80] sm:$0xff] }
 0x247   : > { %v3606_v3 = vld [vmem:[%s12954_s14 + $0xba0] sm:$0xff] }
 0x248   : > { %6348 = vmatpush1.bf16.msra.mxu0 %v11709_v63  ;;  %v3563_v63 = vld [vmem:[%s12954_s14 + $0xa48] sm:$0xff] }
 0x249   : > { %6512 = vmatpush1.bf16.msra.mxu1 %v11711_v35  ;;  %6349 = vmatprep.subr.bf16.mxu0 %v11718_v37  ;;  %v3567_v35 = vld [vmem:[%s12954_s14 + $0xa68] sm:$0xff]  ;;  %v11765_v37 = vcombine.low %v3554_v21, %v3558_v22  ;;  %v11814_v21 = vcombine.high %v3602_v15, %v3606_v3 }
 0x24a   : > { %6513 = vmatprep.subr.bf16.mxu1 %v11720_v38  ;;  %v11767_v38 = vcombine.low %v3555_v24, %v3559_v17  ;;  %v11776_v40 = vcombine.high %v3563_v63, %v3567_v35  ;;  %v3610_v24 = vld [vmem:[%s12954_s14 + $0xbc0] sm:$0xff] }
 0x24b   : > { %v3614_v17 = vld [vmem:[%s12954_s14 + $0xbe0] sm:$0xff] }
 0x24c   : > { %6350 = vmatpush1.bf16.msra.mxu0 %v11717_v42  ;;  %v3571_v42 = vld [vmem:[%s12954_s14 + $0xa88] sm:$0xff] }
 0x24d   : > { %6514 = vmatpush1.bf16.msra.mxu1 %v11719_v43  ;;  %6351 = vmatprep.subr.bf16.mxu0 %v11726_v45  ;;  %v3575_v43 = vld [vmem:[%s12954_s14 + $0xaa8] sm:$0xff]  ;;  %v11773_v45 = vcombine.low %v3562_v31, %v3566_v33  ;;  %v11822_v31 = vcombine.high %v3610_v24, %v3614_v17 }
 0x24e   : > { %6515 = vmatprep.subr.bf16.mxu1 %v11728_v60  ;;  %v11775_v60 = vcombine.low %v3563_v63, %v3567_v35  ;;  %v11784_v47 = vcombine.high %v3571_v42, %v3575_v43  ;;  %v3618_v63 = vld [vmem:[%s12954_s14 + $0xc00] sm:$0xff] }
 0x24f   : > { %v3622_v35 = vld [vmem:[%s12954_s14 + $0xc20] sm:$0xff] }
 0x250   : > { %6352 = vmatpush1.bf16.msra.mxu0 %v11725_v49  ;;  %v3579_v49 = vld [vmem:[%s12954_s14 + $0xac8] sm:$0xff] }
 0x251   : > { %6516 = vmatpush1.bf16.msra.mxu1 %v11727_v16  ;;  %6353 = vmatprep.subr.bf16.mxu0 %v11734_v51  ;;  %v3583_v16 = vld [vmem:[%s12954_s14 + $0xae8] sm:$0xff]  ;;  %v11781_v51 = vcombine.low %v3570_v39, %v3574_v41  ;;  %v11830_v39 = vcombine.high %v3618_v63, %v3622_v35 }
 0x252   : > { %6517 = vmatprep.subr.bf16.mxu1 %v11736_v52  ;;  %v11783_v52 = vcombine.low %v3571_v42, %v3575_v43  ;;  %v11792_v56 = vcombine.high %v3579_v49, %v3583_v16  ;;  %v792_v42 = vsub.s32 4, %v13008_v44  ;;  %v796_v43 = vsub.s32 5, %v13008_v44 }
 0x254   : > { %6354 = vmatpush1.bf16.msra.mxu0 %v11733_v14  ;;  %v3587_v14 = vld [vmem:[%s12954_s14 + $0xb08] sm:$0xff] }
 0x255   : > { %6518 = vmatpush1.bf16.msra.mxu1 %v11735_v62  ;;  %6355 = vmatprep.subr.bf16.mxu0 %v11742_v0  ;;  %v3591_v62 = vld [vmem:[%s12954_s14 + $0xb28] sm:$0xff]  ;;  %v11789_v0 = vcombine.low %v3578_v48, %v3582_v50 }
 0x256   : > { %6519 = vmatprep.subr.bf16.mxu1 %v11744_v2  ;;  %v11791_v2 = vcombine.low %v3579_v49, %v3583_v16  ;;  %v11800_v5 = vcombine.high %v3587_v14, %v3591_v62 }
 0x258   : > { %6356 = vmatpush1.bf16.msra.mxu0 %v11741_v7  ;;  %v3595_v7 = vld [vmem:[%s12954_s14 + $0xb48] sm:$0xff] }
 0x259   : > { %6520 = vmatpush1.bf16.msra.mxu1 %v11743_v8  ;;  %6357 = vmatprep.subr.bf16.mxu0 %v11750_v10  ;;  %v3599_v8 = vld [vmem:[%s12954_s14 + $0xb68] sm:$0xff]  ;;  %v11797_v10 = vcombine.low %v3586_v57, %v3590_v58  ;;  %v3626_v57 = vld [vmem:[%s12954_s14 + $0xc40] sm:$0xff] }
 0x25a   : > { %6521 = vmatprep.subr.bf16.mxu1 %v11752_v11  ;;  %v11799_v11 = vcombine.low %v3587_v14, %v3591_v62  ;;  %v11808_v13 = vcombine.high %v3595_v7, %v3599_v8 }
 0x25c   : > { %6358 = vmatpush1.bf16.msra.mxu0 %v11749_v59  ;;  %v3603_v59 = vld [vmem:[%s12954_s14 + $0xb88] sm:$0xff] }
 0x25d   : > { %6522 = vmatpush1.bf16.msra.mxu1 %v11751_v18  ;;  %6359 = vmatprep.subr.bf16.mxu0 %v11758_v19  ;;  %v3607_v18 = vld [vmem:[%s12954_s14 + $0xba8] sm:$0xff]  ;;  %v11805_v19 = vcombine.low %v3594_v32, %v3598_v6  ;;  %v11829_v6 = vcombine.low %v3618_v63, %v3622_v35  ;;  %v3654_v63 = vld [vmem:[%s12954_s14 + $0xd20] sm:$0xff] }
 0x25e   : > { %6523 = vmatprep.subr.bf16.mxu1 %v11760_v20  ;;  %v11807_v20 = vcombine.low %v3595_v7, %v3599_v8  ;;  %v11816_v22 = vcombine.high %v3603_v59, %v3607_v18  ;;  %v3651_v35 = vld [vmem:[%s12954_s14 + $0xd08] sm:$0xff] }
 0x260   : > { %6360 = vmatpush1.bf16.msra.mxu0 %v11757_v26  ;;  %v3611_v26 = vld [vmem:[%s12954_s14 + $0xbc8] sm:$0xff] }
 0x261   : > { %6524 = vmatpush1.bf16.msra.mxu1 %v11759_v27  ;;  %6361 = vmatprep.subr.bf16.mxu0 %v11766_v28  ;;  %v3615_v27 = vld [vmem:[%s12954_s14 + $0xbe8] sm:$0xff]  ;;  %v11813_v28 = vcombine.low %v3602_v15, %v3606_v3 }
 0x262   : > { %6525 = vmatprep.subr.bf16.mxu1 %v11768_v30  ;;  %v11815_v30 = vcombine.low %v3603_v59, %v3607_v18  ;;  %v11824_v33 = vcombine.high %v3611_v26, %v3615_v27  ;;  %v3635_v15 = vld [vmem:[%s12954_s14 + $0xc88] sm:$0xff] }
 0x263   : > { %v3639_v3 = vld [vmem:[%s12954_s14 + $0xca8] sm:$0xff] }
 0x264   : > { %6362 = vmatpush1.bf16.msra.mxu0 %v11765_v37  ;;  %v3619_v37 = vld [vmem:[%s12954_s14 + $0xc08] sm:$0xff] }
 0x265   : > { %6526 = vmatpush1.bf16.msra.mxu1 %v11767_v38  ;;  %6363 = vmatprep.subr.bf16.mxu0 %v11774_v34  ;;  %v3623_v38 = vld [vmem:[%s12954_s14 + $0xc28] sm:$0xff]  ;;  %v11821_v34 = vcombine.low %v3610_v24, %v3614_v17  ;;  %v3646_v24 = vld [vmem:[%s12954_s14 + $0xce0] sm:$0xff] }
 0x266   : > { %6527 = vmatprep.subr.bf16.mxu1 %v11776_v40  ;;  %v11823_v40 = vcombine.low %v3611_v26, %v3615_v27  ;;  %v11832_v41 = vcombine.high %v3619_v37, %v3623_v38  ;;  %v11831_v7 = vcombine.low %v3619_v37, %v3623_v38  ;;  %v3643_v17 = vld [vmem:[%s12954_s14 + $0xcc8] sm:$0xff] }
 0x267   : > { %v3647_v26 = vld [vmem:[%s12954_s14 + $0xce8] sm:$0xff] }
 0x268   : > { %6364 = vmatpush1.bf16.msra.mxu0 %v11773_v45  ;;  %v804_v45 = vsub.s32 7, %v13008_v44  ;;  %v3655_v37 = vld [vmem:[%s12954_s14 + $0xd28] sm:$0xff] }
 0x269   : > { %6528 = vmatpush1.bf16.msra.mxu1 %v11775_v60  ;;  %6365 = vmatprep.subr.bf16.mxu0 %v11782_v46  ;;  %v13693_v60 = vld [vmem:[%s13467_s21] ss:$4 sm:$0xff] }
 0x26a   : > { %6529 = vmatprep.subr.bf16.mxu1 %v11784_v47  ;;  %v793_v46 = vrot.slane %v13693_v60, %v792_v42  ;;  %v797_v47 = vrot.slane %v13693_v60, %v796_v43  ;;  %v805_v48 = vrot.slane %v13693_v60, %v804_v45 }
 0x26c   : > { %6366 = vmatpush1.bf16.msra.mxu0 %v11781_v51 }
 0x26d   : > { %6530 = vmatpush1.bf16.msra.mxu1 %v11783_v52  ;;  %6367 = vmatprep.subr.bf16.mxu0 %v11790_v54 }
 0x26e   : > { %6531 = vmatprep.subr.bf16.mxu1 %v11792_v56 }
 0x270   : > { %6368 = vmatpush1.bf16.msra.mxu0 %v11789_v0  ;;  %v3630_v0 = vld [vmem:[%s12954_s14 + $0xc60] sm:$0xff] }
 0x271   : > { %6532 = vmatpush1.bf16.msra.mxu1 %v11791_v2  ;;  %6369 = vmatprep.subr.bf16.mxu0 %v11798_v23  ;;  %v3627_v2 = vld [vmem:[%s12954_s14 + $0xc48] sm:$0xff]  ;;  %v11837_v18 = vcombine.low %v3626_v57, %v3630_v0 }
 0x272   : > { %6533 = vmatprep.subr.bf16.mxu1 %v11800_v5  ;;  %v3631_v23 = vld [vmem:[%s12954_s14 + $0xc68] sm:$0xff] }
 0x274   : > { %6370 = vmatpush1.bf16.msra.mxu0 %v11797_v10  ;;  %v3634_v10 = vld [vmem:[%s12954_s14 + $0xc80] sm:$0xff] }
 0x275   : > { %6534 = vmatpush1.bf16.msra.mxu1 %v11799_v11  ;;  %6371 = vmatprep.subr.bf16.mxu0 %v11806_v12  ;;  %v11838_v11 = vcombine.high %v3626_v57, %v3630_v0  ;;  %v11840_v12 = vcombine.high %v3627_v2, %v3631_v23  ;;  %v3667_v57 = vld [vmem:[%s12954_s14 + $0xd88] sm:$0xff] }
 0x276   : > { %6535 = vmatprep.subr.bf16.mxu1 %v11808_v13  ;;  %v3638_v13 = vld [vmem:[%s12954_s14 + $0xca0] sm:$0xff] }
 0x277   : > { %v11845_v27 = vcombine.low %v3634_v10, %v3638_v13 }
 0x278   : > { %6372 = vmatpush1.bf16.msra.mxu0 %v11805_v19  ;;  %v11839_v19 = vcombine.low %v3627_v2, %v3631_v23  ;;  %v3674_v23 = vld [vmem:[%s12954_s14 + $0xdc0] sm:$0xff] }
 0x279   : > { %6536 = vmatpush1.bf16.msra.mxu1 %v11807_v20  ;;  %6373 = vmatprep.subr.bf16.mxu0 %v11814_v21  ;;  %v11846_v20 = vcombine.high %v3634_v10, %v3638_v13  ;;  %v11848_v21 = vcombine.high %v3635_v15, %v3639_v3 }
 0x27a   : > { %6537 = vmatprep.subr.bf16.mxu1 %v11816_v22  ;;  %v3642_v22 = vld [vmem:[%s12954_s14 + $0xcc0] sm:$0xff] }
 0x27b   : > { %v11853_v38 = vcombine.low %v3642_v22, %v3646_v24 }
 0x27c   : > { %6374 = vmatpush1.bf16.msra.mxu0 %v11813_v28  ;;  %v11847_v28 = vcombine.low %v3635_v15, %v3639_v3  ;;  %v3682_v15 = vld [vmem:[%s12954_s14 + $0xe00] sm:$0xff] }
 0x27d   : > { %6538 = vmatpush1.bf16.msra.mxu1 %v11815_v30  ;;  %6375 = vmatprep.subr.bf16.mxu0 %v11822_v31  ;;  %v11854_v30 = vcombine.high %v3642_v22, %v3646_v24  ;;  %v11856_v31 = vcombine.high %v3643_v17, %v3647_v26  ;;  %v3686_v3 = vld [vmem:[%s12954_s14 + $0xe20] sm:$0xff] }
 0x27e   : > { %6539 = vmatprep.subr.bf16.mxu1 %v11824_v33  ;;  %v3650_v33 = vld [vmem:[%s12954_s14 + $0xd00] sm:$0xff]  ;;  %v11894_v22 = vcombine.high %v3682_v15, %v3686_v3 }
 0x280   : > { %6376 = vmatpush1.bf16.msra.mxu0 %v11821_v34  ;;  %v11855_v34 = vcombine.low %v3643_v17, %v3647_v26  ;;  %v3690_v17 = vld [vmem:[%s12954_s14 + $0xe40] sm:$0xff] }
 0x281   : > { %6540 = vmatpush1.bf16.msra.mxu1 %v11823_v40  ;;  %6386 = vmatprep.subr.bf16.mxu0 %v11830_v39  ;;  %v11862_v40 = vcombine.high %v3650_v33, %v3654_v63  ;;  %v11864_v39 = vcombine.high %v3651_v35, %v3655_v37  ;;  %v3694_v26 = vld [vmem:[%s12954_s14 + $0xe60] sm:$0xff] }
 0x282   : > { %6550 = vmatprep.subr.bf16.mxu1 %v11832_v41  ;;  %v3658_v41 = vld [vmem:[%s12954_s14 + $0xd40] sm:$0xff] }
 0x296   : > { %v3096_v50 = vpop.f32.mrb[4].mxu0  ;;  %v13704_v16 = vpop.f32.mrb[4].mxu1 }
 0x297   : > { %v12483_v49 = vadd.f32 %v3096_v50, %v793_v46  ;;  %v3098_v51 = vpop.f32.mrb[5].mxu0  ;;  %v3221_v54 = vpop.f32.mrb[5].mxu1  ;;  %v3662_v46 = vld [vmem:[%s12954_s14 + $0xd60] sm:$0xff]  ;;  %v11861_v50 = vcombine.low %v3650_v33, %v3654_v63  ;;  %v11902_v33 = vcombine.high %v3690_v17, %v3694_v26 }
 0x298   : > { %v12484_v52 = vadd.f32 %v3098_v51, %v797_v47  ;;  %v3100_v56 = vpop.f32.mrb[6].mxu0  ;;  %v12486_v58 = vadd.f32 %v3221_v54, %v805_v48  ;;  %v3223_v14 = vpop.f32.mrb[6].mxu1  ;;  %v3659_v47 = vld [vmem:[%s12954_s14 + $0xd48] sm:$0xff]  ;;  %v11870_v51 = vcombine.high %v3658_v41, %v3662_v46  ;;  %v3666_v54 = vld [vmem:[%s12954_s14 + $0xd80] sm:$0xff] }
 0x299   : > { %v3101_v62 = vpop.f32.mrb[7].mxu0  ;;  %v3224_v32 = vpop.f32.mrb[7].mxu1  ;;  %v13712_v8 = vpack.c.bf16 %v12483_v49, %v12483_v49  ;;  %v3663_v48 = vld [vmem:[%s12954_s14 + $0xd68] sm:$0xff]  ;;  %v11863_v49 = vcombine.low %v3651_v35, %v3655_v37  ;;  %v3670_v56 = vld [vmem:[%s12954_s14 + $0xda0] sm:$0xff]  ;;  %v11869_v14 = vcombine.low %v3658_v41, %v3662_v46 }
 0x29a   : > { %v13710_v5 = vpack.c.bf16 %v12484_v52, %v12484_v52  ;;  %v13720_v59 = vpack.c.bf16 %v12486_v58, %v12486_v58  ;;  %v11872_v52 = vcombine.high %v3659_v47, %v3663_v48  ;;  %v3671_v58 = vld [vmem:[%s12954_s14 + $0xda8] sm:$0xff]  ;;  %v11871_v62 = vcombine.low %v3659_v47, %v3663_v48  ;;  %v3678_v32 = vld [vmem:[%s12954_s14 + $0xde0] sm:$0xff] }
 0x29b   : > { %v11878_v0 = vcombine.high %v3666_v54, %v3670_v56  ;;  %v11880_v2 = vcombine.high %v3667_v57, %v3671_v58  ;;  %v11877_v10 = vcombine.low %v3666_v54, %v3670_v56  ;;  %v3698_v35 = vld [vmem:[%s12954_s14 + $0xe80] sm:$0xff] }
 0x29c   : > { %6377 = vmatprep.mubr.bf16.mxu0 %v13710_v5  ;;  %6541 = vmatprep.mubr.bf16.mxu1 %v13710_v5  ;;  %v3702_v37 = vld [vmem:[%s12954_s14 + $0xea0] sm:$0xff] }
 0x29d   : > { %6378 = vmatmul.mubr.bf16.vlgmr.msra.gmra.mrb[8].mxu0 %v13712_v8  ;;  %6542 = vmatmul.mubr.bf16.vlgmr.msra.gmra.mrb[8].mxu1 %v13712_v8  ;;  %v11910_v41 = vcombine.high %v3698_v35, %v3702_v37  ;;  %v3706_v47 = vld [vmem:[%s12954_s14 + $0xec0] sm:$0xff] }
 0x29e   : > { %6387 = vmatpush1.bf16.msra.mxu0 %v11829_v6  ;;  %6551 = vmatpush1.bf16.msra.mxu1 %v11831_v7  ;;  %v3675_v6 = vld [vmem:[%s12954_s14 + $0xdc8] sm:$0xff]  ;;  %v3710_v48 = vld [vmem:[%s12954_s14 + $0xee0] sm:$0xff] }
 0x29f   : > { %11950 = vmatprep.mubr.msk.bf16.mxu0 %vm6234_vm0, %v13720_v59  ;;  %11952 = vmatprep.mubr.msk.bf16.mxu1 %vm6234_vm0, %v13720_v59  ;;  %v3679_v7 = vld [vmem:[%s12954_s14 + $0xde8] sm:$0xff]  ;;  %v11918_v54 = vcombine.high %v3706_v47, %v3710_v48 }
 0x2a0   : > { %6388 = vmatprep.subr.bf16.mxu0 %v11838_v11  ;;  %6552 = vmatprep.subr.bf16.mxu1 %v11840_v12  ;;  %v11879_v11 = vcombine.low %v3667_v57, %v3671_v58  ;;  %v11886_v12 = vcombine.high %v3674_v23, %v3678_v32  ;;  %v11888_v13 = vcombine.high %v3675_v6, %v3679_v7  ;;  %v3714_v57 = vld [vmem:[%s12954_s14 + $0xf00] sm:$0xff] }
 0x2a1   : > { %v3718_v58 = vld [vmem:[%s12954_s14 + $0xf20] sm:$0xff] }
 0x2a2   : > { %6389 = vmatpush1.bf16.msra.mxu0 %v11837_v18  ;;  %6553 = vmatpush1.bf16.msra.mxu1 %v11839_v19  ;;  %v3683_v18 = vld [vmem:[%s12954_s14 + $0xe08] sm:$0xff] }
 0x2a3   : > { %6390 = vmatprep.subr.bf16.mxu0 %v11846_v20  ;;  %6554 = vmatprep.subr.bf16.mxu1 %v11848_v21  ;;  %v3687_v19 = vld [vmem:[%s12954_s14 + $0xe28] sm:$0xff]  ;;  %v11885_v20 = vcombine.low %v3674_v23, %v3678_v32  ;;  %v11887_v21 = vcombine.low %v3675_v6, %v3679_v7  ;;  %v11926_v23 = vcombine.high %v3714_v57, %v3718_v58  ;;  %v3722_v6 = vld [vmem:[%s12954_s14 + $0xf40] sm:$0xff] }
 0x2a4   : > { %v11896_v24 = vcombine.high %v3683_v18, %v3687_v19  ;;  %v3726_v7 = vld [vmem:[%s12954_s14 + $0xf60] sm:$0xff] }
 0x2a6   : > { %6391 = vmatpush1.bf16.msra.mxu0 %v11845_v27  ;;  %6555 = vmatpush1.bf16.msra.mxu1 %v11847_v28  ;;  %v3691_v27 = vld [vmem:[%s12954_s14 + $0xe48] sm:$0xff] }
 0x2a7   : > { %6392 = vmatprep.subr.bf16.mxu0 %v11854_v30  ;;  %6556 = vmatprep.subr.bf16.mxu1 %v11856_v31  ;;  %v3695_v28 = vld [vmem:[%s12954_s14 + $0xe68] sm:$0xff]  ;;  %v11893_v30 = vcombine.low %v3682_v15, %v3686_v3  ;;  %v11895_v31 = vcombine.low %v3683_v18, %v3687_v19  ;;  %v11934_v3 = vcombine.high %v3722_v6, %v3726_v7  ;;  %v3730_v19 = vld [vmem:[%s12954_s14 + $0xf80] sm:$0xff] }
 0x2a8   : > { %v11904_v63 = vcombine.high %v3691_v27, %v3695_v28 }
 0x2aa   : > { %6393 = vmatpush1.bf16.msra.mxu0 %v11853_v38  ;;  %6557 = vmatpush1.bf16.msra.mxu1 %v11855_v34  ;;  %v3699_v38 = vld [vmem:[%s12954_s14 + $0xe88] sm:$0xff] }
 0x2ab   : > { %6394 = vmatprep.subr.bf16.mxu0 %v11862_v40  ;;  %6558 = vmatprep.subr.bf16.mxu1 %v11864_v39  ;;  %v3703_v34 = vld [vmem:[%s12954_s14 + $0xea8] sm:$0xff]  ;;  %v11901_v40 = vcombine.low %v3690_v17, %v3694_v26  ;;  %v11903_v39 = vcombine.low %v3691_v27, %v3695_v28  ;;  %v11941_v17 = vcombine.low %v3730_v19, %v3730_v19 }
 0x2ac   : > { %v11912_v46 = vcombine.high %v3699_v38, %v3703_v34  ;;  %v11942_v26 = vcombine.high %v3730_v19, %v3730_v19 }
 0x2ae   : > { %6395 = vmatpush1.bf16.msra.mxu0 %v11861_v50  ;;  %6559 = vmatpush1.bf16.msra.mxu1 %v11863_v49  ;;  %v3707_v50 = vld [vmem:[%s12954_s14 + $0xec8] sm:$0xff] }
 0x2af   : > { %6396 = vmatprep.subr.bf16.mxu0 %v11870_v51  ;;  %6560 = vmatprep.subr.bf16.mxu1 %v11872_v52  ;;  %v3711_v49 = vld [vmem:[%s12954_s14 + $0xee8] sm:$0xff]  ;;  %v11909_v51 = vcombine.low %v3698_v35, %v3702_v37  ;;  %v11911_v52 = vcombine.low %v3699_v38, %v3703_v34 }
 0x2b0   : > { %v11920_v56 = vcombine.high %v3707_v50, %v3711_v49 }
 0x2b2   : > { %6397 = vmatpush1.bf16.msra.mxu0 %v11869_v14  ;;  %6561 = vmatpush1.bf16.msra.mxu1 %v11871_v62  ;;  %v3715_v14 = vld [vmem:[%s12954_s14 + $0xf08] sm:$0xff] }
 0x2b3   : > { %6398 = vmatprep.subr.bf16.mxu0 %v11878_v0  ;;  %6562 = vmatprep.subr.bf16.mxu1 %v11880_v2  ;;  %v3719_v62 = vld [vmem:[%s12954_s14 + $0xf28] sm:$0xff]  ;;  %v11917_v0 = vcombine.low %v3706_v47, %v3710_v48  ;;  %v11919_v2 = vcombine.low %v3707_v50, %v3711_v49 }
 0x2b4   : > { %v11928_v32 = vcombine.high %v3715_v14, %v3719_v62  ;;  %v11927_v15 = vcombine.low %v3715_v14, %v3719_v62 }
 0x2b6   : > { %6399 = vmatpush1.bf16.msra.mxu0 %v11877_v10  ;;  %6563 = vmatpush1.bf16.msra.mxu1 %v11879_v11  ;;  %v3723_v10 = vld [vmem:[%s12954_s14 + $0xf48] sm:$0xff] }
 0x2b7   : > { %6400 = vmatprep.subr.bf16.mxu0 %v11886_v12  ;;  %6564 = vmatprep.subr.bf16.mxu1 %v11888_v13  ;;  %v3727_v11 = vld [vmem:[%s12954_s14 + $0xf68] sm:$0xff]  ;;  %v800_v12 = vsub.s32 6, %v13008_v44  ;;  %v11925_v13 = vcombine.low %v3714_v57, %v3718_v58 }
 0x2b8   : > { %v11936_v18 = vcombine.high %v3723_v10, %v3727_v11 }
 0x2ba   : > { %6401 = vmatpush1.bf16.msra.mxu0 %v11885_v20  ;;  %6565 = vmatpush1.bf16.msra.mxu1 %v11887_v21  ;;  %v3731_v20 = vld [vmem:[%s12954_s14 + $0xf88] sm:$0xff]  ;;  %v801_v21 = vrot.slane %v13693_v60, %v800_v12  ;;  %v6240_v60 = vsel %vm6238_vm1, %v11941_v17, 0  ;;  %v3277_v17 = vld [vmem:[%s12954_s14 + $0x158] sm:$0xff] }
 0x2bb   : > { %6402 = vmatprep.subr.bf16.mxu0 %v11894_v22  ;;  %6566 = vmatprep.subr.bf16.mxu1 %v11896_v24  ;;  %v11933_v22 = vcombine.low %v3722_v6, %v3726_v7  ;;  %v11935_v24 = vcombine.low %v3723_v10, %v3727_v11  ;;  %v11944_v27 = vcombine.high %v3731_v20, %v3731_v20  ;;  %v3268_v11 = vld [vmem:[%s12954_s14 + $0x110] sm:$0xff] }
 0x2bc   : > { %v11943_v28 = vcombine.low %v3731_v20, %v3731_v20  ;;  %v12485_v35 = vadd.f32 %v13704_v16, %v801_v21 }
 0x2be   : > { %6403 = vmatpush1.bf16.msra.mxu0 %v11893_v30  ;;  %6567 = vmatpush1.bf16.msra.mxu1 %v11895_v31  ;;  %v3236_v30 = vld [vmem:[%s12954_s14 + $0x10] sm:$0xff]  ;;  %v6246_v37 = vsel %vm6238_vm1, %v11943_v28, 0  ;;  %v13791_v16 = vpack.c.bf16 %v12485_v35, %v12485_v35  ;;  %v3289_v35 = vld [vmem:[%s12954_s14 + $0x1b8] sm:$0xff] }
 0x2bf   : > { %6404 = vmatprep.subr.bf16.mxu0 %v11902_v33  ;;  %6568 = vmatprep.subr.bf16.mxu1 %v11904_v63  ;;  %v3240_v31 = vld [vmem:[%s12954_s14 + $0x30] sm:$0xff]  ;;  %v3237_v33 = vld [vmem:[%s12954_s14 + $0x18] sm:$0xff] }
 0x2c0   : > { %v3241_v63 = vld [vmem:[%s12954_s14 + $0x38] sm:$0xff]  ;;  %v11450_v38 = vcombine.high %v3236_v30, %v3240_v31  ;;  %v11449_v47 = vcombine.low %v3236_v30, %v3240_v31 }
 0x2c1   : > { %v11452_v34 = vcombine.high %v3237_v33, %v3241_v63  ;;  %v11451_v48 = vcombine.low %v3237_v33, %v3241_v63  ;;  %v3284_v33 = vld [vmem:[%s12954_s14 + $0x190] sm:$0xff] }
 0x2c2   : > { %6405 = vmatpush1.bf16.msra.mxu0 %v11901_v40  ;;  %6569 = vmatpush1.bf16.msra.mxu1 %v11903_v39  ;;  %v3244_v40 = vld [vmem:[%s12954_s14 + $0x50] sm:$0xff] }
 0x2c3   : > { %6406 = vmatprep.subr.bf16.mxu0 %v11910_v41  ;;  %6570 = vmatprep.subr.bf16.mxu1 %v11912_v46  ;;  %v3248_v39 = vld [vmem:[%s12954_s14 + $0x70] sm:$0xff]  ;;  %v3245_v41 = vld [vmem:[%s12954_s14 + $0x58] sm:$0xff] }
 0x2c4   : > { %v3249_v46 = vld [vmem:[%s12954_s14 + $0x78] sm:$0xff]  ;;  %v11458_v50 = vcombine.high %v3244_v40, %v3248_v39  ;;  %v11457_v57 = vcombine.low %v3244_v40, %v3248_v39  ;;  %v3288_v63 = vld [vmem:[%s12954_s14 + $0x1b0] sm:$0xff] }
 0x2c5   : > { %v11460_v49 = vcombine.high %v3245_v41, %v3249_v46  ;;  %v11459_v58 = vcombine.low %v3245_v41, %v3249_v46  ;;  %v3292_v39 = vld [vmem:[%s12954_s14 + $0x1d0] sm:$0xff]  ;;  %v3293_v46 = vld [vmem:[%s12954_s14 + $0x1d8] sm:$0xff] }
 0x2c6   : > { %6407 = vmatpush1.bf16.msra.mxu0 %v11909_v51  ;;  %6571 = vmatpush1.bf16.msra.mxu1 %v11911_v52  ;;  %v3252_v51 = vld [vmem:[%s12954_s14 + $0x90] sm:$0xff] }
 0x2c7   : > { %6408 = vmatprep.subr.bf16.mxu0 %v11918_v54  ;;  %6572 = vmatprep.subr.bf16.mxu1 %v11920_v56  ;;  %v3256_v52 = vld [vmem:[%s12954_s14 + $0xb0] sm:$0xff]  ;;  %v3253_v54 = vld [vmem:[%s12954_s14 + $0x98] sm:$0xff] }
 0x2c8   : > { %v3257_v56 = vld [vmem:[%s12954_s14 + $0xb8] sm:$0xff]  ;;  %v11466_v14 = vcombine.high %v3252_v51, %v3256_v52  ;;  %v11465_v6 = vcombine.low %v3252_v51, %v3256_v52  ;;  %v3296_v41 = vld [vmem:[%s12954_s14 + $0x1f0] sm:$0xff] }
 0x2c9   : > { %v11468_v62 = vcombine.high %v3253_v54, %v3257_v56  ;;  %v11467_v7 = vcombine.low %v3253_v54, %v3257_v56  ;;  %v3300_v52 = vld [vmem:[%s12954_s14 + $0x210] sm:$0xff]  ;;  %v3301_v56 = vld [vmem:[%s12954_s14 + $0x218] sm:$0xff] }
 0x2ca   : > { %6409 = vmatpush1.bf16.msra.mxu0 %v11917_v0  ;;  %6573 = vmatpush1.bf16.msra.mxu1 %v11919_v2  ;;  %v3260_v0 = vld [vmem:[%s12954_s14 + $0xd0] sm:$0xff] }
 0x2cb   : > { %6410 = vmatprep.subr.bf16.mxu0 %v11926_v23  ;;  %6574 = vmatprep.subr.bf16.mxu1 %v11928_v32  ;;  %v3264_v2 = vld [vmem:[%s12954_s14 + $0xf0] sm:$0xff]  ;;  %v3261_v23 = vld [vmem:[%s12954_s14 + $0xd8] sm:$0xff] }
 0x2cc   : > { %v3265_v32 = vld [vmem:[%s12954_s14 + $0xf8] sm:$0xff]  ;;  %v3304_v54 = vld [vmem:[%s12954_s14 + $0x230] sm:$0xff] }
 0x2cd   : > { %v11476_v10 = vcombine.high %v3261_v23, %v3265_v32  ;;  %v11475_v19 = vcombine.low %v3261_v23, %v3265_v32  ;;  %v3312_v23 = vld [vmem:[%s12954_s14 + $0x270] sm:$0xff]  ;;  %v3309_v32 = vld [vmem:[%s12954_s14 + $0x258] sm:$0xff] }
 0x2ce   : > { %6411 = vmatpush1.bf16.msra.mxu0 %v11925_v13  ;;  %6575 = vmatpush1.bf16.msra.mxu1 %v11927_v15  ;;  %v3272_v13 = vld [vmem:[%s12954_s14 + $0x130] sm:$0xff]  ;;  %v3269_v15 = vld [vmem:[%s12954_s14 + $0x118] sm:$0xff] }
 0x2cf   : > { %6412 = vmatprep.subr.bf16.mxu0 %v11934_v3  ;;  %6576 = vmatprep.subr.bf16.mxu1 %v11936_v18  ;;  %v3273_v3 = vld [vmem:[%s12954_s14 + $0x138] sm:$0xff]  ;;  %v11473_v18 = vcombine.low %v3260_v0, %v3264_v2  ;;  %v11482_v20 = vcombine.high %v3268_v11, %v3272_v13 }
 0x2d0   : > { %v11484_v21 = vcombine.high %v3269_v15, %v3273_v3  ;;  %v11483_v28 = vcombine.low %v3269_v15, %v3273_v3  ;;  %v3320_v15 = vld [vmem:[%s12954_s14 + $0x2b0] sm:$0xff]  ;;  %v3317_v3 = vld [vmem:[%s12954_s14 + $0x298] sm:$0xff] }
 0x2d2   : > { %6413 = vmatpush1.bf16.msra.mxu0 %v11933_v22  ;;  %6577 = vmatpush1.bf16.msra.mxu1 %v11935_v24  ;;  %v3276_v22 = vld [vmem:[%s12954_s14 + $0x150] sm:$0xff] }
 0x2d3   : > { %11949 = vmatprep.subr.msk.bf16.mxu0 %vm6238_vm1, %v11942_v26  ;;  %11951 = vmatprep.subr.msk.bf16.mxu1 %vm6238_vm1, %v11944_v27  ;;  %v3280_v24 = vld [vmem:[%s12954_s14 + $0x170] sm:$0xff]  ;;  %v3281_v26 = vld [vmem:[%s12954_s14 + $0x178] sm:$0xff]  ;;  %v11481_v27 = vcombine.low %v3268_v11, %v3272_v13 }
 0x2d4   : > { %v11490_v30 = vcombine.high %v3276_v22, %v3280_v24  ;;  %v11492_v31 = vcombine.high %v3277_v17, %v3281_v26  ;;  %v3316_v13 = vld [vmem:[%s12954_s14 + $0x290] sm:$0xff] }
 0x2d6   : > { %6415 = vmatpush1.bf16.msra.mxu0 %v6240_v60  ;;  %6579 = vmatpush1.bf16.msra.mxu1 %v6246_v37  ;;  %v3285_v60 = vld [vmem:[%s12954_s14 + $0x198] sm:$0xff]  ;;  %v11489_v37 = vcombine.low %v3276_v22, %v3280_v24  ;;  %v3324_v24 = vld [vmem:[%s12954_s14 + $0x2d0] sm:$0xff] }
 0x2d7   : > { %6591 = vmatprep.subr.bf16.mxu0 %v11450_v38  ;;  %6755 = vmatprep.subr.bf16.mxu1 %v11452_v34  ;;  %v11491_v38 = vcombine.low %v3277_v17, %v3281_v26  ;;  %v11498_v34 = vcombine.high %v3284_v33, %v3288_v63  ;;  %v11500_v40 = vcombine.high %v3285_v60, %v3289_v35  ;;  %v3328_v17 = vld [vmem:[%s12954_s14 + $0x2f0] sm:$0xff]  ;;  %v3325_v26 = vld [vmem:[%s12954_s14 + $0x2d8] sm:$0xff] }
 0x2d9   : > { %6419 = vmatmul.mubr.bf16.vlgmr.msra.gmra.mrb[8].mxu0 %v13791_v16  ;;  %6583 = vmatmul.mubr.bf16.vlgmr.msra.gmra.mrb[8].mxu1 %v13791_v16 }
 0x2da   : > { %6592 = vmatpush1.bf16.msra.mxu0 %v11449_v47  ;;  %6623 = vmatprep.mubr.bf16.mxu0 %v13494_v29  ;;  %v3297_v47 = vld [vmem:[%s12954_s14 + $0x1f8] sm:$0xff] }
 0x2db   : > { %6756 = vmatpush1.bf16.msra.mxu1 %v11451_v48  ;;  %6787 = vmatprep.mubr.bf16.mxu1 %v13494_v29  ;;  %v11474_v29 = vcombine.high %v3260_v0, %v3264_v2  ;;  %v11497_v48 = vcombine.low %v3284_v33, %v3288_v63  ;;  %v11508_v51 = vcombine.high %v3293_v46, %v3297_v47  ;;  %v3308_v2 = vld [vmem:[%s12954_s14 + $0x250] sm:$0xff] }
 0x2dc   : > { %6593 = vmatprep.subr.bf16.mxu0 %v11458_v50  ;;  %6757 = vmatprep.subr.bf16.mxu1 %v11460_v49  ;;  %v11499_v50 = vcombine.low %v3285_v60, %v3289_v35  ;;  %v11506_v49 = vcombine.high %v3292_v39, %v3296_v41  ;;  %v3332_v63 = vld [vmem:[%s12954_s14 + $0x310] sm:$0xff]  ;;  %v3333_v35 = vld [vmem:[%s12954_s14 + $0x318] sm:$0xff] }
 0x2dd   : > { %v3336_v60 = vld [vmem:[%s12954_s14 + $0x330] sm:$0xff] }
 0x2de   : > { %6594 = vmatpush1.bf16.msra.mxu0 %v11457_v57  ;;  %v3305_v57 = vld [vmem:[%s12954_s14 + $0x238] sm:$0xff] }
 0x2df   : > { %6758 = vmatpush1.bf16.msra.mxu1 %v11459_v58  ;;  %6595 = vmatprep.subr.bf16.mxu0 %v11466_v14  ;;  %v11505_v58 = vcombine.low %v3292_v39, %v3296_v41  ;;  %v11507_v14 = vcombine.low %v3293_v46, %v3297_v47  ;;  %v11516_v0 = vcombine.high %v3301_v56, %v3305_v57  ;;  %v3340_v41 = vld [vmem:[%s12954_s14 + $0x350] sm:$0xff]  ;;  %v3341_v47 = vld [vmem:[%s12954_s14 + $0x358] sm:$0xff] }
 0x2e0   : > { %6759 = vmatprep.subr.bf16.mxu1 %v11468_v62  ;;  %v11514_v62 = vcombine.high %v3300_v52, %v3304_v54  ;;  %v3344_v46 = vld [vmem:[%s12954_s14 + $0x370] sm:$0xff] }
 0x2e2   : > { %6596 = vmatpush1.bf16.msra.mxu0 %v11465_v6  ;;  %v3313_v6 = vld [vmem:[%s12954_s14 + $0x278] sm:$0xff] }
 0x2e3   : > { %6760 = vmatpush1.bf16.msra.mxu1 %v11467_v7  ;;  %6597 = vmatprep.subr.bf16.mxu0 %v11474_v29  ;;  %v11513_v7 = vcombine.low %v3300_v52, %v3304_v54  ;;  %v11515_v29 = vcombine.low %v3301_v56, %v3305_v57  ;;  %v11524_v11 = vcombine.high %v3309_v32, %v3313_v6  ;;  %v3348_v54 = vld [vmem:[%s12954_s14 + $0x390] sm:$0xff]  ;;  %v3349_v57 = vld [vmem:[%s12954_s14 + $0x398] sm:$0xff] }
 0x2e4   : > { %6761 = vmatprep.subr.bf16.mxu1 %v11476_v10  ;;  %v11522_v10 = vcombine.high %v3308_v2, %v3312_v23  ;;  %v3352_v56 = vld [vmem:[%s12954_s14 + $0x3b0] sm:$0xff] }
 0x2e6   : > { %6598 = vmatpush1.bf16.msra.mxu0 %v11473_v18  ;;  %v3321_v18 = vld [vmem:[%s12954_s14 + $0x2b8] sm:$0xff] }
 0x2e7   : > { %6762 = vmatpush1.bf16.msra.mxu1 %v11475_v19  ;;  %6599 = vmatprep.subr.bf16.mxu0 %v11482_v20  ;;  %v11521_v19 = vcombine.low %v3308_v2, %v3312_v23  ;;  %v11523_v20 = vcombine.low %v3309_v32, %v3313_v6  ;;  %v11532_v22 = vcombine.high %v3317_v3, %v3321_v18  ;;  %v3356_v23 = vld [vmem:[%s12954_s14 + $0x3d0] sm:$0xff]  ;;  %v3357_v6 = vld [vmem:[%s12954_s14 + $0x3d8] sm:$0xff] }
 0x2e8   : > { %6763 = vmatprep.subr.bf16.mxu1 %v11484_v21  ;;  %v11530_v21 = vcombine.high %v3316_v13, %v3320_v15  ;;  %v3360_v32 = vld [vmem:[%s12954_s14 + $0x3f0] sm:$0xff] }
 0x2ea   : > { %6600 = vmatpush1.bf16.msra.mxu0 %v11481_v27  ;;  %v3329_v27 = vld [vmem:[%s12954_s14 + $0x2f8] sm:$0xff] }
 0x2eb   : > { %6764 = vmatpush1.bf16.msra.mxu1 %v11483_v28  ;;  %6601 = vmatprep.subr.bf16.mxu0 %v11490_v30  ;;  %v11529_v28 = vcombine.low %v3316_v13, %v3320_v15  ;;  %v11531_v30 = vcombine.low %v3317_v3, %v3321_v18  ;;  %v11540_v33 = vcombine.high %v3325_v26, %v3329_v27  ;;  %v3364_v15 = vld [vmem:[%s12954_s14 + $0x410] sm:$0xff]  ;;  %v3365_v18 = vld [vmem:[%s12954_s14 + $0x418] sm:$0xff] }
 0x2ec   : > { %6765 = vmatprep.subr.bf16.mxu1 %v11492_v31  ;;  %v11538_v31 = vcombine.high %v3324_v24, %v3328_v17  ;;  %v3368_v3 = vld [vmem:[%s12954_s14 + $0x430] sm:$0xff] }
 0x2ee   : > { %6602 = vmatpush1.bf16.msra.mxu0 %v11489_v37  ;;  %v3337_v37 = vld [vmem:[%s12954_s14 + $0x338] sm:$0xff] }
 0x2ef   : > { %6766 = vmatpush1.bf16.msra.mxu1 %v11491_v38  ;;  %6603 = vmatprep.subr.bf16.mxu0 %v11498_v34  ;;  %v11537_v38 = vcombine.low %v3324_v24, %v3328_v17  ;;  %v11539_v34 = vcombine.low %v3325_v26, %v3329_v27  ;;  %v11548_v39 = vcombine.high %v3333_v35, %v3337_v37  ;;  %v3372_v17 = vld [vmem:[%s12954_s14 + $0x450] sm:$0xff] }
 0x2f0   : > { %6767 = vmatprep.subr.bf16.mxu1 %v11500_v40  ;;  %v11546_v40 = vcombine.high %v3332_v63, %v3336_v60  ;;  %v3376_v26 = vld [vmem:[%s12954_s14 + $0x470] sm:$0xff]  ;;  %v11577_v27 = vcombine.low %v3364_v15, %v3368_v3 }
 0x2f2   : > { %6604 = vmatpush1.bf16.msra.mxu0 %v11497_v48  ;;  %v3345_v48 = vld [vmem:[%s12954_s14 + $0x378] sm:$0xff] }
 0x2f3   : > { %6768 = vmatpush1.bf16.msra.mxu1 %v11499_v50  ;;  %6605 = vmatprep.subr.bf16.mxu0 %v11506_v49  ;;  %v11545_v50 = vcombine.low %v3332_v63, %v3336_v60  ;;  %v11547_v49 = vcombine.low %v3333_v35, %v3337_v37  ;;  %v11556_v52 = vcombine.high %v3341_v47, %v3345_v48  ;;  %v3380_v63 = vld [vmem:[%s12954_s14 + $0x490] sm:$0xff]  ;;  %v3381_v37 = vld [vmem:[%s12954_s14 + $0x498] sm:$0xff] }
 0x2f4   : > { %6769 = vmatprep.subr.bf16.mxu1 %v11508_v51  ;;  %v11554_v51 = vcombine.high %v3340_v41, %v3344_v46  ;;  %v3384_v60 = vld [vmem:[%s12954_s14 + $0x4b0] sm:$0xff] }
 0x2f6   : > { %6606 = vmatpush1.bf16.msra.mxu0 %v11505_v58  ;;  %v3353_v58 = vld [vmem:[%s12954_s14 + $0x3b8] sm:$0xff] }
 0x2f7   : > { %6770 = vmatpush1.bf16.msra.mxu1 %v11507_v14  ;;  %6607 = vmatprep.subr.bf16.mxu0 %v11514_v62  ;;  %v11553_v14 = vcombine.low %v3340_v41, %v3344_v46  ;;  %v11555_v62 = vcombine.low %v3341_v47, %v3345_v48  ;;  %v11564_v2 = vcombine.high %v3349_v57, %v3353_v58  ;;  %v3388_v46 = vld [vmem:[%s12954_s14 + $0x4d0] sm:$0xff]  ;;  %v3389_v48 = vld [vmem:[%s12954_s14 + $0x4d8] sm:$0xff] }
 0x2f8   : > { %6771 = vmatprep.subr.bf16.mxu1 %v11516_v0  ;;  %v11562_v0 = vcombine.high %v3348_v54, %v3352_v56  ;;  %v3392_v47 = vld [vmem:[%s12954_s14 + $0x4f0] sm:$0xff] }
 0x2fa   : > { %6608 = vmatpush1.bf16.msra.mxu0 %v11513_v7  ;;  %v3361_v7 = vld [vmem:[%s12954_s14 + $0x3f8] sm:$0xff] }
 0x2fb   : > { %6772 = vmatpush1.bf16.msra.mxu1 %v11515_v29  ;;  %6609 = vmatprep.subr.bf16.mxu0 %v11522_v10  ;;  %v11561_v29 = vcombine.low %v3348_v54, %v3352_v56  ;;  %v11563_v10 = vcombine.low %v3349_v57, %v3353_v58  ;;  %v11572_v13 = vcombine.high %v3357_v6, %v3361_v7  ;;  %v3400_v54 = vld [vmem:[%s12954_s14 + $0x530] sm:$0xff]  ;;  %v3397_v56 = vld [vmem:[%s12954_s14 + $0x518] sm:$0xff] }
 0x2fc   : > { %6773 = vmatprep.subr.bf16.mxu1 %v11524_v11  ;;  %v11570_v11 = vcombine.high %v3356_v23, %v3360_v32  ;;  %v3401_v57 = vld [vmem:[%s12954_s14 + $0x538] sm:$0xff]  ;;  %v11601_v58 = vcombine.low %v3388_v46, %v3392_v47 }
 0x2fe   : > { %6610 = vmatpush1.bf16.msra.mxu0 %v11521_v19  ;;  %v3369_v19 = vld [vmem:[%s12954_s14 + $0x438] sm:$0xff] }
 0x2ff   : > { %6774 = vmatpush1.bf16.msra.mxu1 %v11523_v20  ;;  %6611 = vmatprep.subr.bf16.mxu0 %v11530_v21  ;;  %v11569_v20 = vcombine.low %v3356_v23, %v3360_v32  ;;  %v11571_v21 = vcombine.low %v3357_v6, %v3361_v7  ;;  %v11580_v24 = vcombine.high %v3365_v18, %v3369_v19  ;;  %v3408_v23 = vld [vmem:[%s12954_s14 + $0x570] sm:$0xff]  ;;  %v3405_v32 = vld [vmem:[%s12954_s14 + $0x558] sm:$0xff] }
 0x300   : > { %6775 = vmatprep.subr.bf16.mxu1 %v11532_v22  ;;  %v11578_v22 = vcombine.high %v3364_v15, %v3368_v3  ;;  %v3409_v6 = vld [vmem:[%s12954_s14 + $0x578] sm:$0xff]  ;;  %v3416_v15 = vld [vmem:[%s12954_s14 + $0x5b0] sm:$0xff] }
 0x301   : > { %v3413_v3 = vld [vmem:[%s12954_s14 + $0x598] sm:$0xff] }
 0x302   : > { %6612 = vmatpush1.bf16.msra.mxu0 %v11529_v28  ;;  %v3373_v28 = vld [vmem:[%s12954_s14 + $0x458] sm:$0xff] }
 0x303   : > { %6776 = vmatpush1.bf16.msra.mxu1 %v11531_v30  ;;  %6613 = vmatprep.subr.bf16.mxu0 %v11538_v31  ;;  %v3377_v30 = vld [vmem:[%s12954_s14 + $0x478] sm:$0xff]  ;;  %v11579_v31 = vcombine.low %v3365_v18, %v3369_v19 }
 0x304   : > { %6777 = vmatprep.subr.bf16.mxu1 %v11540_v33  ;;  %v11586_v33 = vcombine.high %v3372_v17, %v3376_v26  ;;  %v11588_v35 = vcombine.high %v3373_v28, %v3377_v30  ;;  %v3417_v18 = vld [vmem:[%s12954_s14 + $0x5b8] sm:$0xff] }
 0x306   : > { %6614 = vmatpush1.bf16.msra.mxu0 %v11537_v38  ;;  %v3385_v38 = vld [vmem:[%s12954_s14 + $0x4b8] sm:$0xff] }
 0x307   : > { %6778 = vmatpush1.bf16.msra.mxu1 %v11539_v34  ;;  %6615 = vmatprep.subr.bf16.mxu0 %v11546_v40  ;;  %v11585_v34 = vcombine.low %v3372_v17, %v3376_v26  ;;  %v11587_v40 = vcombine.low %v3373_v28, %v3377_v30  ;;  %v11596_v41 = vcombine.high %v3381_v37, %v3385_v38  ;;  %v3424_v17 = vld [vmem:[%s12954_s14 + $0x5f0] sm:$0xff]  ;;  %v3421_v26 = vld [vmem:[%s12954_s14 + $0x5d8] sm:$0xff] }
 0x308   : > { %6779 = vmatprep.subr.bf16.mxu1 %v11548_v39  ;;  %v11594_v39 = vcombine.high %v3380_v63, %v3384_v60  ;;  %v11627_v30 = vcombine.low %v3413_v3, %v3417_v18 }
 0x30a   : > { %6616 = vmatpush1.bf16.msra.mxu0 %v11545_v50  ;;  %v11593_v50 = vcombine.low %v3380_v63, %v3384_v60  ;;  %v3428_v63 = vld [vmem:[%s12954_s14 + $0x610] sm:$0xff] }
 0x30b   : > { %6780 = vmatpush1.bf16.msra.mxu1 %v11547_v49  ;;  %6617 = vmatprep.subr.bf16.mxu0 %v11554_v51  ;;  %v11595_v49 = vcombine.low %v3381_v37, %v3385_v38  ;;  %v11602_v51 = vcombine.high %v3388_v46, %v3392_v47  ;;  %v3432_v60 = vld [vmem:[%s12954_s14 + $0x630] sm:$0xff]  ;;  %v3433_v37 = vld [vmem:[%s12954_s14 + $0x638] sm:$0xff] }
 0x30c   : > { %6781 = vmatprep.subr.bf16.mxu1 %v11556_v52  ;;  %v3396_v52 = vld [vmem:[%s12954_s14 + $0x510] sm:$0xff]  ;;  %v3437_v47 = vld [vmem:[%s12954_s14 + $0x658] sm:$0xff] }
 0x30d   : > { %v11609_v7 = vcombine.low %v3396_v52, %v3400_v54  ;;  %v3440_v46 = vld [vmem:[%s12954_s14 + $0x670] sm:$0xff] }
 0x30e   : > { %6618 = vmatpush1.bf16.msra.mxu0 %v11553_v14 }
 0x30f   : > { %6782 = vmatpush1.bf16.msra.mxu1 %v11555_v62  ;;  %6619 = vmatprep.subr.bf16.mxu0 %v11562_v0  ;;  %v11610_v62 = vcombine.high %v3396_v52, %v3400_v54  ;;  %v11612_v0 = vcombine.high %v3397_v56, %v3401_v57  ;;  %v3448_v52 = vld [vmem:[%s12954_s14 + $0x6b0] sm:$0xff]  ;;  %v3445_v54 = vld [vmem:[%s12954_s14 + $0x698] sm:$0xff] }
 0x310   : > { %6783 = vmatprep.subr.bf16.mxu1 %v11564_v2  ;;  %v3404_v2 = vld [vmem:[%s12954_s14 + $0x550] sm:$0xff] }
 0x311   : > { %v11617_v19 = vcombine.low %v3404_v2, %v3408_v23 }
 0x312   : > { %6620 = vmatpush1.bf16.msra.mxu0 %v11561_v29  ;;  %v11611_v29 = vcombine.low %v3397_v56, %v3401_v57  ;;  %v3449_v56 = vld [vmem:[%s12954_s14 + $0x6b8] sm:$0xff] }
 0x313   : > { %6784 = vmatpush1.bf16.msra.mxu1 %v11563_v10  ;;  %6621 = vmatprep.subr.bf16.mxu0 %v11570_v11  ;;  %v11618_v10 = vcombine.high %v3404_v2, %v3408_v23  ;;  %v11620_v11 = vcombine.high %v3405_v32, %v3409_v6  ;;  %v3456_v2 = vld [vmem:[%s12954_s14 + $0x6f0] sm:$0xff]  ;;  %v3453_v23 = vld [vmem:[%s12954_s14 + $0x6d8] sm:$0xff] }
 0x314   : > { %6785 = vmatprep.subr.bf16.mxu1 %v11572_v13  ;;  %v3412_v13 = vld [vmem:[%s12954_s14 + $0x590] sm:$0xff] }
 0x315   : > { %v11625_v28 = vcombine.low %v3412_v13, %v3416_v15 }
 0x316   : > { %6622 = vmatpush1.bf16.msra.mxu0 %v11569_v20  ;;  %v11619_v20 = vcombine.low %v3405_v32, %v3409_v6  ;;  %v3457_v32 = vld [vmem:[%s12954_s14 + $0x6f8] sm:$0xff] }
 0x317   : > { %6786 = vmatpush1.bf16.msra.mxu1 %v11571_v21  ;;  %6632 = vmatprep.subr.bf16.mxu0 %v11578_v22  ;;  %v11626_v21 = vcombine.high %v3412_v13, %v3416_v15  ;;  %v11628_v22 = vcombine.high %v3413_v3, %v3417_v18  ;;  %v3464_v13 = vld [vmem:[%s12954_s14 + $0x730] sm:$0xff]  ;;  %v3461_v15 = vld [vmem:[%s12954_s14 + $0x718] sm:$0xff] }
 0x318   : > { %6796 = vmatprep.subr.bf16.mxu1 %v11580_v24  ;;  %v3420_v24 = vld [vmem:[%s12954_s14 + $0x5d0] sm:$0xff]  ;;  %v3465_v3 = vld [vmem:[%s12954_s14 + $0x738] sm:$0xff] }
 0x319   : > { %6624 = vmatmul.mubr.bf16.vlgmr.msra.gmra.mrb[12].mxu0 %v13548_v61  ;;  %v11633_v38 = vcombine.low %v3420_v24, %v3424_v17 }
 0x31a   : > { %6788 = vmatmul.mubr.bf16.vlgmr.msra.gmra.mrb[12].mxu1 %v13548_v61  ;;  %6633 = vmatpush1.bf16.msra.mxu0 %v11577_v27  ;;  %v3393_v61 = vld [vmem:[%s12954_s14 + $0x4f8] sm:$0xff] }
 0x31b   : > { %6664 = vmatprep.mubr.bf16.mxu0 %v13552_v4  ;;  %6797 = vmatpush1.bf16.msra.mxu1 %v11579_v31  ;;  %v11603_v14 = vcombine.low %v3389_v48, %v3393_v61  ;;  %v3425_v27 = vld [vmem:[%s12954_s14 + $0x5f8] sm:$0xff]  ;;  %v11634_v31 = vcombine.high %v3420_v24, %v3424_v17  ;;  %v3472_v24 = vld [vmem:[%s12954_s14 + $0x770] sm:$0xff] }
 0x31c   : > { %6828 = vmatprep.mubr.bf16.mxu1 %v13552_v4  ;;  %6634 = vmatprep.subr.bf16.mxu0 %v11586_v33  ;;  %v11604_v4 = vcombine.high %v3389_v48, %v3393_v61  ;;  %v11636_v33 = vcombine.high %v3421_v26, %v3425_v27  ;;  %v3441_v48 = vld [vmem:[%s12954_s14 + $0x678] sm:$0xff]  ;;  %v11641_v61 = vcombine.low %v3428_v63, %v3432_v60 }
 0x31d   : > { %6798 = vmatprep.subr.bf16.mxu1 %v11588_v35  ;;  %v3429_v35 = vld [vmem:[%s12954_s14 + $0x618] sm:$0xff] }
 0x31e   : > { %6635 = vmatpush1.bf16.msra.mxu0 %v11585_v34  ;;  %v11635_v34 = vcombine.low %v3421_v26, %v3425_v27  ;;  %v3469_v17 = vld [vmem:[%s12954_s14 + $0x758] sm:$0xff] }
 0x31f   : > { %6799 = vmatpush1.bf16.msra.mxu1 %v11587_v40  ;;  %6636 = vmatprep.subr.bf16.mxu0 %v11594_v39  ;;  %v11642_v40 = vcombine.high %v3428_v63, %v3432_v60  ;;  %v11644_v39 = vcombine.high %v3429_v35, %v3433_v37  ;;  %v3473_v26 = vld [vmem:[%s12954_s14 + $0x778] sm:$0xff]  ;;  %v3480_v63 = vld [vmem:[%s12954_s14 + $0x7b0] sm:$0xff] }
 0x320   : > { %6800 = vmatprep.subr.bf16.mxu1 %v11596_v41  ;;  %v3436_v41 = vld [vmem:[%s12954_s14 + $0x650] sm:$0xff]  ;;  %v3477_v60 = vld [vmem:[%s12954_s14 + $0x798] sm:$0xff] }
 0x321   : > { %v11649_v57 = vcombine.low %v3436_v41, %v3440_v46 }
 0x322   : > { %6637 = vmatpush1.bf16.msra.mxu0 %v11593_v50  ;;  %v11643_v50 = vcombine.low %v3429_v35, %v3433_v37  ;;  %v3481_v35 = vld [vmem:[%s12954_s14 + $0x7b8] sm:$0xff] }
 0x323   : > { %6801 = vmatpush1.bf16.msra.mxu1 %v11595_v49  ;;  %6638 = vmatprep.subr.bf16.mxu0 %v11602_v51  ;;  %v11650_v49 = vcombine.high %v3436_v41, %v3440_v46  ;;  %v11652_v51 = vcombine.high %v3437_v47, %v3441_v48  ;;  %v3488_v41 = vld [vmem:[%s12954_s14 + $0x7f0] sm:$0xff]  ;;  %v3485_v46 = vld [vmem:[%s12954_s14 + $0x7d8] sm:$0xff] }
 0x324   : > { %6802 = vmatprep.subr.bf16.mxu1 %v11604_v4  ;;  %v3444_v4 = vld [vmem:[%s12954_s14 + $0x690] sm:$0xff] }
 0x325   : > { %v11657_v6 = vcombine.low %v3444_v4, %v3448_v52 }
 0x326   : > { %6639 = vmatpush1.bf16.msra.mxu0 %v11601_v58  ;;  %v11651_v58 = vcombine.low %v3437_v47, %v3441_v48  ;;  %v3489_v47 = vld [vmem:[%s12954_s14 + $0x7f8] sm:$0xff] }
 0x327   : > { %6803 = vmatpush1.bf16.msra.mxu1 %v11603_v14  ;;  %6640 = vmatprep.subr.bf16.mxu0 %v11610_v62  ;;  %v11658_v14 = vcombine.high %v3444_v4, %v3448_v52  ;;  %v11660_v62 = vcombine.high %v3445_v54, %v3449_v56  ;;  %v3496_v4 = vld [vmem:[%s12954_s14 + $0x830] sm:$0xff]  ;;  %v3493_v52 = vld [vmem:[%s12954_s14 + $0x818] sm:$0xff] }
 0x328   : > { %6804 = vmatprep.subr.bf16.mxu1 %v11612_v0  ;;  %v3452_v0 = vld [vmem:[%s12954_s14 + $0x6d0] sm:$0xff] }
 0x329   : > { %v11665_v18 = vcombine.low %v3452_v0, %v3456_v2 }
 0x32a   : > { %6641 = vmatpush1.bf16.msra.mxu0 %v11609_v7  ;;  %v11659_v7 = vcombine.low %v3445_v54, %v3449_v56  ;;  %v3497_v54 = vld [vmem:[%s12954_s14 + $0x838] sm:$0xff] }
 0x32b   : > { %6805 = vmatpush1.bf16.msra.mxu1 %v11611_v29  ;;  %6642 = vmatprep.subr.bf16.mxu0 %v11618_v10  ;;  %v11666_v29 = vcombine.high %v3452_v0, %v3456_v2  ;;  %v11668_v10 = vcombine.high %v3453_v23, %v3457_v32  ;;  %v3504_v0 = vld [vmem:[%s12954_s14 + $0x870] sm:$0xff] }
 0x32c   : > { %6806 = vmatprep.subr.bf16.mxu1 %v11620_v11  ;;  %v3460_v11 = vld [vmem:[%s12954_s14 + $0x710] sm:$0xff] }
 0x32d   : > { %v11673_v27 = vcombine.low %v3460_v11, %v3464_v13 }
 0x32e   : > { %6643 = vmatpush1.bf16.msra.mxu0 %v11617_v19  ;;  %v11667_v19 = vcombine.low %v3453_v23, %v3457_v32  ;;  %v3501_v23 = vld [vmem:[%s12954_s14 + $0x858] sm:$0xff] }
 0x32f   : > { %6807 = vmatpush1.bf16.msra.mxu1 %v11619_v20  ;;  %6644 = vmatprep.subr.bf16.mxu0 %v11626_v21  ;;  %v11674_v20 = vcombine.high %v3460_v11, %v3464_v13  ;;  %v11676_v21 = vcombine.high %v3461_v15, %v3465_v3  ;;  %v3505_v32 = vld [vmem:[%s12954_s14 + $0x878] sm:$0xff] }
 0x330   : > { %6808 = vmatprep.subr.bf16.mxu1 %v11628_v22  ;;  %v3468_v22 = vld [vmem:[%s12954_s14 + $0x750] sm:$0xff]  ;;  %v11716_v11 = vcombine.high %v3501_v23, %v3505_v32  ;;  %v3509_v13 = vld [vmem:[%s12954_s14 + $0x898] sm:$0xff] }
 0x331   : > { %v11681_v37 = vcombine.low %v3468_v22, %v3472_v24 }
 0x332   : > { %6645 = vmatpush1.bf16.msra.mxu0 %v11625_v28  ;;  %v11675_v28 = vcombine.low %v3461_v15, %v3465_v3  ;;  %v3513_v15 = vld [vmem:[%s12954_s14 + $0x8b8] sm:$0xff] }
 0x333   : > { %6809 = vmatpush1.bf16.msra.mxu1 %v11627_v30  ;;  %6646 = vmatprep.subr.bf16.mxu0 %v11634_v31  ;;  %v11682_v30 = vcombine.high %v3468_v22, %v3472_v24  ;;  %v11684_v31 = vcombine.high %v3469_v17, %v3473_v26  ;;  %v3520_v22 = vld [vmem:[%s12954_s14 + $0x8f0] sm:$0xff]  ;;  %v3517_v24 = vld [vmem:[%s12954_s14 + $0x8d8] sm:$0xff] }
 0x334   : > { %6810 = vmatprep.subr.bf16.mxu1 %v11636_v33  ;;  %v3476_v33 = vld [vmem:[%s12954_s14 + $0x790] sm:$0xff] }
 0x335   : > { %v11689_v48 = vcombine.low %v3476_v33, %v3480_v63 }
 0x336   : > { %6647 = vmatpush1.bf16.msra.mxu0 %v11633_v38  ;;  %v11683_v38 = vcombine.low %v3469_v17, %v3473_v26  ;;  %v11723_v26 = vcombine.low %v3509_v13, %v3513_v15 }
 0x337   : > { %6811 = vmatpush1.bf16.msra.mxu1 %v11635_v34  ;;  %6648 = vmatprep.subr.bf16.mxu0 %v11642_v40  ;;  %v11690_v34 = vcombine.high %v3476_v33, %v3480_v63  ;;  %v11692_v40 = vcombine.high %v3477_v60, %v3481_v35  ;;  %v3529_v33 = vld [vmem:[%s12954_s14 + $0x938] sm:$0xff] }
 0x338   : > { %6812 = vmatprep.subr.bf16.mxu1 %v11644_v39  ;;  %v3484_v39 = vld [vmem:[%s12954_s14 + $0x7d0] sm:$0xff] }
 0x339   : > { %v11697_v56 = vcombine.low %v3484_v39, %v3488_v41 }
 0x33a   : > { %6649 = vmatpush1.bf16.msra.mxu0 %v11641_v61  ;;  %v11691_v61 = vcombine.low %v3477_v60, %v3481_v35 }
 0x33b   : > { %6813 = vmatpush1.bf16.msra.mxu1 %v11643_v50  ;;  %6650 = vmatprep.subr.bf16.mxu0 %v11650_v49  ;;  %v11698_v50 = vcombine.high %v3484_v39, %v3488_v41  ;;  %v11700_v49 = vcombine.high %v3485_v46, %v3489_v47  ;;  %v3537_v39 = vld [vmem:[%s12954_s14 + $0x978] sm:$0xff] }
 0x33c   : > { %6814 = vmatprep.subr.bf16.mxu1 %v11652_v51  ;;  %v3492_v51 = vld [vmem:[%s12954_s14 + $0x810] sm:$0xff] }
 0x33d   : > { %v11705_v2 = vcombine.low %v3492_v51, %v3496_v4 }
 0x33e   : > { %6651 = vmatpush1.bf16.msra.mxu0 %v11649_v57  ;;  %v11699_v57 = vcombine.low %v3485_v46, %v3489_v47 }
 0x33f   : > { %6815 = vmatpush1.bf16.msra.mxu1 %v11651_v58  ;;  %6652 = vmatprep.subr.bf16.mxu0 %v11658_v14  ;;  %v11706_v58 = vcombine.high %v3492_v51, %v3496_v4  ;;  %v11708_v14 = vcombine.high %v3493_v52, %v3497_v54  ;;  %v3545_v51 = vld [vmem:[%s12954_s14 + $0x9b8] sm:$0xff] }
 0x340   : > { %6816 = vmatprep.subr.bf16.mxu1 %v11660_v62  ;;  %v3500_v62 = vld [vmem:[%s12954_s14 + $0x850] sm:$0xff] }
 0x341   : > { %v11713_v3 = vcombine.low %v3500_v62, %v3504_v0 }
 0x342   : > { %6653 = vmatpush1.bf16.msra.mxu0 %v11657_v6  ;;  %v11707_v6 = vcombine.low %v3493_v52, %v3497_v54 }
 0x343   : > { %6817 = vmatpush1.bf16.msra.mxu1 %v11659_v7  ;;  %6654 = vmatprep.subr.bf16.mxu0 %v11666_v29  ;;  %v11714_v7 = vcombine.high %v3500_v62, %v3504_v0  ;;  %v3508_v29 = vld [vmem:[%s12954_s14 + $0x890] sm:$0xff]  ;;  %v3553_v62 = vld [vmem:[%s12954_s14 + $0x9f8] sm:$0xff] }
 0x344   : > { %6818 = vmatprep.subr.bf16.mxu1 %v11668_v10  ;;  %v3512_v10 = vld [vmem:[%s12954_s14 + $0x8b0] sm:$0xff] }
 0x345   : > { %v11721_v17 = vcombine.low %v3508_v29, %v3512_v10 }
 0x346   : > { %6655 = vmatpush1.bf16.msra.mxu0 %v11665_v18  ;;  %v11715_v18 = vcombine.low %v3501_v23, %v3505_v32 }
 0x347   : > { %6819 = vmatpush1.bf16.msra.mxu1 %v11667_v19  ;;  %6656 = vmatprep.subr.bf16.mxu0 %v11674_v20  ;;  %v11722_v19 = vcombine.high %v3508_v29, %v3512_v10  ;;  %v11724_v20 = vcombine.high %v3509_v13, %v3513_v15  ;;  %v3557_v29 = vld [vmem:[%s12954_s14 + $0xa18] sm:$0xff] }
 0x348   : > { %6820 = vmatprep.subr.bf16.mxu1 %v11676_v21  ;;  %v3516_v21 = vld [vmem:[%s12954_s14 + $0x8d0] sm:$0xff]  ;;  %v3561_v10 = vld [vmem:[%s12954_s14 + $0xa38] sm:$0xff] }
 0x349   : > { %v11729_v63 = vcombine.low %v3516_v21, %v3520_v22 }
 0x34a   : > { %6657 = vmatpush1.bf16.msra.mxu0 %v11673_v27  ;;  %v11730_v27 = vcombine.high %v3516_v21, %v3520_v22  ;;  %v3569_v21 = vld [vmem:[%s12954_s14 + $0xa78] sm:$0xff] }
 0x34b   : > { %6821 = vmatpush1.bf16.msra.mxu1 %v11675_v28  ;;  %6658 = vmatprep.subr.bf16.mxu0 %v11682_v30  ;;  %v3524_v28 = vld [vmem:[%s12954_s14 + $0x910] sm:$0xff] }
 0x34c   : > { %6822 = vmatprep.subr.bf16.mxu1 %v11684_v31  ;;  %v3528_v30 = vld [vmem:[%s12954_s14 + $0x930] sm:$0xff]  ;;  %v3525_v31 = vld [vmem:[%s12954_s14 + $0x918] sm:$0xff] }
 0x34d   : > { %v11738_v35 = vcombine.high %v3524_v28, %v3528_v30  ;;  %v11737_v41 = vcombine.low %v3524_v28, %v3528_v30  ;;  %v11739_v46 = vcombine.low %v3525_v31, %v3529_v33  ;;  %v3577_v28 = vld [vmem:[%s12954_s14 + $0xab8] sm:$0xff] }
 0x34e   : > { %6659 = vmatpush1.bf16.msra.mxu0 %v11681_v37  ;;  %v11740_v37 = vcombine.high %v3525_v31, %v3529_v33 }
 0x34f   : > { %6823 = vmatpush1.bf16.msra.mxu1 %v11683_v38  ;;  %6660 = vmatprep.subr.bf16.mxu0 %v11690_v34  ;;  %v3532_v38 = vld [vmem:[%s12954_s14 + $0x950] sm:$0xff] }
 0x350   : > { %6824 = vmatprep.subr.bf16.mxu1 %v11692_v40  ;;  %v3536_v34 = vld [vmem:[%s12954_s14 + $0x970] sm:$0xff]  ;;  %v3533_v40 = vld [vmem:[%s12954_s14 + $0x958] sm:$0xff] }
 0x351   : > { %v11746_v47 = vcombine.high %v3532_v38, %v3536_v34  ;;  %v11745_v4 = vcombine.low %v3532_v38, %v3536_v34  ;;  %v11747_v52 = vcombine.low %v3533_v40, %v3537_v39  ;;  %v3585_v38 = vld [vmem:[%s12954_s14 + $0xaf8] sm:$0xff] }
 0x352   : > { %6661 = vmatpush1.bf16.msra.mxu0 %v11689_v48  ;;  %v11748_v48 = vcombine.high %v3533_v40, %v3537_v39 }
 0x353   : > { %6825 = vmatpush1.bf16.msra.mxu1 %v11691_v61  ;;  %6662 = vmatprep.subr.bf16.mxu0 %v11698_v50  ;;  %v3540_v61 = vld [vmem:[%s12954_s14 + $0x990] sm:$0xff] }
 0x354   : > { %6826 = vmatprep.subr.bf16.mxu1 %v11700_v49  ;;  %v3544_v50 = vld [vmem:[%s12954_s14 + $0x9b0] sm:$0xff]  ;;  %v3541_v49 = vld [vmem:[%s12954_s14 + $0x998] sm:$0xff] }
 0x355   : > { %v11754_v54 = vcombine.high %v3540_v61, %v3544_v50  ;;  %v11753_v0 = vcombine.low %v3540_v61, %v3544_v50  ;;  %v3593_v61 = vld [vmem:[%s12954_s14 + $0xb38] sm:$0xff] }
 0x356   : > { %6663 = vmatpush1.bf16.msra.mxu0 %v11697_v56  ;;  %v11756_v56 = vcombine.high %v3541_v49, %v3545_v51 }
 0x357   : > { %6827 = vmatpush1.bf16.msra.mxu1 %v11699_v57  ;;  %6673 = vmatprep.subr.bf16.mxu0 %v11706_v58  ;;  %v3548_v57 = vld [vmem:[%s12954_s14 + $0x9d0] sm:$0xff] }
 0x358   : > { %6837 = vmatprep.subr.bf16.mxu1 %v11708_v14  ;;  %v3552_v58 = vld [vmem:[%s12954_s14 + $0x9f0] sm:$0xff]  ;;  %v3549_v14 = vld [vmem:[%s12954_s14 + $0x9d8] sm:$0xff] }
 0x359   : > { %6665 = vmatmul.mubr.bf16.vlgmr.msra.gmra.mrb[12].mxu0 %v13625_v9  ;;  %v11762_v23 = vcombine.high %v3548_v57, %v3552_v58  ;;  %v11764_v32 = vcombine.high %v3549_v14, %v3553_v62  ;;  %v11763_v13 = vcombine.low %v3549_v14, %v3553_v62 }
 0x35a   : > { %6829 = vmatmul.mubr.bf16.vlgmr.msra.gmra.mrb[12].mxu1 %v13625_v9  ;;  %6674 = vmatpush1.bf16.msra.mxu0 %v11705_v2  ;;  %v3521_v9 = vld [vmem:[%s12954_s14 + $0x8f8] sm:$0xff]  ;;  %v11755_v2 = vcombine.low %v3541_v49, %v3545_v51 }
 0x35b   : > { %6705 = vmatprep.mubr.bf16.mxu0 %v13710_v5  ;;  %6838 = vmatpush1.bf16.msra.mxu1 %v11707_v6  ;;  %v11731_v60 = vcombine.low %v3517_v24, %v3521_v9  ;;  %v3556_v6 = vld [vmem:[%s12954_s14 + $0xa10] sm:$0xff] }
 0x35c   : > { %6869 = vmatprep.mubr.bf16.mxu1 %v13710_v5  ;;  %6675 = vmatprep.subr.bf16.mxu0 %v11714_v7  ;;  %v11732_v5 = vcombine.high %v3517_v24, %v3521_v9  ;;  %v3560_v7 = vld [vmem:[%s12954_s14 + $0xa30] sm:$0xff]  ;;  %v11771_v24 = vcombine.low %v3557_v29, %v3561_v10 }
 0x35d   : > { %6839 = vmatprep.subr.bf16.mxu1 %v11716_v11  ;;  %v11761_v11 = vcombine.low %v3548_v57, %v3552_v58  ;;  %v11770_v15 = vcombine.high %v3556_v6, %v3560_v7  ;;  %v11769_v22 = vcombine.low %v3556_v6, %v3560_v7  ;;  %v3601_v57 = vld [vmem:[%s12954_s14 + $0xb78] sm:$0xff] }
 0x35e   : > { %6676 = vmatpush1.bf16.msra.mxu0 %v11713_v3  ;;  %v11772_v3 = vcombine.high %v3557_v29, %v3561_v10  ;;  %v3609_v6 = vld [vmem:[%s12954_s14 + $0xbb8] sm:$0xff] }
 0x35f   : > { %6840 = vmatpush1.bf16.msra.mxu1 %v11715_v18  ;;  %6677 = vmatprep.subr.bf16.mxu0 %v11722_v19  ;;  %v3564_v18 = vld [vmem:[%s12954_s14 + $0xa50] sm:$0xff] }
 0x360   : > { %6841 = vmatprep.subr.bf16.mxu1 %v11724_v20  ;;  %v3568_v19 = vld [vmem:[%s12954_s14 + $0xa70] sm:$0xff]  ;;  %v3565_v20 = vld [vmem:[%s12954_s14 + $0xa58] sm:$0xff] }
 0x361   : > { %v11778_v9 = vcombine.high %v3564_v18, %v3568_v19  ;;  %v11777_v30 = vcombine.low %v3564_v18, %v3568_v19  ;;  %v11779_v31 = vcombine.low %v3565_v20, %v3569_v21  ;;  %v3617_v18 = vld [vmem:[%s12954_s14 + $0xbf8] sm:$0xff] }
 0x362   : > { %6678 = vmatpush1.bf16.msra.mxu0 %v11721_v17  ;;  %v11780_v17 = vcombine.high %v3565_v20, %v3569_v21 }
 0x363   : > { %6842 = vmatpush1.bf16.msra.mxu1 %v11723_v26  ;;  %6679 = vmatprep.subr.bf16.mxu0 %v11730_v27  ;;  %v3572_v26 = vld [vmem:[%s12954_s14 + $0xa90] sm:$0xff] }
 0x364   : > { %6843 = vmatprep.subr.bf16.mxu1 %v11732_v5  ;;  %v3576_v27 = vld [vmem:[%s12954_s14 + $0xab0] sm:$0xff]  ;;  %v3573_v5 = vld [vmem:[%s12954_s14 + $0xa98] sm:$0xff] }
 0x365   : > { %v11786_v33 = vcombine.high %v3572_v26, %v3576_v27  ;;  %v11785_v34 = vcombine.low %v3572_v26, %v3576_v27  ;;  %v11787_v40 = vcombine.low %v3573_v5, %v3577_v28  ;;  %v3625_v26 = vld [vmem:[%s12954_s14 + $0xc38] sm:$0xff] }
 0x366   : > { %6680 = vmatpush1.bf16.msra.mxu0 %v11729_v63  ;;  %v11788_v63 = vcombine.high %v3573_v5, %v3577_v28 }
 0x367   : > { %6844 = vmatpush1.bf16.msra.mxu1 %v11731_v60  ;;  %6681 = vmatprep.subr.bf16.mxu0 %v11738_v35  ;;  %v3580_v60 = vld [vmem:[%s12954_s14 + $0xad0] sm:$0xff] }
 0x368   : > { %6845 = vmatprep.subr.bf16.mxu1 %v11740_v37  ;;  %v3584_v35 = vld [vmem:[%s12954_s14 + $0xaf0] sm:$0xff]  ;;  %v3581_v37 = vld [vmem:[%s12954_s14 + $0xad8] sm:$0xff] }
 0x369   : > { %v11794_v39 = vcombine.high %v3580_v60, %v3584_v35  ;;  %v11793_v50 = vcombine.low %v3580_v60, %v3584_v35  ;;  %v11795_v49 = vcombine.low %v3581_v37, %v3585_v38  ;;  %v3629_v60 = vld [vmem:[%s12954_s14 + $0xc58] sm:$0xff] }
 0x36a   : > { %6682 = vmatpush1.bf16.msra.mxu0 %v11737_v41  ;;  %v11796_v41 = vcombine.high %v3581_v37, %v3585_v38  ;;  %v3633_v35 = vld [vmem:[%s12954_s14 + $0xc78] sm:$0xff] }
 0x36b   : > { %6846 = vmatpush1.bf16.msra.mxu1 %v11739_v46  ;;  %6683 = vmatprep.subr.bf16.mxu0 %v11746_v47  ;;  %v3588_v46 = vld [vmem:[%s12954_s14 + $0xb10] sm:$0xff] }
 0x36c   : > { %6847 = vmatprep.subr.bf16.mxu1 %v11748_v48  ;;  %v3592_v47 = vld [vmem:[%s12954_s14 + $0xb30] sm:$0xff]  ;;  %v3589_v48 = vld [vmem:[%s12954_s14 + $0xb18] sm:$0xff] }
 0x36d   : > { %v11802_v51 = vcombine.high %v3588_v46, %v3592_v47  ;;  %v11801_v58 = vcombine.low %v3588_v46, %v3592_v47  ;;  %v11803_v14 = vcombine.low %v3589_v48, %v3593_v61  ;;  %v3641_v46 = vld [vmem:[%s12954_s14 + $0xcb8] sm:$0xff] }
 0x36e   : > { %6684 = vmatpush1.bf16.msra.mxu0 %v11745_v4  ;;  %v11804_v4 = vcombine.high %v3589_v48, %v3593_v61  ;;  %v11843_v48 = vcombine.low %v3629_v60, %v3633_v35 }
 0x36f   : > { %6848 = vmatpush1.bf16.msra.mxu1 %v11747_v52  ;;  %6685 = vmatprep.subr.bf16.mxu0 %v11754_v54  ;;  %v3596_v52 = vld [vmem:[%s12954_s14 + $0xb50] sm:$0xff] }
 0x370   : > { %6849 = vmatprep.subr.bf16.mxu1 %v11756_v56  ;;  %v3600_v54 = vld [vmem:[%s12954_s14 + $0xb70] sm:$0xff]  ;;  %v3597_v56 = vld [vmem:[%s12954_s14 + $0xb58] sm:$0xff] }
 0x371   : > { %v11810_v62 = vcombine.high %v3596_v52, %v3600_v54  ;;  %v11809_v7 = vcombine.low %v3596_v52, %v3600_v54  ;;  %v11811_v29 = vcombine.low %v3597_v56, %v3601_v57 }
 0x372   : > { %6686 = vmatpush1.bf16.msra.mxu0 %v11753_v0  ;;  %v11812_v0 = vcombine.high %v3597_v56, %v3601_v57  ;;  %v3652_v57 = vld [vmem:[%s12954_s14 + $0xd10] sm:$0xff] }
 0x373   : > { %6850 = vmatpush1.bf16.msra.mxu1 %v11755_v2  ;;  %6687 = vmatprep.subr.bf16.mxu0 %v11762_v23  ;;  %v3604_v2 = vld [vmem:[%s12954_s14 + $0xb90] sm:$0xff] }
 0x374   : > { %6851 = vmatprep.subr.bf16.mxu1 %v11764_v32  ;;  %v3608_v23 = vld [vmem:[%s12954_s14 + $0xbb0] sm:$0xff]  ;;  %v3605_v32 = vld [vmem:[%s12954_s14 + $0xb98] sm:$0xff] }
 0x375   : > { %v11818_v10 = vcombine.high %v3604_v2, %v3608_v23  ;;  %v11817_v19 = vcombine.low %v3604_v2, %v3608_v23  ;;  %v11819_v20 = vcombine.low %v3605_v32, %v3609_v6 }
 0x376   : > { %6688 = vmatpush1.bf16.msra.mxu0 %v11761_v11  ;;  %v11820_v11 = vcombine.high %v3605_v32, %v3609_v6  ;;  %v3660_v6 = vld [vmem:[%s12954_s14 + $0xd50] sm:$0xff] }
 0x377   : > { %6852 = vmatpush1.bf16.msra.mxu1 %v11763_v13  ;;  %6689 = vmatprep.subr.bf16.mxu0 %v11770_v15  ;;  %v3612_v13 = vld [vmem:[%s12954_s14 + $0xbd0] sm:$0xff] }
 0x378   : > { %6853 = vmatprep.subr.bf16.mxu1 %v11772_v3  ;;  %v3616_v15 = vld [vmem:[%s12954_s14 + $0xbf0] sm:$0xff]  ;;  %v3613_v3 = vld [vmem:[%s12954_s14 + $0xbd8] sm:$0xff] }
 0x379   : > { %v11826_v21 = vcombine.high %v3612_v13, %v3616_v15  ;;  %v11825_v27 = vcombine.low %v3612_v13, %v3616_v15  ;;  %v11827_v5 = vcombine.low %v3613_v3, %v3617_v18 }
 0x37a   : > { %6690 = vmatpush1.bf16.msra.mxu0 %v11769_v22  ;;  %v11828_v22 = vcombine.high %v3613_v3, %v3617_v18  ;;  %v3668_v18 = vld [vmem:[%s12954_s14 + $0xd90] sm:$0xff] }
 0x37b   : > { %6854 = vmatpush1.bf16.msra.mxu1 %v11771_v24  ;;  %6691 = vmatprep.subr.bf16.mxu0 %v11778_v9  ;;  %v3620_v24 = vld [vmem:[%s12954_s14 + $0xc10] sm:$0xff] }
 0x37c   : > { %6855 = vmatprep.subr.bf16.mxu1 %v11780_v17  ;;  %v3624_v9 = vld [vmem:[%s12954_s14 + $0xc30] sm:$0xff]  ;;  %v3621_v17 = vld [vmem:[%s12954_s14 + $0xc18] sm:$0xff] }
 0x37d   : > { %v11834_v28 = vcombine.high %v3620_v24, %v3624_v9  ;;  %v11835_v37 = vcombine.low %v3621_v17, %v3625_v26 }
 0x37e   : > { %6692 = vmatpush1.bf16.msra.mxu0 %v11777_v30  ;;  %v11836_v30 = vcombine.high %v3621_v17, %v3625_v26 }
 0x37f   : > { %6856 = vmatpush1.bf16.msra.mxu1 %v11779_v31  ;;  %6693 = vmatprep.subr.bf16.mxu0 %v11786_v33  ;;  %v3628_v31 = vld [vmem:[%s12954_s14 + $0xc50] sm:$0xff] }
 0x380   : > { %6857 = vmatprep.subr.bf16.mxu1 %v11788_v63  ;;  %v3632_v33 = vld [vmem:[%s12954_s14 + $0xc70] sm:$0xff]  ;;  %v11833_v63 = vcombine.low %v3620_v24, %v3624_v9 }
 0x381   : > { %v11842_v38 = vcombine.high %v3628_v31, %v3632_v33  ;;  %v11841_v47 = vcombine.low %v3628_v31, %v3632_v33  ;;  %v3677_v33 = vld [vmem:[%s12954_s14 + $0xdd8] sm:$0xff] }
 0x382   : > { %6694 = vmatpush1.bf16.msra.mxu0 %v11785_v34  ;;  %v3636_v34 = vld [vmem:[%s12954_s14 + $0xc90] sm:$0xff] }
 0x383   : > { %6858 = vmatpush1.bf16.msra.mxu1 %v11787_v40  ;;  %6695 = vmatprep.subr.bf16.mxu0 %v11794_v39  ;;  %v3640_v40 = vld [vmem:[%s12954_s14 + $0xcb0] sm:$0xff]  ;;  %v11844_v39 = vcombine.high %v3629_v60, %v3633_v35 }
 0x384   : > { %6859 = vmatprep.subr.bf16.mxu1 %v11796_v41  ;;  %v3637_v41 = vld [vmem:[%s12954_s14 + $0xc98] sm:$0xff]  ;;  %v11850_v61 = vcombine.high %v3636_v34, %v3640_v40  ;;  %v11849_v52 = vcombine.low %v3636_v34, %v3640_v40 }
 0x385   : > { %v11851_v54 = vcombine.low %v3637_v41, %v3641_v46 }
 0x386   : > { %6696 = vmatpush1.bf16.msra.mxu0 %v11793_v50  ;;  %v11852_v50 = vcombine.high %v3637_v41, %v3641_v46  ;;  %v3684_v46 = vld [vmem:[%s12954_s14 + $0xe10] sm:$0xff] }
 0x387   : > { %6860 = vmatpush1.bf16.msra.mxu1 %v11795_v49  ;;  %6697 = vmatprep.subr.bf16.mxu0 %v11802_v51  ;;  %v3644_v49 = vld [vmem:[%s12954_s14 + $0xcd0] sm:$0xff] }
 0x388   : > { %6861 = vmatprep.subr.bf16.mxu1 %v11804_v4  ;;  %v3648_v51 = vld [vmem:[%s12954_s14 + $0xcf0] sm:$0xff]  ;;  %v3649_v4 = vld [vmem:[%s12954_s14 + $0xcf8] sm:$0xff] }
 0x389   : > { %v11858_v56 = vcombine.high %v3644_v49, %v3648_v51 }
 0x38a   : > { %6698 = vmatpush1.bf16.msra.mxu0 %v11801_v58  ;;  %v3656_v58 = vld [vmem:[%s12954_s14 + $0xd30] sm:$0xff] }
 0x38b   : > { %6862 = vmatpush1.bf16.msra.mxu1 %v11803_v14  ;;  %6699 = vmatprep.subr.bf16.mxu0 %v11810_v62  ;;  %v3653_v14 = vld [vmem:[%s12954_s14 + $0xd18] sm:$0xff]  ;;  %v11866_v23 = vcombine.high %v3652_v57, %v3656_v58 }
 0x38c   : > { %6863 = vmatprep.subr.bf16.mxu1 %v11812_v0  ;;  %v3657_v62 = vld [vmem:[%s12954_s14 + $0xd38] sm:$0xff]  ;;  %v11857_v0 = vcombine.low %v3644_v49, %v3648_v51 }
 0x38d   : > { %v11868_v32 = vcombine.high %v3653_v14, %v3657_v62  ;;  %v11867_v13 = vcombine.low %v3653_v14, %v3657_v62  ;;  %v3700_v62 = vld [vmem:[%s12954_s14 + $0xe90] sm:$0xff] }
 0x38e   : > { %6700 = vmatpush1.bf16.msra.mxu0 %v11809_v7  ;;  %v3664_v7 = vld [vmem:[%s12954_s14 + $0xd70] sm:$0xff] }
 0x38f   : > { %6864 = vmatpush1.bf16.msra.mxu1 %v11811_v29  ;;  %6701 = vmatprep.subr.bf16.mxu0 %v11818_v10  ;;  %v3661_v29 = vld [vmem:[%s12954_s14 + $0xd58] sm:$0xff]  ;;  %v11874_v15 = vcombine.high %v3660_v6, %v3664_v7 }
 0x390   : > { %6865 = vmatprep.subr.bf16.mxu1 %v11820_v11  ;;  %v3665_v10 = vld [vmem:[%s12954_s14 + $0xd78] sm:$0xff]  ;;  %v11865_v11 = vcombine.low %v3652_v57, %v3656_v58 }
 0x391   : > { %v11876_v3 = vcombine.high %v3661_v29, %v3665_v10  ;;  %v11875_v24 = vcombine.low %v3661_v29, %v3665_v10  ;;  %v3708_v10 = vld [vmem:[%s12954_s14 + $0xed0] sm:$0xff] }
 0x392   : > { %6702 = vmatpush1.bf16.msra.mxu0 %v11817_v19  ;;  %v3672_v19 = vld [vmem:[%s12954_s14 + $0xdb0] sm:$0xff] }
 0x393   : > { %6866 = vmatpush1.bf16.msra.mxu1 %v11819_v20  ;;  %6703 = vmatprep.subr.bf16.mxu0 %v11826_v21  ;;  %v3669_v20 = vld [vmem:[%s12954_s14 + $0xd98] sm:$0xff]  ;;  %v11882_v9 = vcombine.high %v3668_v18, %v3672_v19 }
 0x394   : > { %6867 = vmatprep.subr.bf16.mxu1 %v11828_v22  ;;  %v3673_v21 = vld [vmem:[%s12954_s14 + $0xdb8] sm:$0xff]  ;;  %v11873_v22 = vcombine.low %v3660_v6, %v3664_v7 }
 0x395   : > { %v11883_v40 = vcombine.low %v3669_v20, %v3673_v21 }
 0x396   : > { %6704 = vmatpush1.bf16.msra.mxu0 %v11825_v27  ;;  %v11884_v27 = vcombine.high %v3669_v20, %v3673_v21  ;;  %v3716_v21 = vld [vmem:[%s12954_s14 + $0xf10] sm:$0xff] }
 0x397   : > { %6868 = vmatpush1.bf16.msra.mxu1 %v11827_v5  ;;  %6714 = vmatprep.subr.bf16.mxu0 %v11834_v28  ;;  %v3676_v5 = vld [vmem:[%s12954_s14 + $0xdd0] sm:$0xff] }
 0x398   : > { %6878 = vmatprep.subr.bf16.mxu1 %v11836_v30  ;;  %v3680_v28 = vld [vmem:[%s12954_s14 + $0xdf0] sm:$0xff] }
 0x399   : > { %6706 = vmatmul.mubr.bf16.vlgmr.msra.gmra.mrb[12].mxu0 %v13712_v8 }
 0x39a   : > { %6870 = vmatmul.mubr.bf16.vlgmr.msra.gmra.mrb[12].mxu1 %v13712_v8  ;;  %6715 = vmatpush1.bf16.msra.mxu0 %v11833_v63  ;;  %v3645_v8 = vld [vmem:[%s12954_s14 + $0xcd8] sm:$0xff] }
 0x39b   : > { %11954 = vmatprep.mubr.msk.bf16.mxu0 %vm6234_vm0, %v13720_v59  ;;  %6879 = vmatpush1.bf16.msra.mxu1 %v11835_v37  ;;  %v11859_v2 = vcombine.low %v3645_v8, %v3649_v4  ;;  %v3681_v63 = vld [vmem:[%s12954_s14 + $0xdf8] sm:$0xff]  ;;  %v11881_v37 = vcombine.low %v3668_v18, %v3672_v19 }
 0x39c   : > { %11956 = vmatprep.mubr.msk.bf16.mxu1 %vm6234_vm0, %v13720_v59  ;;  %6716 = vmatprep.subr.bf16.mxu0 %v11842_v38  ;;  %v11860_v59 = vcombine.high %v3645_v8, %v3649_v4  ;;  %v11892_v41 = vcombine.high %v3677_v33, %v3681_v63  ;;  %v11891_v49 = vcombine.low %v3677_v33, %v3681_v63  ;;  %v3692_v4 = vld [vmem:[%s12954_s14 + $0xe50] sm:$0xff] }
 0x39d   : > { %6880 = vmatprep.subr.bf16.mxu1 %v11844_v39  ;;  %v11890_v39 = vcombine.high %v3676_v5, %v3680_v28  ;;  %v3724_v63 = vld [vmem:[%s12954_s14 + $0xf50] sm:$0xff] }
 0x39e   : > { %6717 = vmatpush1.bf16.msra.mxu0 %v11841_v47  ;;  %v3688_v47 = vld [vmem:[%s12954_s14 + $0xe30] sm:$0xff] }
 0x39f   : > { %6881 = vmatpush1.bf16.msra.mxu1 %v11843_v48  ;;  %6718 = vmatprep.subr.bf16.mxu0 %v11850_v61  ;;  %v3685_v48 = vld [vmem:[%s12954_s14 + $0xe18] sm:$0xff]  ;;  %v11898_v51 = vcombine.high %v3684_v46, %v3688_v47 }
 0x3a0   : > { %6882 = vmatprep.subr.bf16.mxu1 %v11852_v50  ;;  %v3689_v61 = vld [vmem:[%s12954_s14 + $0xe38] sm:$0xff]  ;;  %v11889_v50 = vcombine.low %v3676_v5, %v3680_v28 }
 0x3a1   : > { %v11900_v8 = vcombine.high %v3685_v48, %v3689_v61  ;;  %v11899_v57 = vcombine.low %v3685_v48, %v3689_v61 }
 0x3a2   : > { %6719 = vmatpush1.bf16.msra.mxu0 %v11849_v52  ;;  %v3696_v52 = vld [vmem:[%s12954_s14 + $0xe70] sm:$0xff] }
 0x3a3   : > { %6883 = vmatpush1.bf16.msra.mxu1 %v11851_v54  ;;  %6720 = vmatprep.subr.bf16.mxu0 %v11858_v56  ;;  %v3693_v54 = vld [vmem:[%s12954_s14 + $0xe58] sm:$0xff]  ;;  %v11906_v58 = vcombine.high %v3692_v4, %v3696_v52 }
 0x3a4   : > { %6884 = vmatprep.subr.bf16.mxu1 %v11860_v59  ;;  %v3697_v56 = vld [vmem:[%s12954_s14 + $0xe78] sm:$0xff]  ;;  %v11897_v59 = vcombine.low %v3684_v46, %v3688_v47 }
 0x3a5   : > { %v11908_v14 = vcombine.high %v3693_v54, %v3697_v56  ;;  %v11907_v6 = vcombine.low %v3693_v54, %v3697_v56  ;;  %v3733_v46 = vld [vmem:[%s12954_s14 + $0xf98] sm:$0xff] }
 0x3a6   : > { %6721 = vmatpush1.bf16.msra.mxu0 %v11857_v0  ;;  %v3704_v0 = vld [vmem:[%s12954_s14 + $0xeb0] sm:$0xff] }
 0x3a7   : > { %6885 = vmatpush1.bf16.msra.mxu1 %v11859_v2  ;;  %6722 = vmatprep.subr.bf16.mxu0 %v11866_v23  ;;  %v3701_v2 = vld [vmem:[%s12954_s14 + $0xe98] sm:$0xff]  ;;  %v11914_v7 = vcombine.high %v3700_v62, %v3704_v0 }
 0x3a8   : > { %6886 = vmatprep.subr.bf16.mxu1 %v11868_v32  ;;  %v3705_v23 = vld [vmem:[%s12954_s14 + $0xeb8] sm:$0xff]  ;;  %v11905_v32 = vcombine.low %v3692_v4, %v3696_v52 }
 0x3a9   : > { %v11916_v29 = vcombine.high %v3701_v2, %v3705_v23  ;;  %v11915_v18 = vcombine.low %v3701_v2, %v3705_v23 }
 0x3aa   : > { %6723 = vmatpush1.bf16.msra.mxu0 %v11865_v11  ;;  %v3712_v11 = vld [vmem:[%s12954_s14 + $0xef0] sm:$0xff] }
 0x3ab   : > { %6887 = vmatpush1.bf16.msra.mxu1 %v11867_v13  ;;  %6724 = vmatprep.subr.bf16.mxu0 %v11874_v15  ;;  %v3709_v13 = vld [vmem:[%s12954_s14 + $0xed8] sm:$0xff]  ;;  %v11922_v19 = vcombine.high %v3708_v10, %v3712_v11 }
 0x3ac   : > { %v14023_v17 = vpop.f32.mrb[8].mxu0  ;;  %v14025_v26 = vpop.f32.mrb[8].mxu1  ;;  %6888 = vmatprep.subr.bf16.mxu1 %v11876_v3  ;;  %v3713_v15 = vld [vmem:[%s12954_s14 + $0xef8] sm:$0xff]  ;;  %v11913_v3 = vcombine.low %v3700_v62, %v3704_v0 }
 0x3ad   : > { %v14029_v30 = vpop.f32.mrb[9].mxu0  ;;  %v14031_v31 = vpop.f32.mrb[9].mxu1  ;;  %v11924_v20 = vcombine.high %v3709_v13, %v3713_v15  ;;  %v11923_v5 = vcombine.low %v3709_v13, %v3713_v15 }
 0x3ae   : > { %v6424_v60 = vpop.f32.mrb[10].mxu0  ;;  %v6588_v35 = vpop.f32.mrb[10].mxu1  ;;  %6725 = vmatpush1.bf16.msra.mxu0 %v11873_v22  ;;  %v3720_v22 = vld [vmem:[%s12954_s14 + $0xf30] sm:$0xff]  ;;  %v6931_v0 = vcombine.low (!%p11957_p7), %v14023_v17, %v14029_v30  ;;  %v6932_v2 = vcombine.low (!%p11957_p7), %v14025_v26, %v14031_v31 }
 0x3af   : > { %6889 = vmatpush1.bf16.msra.mxu1 %v11875_v24  ;;  %v6425_v38 = vpop.f32.mrb[11].mxu0  ;;  %v6589_v34 = vpop.f32.mrb[11].mxu1  ;;  %6726 = vmatprep.subr.bf16.mxu0 %v11882_v9  ;;  %v3717_v24 = vld [vmem:[%s12954_s14 + $0xf18] sm:$0xff]  ;;  %v11930_v28 = vcombine.high %v3716_v21, %v3720_v22  ;;  %v3728_v60 = vld [vmem:[%s12954_s14 + $0xf70] sm:$0xff] }
 0x3b0   : > { %6890 = vmatprep.subr.bf16.mxu1 %v11884_v27  ;;  %v3721_v9 = vld [vmem:[%s12954_s14 + $0xf38] sm:$0xff]  ;;  %v11921_v27 = vcombine.low %v3708_v10, %v3712_v11  ;;  %v11929_v38 = vcombine.low %v3716_v21, %v3720_v22  ;;  %v11937_v47 = vcombine.low %v3724_v63, %v3728_v60 }
 0x3b1   : > { %v11932_v33 = vcombine.high %v3717_v24, %v3721_v9  ;;  %v3725_v35 = vld [vmem:[%s12954_s14 + $0xf58] sm:$0xff]  ;;  %v11931_v34 = vcombine.low %v3717_v24, %v3721_v9 }
 0x3b2   : > { %6727 = vmatpush1.bf16.msra.mxu0 %v11881_v37  ;;  %v3729_v37 = vld [vmem:[%s12954_s14 + $0xf78] sm:$0xff] }
 0x3b3   : > { %6891 = vmatpush1.bf16.msra.mxu1 %v11883_v40  ;;  %6728 = vmatprep.subr.bf16.mxu0 %v11890_v39  ;;  %v11938_v40 = vcombine.high %v3724_v63, %v3728_v60  ;;  %v11940_v39 = vcombine.high %v3725_v35, %v3729_v37  ;;  %v11939_v48 = vcombine.low %v3725_v35, %v3729_v37 }
 0x3b4   : > { %6892 = vmatprep.subr.bf16.mxu1 %v11892_v41  ;;  %v3732_v41 = vld [vmem:[%s12954_s14 + $0xf90] sm:$0xff] }
 0x3b5   : > { %v11946_v61 = vcombine.high %v3732_v41, %v3732_v41 }
 0x3b6   : > { %6729 = vmatpush1.bf16.msra.mxu0 %v11889_v50  ;;  %v11945_v50 = vcombine.low %v3732_v41, %v3732_v41 }
 0x3b7   : > { %6893 = vmatpush1.bf16.msra.mxu1 %v11891_v49  ;;  %6730 = vmatprep.subr.bf16.mxu0 %v11898_v51  ;;  %v11948_v49 = vcombine.high %v3733_v46, %v3733_v46  ;;  %v11947_v51 = vcombine.low %v3733_v46, %v3733_v46 }
 0x3b8   : > { %6894 = vmatprep.subr.bf16.mxu1 %v11900_v8  ;;  %v6252_v8 = vsel %vm6238_vm1, %v11945_v50, 0 }
 0x3b9   : > { %v6258_v4 = vsel %vm6238_vm1, %v11947_v51, 0 }
 0x3ba   : > { %6731 = vmatpush1.bf16.msra.mxu0 %v11897_v59 }
 0x3bb   : > { %6895 = vmatpush1.bf16.msra.mxu1 %v11899_v57  ;;  %6732 = vmatprep.subr.bf16.mxu0 %v11906_v58 }
 0x3bc   : > { %6896 = vmatprep.subr.bf16.mxu1 %v11908_v14 }
 0x3be   : > { %6733 = vmatpush1.bf16.msra.mxu0 %v11905_v32 }
 0x3bf   : > { %6897 = vmatpush1.bf16.msra.mxu1 %v11907_v6  ;;  %6734 = vmatprep.subr.bf16.mxu0 %v11914_v7  ;;  %v6946_v6 = vrot.slane (!%p11957_p7), %v6932_v2, %v13015_v53 }
 0x3c0   : > { %6898 = vmatprep.subr.bf16.mxu1 %v11916_v29 }
 0x3c2   : > { %6735 = vmatpush1.bf16.msra.mxu0 %v11913_v3 }
 0x3c3   : > { %6899 = vmatpush1.bf16.msra.mxu1 %v11915_v18  ;;  %6736 = vmatprep.subr.bf16.mxu0 %v11922_v19 }
 0x3c4   : > { %6900 = vmatprep.subr.bf16.mxu1 %v11924_v20 }
 0x3c6   : > { %6737 = vmatpush1.bf16.msra.mxu0 %v11921_v27 }
 0x3c7   : > { %6901 = vmatpush1.bf16.msra.mxu1 %v11923_v5  ;;  %6738 = vmatprep.subr.bf16.mxu0 %v11930_v28 }
 0x3c8   : > { %6902 = vmatprep.subr.bf16.mxu1 %v11932_v33 }
 0x3ca   : > { %6739 = vmatpush1.bf16.msra.mxu0 %v11929_v38 }
 0x3cb   : > { %6903 = vmatpush1.bf16.msra.mxu1 %v11931_v34  ;;  %6740 = vmatprep.subr.bf16.mxu0 %v11938_v40 }
 0x3cc   : > { %6904 = vmatprep.subr.bf16.mxu1 %v11940_v39 }
 0x3ce   : > { %6741 = vmatpush1.bf16.msra.mxu0 %v11937_v47 }
 0x3cf   : > { %6905 = vmatpush1.bf16.msra.mxu1 %v11939_v48  ;;  %11953 = vmatprep.subr.msk.bf16.mxu0 %vm6238_vm1, %v11946_v61 }
 0x3d0   : > { %11955 = vmatprep.subr.msk.bf16.mxu1 %vm6238_vm1, %v11948_v49 }
 0x3d2   : > { %6743 = vmatpush1.bf16.msra.mxu0 %v6252_v8 }
 0x3d3   : > { %6907 = vmatpush1.bf16.msra.mxu1 %v6258_v4 }
 0x3d5   : > { %6747 = vmatmul.mubr.bf16.vlgmr.msra.gmra.mrb[12].mxu0 %v13791_v16 }
 0x3d6   : > { %6911 = vmatmul.mubr.bf16.vlgmr.msra.gmra.mrb[12].mxu1 %v13791_v16  ;;  %v6939_v16 = vrot.slane (!%p11957_p7), %v6931_v0, %v13015_v53 }
 0x3d8   : > { %v6947_v10 = vcombine.low (!%p11957_p7), %v6939_v16, %v6946_v6 }
 0x3da   : > { %6967 = vst [vmem:[#allocation2] sm:$0xff] (!%p11957_p7), %v6947_v10 }
 0x4a6   : > { %6922 = sbr.rel (%p11957_p7) target bundleno = 1202 (0x4b2), region = 52 }
 0x4a8   : > { %v6748_v52 = vpop.f32.mrb[12].mxu0 }
 0x4a9   : > { %v6912_v54 = vpop.f32.mrb[12].mxu1  ;;  %v6750_v56 = vpop.f32.mrb[13].mxu0 }
 0x4aa   : > { %v6914_v59 = vpop.f32.mrb[13].mxu1  ;;  %v6752_v57 = vpop.f32.mrb[14].mxu0  ;;  %v6948_v23 = vcombine.low (!%p11957_p7), %v6748_v52, %v6750_v56 }
 0x4ab   : > { %v6916_v58 = vpop.f32.mrb[14].mxu1  ;;  %v6753_v14 = vpop.f32.mrb[15].mxu0  ;;  %v6949_v32 = vcombine.low (!%p11957_p7), %v6912_v54, %v6914_v59 }
 0x4ac   : > { %v6917_v62 = vpop.f32.mrb[15].mxu1  ;;  %v6956_v7 = vrot.slane (!%p11957_p7), %v6948_v23, %v13015_v53 }
 0x4ad   : > { %v6963_v29 = vrot.slane %v6949_v32, %v13015_v53 }
 0x4af   : > { %v6964_v11 = vcombine.low %v6956_v7, %v6963_v29 }
 0x4b1   : > { %6968 = vst [vmem:[#allocation2 + $0x8] sm:$0xff] %v6964_v11 }
 0x4b2 PF: > { %p11958_p8 = scmp.eq.s32.totalorder %s12782_s24, 0 }
 0x4b3   : > { %v6983_v13 = vcombine.low (!%p11958_p8), %v14023_v17, %v14029_v30  ;;  %v6984_v15 = vcombine.low (!%p11958_p8), %v14025_v26, %v14031_v31  ;;  %v7000_v3 = vcombine.low (!%p11958_p8), %v6748_v52, %v6750_v56  ;;  %v7001_v18 = vcombine.low (!%p11958_p8), %v6912_v54, %v6914_v59  ;;  %v6973_v24 = vld [vmem:[#allocation2] sm:$0xff] (!%p11958_p8) }
 0x4b4   : > { %6972 = sbr.rel (%p11958_p8) target bundleno = 1212 (0x4bc), region = 56 }
 0x4b5   : > { %v6991_v19 = vrot.slane (!%p11958_p8), %v6983_v13, %v13015_v53  ;;  %v6998_v20 = vrot.slane (!%p11958_p8), %v6984_v15, %v13015_v53  ;;  %v7008_v21 = vrot.slane (!%p11958_p8), %v7000_v3, %v13015_v53  ;;  %v7015_v22 = vrot.slane (!%p11958_p8), %v7001_v18, %v13015_v53 }
 0x4b7   : > { %v6999_v27 = vcombine.low (!%p11958_p8), %v6991_v19, %v6998_v20  ;;  %v7016_v5 = vcombine.low (!%p11958_p8), %v7008_v21, %v7015_v22 }
 0x4b8   : > { %v6974_v9 = vld [vmem:[#allocation2 + $0x8] sm:$0xff] (!%p11958_p8) }
 0x4b9   : > { %v7019_v28 = vadd.f32 (!%p11958_p8), %v6999_v27, %v6973_v24  ;;  %v7020_v33 = vadd.f32 (!%p11958_p8), %v7016_v5, %v6974_v9 }
 0x4bb   : > { %7021 = vst [vmem:[#allocation2] sm:$0xff] %v7019_v28  ;;  %7022 = vst [vmem:[#allocation2 + $0x8] sm:$0xff] %v7020_v33 }
 0x4bc PF: > { %p11959_p9 = scmp.ne.s32.totalorder %s12782_s24, 2 }
 0x4bd   : > { %v7155_v17 = vld [vmem:[%s12978_s19] sm:$0xff] (!%p11959_p9)  ;;  %v7156_v30 = vld [vmem:[%s12978_s19 + $0x8] sm:$0xff] (!%p11959_p9)  ;;  %vm10928_vm2 = vcmask (!%p11959_p9), 1041408   ;;  %vm10929_vm3 = vcmask (!%p11959_p9), 1043458   ;;  %vm10931_vm5 = vcmask (!%p11959_p9), 1045508   ;;  %vm10933_vm7 = vcmask (!%p11959_p9), 850950  }
 0x4be   : > { %7026 = sbr.rel (%p11959_p9) target bundleno = 1949 (0x79d), region = 60  ;;  %v7159_v26 = vld [vmem:[%s12978_s19 + $0x20] sm:$0xff] (!%p11959_p9)  ;;  %v7160_v63 = vld [vmem:[%s12978_s19 + $0x28] sm:$0xff] (!%p11959_p9)  ;;  %vm10930_vm4 = vmor (!%p11959_p9), %vm10929_vm3, %vm10928_vm2 }
 0x4bf   : > { %v11961_v31 = vcombine.high (!%p11959_p9), %v7155_v17, %v7159_v26  ;;  %v11960_v60 = vcombine.low (!%p11959_p9), %v7155_v17, %v7159_v26  ;;  %v7163_v35 = vld [vmem:[%s12978_s19 + $0x40] sm:$0xff] (!%p11959_p9)  ;;  %v11963_v38 = vcombine.high (!%p11959_p9), %v7156_v30, %v7160_v63  ;;  %v11962_v34 = vcombine.low (!%p11959_p9), %v7156_v30, %v7160_v63  ;;  %v7164_v39 = vld [vmem:[%s12978_s19 + $0x48] sm:$0xff] (!%p11959_p9)  ;;  %vm10932_vm6 = vmor (!%p11959_p9), %vm10931_vm5, %vm10930_vm4 }
 0x4c0   : > { %v7167_v37 = vld [vmem:[%s12978_s19 + $0x60] sm:$0xff] (!%p11959_p9)  ;;  %v7168_v41 = vld [vmem:[%s12978_s19 + $0x68] sm:$0xff] (!%p11959_p9)  ;;  %vm10934_vm8 = vmor (!%p11959_p9), %vm10933_vm7, %vm10932_vm6 }
 0x4c1   : > { %v11969_v40 = vcombine.high (!%p11959_p9), %v7163_v35, %v7167_v37  ;;  %v7171_v46 = vld [vmem:[%s12978_s19 + $0x80] sm:$0xff] (!%p11959_p9)  ;;  %10227 = vmatprep.subr.bf16.mxu0 (!%p11959_p9), %v11961_v31  ;;  %v11971_v47 = vcombine.high (!%p11959_p9), %v7164_v39, %v7168_v41  ;;  %v7172_v61 = vld [vmem:[%s12978_s19 + $0x88] sm:$0xff] (!%p11959_p9)  ;;  %10391 = vmatprep.subr.bf16.mxu1 (!%p11959_p9), %v11963_v38  ;;  %v11968_v49 = vcombine.low (!%p11959_p9), %v7163_v35, %v7167_v37 }
 0x4c2   : > { %v7175_v48 = vld [vmem:[%s12978_s19 + $0xa0] sm:$0xff] (!%p11959_p9)  ;;  %v7176_v50 = vld [vmem:[%s12978_s19 + $0xa8] sm:$0xff] (!%p11959_p9)  ;;  %10228 = vmatpush1.bf16.msra.mxu0 (!%p11959_p9), %v11960_v60  ;;  %10392 = vmatpush1.bf16.msra.mxu1 (!%p11959_p9), %v11962_v34  ;;  %v11970_v51 = vcombine.low (!%p11959_p9), %v7164_v39, %v7168_v41 }
 0x4c3   : > { %10229 = vmatprep.subr.bf16.mxu0 (!%p11959_p9), %v11969_v40  ;;  %v11977_v8 = vcombine.high (!%p11959_p9), %v7171_v46, %v7175_v48  ;;  %10393 = vmatprep.subr.bf16.mxu1 (!%p11959_p9), %v11971_v47  ;;  %v11979_v4 = vcombine.high (!%p11959_p9), %v7172_v61, %v7176_v50  ;;  %v7179_v52 = vld [vmem:[%s12978_s19 + $0xc0] sm:$0xff] (!%p11959_p9)  ;;  %v7180_v56 = vld [vmem:[%s12978_s19 + $0xc8] sm:$0xff] (!%p11959_p9)  ;;  %v11976_v57 = vcombine.low (!%p11959_p9), %v7171_v46, %v7175_v48 }
 0x4c4   : > { %v7183_v54 = vld [vmem:[%s12978_s19 + $0xe0] sm:$0xff] (!%p11959_p9)  ;;  %v7184_v59 = vld [vmem:[%s12978_s19 + $0xe8] sm:$0xff] (!%p11959_p9)  ;;  %v11978_v58 = vcombine.low (!%p11959_p9), %v7172_v61, %v7176_v50 }
 0x4c5   : > { %v11985_v14 = vcombine.high %v7179_v52, %v7183_v54  ;;  %v11987_v62 = vcombine.high %v7180_v56, %v7184_v59  ;;  %v7187_v0 = vld [vmem:[%s12978_s19 + $0x100] sm:$0xff]  ;;  %v7188_v23 = vld [vmem:[%s12978_s19 + $0x108] sm:$0xff]  ;;  %v11984_v16 = vcombine.low %v7179_v52, %v7183_v54  ;;  %v11986_v6 = vcombine.low %v7180_v56, %v7184_v59 }
 0x4c6   : > { %10230 = vmatpush1.bf16.msra.mxu0 %v11968_v49  ;;  %10394 = vmatpush1.bf16.msra.mxu1 %v11970_v51  ;;  %v7191_v2 = vld [vmem:[%s12978_s19 + $0x120] sm:$0xff]  ;;  %v7192_v32 = vld [vmem:[%s12978_s19 + $0x128] sm:$0xff] }
 0x4c7   : > { %10231 = vmatprep.subr.bf16.mxu0 %v11977_v8  ;;  %10395 = vmatprep.subr.bf16.mxu1 %v11979_v4  ;;  %v11993_v7 = vcombine.high %v7187_v0, %v7191_v2  ;;  %v11995_v29 = vcombine.high %v7188_v23, %v7192_v32  ;;  %v7195_v10 = vld [vmem:[%s12978_s19 + $0x140] sm:$0xff]  ;;  %v7196_v13 = vld [vmem:[%s12978_s19 + $0x148] sm:$0xff]  ;;  %v11992_v3 = vcombine.low %v7187_v0, %v7191_v2 }
 0x4c8   : > { %v7199_v11 = vld [vmem:[%s12978_s19 + $0x160] sm:$0xff]  ;;  %v7200_v15 = vld [vmem:[%s12978_s19 + $0x168] sm:$0xff]  ;;  %v11994_v18 = vcombine.low %v7188_v23, %v7192_v32 }
 0x4c9   : > { %v12001_v19 = vcombine.high %v7195_v10, %v7199_v11  ;;  %v12003_v20 = vcombine.high %v7196_v13, %v7200_v15  ;;  %v7203_v21 = vld [vmem:[%s12978_s19 + $0x180] sm:$0xff]  ;;  %v7204_v24 = vld [vmem:[%s12978_s19 + $0x188] sm:$0xff]  ;;  %v12000_v27 = vcombine.low %v7195_v10, %v7199_v11  ;;  %v12002_v5 = vcombine.low %v7196_v13, %v7200_v15 }
 0x4ca   : > { %10232 = vmatpush1.bf16.msra.mxu0 %v11976_v57  ;;  %10396 = vmatpush1.bf16.msra.mxu1 %v11978_v58  ;;  %v7207_v22 = vld [vmem:[%s12978_s19 + $0x1a0] sm:$0xff]  ;;  %v7208_v9 = vld [vmem:[%s12978_s19 + $0x1a8] sm:$0xff] }
 0x4cb   : > { %10233 = vmatprep.subr.bf16.mxu0 %v11985_v14  ;;  %10397 = vmatprep.subr.bf16.mxu1 %v11987_v62  ;;  %v12009_v28 = vcombine.high %v7203_v21, %v7207_v22  ;;  %v14119_v33 = vld [vmem:[%s321_s11] sm:$0xff]  ;;  %v12011_v17 = vcombine.high %v7204_v24, %v7208_v9  ;;  %v7212_v60 = vld [vmem:[%s12978_s19 + $0x1c8] sm:$0xff]  ;;  %v12010_v40 = vcombine.low %v7204_v24, %v7208_v9 }
 0x4cc   : > { %v7211_v26 = vld [vmem:[%s12978_s19 + $0x1c0] sm:$0xff]  ;;  %v7034_v31 = vrot.slane %v14119_v33, %v776_v25  ;;  %v7038_v63 = vrot.slane %v14119_v33, %v780_v1  ;;  %v7216_v35 = vld [vmem:[%s12978_s19 + $0x1e8] sm:$0xff]  ;;  %v7042_v37 = vrot.slane %v14119_v33, %v784_v55  ;;  %v7046_v38 = vrot.slane %v14119_v33, %v788_v36 }
 0x4cd   : > { %v7215_v30 = vld [vmem:[%s12978_s19 + $0x1e0] sm:$0xff]  ;;  %v12008_v25 = vcombine.low %v7203_v21, %v7207_v22  ;;  %v12019_v41 = vcombine.high %v7212_v60, %v7216_v35  ;;  %v7220_v48 = vld [vmem:[%s12978_s19 + $0x208] sm:$0xff]  ;;  %v12018_v51 = vcombine.low %v7212_v60, %v7216_v35 }
 0x4ce   : > { %10234 = vmatpush1.bf16.msra.mxu0 %v11984_v16  ;;  %10398 = vmatpush1.bf16.msra.mxu1 %v11986_v6  ;;  %v7063_v34 = vcombine.low %v7034_v31, %v7038_v63  ;;  %v12017_v1 = vcombine.high %v7211_v26, %v7215_v30  ;;  %v7064_v39 = vcombine.low %v7042_v37, %v7046_v38  ;;  %v7219_v46 = vld [vmem:[%s12978_s19 + $0x200] sm:$0xff]  ;;  %v7224_v36 = vld [vmem:[%s12978_s19 + $0x228] sm:$0xff] }
 0x4cf   : > { %10235 = vmatprep.subr.bf16.mxu0 %v11993_v7  ;;  %10399 = vmatprep.subr.bf16.mxu1 %v11995_v29  ;;  %v7223_v47 = vld [vmem:[%s12978_s19 + $0x220] sm:$0xff]  ;;  %v12016_v50 = vcombine.low %v7211_v26, %v7215_v30  ;;  %v12027_v52 = vcombine.high %v7220_v48, %v7224_v36  ;;  %v7228_v59 = vld [vmem:[%s12978_s19 + $0x248] sm:$0xff]  ;;  %v12026_v62 = vcombine.low %v7220_v48, %v7224_v36 }
 0x4d0   : > { %v7071_v55 = vrot.slane %v7063_v34, %v13015_v53  ;;  %v7078_v61 = vrot.slane %v7064_v39, %v13015_v53  ;;  %v7027_v49 = vld [vmem:[#allocation2] sm:$0xff]  ;;  %v12025_v8 = vcombine.high %v7219_v46, %v7223_v47  ;;  %v7232_v57 = vld [vmem:[%s12978_s19 + $0x268] sm:$0xff]  ;;  %v12024_v14 = vcombine.low %v7219_v46, %v7223_v47 }
 0x4d1   : > { %v7227_v54 = vld [vmem:[%s12978_s19 + $0x240] sm:$0xff]  ;;  %v12035_v23 = vcombine.high %v7228_v59, %v7232_v57  ;;  %v7236_v6 = vld [vmem:[%s12978_s19 + $0x288] sm:$0xff]  ;;  %v12034_v11 = vcombine.low %v7228_v59, %v7232_v57 }
 0x4d2   : > { %10236 = vmatpush1.bf16.msra.mxu0 %v11992_v3  ;;  %10400 = vmatpush1.bf16.msra.mxu1 %v11994_v18  ;;  %v7079_v4 = vcombine.low %v7071_v55, %v7078_v61  ;;  %v7231_v56 = vld [vmem:[%s12978_s19 + $0x260] sm:$0xff]  ;;  %v7240_v7 = vld [vmem:[%s12978_s19 + $0x2a8] sm:$0xff] }
 0x4d3   : > { %10237 = vmatprep.subr.bf16.mxu0 %v12001_v19  ;;  %10401 = vmatprep.subr.bf16.mxu1 %v12003_v20  ;;  %v12033_v0 = vcombine.high %v7227_v54, %v7231_v56  ;;  %v7235_v32 = vld [vmem:[%s12978_s19 + $0x280] sm:$0xff]  ;;  %v12032_v10 = vcombine.low %v7227_v54, %v7231_v56  ;;  %v12043_v3 = vcombine.high %v7236_v6, %v7240_v7  ;;  %v7244_v20 = vld [vmem:[%s12978_s19 + $0x2c8] sm:$0xff] }
 0x4d4   : > { %v7099_v58 = vadd.f32 %v7079_v4, %v7027_v49  ;;  %v7239_v16 = vld [vmem:[%s12978_s19 + $0x2a0] sm:$0xff]  ;;  %v7248_v21 = vld [vmem:[%s12978_s19 + $0x2e8] sm:$0xff]  ;;  %v12042_v9 = vcombine.low %v7236_v6, %v7240_v7 }
 0x4d5   : > { %v12041_v13 = vcombine.high %v7235_v32, %v7239_v16  ;;  %v7243_v18 = vld [vmem:[%s12978_s19 + $0x2c0] sm:$0xff]  ;;  %v12040_v24 = vcombine.low %v7235_v32, %v7239_v16  ;;  %v7252_v26 = vld [vmem:[%s12978_s19 + $0x308] sm:$0xff]  ;;  %v12050_v63 = vcombine.low %v7244_v20, %v7248_v21 }
 0x4d6   : > { %10238 = vmatpush1.bf16.msra.mxu0 %v12000_v27  ;;  %10402 = vmatpush1.bf16.msra.mxu1 %v12002_v5  ;;  %v14147_v2 = vmax.f32 %v7099_v58, 0.0  ;;  %v7247_v19 = vld [vmem:[%s12978_s19 + $0x2e0] sm:$0xff]  ;;  %v12051_v5 = vcombine.high %v7244_v20, %v7248_v21  ;;  %v7256_v30 = vld [vmem:[%s12978_s19 + $0x328] sm:$0xff] }
 0x4d7   : > { %10239 = vmatprep.subr.bf16.mxu0 %v12009_v28  ;;  %10403 = vmatprep.subr.bf16.mxu1 %v12011_v17  ;;  %v12049_v27 = vcombine.high %v7243_v18, %v7247_v19  ;;  %v7251_v28 = vld [vmem:[%s12978_s19 + $0x300] sm:$0xff]  ;;  %v12048_v31 = vcombine.low %v7243_v18, %v7247_v19  ;;  %v12059_v35 = vcombine.high %v7252_v26, %v7256_v30  ;;  %v7264_v34 = vld [vmem:[%s12978_s19 + $0x368] sm:$0xff] }
 0x4d8   : > { %v14155_v29 = vrot.slane %v14147_v2, %v13015_v53  ;;  %v7255_v17 = vld [vmem:[%s12978_s19 + $0x320] sm:$0xff]  ;;  %v7268_v55 = vld [vmem:[%s12978_s19 + $0x388] sm:$0xff]  ;;  %v7105_v4 = vcombine.high %v14147_v2, %v14147_v2 }
 0x4d9   : > { %v12057_v60 = vcombine.high %v7251_v28, %v7255_v17  ;;  %v7259_v37 = vld [vmem:[%s12978_s19 + $0x340] sm:$0xff]  ;;  %v7272_v48 = vld [vmem:[%s12978_s19 + $0x3a8] sm:$0xff] }
 0x4da   : > { %10240 = vmatpush1.bf16.msra.mxu0 %v12008_v25  ;;  %10404 = vmatpush1.bf16.msra.mxu1 %v12010_v40  ;;  %v7120_v15 = vcombine.high %v14155_v29, %v14155_v29  ;;  %v7263_v38 = vld [vmem:[%s12978_s19 + $0x360] sm:$0xff]  ;;  %v7260_v25 = vld [vmem:[%s12978_s19 + $0x348] sm:$0xff]  ;;  %v12056_v40 = vcombine.low %v7251_v28, %v7255_v17  ;;  %v12075_v49 = vcombine.high %v7268_v55, %v7272_v48 }
 0x4db   : > { %10241 = vmatprep.subr.bf16.mxu0 %v12017_v1  ;;  %10405 = vmatprep.subr.bf16.mxu1 %v12019_v41  ;;  %v12058_v1 = vcombine.low %v7252_v26, %v7256_v30  ;;  %v12065_v39 = vcombine.high %v7259_v37, %v7263_v38  ;;  %v12067_v41 = vcombine.high %v7260_v25, %v7264_v34  ;;  %v7267_v46 = vld [vmem:[%s12978_s19 + $0x380] sm:$0xff]  ;;  %v7280_v54 = vld [vmem:[%s12978_s19 + $0x3e8] sm:$0xff] }
 0x4dc   : > { %v14163_v22 = vpack.c.bf16 %v7120_v15, %v7120_v15  ;;  %v7271_v47 = vld [vmem:[%s12978_s19 + $0x3a0] sm:$0xff]  ;;  %v12064_v36 = vcombine.low %v7259_v37, %v7263_v38  ;;  %v12066_v61 = vcombine.low %v7260_v25, %v7264_v34  ;;  %v12074_v59 = vcombine.low %v7268_v55, %v7272_v48  ;;  %v7284_v2 = vld [vmem:[%s12978_s19 + $0x408] sm:$0xff] }
 0x4dd   : > { %v12072_v56 = vcombine.low %v7267_v46, %v7271_v47  ;;  %v14198_v15 = vpack.c.bf16 %v14155_v29, %v14155_v29  ;;  %v7296_v18 = vld [vmem:[%s12978_s19 + $0x468] sm:$0xff] }
 0x4de   : > { %10242 = vmatpush1.bf16.msra.mxu0 %v12016_v50  ;;  %10406 = vmatpush1.bf16.msra.mxu1 %v12018_v51  ;;  %v12073_v50 = vcombine.high %v7267_v46, %v7271_v47  ;;  %v7275_v51 = vld [vmem:[%s12978_s19 + $0x3c0] sm:$0xff]  ;;  %v7300_v29 = vld [vmem:[%s12978_s19 + $0x488] sm:$0xff] }
 0x4df   : > { %10243 = vmatprep.subr.bf16.mxu0 %v12025_v8  ;;  %10407 = vmatprep.subr.bf16.mxu1 %v12027_v52  ;;  %v7279_v8 = vld [vmem:[%s12978_s19 + $0x3e0] sm:$0xff]  ;;  %v7276_v52 = vld [vmem:[%s12978_s19 + $0x3c8] sm:$0xff] }
 0x4e0   : > { %10259 = vmatprep.mubr.bf16.mxu0 %v14163_v22  ;;  %10423 = vmatprep.mubr.bf16.mxu1 %v14163_v22  ;;  %v12081_v57 = vcombine.high %v7275_v51, %v7279_v8  ;;  %v12083_v58 = vcombine.high %v7276_v52, %v7280_v54  ;;  %v12080_v32 = vcombine.low %v7275_v51, %v7279_v8  ;;  %v7304_v28 = vld [vmem:[%s12978_s19 + $0x4a8] sm:$0xff] }
 0x4e1   : > { %v12082_v16 = vcombine.low %v7276_v52, %v7280_v54  ;;  %v7312_v37 = vld [vmem:[%s12978_s19 + $0x4e8] sm:$0xff]  ;;  %v12106_v25 = vcombine.low %v7300_v29, %v7304_v28 }
 0x4e2   : > { %10244 = vmatpush1.bf16.msra.mxu0 %v12024_v14  ;;  %10408 = vmatpush1.bf16.msra.mxu1 %v12026_v62  ;;  %v7283_v14 = vld [vmem:[%s12978_s19 + $0x400] sm:$0xff]  ;;  %v7320_v46 = vld [vmem:[%s12978_s19 + $0x528] sm:$0xff] }
 0x4e3   : > { %10245 = vmatprep.subr.bf16.mxu0 %v12033_v0  ;;  %10409 = vmatprep.subr.bf16.mxu1 %v12035_v23  ;;  %v7287_v62 = vld [vmem:[%s12978_s19 + $0x420] sm:$0xff]  ;;  %v14188_v0 = vrot.slane %v7105_v4, %v13015_v53  ;;  %v7288_v23 = vld [vmem:[%s12978_s19 + $0x428] sm:$0xff] }
 0x4e4   : > { %v12089_v6 = vcombine.high %v7283_v14, %v7287_v62  ;;  %v12091_v7 = vcombine.high %v7284_v2, %v7288_v23  ;;  %v12088_v19 = vcombine.low %v7283_v14, %v7287_v62  ;;  %v12090_v20 = vcombine.low %v7284_v2, %v7288_v23  ;;  %v7328_v51 = vld [vmem:[%s12978_s19 + $0x568] sm:$0xff] }
 0x4e6   : > { %10246 = vmatpush1.bf16.msra.mxu0 %v12032_v10  ;;  %10410 = vmatpush1.bf16.msra.mxu1 %v12034_v11  ;;  %v7291_v10 = vld [vmem:[%s12978_s19 + $0x440] sm:$0xff] }
 0x4e7   : > { %10247 = vmatprep.subr.bf16.mxu0 %v12041_v13  ;;  %10411 = vmatprep.subr.bf16.mxu1 %v12043_v3  ;;  %v7295_v11 = vld [vmem:[%s12978_s19 + $0x460] sm:$0xff]  ;;  %v7121_v13 = vcombine.high %v14188_v0, %v14188_v0  ;;  %v7292_v3 = vld [vmem:[%s12978_s19 + $0x448] sm:$0xff] }
 0x4e8   : > { %v12097_v21 = vcombine.high %v7291_v10, %v7295_v11  ;;  %v12096_v17 = vcombine.low %v7291_v10, %v7295_v11  ;;  %v12098_v26 = vcombine.low %v7292_v3, %v7296_v18 }
 0x4ea   : > { %10248 = vmatpush1.bf16.msra.mxu0 %v12040_v24  ;;  %10412 = vmatpush1.bf16.msra.mxu1 %v12042_v9  ;;  %v12099_v24 = vcombine.high %v7292_v3, %v7296_v18  ;;  %v7299_v9 = vld [vmem:[%s12978_s19 + $0x480] sm:$0xff] }
 0x4eb   : > { %10249 = vmatprep.subr.bf16.mxu0 %v12049_v27  ;;  %10413 = vmatprep.subr.bf16.mxu1 %v12051_v5  ;;  %v7303_v27 = vld [vmem:[%s12978_s19 + $0x4a0] sm:$0xff]  ;;  %v14204_v5 = vpack.c.bf16 %v7121_v13, %v7121_v13 }
 0x4ec   : > { %v12105_v30 = vcombine.high %v7299_v9, %v7303_v27  ;;  %v12104_v38 = vcombine.low %v7299_v9, %v7303_v27  ;;  %v7347_v18 = vld [vmem:[%s12978_s19 + $0x600] sm:$0xff] }
 0x4ee   : > { %10250 = vmatpush1.bf16.msra.mxu0 %v12048_v31  ;;  %10414 = vmatpush1.bf16.msra.mxu1 %v12050_v63  ;;  %v12107_v31 = vcombine.high %v7300_v29, %v7304_v28  ;;  %v7307_v63 = vld [vmem:[%s12978_s19 + $0x4c0] sm:$0xff] }
 0x4ef   : > { %10251 = vmatprep.subr.bf16.mxu0 %v12057_v60  ;;  %10415 = vmatprep.subr.bf16.mxu1 %v12059_v35  ;;  %v7311_v60 = vld [vmem:[%s12978_s19 + $0x4e0] sm:$0xff]  ;;  %v7308_v35 = vld [vmem:[%s12978_s19 + $0x4c8] sm:$0xff] }
 0x4f0   : > { %v12113_v34 = vcombine.high %v7307_v63, %v7311_v60  ;;  %v12112_v47 = vcombine.low %v7307_v63, %v7311_v60  ;;  %v12114_v55 = vcombine.low %v7308_v35, %v7312_v37  ;;  %v7355_v29 = vld [vmem:[%s12978_s19 + $0x640] sm:$0xff] }
 0x4f2   : > { %10252 = vmatpush1.bf16.msra.mxu0 %v12056_v40  ;;  %10416 = vmatpush1.bf16.msra.mxu1 %v12058_v1  ;;  %v12115_v40 = vcombine.high %v7308_v35, %v7312_v37  ;;  %v7315_v1 = vld [vmem:[%s12978_s19 + $0x500] sm:$0xff] }
 0x4f3   : > { %10253 = vmatprep.subr.bf16.mxu0 %v12065_v39  ;;  %10417 = vmatprep.subr.bf16.mxu1 %v12067_v41  ;;  %v7319_v39 = vld [vmem:[%s12978_s19 + $0x520] sm:$0xff]  ;;  %v7316_v41 = vld [vmem:[%s12978_s19 + $0x508] sm:$0xff] }
 0x4f4   : > { %v12121_v48 = vcombine.high %v7315_v1, %v7319_v39  ;;  %v12120_v8 = vcombine.low %v7315_v1, %v7319_v39  ;;  %v12122_v4 = vcombine.low %v7316_v41, %v7320_v46  ;;  %v7363_v37 = vld [vmem:[%s12978_s19 + $0x680] sm:$0xff]  ;;  %v7062_v1 = vrot.slane %v14119_v33, %v804_v45  ;;  %v7364_v39 = vld [vmem:[%s12978_s19 + $0x688] sm:$0xff] }
 0x4f5   : > { %v7372_v45 = vld [vmem:[%s12978_s19 + $0x6c8] sm:$0xff] }
 0x4f6   : > { %10254 = vmatpush1.bf16.msra.mxu0 %v12064_v36  ;;  %10418 = vmatpush1.bf16.msra.mxu1 %v12066_v61  ;;  %v12123_v36 = vcombine.high %v7316_v41, %v7320_v46  ;;  %v7323_v61 = vld [vmem:[%s12978_s19 + $0x540] sm:$0xff]  ;;  %v7368_v41 = vld [vmem:[%s12978_s19 + $0x6a8] sm:$0xff] }
 0x4f7   : > { %10255 = vmatprep.subr.bf16.mxu0 %v12073_v50  ;;  %10419 = vmatprep.subr.bf16.mxu1 %v12075_v49  ;;  %v7327_v50 = vld [vmem:[%s12978_s19 + $0x560] sm:$0xff]  ;;  %v7324_v49 = vld [vmem:[%s12978_s19 + $0x548] sm:$0xff] }
 0x4f8   : > { %v12129_v52 = vcombine.high %v7323_v61, %v7327_v50  ;;  %v12131_v54 = vcombine.high %v7324_v49, %v7328_v51  ;;  %v12128_v14 = vcombine.low %v7323_v61, %v7327_v50  ;;  %v12130_v62 = vcombine.low %v7324_v49, %v7328_v51  ;;  %v7379_v51 = vld [vmem:[%s12978_s19 + $0x700] sm:$0xff] }
 0x4f9   : > { %v12170_v61 = vcombine.low %v7364_v39, %v7368_v41 }
 0x4fa   : > { %10256 = vmatpush1.bf16.msra.mxu0 %v12072_v56  ;;  %10420 = vmatpush1.bf16.msra.mxu1 %v12074_v59  ;;  %v7331_v56 = vld [vmem:[%s12978_s19 + $0x580] sm:$0xff] }
 0x4fb   : > { %10257 = vmatprep.subr.bf16.mxu0 %v12081_v57  ;;  %10421 = vmatprep.subr.bf16.mxu1 %v12083_v58  ;;  %v7335_v59 = vld [vmem:[%s12978_s19 + $0x5a0] sm:$0xff]  ;;  %v7332_v57 = vld [vmem:[%s12978_s19 + $0x588] sm:$0xff] }
 0x4fc   : > { %v7336_v58 = vld [vmem:[%s12978_s19 + $0x5a8] sm:$0xff]  ;;  %v12137_v2 = vcombine.high %v7331_v56, %v7335_v59  ;;  %v12136_v10 = vcombine.low %v7331_v56, %v7335_v59 }
 0x4fd   : > { %v12139_v23 = vcombine.high %v7332_v57, %v7336_v58  ;;  %v12138_v11 = vcombine.low %v7332_v57, %v7336_v58  ;;  %v7384_v56 = vld [vmem:[%s12978_s19 + $0x728] sm:$0xff] }
 0x4fe   : > { %10258 = vmatpush1.bf16.msra.mxu0 %v12080_v32  ;;  %10422 = vmatpush1.bf16.msra.mxu1 %v12082_v16  ;;  %v7339_v32 = vld [vmem:[%s12978_s19 + $0x5c0] sm:$0xff] }
 0x4ff   : > { %10268 = vmatprep.subr.bf16.mxu0 %v12089_v6  ;;  %10432 = vmatprep.subr.bf16.mxu1 %v12091_v7  ;;  %v7343_v16 = vld [vmem:[%s12978_s19 + $0x5e0] sm:$0xff]  ;;  %v7340_v6 = vld [vmem:[%s12978_s19 + $0x5c8] sm:$0xff] }
 0x500   : > { %v7344_v7 = vld [vmem:[%s12978_s19 + $0x5e8] sm:$0xff]  ;;  %v12145_v13 = vcombine.high %v7339_v32, %v7343_v16 }
 0x501   : > { %10260 = vmatmul.mubr.bf16.vlgmr.msra.gmra.mrb[0].mxu0 %v14198_v15  ;;  %10424 = vmatmul.mubr.bf16.vlgmr.msra.gmra.mrb[0].mxu1 %v14198_v15  ;;  %v12147_v3 = vcombine.high %v7340_v6, %v7344_v7  ;;  %v12146_v9 = vcombine.low %v7340_v6, %v7344_v7  ;;  %v7028_v6 = vld [vmem:[#allocation2 + $0x8] sm:$0xff] }
 0x502   : > { %10269 = vmatpush1.bf16.msra.mxu0 %v12088_v19  ;;  %10433 = vmatpush1.bf16.msra.mxu1 %v12090_v20  ;;  %v7351_v19 = vld [vmem:[%s12978_s19 + $0x620] sm:$0xff]  ;;  %v7348_v20 = vld [vmem:[%s12978_s19 + $0x608] sm:$0xff] }
 0x503   : > { %10270 = vmatprep.subr.bf16.mxu0 %v12097_v21  ;;  %10434 = vmatprep.subr.bf16.mxu1 %v12099_v24  ;;  %v7352_v21 = vld [vmem:[%s12978_s19 + $0x628] sm:$0xff]  ;;  %v12144_v24 = vcombine.low %v7339_v32, %v7343_v16  ;;  %v12153_v27 = vcombine.high %v7347_v18, %v7351_v19 }
 0x504   : > { %10300 = vmatprep.mubr.bf16.mxu0 %v14204_v5  ;;  %10464 = vmatprep.mubr.bf16.mxu1 %v14204_v5  ;;  %v12155_v28 = vcombine.high %v7348_v20, %v7352_v21  ;;  %v12154_v63 = vcombine.low %v7348_v20, %v7352_v21  ;;  %v7388_v32 = vld [vmem:[%s12978_s19 + $0x748] sm:$0xff] }
 0x505   : > { %v7392_v16 = vld [vmem:[%s12978_s19 + $0x768] sm:$0xff] }
 0x506   : > { %10271 = vmatpush1.bf16.msra.mxu0 %v12096_v17  ;;  %10435 = vmatpush1.bf16.msra.mxu1 %v12098_v26  ;;  %v7359_v17 = vld [vmem:[%s12978_s19 + $0x660] sm:$0xff]  ;;  %v7356_v26 = vld [vmem:[%s12978_s19 + $0x648] sm:$0xff] }
 0x507   : > { %10272 = vmatprep.subr.bf16.mxu0 %v12105_v30  ;;  %10436 = vmatprep.subr.bf16.mxu1 %v12107_v31  ;;  %v7360_v30 = vld [vmem:[%s12978_s19 + $0x668] sm:$0xff]  ;;  %v12152_v31 = vcombine.low %v7347_v18, %v7351_v19  ;;  %v12161_v60 = vcombine.high %v7355_v29, %v7359_v17  ;;  %v12160_v46 = vcombine.low %v7355_v29, %v7359_v17  ;;  %v7399_v18 = vld [vmem:[%s12978_s19 + $0x7a0] sm:$0xff] }
 0x508   : > { %v12163_v35 = vcombine.high %v7356_v26, %v7360_v30  ;;  %v7396_v20 = vld [vmem:[%s12978_s19 + $0x788] sm:$0xff]  ;;  %v7407_v17 = vld [vmem:[%s12978_s19 + $0x7e0] sm:$0xff] }
 0x509   : > { %v7400_v21 = vld [vmem:[%s12978_s19 + $0x7a8] sm:$0xff] }
 0x50a   : > { %10273 = vmatpush1.bf16.msra.mxu0 %v12104_v38  ;;  %10437 = vmatpush1.bf16.msra.mxu1 %v12106_v25  ;;  %v7367_v38 = vld [vmem:[%s12978_s19 + $0x6a0] sm:$0xff]  ;;  %v7050_v25 = vrot.slane %v14119_v33, %v792_v42  ;;  %v12162_v42 = vcombine.low %v7356_v26, %v7360_v30  ;;  %v12203_v29 = vcombine.high %v7396_v20, %v7400_v21  ;;  %v7404_v30 = vld [vmem:[%s12978_s19 + $0x7c8] sm:$0xff] }
 0x50b   : > { %10274 = vmatprep.subr.bf16.mxu0 %v12113_v34  ;;  %10438 = vmatprep.subr.bf16.mxu1 %v12115_v40  ;;  %v7054_v34 = vrot.slane %v14119_v33, %v796_v43  ;;  %v7058_v40 = vrot.slane %v14119_v33, %v800_v12  ;;  %v12171_v43 = vcombine.high %v7364_v39, %v7368_v41  ;;  %v7375_v12 = vld [vmem:[%s12978_s19 + $0x6e0] sm:$0xff]  ;;  %v7376_v33 = vld [vmem:[%s12978_s19 + $0x6e8] sm:$0xff] }
 0x50c   : > { %v12179_v49 = vcombine.high %v7372_v45, %v7376_v33  ;;  %v12178_v57 = vcombine.low %v7372_v45, %v7376_v33 }
 0x50d   : > { %v7081_v44 = vcombine.low %v7058_v40, %v7062_v1  ;;  %v7412_v40 = vld [vmem:[%s12978_s19 + $0x808] sm:$0xff] }
 0x50e   : > { %10275 = vmatpush1.bf16.msra.mxu0 %v12112_v47  ;;  %10439 = vmatpush1.bf16.msra.mxu1 %v12114_v55  ;;  %v12169_v47 = vcombine.high %v7363_v37, %v7367_v38  ;;  %v7371_v55 = vld [vmem:[%s12978_s19 + $0x6c0] sm:$0xff]  ;;  %v7416_v1 = vld [vmem:[%s12978_s19 + $0x828] sm:$0xff] }
 0x50f   : > { %10276 = vmatprep.subr.bf16.mxu0 %v12121_v48  ;;  %10440 = vmatprep.subr.bf16.mxu1 %v12123_v36  ;;  %v7080_v48 = vcombine.low %v7050_v25, %v7054_v34  ;;  %v12168_v36 = vcombine.low %v7363_v37, %v7367_v38  ;;  %v12177_v50 = vcombine.high %v7371_v55, %v7375_v12  ;;  %v7411_v38 = vld [vmem:[%s12978_s19 + $0x800] sm:$0xff] }
 0x510   : > { %v12176_v59 = vcombine.low %v7371_v55, %v7375_v12  ;;  %v7415_v25 = vld [vmem:[%s12978_s19 + $0x820] sm:$0xff]  ;;  %v14294_v12 = vpack.c.bf16 %v14188_v0, %v14188_v0  ;;  %v12218_v33 = vcombine.low %v7412_v40, %v7416_v1  ;;  %v7428_v0 = vld [vmem:[%s12978_s19 + $0x888] sm:$0xff] }
 0x511   : > { %v12216_v45 = vcombine.low %v7411_v38, %v7415_v25 }
 0x512   : > { %10277 = vmatpush1.bf16.msra.mxu0 %v12120_v8  ;;  %10441 = vmatpush1.bf16.msra.mxu1 %v12122_v4  ;;  %v7383_v8 = vld [vmem:[%s12978_s19 + $0x720] sm:$0xff]  ;;  %v7088_v4 = vrot.slane %v7080_v48, %v13015_v53  ;;  %v7420_v48 = vld [vmem:[%s12978_s19 + $0x848] sm:$0xff] }
 0x513   : > { %10278 = vmatprep.subr.bf16.mxu0 %v12129_v52  ;;  %10442 = vmatprep.subr.bf16.mxu1 %v12131_v54  ;;  %v7095_v52 = vrot.slane %v7081_v44, %v13015_v53  ;;  %v7380_v54 = vld [vmem:[%s12978_s19 + $0x708] sm:$0xff]  ;;  %v12185_v58 = vcombine.high %v7379_v51, %v7383_v8  ;;  %v12184_v7 = vcombine.low %v7379_v51, %v7383_v8 }
 0x514   : > { %v7424_v44 = vld [vmem:[%s12978_s19 + $0x868] sm:$0xff] }
 0x515   : > { %v7432_v8 = vld [vmem:[%s12978_s19 + $0x8a8] sm:$0xff] }
 0x516   : > { %10279 = vmatpush1.bf16.msra.mxu0 %v12128_v14  ;;  %10443 = vmatpush1.bf16.msra.mxu1 %v12130_v62  ;;  %v12187_v14 = vcombine.high %v7380_v54, %v7384_v56  ;;  %v7387_v62 = vld [vmem:[%s12978_s19 + $0x740] sm:$0xff] }
 0x517   : > { %10280 = vmatprep.subr.bf16.mxu0 %v12137_v2  ;;  %10444 = vmatprep.subr.bf16.mxu1 %v12139_v23  ;;  %v7391_v2 = vld [vmem:[%s12978_s19 + $0x760] sm:$0xff]  ;;  %v7096_v23 = vcombine.low %v7088_v4, %v7095_v52  ;;  %v12226_v52 = vcombine.low %v7420_v48, %v7424_v44 }
 0x519   : > { %v7100_v19 = vadd.f32 %v7096_v23, %v7028_v6  ;;  %v7447_v6 = vld [vmem:[%s12978_s19 + $0x920] sm:$0xff] }
 0x51a   : > { %10281 = vmatpush1.bf16.msra.mxu0 %v12136_v10  ;;  %10445 = vmatpush1.bf16.msra.mxu1 %v12138_v11  ;;  %v12186_v10 = vcombine.low %v7380_v54, %v7384_v56  ;;  %v12193_v11 = vcombine.high %v7387_v62, %v7391_v2  ;;  %v12235_v56 = vcombine.high %v7428_v0, %v7432_v8 }
 0x51b   : > { %10282 = vmatprep.subr.bf16.mxu0 %v12145_v13  ;;  %10446 = vmatprep.subr.bf16.mxu1 %v12147_v3  ;;  %v12195_v13 = vcombine.high %v7388_v32, %v7392_v16  ;;  %v7395_v3 = vld [vmem:[%s12978_s19 + $0x780] sm:$0xff]  ;;  %v14276_v26 = vmax.f32 %v7100_v19, 0.0 }
 0x51c   : > { %v7451_v19 = vld [vmem:[%s12978_s19 + $0x940] sm:$0xff] }
 0x51d   : > { %v14284_v34 = vrot.slane %v14276_v26, %v13015_v53 }
 0x51e   : > { %10283 = vmatpush1.bf16.msra.mxu0 %v12144_v24  ;;  %10447 = vmatpush1.bf16.msra.mxu1 %v12146_v9  ;;  %v12192_v24 = vcombine.low %v7387_v62, %v7391_v2  ;;  %v12194_v9 = vcombine.low %v7388_v32, %v7392_v16  ;;  %v12234_v2 = vcombine.low %v7428_v0, %v7432_v8  ;;  %v7443_v16 = vld [vmem:[%s12978_s19 + $0x900] sm:$0xff]  ;;  %v7484_v0 = vld [vmem:[%s12978_s19 + $0xa48] sm:$0xff] }
 0x51f   : > { %10284 = vmatprep.subr.bf16.mxu0 %v12153_v27  ;;  %10448 = vmatprep.subr.bf16.mxu1 %v12155_v28  ;;  %v12201_v27 = vcombine.high %v7395_v3, %v7399_v18  ;;  %v7403_v28 = vld [vmem:[%s12978_s19 + $0x7c0] sm:$0xff]  ;;  %v7137_v55 = vcombine.high %v14284_v34, %v14284_v34  ;;  %v7488_v8 = vld [vmem:[%s12978_s19 + $0xa68] sm:$0xff] }
 0x520   : > { %v12208_v39 = vcombine.low %v7403_v28, %v7407_v17 }
 0x521   : > { %v14300_v51 = vpack.c.bf16 %v7137_v55, %v7137_v55  ;;  %v7479_v55 = vld [vmem:[%s12978_s19 + $0xa20] sm:$0xff] }
 0x522   : > { %10285 = vmatpush1.bf16.msra.mxu0 %v12152_v31  ;;  %10449 = vmatpush1.bf16.msra.mxu1 %v12154_v63  ;;  %v7408_v31 = vld [vmem:[%s12978_s19 + $0x7e8] sm:$0xff]  ;;  %v12200_v63 = vcombine.low %v7395_v3, %v7399_v18  ;;  %v12249_v3 = vcombine.high %v7443_v16, %v7447_v6 }
 0x523   : > { %10286 = vmatprep.subr.bf16.mxu0 %v12161_v60  ;;  %10450 = vmatprep.subr.bf16.mxu1 %v12163_v35  ;;  %v12202_v60 = vcombine.low %v7396_v20, %v7400_v21  ;;  %v12209_v35 = vcombine.high %v7403_v28, %v7407_v17  ;;  %v12211_v37 = vcombine.high %v7404_v30, %v7408_v31  ;;  %v7455_v20 = vld [vmem:[%s12978_s19 + $0x960] sm:$0xff]  ;;  %v7452_v21 = vld [vmem:[%s12978_s19 + $0x948] sm:$0xff] }
 0x524   : > { %v12210_v41 = vcombine.low %v7404_v30, %v7408_v31  ;;  %v7459_v17 = vld [vmem:[%s12978_s19 + $0x980] sm:$0xff]  ;;  %v7460_v31 = vld [vmem:[%s12978_s19 + $0x988] sm:$0xff] }
 0x525   : > { %v7463_v30 = vld [vmem:[%s12978_s19 + $0x9a0] sm:$0xff] }
 0x526   : > { %10287 = vmatpush1.bf16.msra.mxu0 %v12160_v46  ;;  %10451 = vmatpush1.bf16.msra.mxu1 %v12162_v42  ;;  %v12217_v46 = vcombine.high %v7411_v38, %v7415_v25  ;;  %v12219_v42 = vcombine.high %v7412_v40, %v7416_v1  ;;  %v7467_v25 = vld [vmem:[%s12978_s19 + $0x9c0] sm:$0xff]  ;;  %v7468_v1 = vld [vmem:[%s12978_s19 + $0x9c8] sm:$0xff] }
 0x527   : > { %10288 = vmatprep.subr.bf16.mxu0 %v12169_v47  ;;  %10452 = vmatprep.subr.bf16.mxu1 %v12171_v43  ;;  %v7419_v47 = vld [vmem:[%s12978_s19 + $0x840] sm:$0xff] }
 0x528   : > { %v7423_v43 = vld [vmem:[%s12978_s19 + $0x860] sm:$0xff] }
 0x529   : > { %v12224_v4 = vcombine.low %v7419_v47, %v7423_v43  ;;  %v7471_v40 = vld [vmem:[%s12978_s19 + $0x9e0] sm:$0xff] }
 0x52a   : > { %10289 = vmatpush1.bf16.msra.mxu0 %v12168_v36  ;;  %10453 = vmatpush1.bf16.msra.mxu1 %v12170_v61  ;;  %v12225_v36 = vcombine.high %v7419_v47, %v7423_v43  ;;  %v12227_v61 = vcombine.high %v7420_v48, %v7424_v44  ;;  %v7475_v43 = vld [vmem:[%s12978_s19 + $0xa00] sm:$0xff]  ;;  %v7476_v48 = vld [vmem:[%s12978_s19 + $0xa08] sm:$0xff] }
 0x52b   : > { %10290 = vmatprep.subr.bf16.mxu0 %v12177_v50  ;;  %10454 = vmatprep.subr.bf16.mxu1 %v12179_v49  ;;  %v7427_v50 = vld [vmem:[%s12978_s19 + $0x880] sm:$0xff]  ;;  %v7480_v44 = vld [vmem:[%s12978_s19 + $0xa28] sm:$0xff] }
 0x52c   : > { %v7431_v49 = vld [vmem:[%s12978_s19 + $0x8a0] sm:$0xff] }
 0x52d   : > { %v12233_v54 = vcombine.high %v7427_v50, %v7431_v49  ;;  %v12232_v62 = vcombine.low %v7427_v50, %v7431_v49  ;;  %v7483_v50 = vld [vmem:[%s12978_s19 + $0xa40] sm:$0xff] }
 0x52e   : > { %10291 = vmatpush1.bf16.msra.mxu0 %v12176_v59  ;;  %10455 = vmatpush1.bf16.msra.mxu1 %v12178_v57  ;;  %v7435_v59 = vld [vmem:[%s12978_s19 + $0x8c0] sm:$0xff] }
 0x52f   : > { %10292 = vmatprep.subr.bf16.mxu0 %v12185_v58  ;;  %10456 = vmatprep.subr.bf16.mxu1 %v12187_v14  ;;  %v7439_v57 = vld [vmem:[%s12978_s19 + $0x8e0] sm:$0xff]  ;;  %v7436_v58 = vld [vmem:[%s12978_s19 + $0x8c8] sm:$0xff] }
 0x530   : > { %v7440_v14 = vld [vmem:[%s12978_s19 + $0x8e8] sm:$0xff]  ;;  %v12241_v23 = vcombine.high %v7435_v59, %v7439_v57  ;;  %v7487_v49 = vld [vmem:[%s12978_s19 + $0xa60] sm:$0xff] }
 0x531   : > { %v12243_v32 = vcombine.high %v7436_v58, %v7440_v14 }
 0x532   : > { %10293 = vmatpush1.bf16.msra.mxu0 %v12184_v7  ;;  %10457 = vmatpush1.bf16.msra.mxu1 %v12186_v10  ;;  %v7444_v7 = vld [vmem:[%s12978_s19 + $0x908] sm:$0xff] }
 0x533   : > { %10294 = vmatprep.subr.bf16.mxu0 %v12193_v11  ;;  %10458 = vmatprep.subr.bf16.mxu1 %v12195_v13  ;;  %v7448_v10 = vld [vmem:[%s12978_s19 + $0x928] sm:$0xff]  ;;  %v12240_v11 = vcombine.low %v7435_v59, %v7439_v57  ;;  %v12242_v13 = vcombine.low %v7436_v58, %v7440_v14  ;;  %v7491_v59 = vld [vmem:[%s12978_s19 + $0xa80] sm:$0xff] }
 0x534   : > { %v12251_v18 = vcombine.high %v7444_v7, %v7448_v10  ;;  %v7495_v57 = vld [vmem:[%s12978_s19 + $0xaa0] sm:$0xff]  ;;  %v7492_v58 = vld [vmem:[%s12978_s19 + $0xa88] sm:$0xff] }
 0x535   : > { %v7496_v14 = vld [vmem:[%s12978_s19 + $0xaa8] sm:$0xff] }
 0x536   : > { %10295 = vmatpush1.bf16.msra.mxu0 %v12192_v24  ;;  %10459 = vmatpush1.bf16.msra.mxu1 %v12194_v9  ;;  %v7456_v24 = vld [vmem:[%s12978_s19 + $0x968] sm:$0xff]  ;;  %v12248_v9 = vcombine.low %v7443_v16, %v7447_v6  ;;  %v7499_v16 = vld [vmem:[%s12978_s19 + $0xac0] sm:$0xff] }
 0x537   : > { %10296 = vmatprep.subr.bf16.mxu0 %v12201_v27  ;;  %10460 = vmatprep.subr.bf16.mxu1 %v12203_v29  ;;  %v12250_v27 = vcombine.low %v7444_v7, %v7448_v10  ;;  %v12257_v29 = vcombine.high %v7451_v19, %v7455_v20  ;;  %v12259_v28 = vcombine.high %v7452_v21, %v7456_v24  ;;  %v7503_v6 = vld [vmem:[%s12978_s19 + $0xae0] sm:$0xff]  ;;  %v7500_v7 = vld [vmem:[%s12978_s19 + $0xac8] sm:$0xff] }
 0x538   : > { %v7504_v10 = vld [vmem:[%s12978_s19 + $0xae8] sm:$0xff] }
 0x53a   : > { %10297 = vmatpush1.bf16.msra.mxu0 %v12200_v63  ;;  %10461 = vmatpush1.bf16.msra.mxu1 %v12202_v60  ;;  %v7464_v63 = vld [vmem:[%s12978_s19 + $0x9a8] sm:$0xff]  ;;  %v12256_v60 = vcombine.low %v7451_v19, %v7455_v20  ;;  %v7507_v19 = vld [vmem:[%s12978_s19 + $0xb00] sm:$0xff] }
 0x53b   : > { %10298 = vmatprep.subr.bf16.mxu0 %v12209_v35  ;;  %10462 = vmatprep.subr.bf16.mxu1 %v12211_v37  ;;  %v12258_v35 = vcombine.low %v7452_v21, %v7456_v24  ;;  %v12265_v37 = vcombine.high %v7459_v17, %v7463_v30  ;;  %v12267_v38 = vcombine.high %v7460_v31, %v7464_v63  ;;  %v7511_v20 = vld [vmem:[%s12978_s19 + $0xb20] sm:$0xff]  ;;  %v7508_v21 = vld [vmem:[%s12978_s19 + $0xb08] sm:$0xff] }
 0x53c   : > { %v7512_v24 = vld [vmem:[%s12978_s19 + $0xb28] sm:$0xff] }
 0x53e   : > { %10299 = vmatpush1.bf16.msra.mxu0 %v12208_v39  ;;  %10463 = vmatpush1.bf16.msra.mxu1 %v12210_v41  ;;  %v7472_v39 = vld [vmem:[%s12978_s19 + $0x9e8] sm:$0xff]  ;;  %v12264_v41 = vcombine.low %v7459_v17, %v7463_v30  ;;  %v7515_v17 = vld [vmem:[%s12978_s19 + $0xb40] sm:$0xff] }
 0x53f   : > { %10309 = vmatprep.subr.bf16.mxu0 %v12217_v46  ;;  %10473 = vmatprep.subr.bf16.mxu1 %v12219_v42  ;;  %v12266_v46 = vcombine.low %v7460_v31, %v7464_v63  ;;  %v12273_v42 = vcombine.high %v7467_v25, %v7471_v40  ;;  %v12275_v47 = vcombine.high %v7468_v1, %v7472_v39  ;;  %v7519_v30 = vld [vmem:[%s12978_s19 + $0xb60] sm:$0xff]  ;;  %v7516_v31 = vld [vmem:[%s12978_s19 + $0xb48] sm:$0xff] }
 0x540   : > { %v7520_v63 = vld [vmem:[%s12978_s19 + $0xb68] sm:$0xff] }
 0x541   : > { %10301 = vmatmul.mubr.bf16.vlgmr.msra.gmra.mrb[0].mxu0 %v14294_v12  ;;  %10465 = vmatmul.mubr.bf16.vlgmr.msra.gmra.mrb[0].mxu1 %v14294_v12 }
 0x542   : > { %10310 = vmatpush1.bf16.msra.mxu0 %v12216_v45  ;;  %10474 = vmatpush1.bf16.msra.mxu1 %v12218_v33  ;;  %v12272_v45 = vcombine.low %v7467_v25, %v7471_v40  ;;  %v12274_v33 = vcombine.low %v7468_v1, %v7472_v39  ;;  %v7523_v25 = vld [vmem:[%s12978_s19 + $0xb80] sm:$0xff]  ;;  %v7524_v1 = vld [vmem:[%s12978_s19 + $0xb88] sm:$0xff] }
 0x543   : > { %10311 = vmatprep.subr.bf16.mxu0 %v12225_v36  ;;  %10475 = vmatprep.subr.bf16.mxu1 %v12227_v61  ;;  %v12281_v36 = vcombine.high %v7475_v43, %v7479_v55  ;;  %v12283_v61 = vcombine.high %v7476_v48, %v7480_v44  ;;  %v7527_v40 = vld [vmem:[%s12978_s19 + $0xba0] sm:$0xff]  ;;  %v7528_v39 = vld [vmem:[%s12978_s19 + $0xba8] sm:$0xff] }
 0x544   : > { %10341 = vmatprep.mubr.bf16.mxu0 %v14300_v51  ;;  %10505 = vmatprep.mubr.bf16.mxu1 %v14300_v51 }
 0x546   : > { %10312 = vmatpush1.bf16.msra.mxu0 %v12224_v4  ;;  %10476 = vmatpush1.bf16.msra.mxu1 %v12226_v52  ;;  %v12280_v4 = vcombine.low %v7475_v43, %v7479_v55  ;;  %v12282_v52 = vcombine.low %v7476_v48, %v7480_v44  ;;  %v7531_v43 = vld [vmem:[%s12978_s19 + $0xbc0] sm:$0xff]  ;;  %v7122_v48 = vcombine.high %v14276_v26, %v14276_v26  ;;  %v7532_v44 = vld [vmem:[%s12978_s19 + $0xbc8] sm:$0xff] }
 0x547   : > { %10313 = vmatprep.subr.bf16.mxu0 %v12233_v54  ;;  %10477 = vmatprep.subr.bf16.mxu1 %v12235_v56  ;;  %v12289_v54 = vcombine.high %v7483_v50, %v7487_v49  ;;  %v12291_v56 = vcombine.high %v7484_v0, %v7488_v8  ;;  %v7535_v55 = vld [vmem:[%s12978_s19 + $0xbe0] sm:$0xff]  ;;  %v7540_v26 = vld [vmem:[%s12978_s19 + $0xc08] sm:$0xff] }
 0x54a   : > { %10314 = vmatpush1.bf16.msra.mxu0 %v12232_v62  ;;  %10478 = vmatpush1.bf16.msra.mxu1 %v12234_v2  ;;  %v12288_v62 = vcombine.low %v7483_v50, %v7487_v49  ;;  %v12290_v2 = vcombine.low %v7484_v0, %v7488_v8  ;;  %v7539_v49 = vld [vmem:[%s12978_s19 + $0xc00] sm:$0xff]  ;;  %v14365_v8 = vrot.slane %v7122_v48, %v13015_v53 }
 0x54b   : > { %10315 = vmatprep.subr.bf16.mxu0 %v12241_v23  ;;  %10479 = vmatprep.subr.bf16.mxu1 %v12243_v32  ;;  %v12297_v23 = vcombine.high %v7491_v59, %v7495_v57  ;;  %v12299_v32 = vcombine.high %v7492_v58, %v7496_v14  ;;  %v7543_v0 = vld [vmem:[%s12978_s19 + $0xc20] sm:$0xff] }
 0x54e   : > { %10316 = vmatpush1.bf16.msra.mxu0 %v12240_v11  ;;  %10480 = vmatpush1.bf16.msra.mxu1 %v12242_v13  ;;  %v12296_v11 = vcombine.low %v7491_v59, %v7495_v57  ;;  %v12298_v13 = vcombine.low %v7492_v58, %v7496_v14  ;;  %v7547_v57 = vld [vmem:[%s12978_s19 + $0xc40] sm:$0xff]  ;;  %v7138_v14 = vcombine.high %v14365_v8, %v14365_v8 }
 0x54f   : > { %10317 = vmatprep.subr.bf16.mxu0 %v12249_v3  ;;  %10481 = vmatprep.subr.bf16.mxu1 %v12251_v18  ;;  %v12305_v3 = vcombine.high %v7499_v16, %v7503_v6  ;;  %v12307_v18 = vcombine.high %v7500_v7, %v7504_v10  ;;  %v7551_v58 = vld [vmem:[%s12978_s19 + $0xc60] sm:$0xff] }
 0x552   : > { %10318 = vmatpush1.bf16.msra.mxu0 %v12248_v9  ;;  %10482 = vmatpush1.bf16.msra.mxu1 %v12250_v27  ;;  %v12304_v9 = vcombine.low %v7499_v16, %v7503_v6  ;;  %v12306_v27 = vcombine.low %v7500_v7, %v7504_v10  ;;  %v12353_v6 = vcombine.high %v7547_v57, %v7551_v58  ;;  %v7555_v10 = vld [vmem:[%s12978_s19 + $0xc80] sm:$0xff] }
 0x553   : > { %10319 = vmatprep.subr.bf16.mxu0 %v12257_v29  ;;  %10483 = vmatprep.subr.bf16.mxu1 %v12259_v28  ;;  %v12313_v29 = vcombine.high %v7507_v19, %v7511_v20  ;;  %v12315_v28 = vcombine.high %v7508_v21, %v7512_v24 }
 0x556   : > { %10320 = vmatpush1.bf16.msra.mxu0 %v12256_v60  ;;  %10484 = vmatpush1.bf16.msra.mxu1 %v12258_v35  ;;  %v12312_v60 = vcombine.low %v7507_v19, %v7511_v20  ;;  %v12314_v35 = vcombine.low %v7508_v21, %v7512_v24  ;;  %v7563_v24 = vld [vmem:[%s12978_s19 + $0xcc0] sm:$0xff] }
 0x557   : > { %10321 = vmatprep.subr.bf16.mxu0 %v12265_v37  ;;  %10485 = vmatprep.subr.bf16.mxu1 %v12267_v38  ;;  %v12321_v37 = vcombine.high %v7515_v17, %v7519_v30  ;;  %v12323_v38 = vcombine.high %v7516_v31, %v7520_v63 }
 0x55a   : > { %10322 = vmatpush1.bf16.msra.mxu0 %v12264_v41  ;;  %10486 = vmatpush1.bf16.msra.mxu1 %v12266_v46  ;;  %v12320_v41 = vcombine.low %v7515_v17, %v7519_v30  ;;  %v12322_v46 = vcombine.low %v7516_v31, %v7520_v63  ;;  %v7571_v63 = vld [vmem:[%s12978_s19 + $0xd00] sm:$0xff] }
 0x55b   : > { %10323 = vmatprep.subr.bf16.mxu0 %v12273_v42  ;;  %10487 = vmatprep.subr.bf16.mxu1 %v12275_v47  ;;  %v12329_v42 = vcombine.high %v7523_v25, %v7527_v40  ;;  %v12331_v47 = vcombine.high %v7524_v1, %v7528_v39 }
 0x55e   : > { %10324 = vmatpush1.bf16.msra.mxu0 %v12272_v45  ;;  %10488 = vmatpush1.bf16.msra.mxu1 %v12274_v33  ;;  %v7536_v45 = vld [vmem:[%s12978_s19 + $0xbe8] sm:$0xff]  ;;  %v12328_v33 = vcombine.low %v7523_v25, %v7527_v40 }
 0x55f   : > { %10325 = vmatprep.subr.bf16.mxu0 %v12281_v36  ;;  %10489 = vmatprep.subr.bf16.mxu1 %v12283_v61  ;;  %v12330_v36 = vcombine.low %v7524_v1, %v7528_v39  ;;  %v12337_v61 = vcombine.high %v7531_v43, %v7535_v55  ;;  %v12339_v50 = vcombine.high %v7532_v44, %v7536_v45  ;;  %v7579_v39 = vld [vmem:[%s12978_s19 + $0xd40] sm:$0xff] }
 0x562   : > { %10326 = vmatpush1.bf16.msra.mxu0 %v12280_v4  ;;  %10490 = vmatpush1.bf16.msra.mxu1 %v12282_v52  ;;  %v7544_v4 = vld [vmem:[%s12978_s19 + $0xc28] sm:$0xff]  ;;  %v12336_v52 = vcombine.low %v7531_v43, %v7535_v55 }
 0x563   : > { %10327 = vmatprep.subr.bf16.mxu0 %v12289_v54  ;;  %10491 = vmatprep.subr.bf16.mxu1 %v12291_v56  ;;  %v12338_v54 = vcombine.low %v7532_v44, %v7536_v45  ;;  %v12345_v56 = vcombine.high %v7539_v49, %v7543_v0  ;;  %v12347_v59 = vcombine.high %v7540_v26, %v7544_v4  ;;  %v7587_v44 = vld [vmem:[%s12978_s19 + $0xd80] sm:$0xff] }
 0x564   : > { %v12346_v16 = vcombine.low %v7540_v26, %v7544_v4  ;;  %v7591_v45 = vld [vmem:[%s12978_s19 + $0xda0] sm:$0xff] }
 0x565   : > { %v7595_v26 = vld [vmem:[%s12978_s19 + $0xdc0] sm:$0xff] }
 0x566   : > { %10328 = vmatpush1.bf16.msra.mxu0 %v12288_v62  ;;  %10492 = vmatpush1.bf16.msra.mxu1 %v12290_v2  ;;  %v14375_v62 = vpack.c.bf16 %v14284_v34, %v14284_v34  ;;  %v7548_v2 = vld [vmem:[%s12978_s19 + $0xc48] sm:$0xff]  ;;  %v7599_v4 = vld [vmem:[%s12978_s19 + $0xde0] sm:$0xff] }
 0x567   : > { %10329 = vmatprep.subr.bf16.mxu0 %v12297_v23  ;;  %10493 = vmatprep.subr.bf16.mxu1 %v12299_v32  ;;  %v7552_v23 = vld [vmem:[%s12978_s19 + $0xc68] sm:$0xff]  ;;  %v12344_v32 = vcombine.low %v7539_v49, %v7543_v0  ;;  %v12393_v49 = vcombine.high %v7587_v44, %v7591_v45 }
 0x568   : > { %v12355_v7 = vcombine.high %v7548_v2, %v7552_v23  ;;  %v7556_v34 = vld [vmem:[%s12978_s19 + $0xc88] sm:$0xff]  ;;  %v12354_v19 = vcombine.low %v7548_v2, %v7552_v23  ;;  %v7607_v2 = vld [vmem:[%s12978_s19 + $0xe20] sm:$0xff] }
 0x569   : > { %v7604_v23 = vld [vmem:[%s12978_s19 + $0xe08] sm:$0xff] }
 0x56a   : > { %10330 = vmatpush1.bf16.msra.mxu0 %v12296_v11  ;;  %10494 = vmatpush1.bf16.msra.mxu1 %v12298_v13  ;;  %v7559_v11 = vld [vmem:[%s12978_s19 + $0xca0] sm:$0xff]  ;;  %v14381_v13 = vpack.c.bf16 %v7138_v14, %v7138_v14 }
 0x56b   : > { %10331 = vmatprep.subr.bf16.mxu0 %v12305_v3  ;;  %10495 = vmatprep.subr.bf16.mxu1 %v12307_v18  ;;  %v7560_v3 = vld [vmem:[%s12978_s19 + $0xca8] sm:$0xff]  ;;  %v12352_v18 = vcombine.low %v7547_v57, %v7551_v58  ;;  %v12361_v20 = vcombine.high %v7555_v10, %v7559_v11  ;;  %v12401_v57 = vcombine.high %v7595_v26, %v7599_v4  ;;  %v7603_v14 = vld [vmem:[%s12978_s19 + $0xe00] sm:$0xff] }
 0x56c   : > { %v12363_v21 = vcombine.high %v7556_v34, %v7560_v3  ;;  %v12362_v17 = vcombine.low %v7556_v34, %v7560_v3  ;;  %v7615_v34 = vld [vmem:[%s12978_s19 + $0xe60] sm:$0xff]  ;;  %v7612_v3 = vld [vmem:[%s12978_s19 + $0xe48] sm:$0xff] }
 0x56e   : > { %10332 = vmatpush1.bf16.msra.mxu0 %v12304_v9  ;;  %10496 = vmatpush1.bf16.msra.mxu1 %v12306_v27  ;;  %v7567_v9 = vld [vmem:[%s12978_s19 + $0xce0] sm:$0xff]  ;;  %v7564_v27 = vld [vmem:[%s12978_s19 + $0xcc8] sm:$0xff] }
 0x56f   : > { %10333 = vmatprep.subr.bf16.mxu0 %v12313_v29  ;;  %10497 = vmatprep.subr.bf16.mxu1 %v12315_v28  ;;  %v7568_v29 = vld [vmem:[%s12978_s19 + $0xce8] sm:$0xff]  ;;  %v12360_v28 = vcombine.low %v7555_v10, %v7559_v11  ;;  %v12369_v30 = vcombine.high %v7563_v24, %v7567_v9  ;;  %v7611_v11 = vld [vmem:[%s12978_s19 + $0xe40] sm:$0xff] }
 0x570   : > { %v12371_v31 = vcombine.high %v7564_v27, %v7568_v29  ;;  %v12370_v25 = vcombine.low %v7564_v27, %v7568_v29  ;;  %v7623_v27 = vld [vmem:[%s12978_s19 + $0xea0] sm:$0xff]  ;;  %v7620_v29 = vld [vmem:[%s12978_s19 + $0xe88] sm:$0xff] }
 0x572   : > { %10334 = vmatpush1.bf16.msra.mxu0 %v12312_v60  ;;  %10498 = vmatpush1.bf16.msra.mxu1 %v12314_v35  ;;  %v7575_v60 = vld [vmem:[%s12978_s19 + $0xd20] sm:$0xff]  ;;  %v7572_v35 = vld [vmem:[%s12978_s19 + $0xd08] sm:$0xff] }
 0x573   : > { %10335 = vmatprep.subr.bf16.mxu0 %v12321_v37  ;;  %10499 = vmatprep.subr.bf16.mxu1 %v12323_v38  ;;  %v7576_v37 = vld [vmem:[%s12978_s19 + $0xd28] sm:$0xff]  ;;  %v12368_v38 = vcombine.low %v7563_v24, %v7567_v9  ;;  %v12377_v40 = vcombine.high %v7571_v63, %v7575_v60  ;;  %v7619_v9 = vld [vmem:[%s12978_s19 + $0xe80] sm:$0xff] }
 0x574   : > { %v12379_v1 = vcombine.high %v7572_v35, %v7576_v37  ;;  %v12378_v43 = vcombine.low %v7572_v35, %v7576_v37  ;;  %v7631_v35 = vld [vmem:[%s12978_s19 + $0xee0] sm:$0xff]  ;;  %v7628_v37 = vld [vmem:[%s12978_s19 + $0xec8] sm:$0xff] }
 0x576   : > { %10336 = vmatpush1.bf16.msra.mxu0 %v12320_v41  ;;  %10500 = vmatpush1.bf16.msra.mxu1 %v12322_v46  ;;  %v7583_v41 = vld [vmem:[%s12978_s19 + $0xd60] sm:$0xff]  ;;  %v7580_v46 = vld [vmem:[%s12978_s19 + $0xd48] sm:$0xff] }
 0x577   : > { %10337 = vmatprep.subr.bf16.mxu0 %v12329_v42  ;;  %10501 = vmatprep.subr.bf16.mxu1 %v12331_v47  ;;  %v7584_v42 = vld [vmem:[%s12978_s19 + $0xd68] sm:$0xff]  ;;  %v12376_v47 = vcombine.low %v7571_v63, %v7575_v60  ;;  %v12385_v55 = vcombine.high %v7579_v39, %v7583_v41  ;;  %v7627_v60 = vld [vmem:[%s12978_s19 + $0xec0] sm:$0xff] }
 0x578   : > { %v12387_v48 = vcombine.high %v7580_v46, %v7584_v42 }
 0x57a   : > { %10338 = vmatpush1.bf16.msra.mxu0 %v12328_v33  ;;  %10502 = vmatpush1.bf16.msra.mxu1 %v12330_v36  ;;  %v7588_v33 = vld [vmem:[%s12978_s19 + $0xd88] sm:$0xff] }
 0x57b   : > { %10339 = vmatprep.subr.bf16.mxu0 %v12337_v61  ;;  %10503 = vmatprep.subr.bf16.mxu1 %v12339_v50  ;;  %v7592_v36 = vld [vmem:[%s12978_s19 + $0xda8] sm:$0xff]  ;;  %v12384_v61 = vcombine.low %v7579_v39, %v7583_v41  ;;  %v12386_v50 = vcombine.low %v7580_v46, %v7584_v42  ;;  %v7635_v41 = vld [vmem:[%s12978_s19 + $0xf00] sm:$0xff] }
 0x57c   : > { %v12395_v0 = vcombine.high %v7588_v33, %v7592_v36  ;;  %v7639_v46 = vld [vmem:[%s12978_s19 + $0xf20] sm:$0xff]  ;;  %v7636_v42 = vld [vmem:[%s12978_s19 + $0xf08] sm:$0xff] }
 0x57e   : > { %10340 = vmatpush1.bf16.msra.mxu0 %v12336_v52  ;;  %10504 = vmatpush1.bf16.msra.mxu1 %v12338_v54  ;;  %v7596_v52 = vld [vmem:[%s12978_s19 + $0xdc8] sm:$0xff] }
 0x57f   : > { %10350 = vmatprep.subr.bf16.mxu0 %v12345_v56  ;;  %10514 = vmatprep.subr.bf16.mxu1 %v12347_v59  ;;  %v7600_v54 = vld [vmem:[%s12978_s19 + $0xde8] sm:$0xff]  ;;  %v12392_v56 = vcombine.low %v7587_v44, %v7591_v45  ;;  %v12394_v59 = vcombine.low %v7588_v33, %v7592_v36  ;;  %v7643_v45 = vld [vmem:[%s12978_s19 + $0xf40] sm:$0xff] }
 0x580   : > { %v12403_v58 = vcombine.high %v7596_v52, %v7600_v54  ;;  %v7647_v33 = vld [vmem:[%s12978_s19 + $0xf60] sm:$0xff]  ;;  %v7644_v36 = vld [vmem:[%s12978_s19 + $0xf48] sm:$0xff] }
 0x581   : > { %10342 = vmatmul.mubr.bf16.vlgmr.msra.gmra.mrb[0].mxu0 %v14375_v62  ;;  %10506 = vmatmul.mubr.bf16.vlgmr.msra.gmra.mrb[0].mxu1 %v14375_v62 }
 0x582   : > { %10351 = vmatpush1.bf16.msra.mxu0 %v12344_v32  ;;  %10515 = vmatpush1.bf16.msra.mxu1 %v12346_v16  ;;  %v7608_v32 = vld [vmem:[%s12978_s19 + $0xe28] sm:$0xff]  ;;  %v12400_v16 = vcombine.low %v7595_v26, %v7599_v4  ;;  %v7651_v4 = vld [vmem:[%s12978_s19 + $0xf80] sm:$0xff] }
 0x583   : > { %10352 = vmatprep.subr.bf16.mxu0 %v12353_v6  ;;  %10516 = vmatprep.subr.bf16.mxu1 %v12355_v7  ;;  %v12402_v6 = vcombine.low %v7596_v52, %v7600_v54  ;;  %v12409_v7 = vcombine.high %v7603_v14, %v7607_v2  ;;  %v12411_v10 = vcombine.high %v7604_v23, %v7608_v32  ;;  %v7655_v52 = vld [vmem:[%s12978_s19 + $0xfa0] sm:$0xff]  ;;  %v7652_v54 = vld [vmem:[%s12978_s19 + $0xf88] sm:$0xff] }
 0x584   : > { %10382 = vmatprep.mubr.bf16.mxu0 %v14381_v13  ;;  %10546 = vmatprep.mubr.bf16.mxu1 %v14381_v13 }
 0x586   : > { %10353 = vmatpush1.bf16.msra.mxu0 %v12352_v18  ;;  %10517 = vmatpush1.bf16.msra.mxu1 %v12354_v19  ;;  %v7616_v18 = vld [vmem:[%s12978_s19 + $0xe68] sm:$0xff]  ;;  %v12408_v19 = vcombine.low %v7603_v14, %v7607_v2  ;;  %v7659_v2 = vld [vmem:[%s12978_s19 + $0xfc0] sm:$0xff] }
 0x587   : > { %10354 = vmatprep.subr.bf16.mxu0 %v12361_v20  ;;  %10518 = vmatprep.subr.bf16.mxu1 %v12363_v21  ;;  %v12410_v20 = vcombine.low %v7604_v23, %v7608_v32  ;;  %v12417_v21 = vcombine.high %v7611_v11, %v7615_v34  ;;  %v12419_v24 = vcombine.high %v7612_v3, %v7616_v18  ;;  %v7663_v23 = vld [vmem:[%s12978_s19 + $0xfe0] sm:$0xff]  ;;  %v7660_v32 = vld [vmem:[%s12978_s19 + $0xfc8] sm:$0xff] }
 0x58a   : > { %10355 = vmatpush1.bf16.msra.mxu0 %v12360_v28  ;;  %10519 = vmatpush1.bf16.msra.mxu1 %v12362_v17  ;;  %v7624_v28 = vld [vmem:[%s12978_s19 + $0xea8] sm:$0xff]  ;;  %v12416_v17 = vcombine.low %v7611_v11, %v7615_v34  ;;  %v7157_v34 = vld [vmem:[%s12978_s19 + $0x10] sm:$0xff] }
 0x58b   : > { %10356 = vmatprep.subr.bf16.mxu0 %v12369_v30  ;;  %10520 = vmatprep.subr.bf16.mxu1 %v12371_v31  ;;  %v12418_v30 = vcombine.low %v7612_v3, %v7616_v18  ;;  %v12425_v31 = vcombine.high %v7619_v9, %v7623_v27  ;;  %v12427_v63 = vcombine.high %v7620_v29, %v7624_v28  ;;  %v7161_v3 = vld [vmem:[%s12978_s19 + $0x30] sm:$0xff]  ;;  %v7158_v18 = vld [vmem:[%s12978_s19 + $0x18] sm:$0xff] }
 0x58e   : > { %10357 = vmatpush1.bf16.msra.mxu0 %v12368_v38  ;;  %10521 = vmatpush1.bf16.msra.mxu1 %v12370_v25  ;;  %v7632_v38 = vld [vmem:[%s12978_s19 + $0xee8] sm:$0xff]  ;;  %v12424_v25 = vcombine.low %v7619_v9, %v7623_v27  ;;  %v7165_v27 = vld [vmem:[%s12978_s19 + $0x50] sm:$0xff] }
 0x58f   : > { %10358 = vmatprep.subr.bf16.mxu0 %v12377_v40  ;;  %10522 = vmatprep.subr.bf16.mxu1 %v12379_v1  ;;  %v12426_v40 = vcombine.low %v7620_v29, %v7624_v28  ;;  %v12433_v1 = vcombine.high %v7627_v60, %v7631_v35  ;;  %v12435_v39 = vcombine.high %v7628_v37, %v7632_v38  ;;  %v7169_v29 = vld [vmem:[%s12978_s19 + $0x70] sm:$0xff] }
 0x590   : > { %v14449_v28 = vpack.c.bf16 %v14365_v8, %v14365_v8  ;;  %v7174_v8 = vld [vmem:[%s12978_s19 + $0x98] sm:$0xff] }
 0x592   : > { %10359 = vmatpush1.bf16.msra.mxu0 %v12376_v47  ;;  %10523 = vmatpush1.bf16.msra.mxu1 %v12378_v43  ;;  %v7640_v47 = vld [vmem:[%s12978_s19 + $0xf28] sm:$0xff]  ;;  %v12432_v43 = vcombine.low %v7627_v60, %v7631_v35  ;;  %v11973_v60 = vcombine.high %v7165_v27, %v7169_v29 }
 0x593   : > { %10360 = vmatprep.subr.bf16.mxu0 %v12385_v55  ;;  %10524 = vmatprep.subr.bf16.mxu1 %v12387_v48  ;;  %v12434_v55 = vcombine.low %v7628_v37, %v7632_v38  ;;  %v12441_v48 = vcombine.high %v7635_v41, %v7639_v46  ;;  %v12443_v44 = vcombine.high %v7636_v42, %v7640_v47  ;;  %v7173_v37 = vld [vmem:[%s12978_s19 + $0x90] sm:$0xff] }
 0x594   : > { %v7177_v38 = vld [vmem:[%s12978_s19 + $0xb0] sm:$0xff] }
 0x596   : > { %10361 = vmatpush1.bf16.msra.mxu0 %v12384_v61  ;;  %10525 = vmatpush1.bf16.msra.mxu1 %v12386_v50  ;;  %v7648_v61 = vld [vmem:[%s12978_s19 + $0xf68] sm:$0xff]  ;;  %v12440_v50 = vcombine.low %v7635_v41, %v7639_v46  ;;  %v7181_v46 = vld [vmem:[%s12978_s19 + $0xd0] sm:$0xff] }
 0x597   : > { %10362 = vmatprep.subr.bf16.mxu0 %v12393_v49  ;;  %10526 = vmatprep.subr.bf16.mxu1 %v12395_v0  ;;  %v12442_v49 = vcombine.low %v7636_v42, %v7640_v47  ;;  %v12449_v0 = vcombine.high %v7643_v45, %v7647_v33  ;;  %v12451_v26 = vcombine.high %v7644_v36, %v7648_v61  ;;  %v7185_v42 = vld [vmem:[%s12978_s19 + $0xf0] sm:$0xff]  ;;  %v7182_v47 = vld [vmem:[%s12978_s19 + $0xd8] sm:$0xff] }
 0x59a   : > { %10363 = vmatpush1.bf16.msra.mxu0 %v12392_v56  ;;  %10527 = vmatpush1.bf16.msra.mxu1 %v12394_v59  ;;  %v7656_v56 = vld [vmem:[%s12978_s19 + $0xfa8] sm:$0xff]  ;;  %v12448_v59 = vcombine.low %v7643_v45, %v7647_v33  ;;  %v7189_v33 = vld [vmem:[%s12978_s19 + $0x110] sm:$0xff] }
 0x59b   : > { %10364 = vmatprep.subr.bf16.mxu0 %v12401_v57  ;;  %10528 = vmatprep.subr.bf16.mxu1 %v12403_v58  ;;  %v12450_v57 = vcombine.low %v7644_v36, %v7648_v61  ;;  %v12457_v58 = vcombine.high %v7651_v4, %v7655_v52  ;;  %v12459_v14 = vcombine.high %v7652_v54, %v7656_v56  ;;  %v7193_v36 = vld [vmem:[%s12978_s19 + $0x130] sm:$0xff]  ;;  %v7190_v61 = vld [vmem:[%s12978_s19 + $0x118] sm:$0xff] }
 0x59e   : > { %10365 = vmatpush1.bf16.msra.mxu0 %v12400_v16  ;;  %10529 = vmatpush1.bf16.msra.mxu1 %v12402_v6  ;;  %v7664_v16 = vld [vmem:[%s12978_s19 + $0xfe8] sm:$0xff]  ;;  %v12456_v6 = vcombine.low %v7651_v4, %v7655_v52  ;;  %v7197_v4 = vld [vmem:[%s12978_s19 + $0x150] sm:$0xff] }
 0x59f   : > { %10366 = vmatprep.subr.bf16.mxu0 %v12409_v7  ;;  %10530 = vmatprep.subr.bf16.mxu1 %v12411_v10  ;;  %v12458_v7 = vcombine.low %v7652_v54, %v7656_v56  ;;  %v12465_v10 = vcombine.high %v7659_v2, %v7663_v23  ;;  %v12467_v11 = vcombine.high %v7660_v32, %v7664_v16  ;;  %v7201_v52 = vld [vmem:[%s12978_s19 + $0x170] sm:$0xff]  ;;  %v7198_v54 = vld [vmem:[%s12978_s19 + $0x158] sm:$0xff] }
 0x5a0   : > { %v7202_v56 = vld [vmem:[%s12978_s19 + $0x178] sm:$0xff] }
 0x5a2   : > { %10367 = vmatpush1.bf16.msra.mxu0 %v12408_v19  ;;  %10531 = vmatpush1.bf16.msra.mxu1 %v12410_v20  ;;  %v7162_v19 = vld [vmem:[%s12978_s19 + $0x38] sm:$0xff]  ;;  %v12464_v20 = vcombine.low %v7659_v2, %v7663_v23  ;;  %v7205_v2 = vld [vmem:[%s12978_s19 + $0x190] sm:$0xff] }
 0x5a3   : > { %10368 = vmatprep.subr.bf16.mxu0 %v12417_v21  ;;  %10532 = vmatprep.subr.bf16.mxu1 %v12419_v24  ;;  %v12466_v21 = vcombine.low %v7660_v32, %v7664_v16  ;;  %v11965_v24 = vcombine.high %v7157_v34, %v7161_v3  ;;  %v11967_v9 = vcombine.high %v7158_v18, %v7162_v19  ;;  %v7209_v23 = vld [vmem:[%s12978_s19 + $0x1b0] sm:$0xff]  ;;  %v7206_v32 = vld [vmem:[%s12978_s19 + $0x198] sm:$0xff] }
 0x5a4   : > { %v7210_v16 = vld [vmem:[%s12978_s19 + $0x1b8] sm:$0xff] }
 0x5a6   : > { %10369 = vmatpush1.bf16.msra.mxu0 %v12416_v17  ;;  %10533 = vmatpush1.bf16.msra.mxu1 %v12418_v30  ;;  %v7166_v17 = vld [vmem:[%s12978_s19 + $0x58] sm:$0xff] }
 0x5a7   : > { %10370 = vmatprep.subr.bf16.mxu0 %v12425_v31  ;;  %10534 = vmatprep.subr.bf16.mxu1 %v12427_v63  ;;  %v7170_v30 = vld [vmem:[%s12978_s19 + $0x78] sm:$0xff]  ;;  %v11964_v31 = vcombine.low %v7157_v34, %v7161_v3  ;;  %v11966_v63 = vcombine.low %v7158_v18, %v7162_v19  ;;  %v7213_v34 = vld [vmem:[%s12978_s19 + $0x1d0] sm:$0xff] }
 0x5a8   : > { %v11975_v35 = vcombine.high %v7166_v17, %v7170_v30  ;;  %v7217_v3 = vld [vmem:[%s12978_s19 + $0x1f0] sm:$0xff]  ;;  %v7214_v18 = vld [vmem:[%s12978_s19 + $0x1d8] sm:$0xff] }
 0x5a9   : > { %v7218_v19 = vld [vmem:[%s12978_s19 + $0x1f8] sm:$0xff] }
 0x5aa   : > { %10371 = vmatpush1.bf16.msra.mxu0 %v12424_v25  ;;  %10535 = vmatpush1.bf16.msra.mxu1 %v12426_v40  ;;  %v7178_v25 = vld [vmem:[%s12978_s19 + $0xb8] sm:$0xff]  ;;  %v11972_v40 = vcombine.low %v7165_v27, %v7169_v29  ;;  %v7221_v27 = vld [vmem:[%s12978_s19 + $0x210] sm:$0xff] }
 0x5ab   : > { %10372 = vmatprep.subr.bf16.mxu0 %v12433_v1  ;;  %10536 = vmatprep.subr.bf16.mxu1 %v12435_v39  ;;  %v11974_v1 = vcombine.low %v7166_v17, %v7170_v30  ;;  %v11981_v39 = vcombine.high %v7173_v37, %v7177_v38  ;;  %v11983_v41 = vcombine.high %v7174_v8, %v7178_v25  ;;  %v7225_v29 = vld [vmem:[%s12978_s19 + $0x230] sm:$0xff]  ;;  %v7222_v17 = vld [vmem:[%s12978_s19 + $0x218] sm:$0xff] }
 0x5ac   : > { %v7226_v30 = vld [vmem:[%s12978_s19 + $0x238] sm:$0xff] }
 0x5ae   : > { %10373 = vmatpush1.bf16.msra.mxu0 %v12432_v43  ;;  %10537 = vmatpush1.bf16.msra.mxu1 %v12434_v55  ;;  %v7186_v43 = vld [vmem:[%s12978_s19 + $0xf8] sm:$0xff]  ;;  %v11980_v55 = vcombine.low %v7173_v37, %v7177_v38  ;;  %v7229_v37 = vld [vmem:[%s12978_s19 + $0x250] sm:$0xff] }
 0x5af   : > { %10374 = vmatprep.subr.bf16.mxu0 %v12441_v48  ;;  %10538 = vmatprep.subr.bf16.mxu1 %v12443_v44  ;;  %v11982_v48 = vcombine.low %v7174_v8, %v7178_v25  ;;  %v11989_v44 = vcombine.high %v7181_v46, %v7185_v42  ;;  %v11991_v45 = vcombine.high %v7182_v47, %v7186_v43  ;;  %v7233_v38 = vld [vmem:[%s12978_s19 + $0x270] sm:$0xff]  ;;  %v7230_v8 = vld [vmem:[%s12978_s19 + $0x258] sm:$0xff] }
 0x5b0   : > { %v7234_v25 = vld [vmem:[%s12978_s19 + $0x278] sm:$0xff] }
 0x5b2   : > { %10375 = vmatpush1.bf16.msra.mxu0 %v12440_v50  ;;  %10539 = vmatpush1.bf16.msra.mxu1 %v12442_v49  ;;  %v7194_v50 = vld [vmem:[%s12978_s19 + $0x138] sm:$0xff]  ;;  %v11988_v49 = vcombine.low %v7181_v46, %v7185_v42  ;;  %v7237_v46 = vld [vmem:[%s12978_s19 + $0x290] sm:$0xff] }
 0x5b3   : > { %10376 = vmatprep.subr.bf16.mxu0 %v12449_v0  ;;  %10540 = vmatprep.subr.bf16.mxu1 %v12451_v26  ;;  %v11997_v0 = vcombine.high %v7189_v33, %v7193_v36  ;;  %v11999_v26 = vcombine.high %v7190_v61, %v7194_v50  ;;  %v7241_v42 = vld [vmem:[%s12978_s19 + $0x2b0] sm:$0xff] }
 0x5b6   : > { %10377 = vmatpush1.bf16.msra.mxu0 %v12448_v59  ;;  %10541 = vmatpush1.bf16.msra.mxu1 %v12450_v57  ;;  %v11996_v59 = vcombine.low %v7189_v33, %v7193_v36  ;;  %v11998_v57 = vcombine.low %v7190_v61, %v7194_v50  ;;  %v7245_v33 = vld [vmem:[%s12978_s19 + $0x2d0] sm:$0xff]  ;;  %v7246_v61 = vld [vmem:[%s12978_s19 + $0x2d8] sm:$0xff] }
 0x5b7   : > { %10378 = vmatprep.subr.bf16.mxu0 %v12457_v58  ;;  %10542 = vmatprep.subr.bf16.mxu1 %v12459_v14  ;;  %v12005_v58 = vcombine.high %v7197_v4, %v7201_v52  ;;  %v12007_v14 = vcombine.high %v7198_v54, %v7202_v56  ;;  %v7249_v36 = vld [vmem:[%s12978_s19 + $0x2f0] sm:$0xff]  ;;  %v7250_v50 = vld [vmem:[%s12978_s19 + $0x2f8] sm:$0xff] }
 0x5ba   : > { %10379 = vmatpush1.bf16.msra.mxu0 %v12456_v6  ;;  %10543 = vmatpush1.bf16.msra.mxu1 %v12458_v7  ;;  %v12004_v6 = vcombine.low %v7197_v4, %v7201_v52  ;;  %v12006_v7 = vcombine.low %v7198_v54, %v7202_v56  ;;  %v7253_v4 = vld [vmem:[%s12978_s19 + $0x310] sm:$0xff]  ;;  %v7254_v54 = vld [vmem:[%s12978_s19 + $0x318] sm:$0xff] }
 0x5bb   : > { %10380 = vmatprep.subr.bf16.mxu0 %v12465_v10  ;;  %10544 = vmatprep.subr.bf16.mxu1 %v12467_v11  ;;  %v12013_v10 = vcombine.high %v7205_v2, %v7209_v23  ;;  %v12015_v11 = vcombine.high %v7206_v32, %v7210_v16  ;;  %v7257_v52 = vld [vmem:[%s12978_s19 + $0x330] sm:$0xff]  ;;  %v7258_v56 = vld [vmem:[%s12978_s19 + $0x338] sm:$0xff] }
 0x5be   : > { %10381 = vmatpush1.bf16.msra.mxu0 %v12464_v20  ;;  %10545 = vmatpush1.bf16.msra.mxu1 %v12466_v21  ;;  %v12012_v20 = vcombine.low %v7205_v2, %v7209_v23  ;;  %v12014_v21 = vcombine.low %v7206_v32, %v7210_v16  ;;  %v7261_v2 = vld [vmem:[%s12978_s19 + $0x350] sm:$0xff]  ;;  %v7262_v32 = vld [vmem:[%s12978_s19 + $0x358] sm:$0xff] }
 0x5bf   : > { %10555 = vmatprep.subr.bf16.mxu0 %v11965_v24  ;;  %10719 = vmatprep.subr.bf16.mxu1 %v11967_v9  ;;  %v12021_v24 = vcombine.high %v7213_v34, %v7217_v3  ;;  %v12023_v9 = vcombine.high %v7214_v18, %v7218_v19  ;;  %v7265_v23 = vld [vmem:[%s12978_s19 + $0x370] sm:$0xff]  ;;  %v7266_v16 = vld [vmem:[%s12978_s19 + $0x378] sm:$0xff] }
 0x5c1   : > { %10383 = vmatmul.mubr.bf16.vlgmr.msra.gmra.mrb[0].mxu0 %v14449_v28  ;;  %10547 = vmatmul.mubr.bf16.vlgmr.msra.gmra.mrb[0].mxu1 %v14449_v28 }
 0x5c2   : > { %10556 = vmatpush1.bf16.msra.mxu0 %v11964_v31  ;;  %10720 = vmatpush1.bf16.msra.mxu1 %v11966_v63  ;;  %v12020_v31 = vcombine.low %v7213_v34, %v7217_v3  ;;  %v12022_v63 = vcombine.low %v7214_v18, %v7218_v19  ;;  %v7269_v34 = vld [vmem:[%s12978_s19 + $0x390] sm:$0xff]  ;;  %v7270_v18 = vld [vmem:[%s12978_s19 + $0x398] sm:$0xff] }
 0x5c3   : > { %10557 = vmatprep.subr.bf16.mxu0 %v11973_v60  ;;  %10721 = vmatprep.subr.bf16.mxu1 %v11975_v35  ;;  %v12029_v60 = vcombine.high %v7221_v27, %v7225_v29  ;;  %v12031_v35 = vcombine.high %v7222_v17, %v7226_v30  ;;  %v7273_v3 = vld [vmem:[%s12978_s19 + $0x3b0] sm:$0xff]  ;;  %v7274_v19 = vld [vmem:[%s12978_s19 + $0x3b8] sm:$0xff] }
 0x5c4   : > { %10587 = vmatprep.mubr.bf16.mxu0 %v14163_v22  ;;  %10751 = vmatprep.mubr.bf16.mxu1 %v14163_v22  ;;  %v11990_v22 = vcombine.low %v7182_v47, %v7186_v43  ;;  %v7238_v47 = vld [vmem:[%s12978_s19 + $0x298] sm:$0xff] }
 0x5c5   : > { %v7242_v43 = vld [vmem:[%s12978_s19 + $0x2b8] sm:$0xff] }
 0x5c6   : > { %10558 = vmatpush1.bf16.msra.mxu0 %v11972_v40  ;;  %10722 = vmatpush1.bf16.msra.mxu1 %v11974_v1  ;;  %v12028_v40 = vcombine.low %v7221_v27, %v7225_v29  ;;  %v12030_v1 = vcombine.low %v7222_v17, %v7226_v30  ;;  %v7277_v27 = vld [vmem:[%s12978_s19 + $0x3d0] sm:$0xff]  ;;  %v7278_v17 = vld [vmem:[%s12978_s19 + $0x3d8] sm:$0xff] }
 0x5c7   : > { %10559 = vmatprep.subr.bf16.mxu0 %v11981_v39  ;;  %10723 = vmatprep.subr.bf16.mxu1 %v11983_v41  ;;  %v12037_v39 = vcombine.high %v7229_v37, %v7233_v38  ;;  %v12039_v41 = vcombine.high %v7230_v8, %v7234_v25  ;;  %v7281_v29 = vld [vmem:[%s12978_s19 + $0x3f0] sm:$0xff]  ;;  %v7282_v30 = vld [vmem:[%s12978_s19 + $0x3f8] sm:$0xff] }
 0x5ca   : > { %10560 = vmatpush1.bf16.msra.mxu0 %v11980_v55  ;;  %10724 = vmatpush1.bf16.msra.mxu1 %v11982_v48  ;;  %v12036_v55 = vcombine.low %v7229_v37, %v7233_v38  ;;  %v12038_v48 = vcombine.low %v7230_v8, %v7234_v25  ;;  %v7285_v37 = vld [vmem:[%s12978_s19 + $0x410] sm:$0xff]  ;;  %v7286_v8 = vld [vmem:[%s12978_s19 + $0x418] sm:$0xff] }
 0x5cb   : > { %10561 = vmatprep.subr.bf16.mxu0 %v11989_v44  ;;  %10725 = vmatprep.subr.bf16.mxu1 %v11991_v45  ;;  %v12045_v44 = vcombine.high %v7237_v46, %v7241_v42  ;;  %v12047_v45 = vcombine.high %v7238_v47, %v7242_v43  ;;  %v7289_v38 = vld [vmem:[%s12978_s19 + $0x430] sm:$0xff]  ;;  %v7290_v25 = vld [vmem:[%s12978_s19 + $0x438] sm:$0xff] }
 0x5ce   : > { %10562 = vmatpush1.bf16.msra.mxu0 %v11988_v49  ;;  %10726 = vmatpush1.bf16.msra.mxu1 %v11990_v22  ;;  %v12044_v49 = vcombine.low %v7237_v46, %v7241_v42  ;;  %v12046_v22 = vcombine.low %v7238_v47, %v7242_v43  ;;  %v7293_v46 = vld [vmem:[%s12978_s19 + $0x450] sm:$0xff]  ;;  %v7294_v47 = vld [vmem:[%s12978_s19 + $0x458] sm:$0xff] }
 0x5cf   : > { %10563 = vmatprep.subr.bf16.mxu0 %v11997_v0  ;;  %10727 = vmatprep.subr.bf16.mxu1 %v11999_v26  ;;  %v12053_v0 = vcombine.high %v7245_v33, %v7249_v36  ;;  %v12055_v26 = vcombine.high %v7246_v61, %v7250_v50  ;;  %v7297_v42 = vld [vmem:[%s12978_s19 + $0x470] sm:$0xff]  ;;  %v7298_v43 = vld [vmem:[%s12978_s19 + $0x478] sm:$0xff] }
 0x5d2   : > { %10564 = vmatpush1.bf16.msra.mxu0 %v11996_v59  ;;  %10728 = vmatpush1.bf16.msra.mxu1 %v11998_v57  ;;  %v12052_v59 = vcombine.low %v7245_v33, %v7249_v36  ;;  %v12054_v57 = vcombine.low %v7246_v61, %v7250_v50  ;;  %v7301_v33 = vld [vmem:[%s12978_s19 + $0x490] sm:$0xff]  ;;  %v7302_v61 = vld [vmem:[%s12978_s19 + $0x498] sm:$0xff] }
 0x5d3   : > { %10565 = vmatprep.subr.bf16.mxu0 %v12005_v58  ;;  %10729 = vmatprep.subr.bf16.mxu1 %v12007_v14  ;;  %v12061_v58 = vcombine.high %v7253_v4, %v7257_v52  ;;  %v12063_v14 = vcombine.high %v7254_v54, %v7258_v56  ;;  %v7305_v36 = vld [vmem:[%s12978_s19 + $0x4b0] sm:$0xff]  ;;  %v7306_v50 = vld [vmem:[%s12978_s19 + $0x4b8] sm:$0xff] }
 0x5d6   : > { %10566 = vmatpush1.bf16.msra.mxu0 %v12004_v6  ;;  %10730 = vmatpush1.bf16.msra.mxu1 %v12006_v7  ;;  %v12060_v6 = vcombine.low %v7253_v4, %v7257_v52  ;;  %v12062_v7 = vcombine.low %v7254_v54, %v7258_v56  ;;  %v7309_v4 = vld [vmem:[%s12978_s19 + $0x4d0] sm:$0xff]  ;;  %v7310_v54 = vld [vmem:[%s12978_s19 + $0x4d8] sm:$0xff] }
 0x5d7   : > { %10567 = vmatprep.subr.bf16.mxu0 %v12013_v10  ;;  %10731 = vmatprep.subr.bf16.mxu1 %v12015_v11  ;;  %v12069_v10 = vcombine.high %v7261_v2, %v7265_v23  ;;  %v12071_v11 = vcombine.high %v7262_v32, %v7266_v16  ;;  %v7313_v52 = vld [vmem:[%s12978_s19 + $0x4f0] sm:$0xff]  ;;  %v7314_v56 = vld [vmem:[%s12978_s19 + $0x4f8] sm:$0xff] }
 0x5da   : > { %10568 = vmatpush1.bf16.msra.mxu0 %v12012_v20  ;;  %10732 = vmatpush1.bf16.msra.mxu1 %v12014_v21  ;;  %v12068_v20 = vcombine.low %v7261_v2, %v7265_v23  ;;  %v12070_v21 = vcombine.low %v7262_v32, %v7266_v16  ;;  %v7321_v2 = vld [vmem:[%s12978_s19 + $0x530] sm:$0xff]  ;;  %v7318_v23 = vld [vmem:[%s12978_s19 + $0x518] sm:$0xff]  ;;  %v12116_v16 = vcombine.low %v7309_v4, %v7313_v52 }
 0x5db   : > { %10569 = vmatprep.subr.bf16.mxu0 %v12021_v24  ;;  %10733 = vmatprep.subr.bf16.mxu1 %v12023_v9  ;;  %v12077_v24 = vcombine.high %v7269_v34, %v7273_v3  ;;  %v12079_v9 = vcombine.high %v7270_v18, %v7274_v19  ;;  %v7322_v32 = vld [vmem:[%s12978_s19 + $0x538] sm:$0xff] }
 0x5de   : > { %10570 = vmatpush1.bf16.msra.mxu0 %v12020_v31  ;;  %10734 = vmatpush1.bf16.msra.mxu1 %v12022_v63  ;;  %v12076_v31 = vcombine.low %v7269_v34, %v7273_v3  ;;  %v12078_v63 = vcombine.low %v7270_v18, %v7274_v19  ;;  %v7326_v34 = vld [vmem:[%s12978_s19 + $0x558] sm:$0xff]  ;;  %v12126_v19 = vcombine.low %v7318_v23, %v7322_v32 }
 0x5df   : > { %10571 = vmatprep.subr.bf16.mxu0 %v12029_v60  ;;  %10735 = vmatprep.subr.bf16.mxu1 %v12031_v35  ;;  %v12085_v60 = vcombine.high %v7277_v27, %v7281_v29  ;;  %v12087_v35 = vcombine.high %v7278_v17, %v7282_v30  ;;  %v7330_v3 = vld [vmem:[%s12978_s19 + $0x578] sm:$0xff] }
 0x5e2   : > { %10572 = vmatpush1.bf16.msra.mxu0 %v12028_v40  ;;  %10736 = vmatpush1.bf16.msra.mxu1 %v12030_v1  ;;  %v12084_v40 = vcombine.low %v7277_v27, %v7281_v29  ;;  %v12086_v1 = vcombine.low %v7278_v17, %v7282_v30  ;;  %v7334_v27 = vld [vmem:[%s12978_s19 + $0x598] sm:$0xff]  ;;  %v12134_v30 = vcombine.low %v7326_v34, %v7330_v3 }
 0x5e3   : > { %10573 = vmatprep.subr.bf16.mxu0 %v12037_v39  ;;  %10737 = vmatprep.subr.bf16.mxu1 %v12039_v41  ;;  %v12093_v39 = vcombine.high %v7285_v37, %v7289_v38  ;;  %v12095_v41 = vcombine.high %v7286_v8, %v7290_v25  ;;  %v7338_v29 = vld [vmem:[%s12978_s19 + $0x5b8] sm:$0xff] }
 0x5e6   : > { %10574 = vmatpush1.bf16.msra.mxu0 %v12036_v55  ;;  %10738 = vmatpush1.bf16.msra.mxu1 %v12038_v48  ;;  %v12092_v55 = vcombine.low %v7285_v37, %v7289_v38  ;;  %v12094_v48 = vcombine.low %v7286_v8, %v7290_v25  ;;  %v7342_v37 = vld [vmem:[%s12978_s19 + $0x5d8] sm:$0xff]  ;;  %v12142_v25 = vcombine.low %v7334_v27, %v7338_v29 }
 0x5e7   : > { %10575 = vmatprep.subr.bf16.mxu0 %v12045_v44  ;;  %10739 = vmatprep.subr.bf16.mxu1 %v12047_v45  ;;  %v12101_v44 = vcombine.high %v7293_v46, %v7297_v42  ;;  %v12103_v45 = vcombine.high %v7294_v47, %v7298_v43  ;;  %v7346_v38 = vld [vmem:[%s12978_s19 + $0x5f8] sm:$0xff] }
 0x5ea   : > { %10576 = vmatpush1.bf16.msra.mxu0 %v12044_v49  ;;  %10740 = vmatpush1.bf16.msra.mxu1 %v12046_v22  ;;  %v12100_v49 = vcombine.low %v7293_v46, %v7297_v42  ;;  %v12102_v22 = vcombine.low %v7294_v47, %v7298_v43  ;;  %v7350_v46 = vld [vmem:[%s12978_s19 + $0x618] sm:$0xff]  ;;  %v12150_v43 = vcombine.low %v7342_v37, %v7346_v38 }
 0x5eb   : > { %10577 = vmatprep.subr.bf16.mxu0 %v12053_v0  ;;  %10741 = vmatprep.subr.bf16.mxu1 %v12055_v26  ;;  %v12109_v0 = vcombine.high %v7301_v33, %v7305_v36  ;;  %v12111_v26 = vcombine.high %v7302_v61, %v7306_v50  ;;  %v7354_v42 = vld [vmem:[%s12978_s19 + $0x638] sm:$0xff] }
 0x5ee   : > { %10578 = vmatpush1.bf16.msra.mxu0 %v12052_v59  ;;  %10742 = vmatpush1.bf16.msra.mxu1 %v12054_v57  ;;  %v12110_v59 = vcombine.low %v7302_v61, %v7306_v50  ;;  %v12117_v57 = vcombine.high %v7309_v4, %v7313_v52  ;;  %v12158_v50 = vcombine.low %v7350_v46, %v7354_v42  ;;  %v7366_v4 = vld [vmem:[%s12978_s19 + $0x698] sm:$0xff] }
 0x5ef   : > { %10579 = vmatprep.subr.bf16.mxu0 %v12061_v58  ;;  %10743 = vmatprep.subr.bf16.mxu1 %v12063_v14  ;;  %v12119_v58 = vcombine.high %v7310_v54, %v7314_v56  ;;  %v7317_v14 = vld [vmem:[%s12978_s19 + $0x510] sm:$0xff]  ;;  %v7370_v52 = vld [vmem:[%s12978_s19 + $0x6b8] sm:$0xff] }
 0x5f0   : > { %v12124_v18 = vcombine.low %v7317_v14, %v7321_v2 }
 0x5f2   : > { %10580 = vmatpush1.bf16.msra.mxu0 %v12060_v6  ;;  %10744 = vmatpush1.bf16.msra.mxu1 %v12062_v7  ;;  %v12125_v6 = vcombine.high %v7317_v14, %v7321_v2  ;;  %v12127_v7 = vcombine.high %v7318_v23, %v7322_v32  ;;  %v7374_v14 = vld [vmem:[%s12978_s19 + $0x6d8] sm:$0xff]  ;;  %v12174_v32 = vcombine.low %v7366_v4, %v7370_v52 }
 0x5f3   : > { %10581 = vmatprep.subr.bf16.mxu0 %v12069_v10  ;;  %10745 = vmatprep.subr.bf16.mxu1 %v12071_v11  ;;  %v7325_v10 = vld [vmem:[%s12978_s19 + $0x550] sm:$0xff]  ;;  %v7378_v2 = vld [vmem:[%s12978_s19 + $0x6f8] sm:$0xff] }
 0x5f4   : > { %v7329_v11 = vld [vmem:[%s12978_s19 + $0x570] sm:$0xff] }
 0x5f5   : > { %v12132_v17 = vcombine.low %v7325_v10, %v7329_v11 }
 0x5f6   : > { %10582 = vmatpush1.bf16.msra.mxu0 %v12068_v20  ;;  %10746 = vmatpush1.bf16.msra.mxu1 %v12070_v21  ;;  %v12133_v20 = vcombine.high %v7325_v10, %v7329_v11  ;;  %v12135_v21 = vcombine.high %v7326_v34, %v7330_v3  ;;  %v7382_v10 = vld [vmem:[%s12978_s19 + $0x718] sm:$0xff]  ;;  %v12182_v3 = vcombine.low %v7374_v14, %v7378_v2 }
 0x5f7   : > { %10583 = vmatprep.subr.bf16.mxu0 %v12077_v24  ;;  %10747 = vmatprep.subr.bf16.mxu1 %v12079_v9  ;;  %v7333_v24 = vld [vmem:[%s12978_s19 + $0x590] sm:$0xff]  ;;  %v7386_v11 = vld [vmem:[%s12978_s19 + $0x738] sm:$0xff] }
 0x5f8   : > { %v7337_v9 = vld [vmem:[%s12978_s19 + $0x5b0] sm:$0xff] }
 0x5f9   : > { %v12140_v8 = vcombine.low %v7333_v24, %v7337_v9 }
 0x5fa   : > { %10584 = vmatpush1.bf16.msra.mxu0 %v12076_v31  ;;  %10748 = vmatpush1.bf16.msra.mxu1 %v12078_v63  ;;  %v12141_v31 = vcombine.high %v7333_v24, %v7337_v9  ;;  %v12143_v63 = vcombine.high %v7334_v27, %v7338_v29  ;;  %v7390_v24 = vld [vmem:[%s12978_s19 + $0x758] sm:$0xff]  ;;  %v12190_v29 = vcombine.low %v7382_v10, %v7386_v11 }
 0x5fb   : > { %10585 = vmatprep.subr.bf16.mxu0 %v12085_v60  ;;  %10749 = vmatprep.subr.bf16.mxu1 %v12087_v35  ;;  %v7341_v60 = vld [vmem:[%s12978_s19 + $0x5d0] sm:$0xff]  ;;  %v7394_v9 = vld [vmem:[%s12978_s19 + $0x778] sm:$0xff] }
 0x5fc   : > { %v7345_v35 = vld [vmem:[%s12978_s19 + $0x5f0] sm:$0xff] }
 0x5fd   : > { %v12148_v47 = vcombine.low %v7341_v60, %v7345_v35 }
 0x5fe   : > { %10586 = vmatpush1.bf16.msra.mxu0 %v12084_v40  ;;  %10750 = vmatpush1.bf16.msra.mxu1 %v12086_v1  ;;  %v12149_v40 = vcombine.high %v7341_v60, %v7345_v35  ;;  %v12151_v1 = vcombine.high %v7342_v37, %v7346_v38  ;;  %v7398_v60 = vld [vmem:[%s12978_s19 + $0x798] sm:$0xff]  ;;  %v12198_v38 = vcombine.low %v7390_v24, %v7394_v9 }
 0x5ff   : > { %10596 = vmatprep.subr.bf16.mxu0 %v12093_v39  ;;  %10760 = vmatprep.subr.bf16.mxu1 %v12095_v41  ;;  %v7349_v39 = vld [vmem:[%s12978_s19 + $0x610] sm:$0xff]  ;;  %v7402_v35 = vld [vmem:[%s12978_s19 + $0x7b8] sm:$0xff] }
 0x600   : > { %v7353_v41 = vld [vmem:[%s12978_s19 + $0x630] sm:$0xff] }
 0x601   : > { %10588 = vmatmul.mubr.bf16.vlgmr.msra.gmra.mrb[4].mxu0 %v14198_v15  ;;  %10752 = vmatmul.mubr.bf16.vlgmr.msra.gmra.mrb[4].mxu1 %v14198_v15  ;;  %v12108_v15 = vcombine.low %v7301_v33, %v7305_v36  ;;  %v7358_v33 = vld [vmem:[%s12978_s19 + $0x658] sm:$0xff]  ;;  %v12156_v61 = vcombine.low %v7349_v39, %v7353_v41 }
 0x602   : > { %10597 = vmatpush1.bf16.msra.mxu0 %v12092_v55  ;;  %10761 = vmatpush1.bf16.msra.mxu1 %v12094_v48  ;;  %v12157_v55 = vcombine.high %v7349_v39, %v7353_v41  ;;  %v12159_v48 = vcombine.high %v7350_v46, %v7354_v42  ;;  %v7362_v36 = vld [vmem:[%s12978_s19 + $0x678] sm:$0xff]  ;;  %v12206_v42 = vcombine.low %v7398_v60, %v7402_v35 }
 0x603   : > { %10598 = vmatprep.subr.bf16.mxu0 %v12101_v44  ;;  %10762 = vmatprep.subr.bf16.mxu1 %v12103_v45  ;;  %v7357_v44 = vld [vmem:[%s12978_s19 + $0x650] sm:$0xff]  ;;  %v7406_v39 = vld [vmem:[%s12978_s19 + $0x7d8] sm:$0xff] }
 0x604   : > { %10628 = vmatprep.mubr.bf16.mxu0 %v14204_v5  ;;  %10792 = vmatprep.mubr.bf16.mxu1 %v14204_v5  ;;  %v12118_v5 = vcombine.low %v7310_v54, %v7314_v56  ;;  %v7361_v45 = vld [vmem:[%s12978_s19 + $0x670] sm:$0xff]  ;;  %v12166_v56 = vcombine.low %v7358_v33, %v7362_v36  ;;  %v7410_v41 = vld [vmem:[%s12978_s19 + $0x7f8] sm:$0xff] }
 0x605   : > { %v12164_v54 = vcombine.low %v7357_v44, %v7361_v45 }
 0x606   : > { %10599 = vmatpush1.bf16.msra.mxu0 %v12100_v49  ;;  %10763 = vmatpush1.bf16.msra.mxu1 %v12102_v22  ;;  %v12165_v49 = vcombine.high %v7357_v44, %v7361_v45  ;;  %v12167_v22 = vcombine.high %v7358_v33, %v7362_v36  ;;  %v7414_v44 = vld [vmem:[%s12978_s19 + $0x818] sm:$0xff]  ;;  %v12214_v36 = vcombine.low %v7406_v39, %v7410_v41 }
 0x607   : > { %10600 = vmatprep.subr.bf16.mxu0 %v12109_v0  ;;  %10764 = vmatprep.subr.bf16.mxu1 %v12111_v26  ;;  %v7365_v0 = vld [vmem:[%s12978_s19 + $0x690] sm:$0xff]  ;;  %v7418_v45 = vld [vmem:[%s12978_s19 + $0x838] sm:$0xff] }
 0x608   : > { %v7369_v26 = vld [vmem:[%s12978_s19 + $0x6b0] sm:$0xff] }
 0x609   : > { %v12172_v23 = vcombine.low %v7365_v0, %v7369_v26 }
 0x60a   : > { %10601 = vmatpush1.bf16.msra.mxu0 %v12108_v15  ;;  %10765 = vmatpush1.bf16.msra.mxu1 %v12110_v59  ;;  %v12173_v15 = vcombine.high %v7365_v0, %v7369_v26  ;;  %v12175_v59 = vcombine.high %v7366_v4, %v7370_v52  ;;  %v7422_v0 = vld [vmem:[%s12978_s19 + $0x858] sm:$0xff]  ;;  %v12222_v52 = vcombine.low %v7414_v44, %v7418_v45 }
 0x60b   : > { %10602 = vmatprep.subr.bf16.mxu0 %v12117_v57  ;;  %10766 = vmatprep.subr.bf16.mxu1 %v12119_v58  ;;  %v7373_v57 = vld [vmem:[%s12978_s19 + $0x6d0] sm:$0xff]  ;;  %v7426_v26 = vld [vmem:[%s12978_s19 + $0x878] sm:$0xff] }
 0x60c   : > { %v7377_v58 = vld [vmem:[%s12978_s19 + $0x6f0] sm:$0xff] }
 0x60d   : > { %v12180_v34 = vcombine.low %v7373_v57, %v7377_v58 }
 0x60e   : > { %10603 = vmatpush1.bf16.msra.mxu0 %v12116_v16  ;;  %10767 = vmatpush1.bf16.msra.mxu1 %v12118_v5  ;;  %v12181_v16 = vcombine.high %v7373_v57, %v7377_v58  ;;  %v12183_v5 = vcombine.high %v7374_v14, %v7378_v2  ;;  %v7430_v57 = vld [vmem:[%s12978_s19 + $0x898] sm:$0xff]  ;;  %v12230_v2 = vcombine.low %v7422_v0, %v7426_v26 }
 0x60f   : > { %10604 = vmatprep.subr.bf16.mxu0 %v12125_v6  ;;  %10768 = vmatprep.subr.bf16.mxu1 %v12127_v7  ;;  %v7381_v6 = vld [vmem:[%s12978_s19 + $0x710] sm:$0xff]  ;;  %v7434_v58 = vld [vmem:[%s12978_s19 + $0x8b8] sm:$0xff] }
 0x610   : > { %v7385_v7 = vld [vmem:[%s12978_s19 + $0x730] sm:$0xff] }
 0x611   : > { %v12188_v27 = vcombine.low %v7381_v6, %v7385_v7 }
 0x612   : > { %10605 = vmatpush1.bf16.msra.mxu0 %v12124_v18  ;;  %10769 = vmatpush1.bf16.msra.mxu1 %v12126_v19  ;;  %v12189_v18 = vcombine.high %v7381_v6, %v7385_v7  ;;  %v12191_v19 = vcombine.high %v7382_v10, %v7386_v11  ;;  %v7438_v6 = vld [vmem:[%s12978_s19 + $0x8d8] sm:$0xff]  ;;  %v12238_v10 = vcombine.low %v7430_v57, %v7434_v58 }
 0x613   : > { %10606 = vmatprep.subr.bf16.mxu0 %v12133_v20  ;;  %10770 = vmatprep.subr.bf16.mxu1 %v12135_v21  ;;  %v7389_v20 = vld [vmem:[%s12978_s19 + $0x750] sm:$0xff]  ;;  %v7442_v7 = vld [vmem:[%s12978_s19 + $0x8f8] sm:$0xff] }
 0x614   : > { %v7393_v21 = vld [vmem:[%s12978_s19 + $0x770] sm:$0xff] }
 0x615   : > { %v12196_v37 = vcombine.low %v7389_v20, %v7393_v21 }
 0x616   : > { %10607 = vmatpush1.bf16.msra.mxu0 %v12132_v17  ;;  %10771 = vmatpush1.bf16.msra.mxu1 %v12134_v30  ;;  %v12197_v17 = vcombine.high %v7389_v20, %v7393_v21  ;;  %v12199_v30 = vcombine.high %v7390_v24, %v7394_v9  ;;  %v7450_v20 = vld [vmem:[%s12978_s19 + $0x938] sm:$0xff] }
 0x617   : > { %10608 = vmatprep.subr.bf16.mxu0 %v12141_v31  ;;  %10772 = vmatprep.subr.bf16.mxu1 %v12143_v63  ;;  %v7397_v31 = vld [vmem:[%s12978_s19 + $0x790] sm:$0xff] }
 0x618   : > { %v7401_v63 = vld [vmem:[%s12978_s19 + $0x7b0] sm:$0xff] }
 0x619   : > { %v12204_v46 = vcombine.low %v7397_v31, %v7401_v63 }
 0x61a   : > { %10609 = vmatpush1.bf16.msra.mxu0 %v12140_v8  ;;  %10773 = vmatpush1.bf16.msra.mxu1 %v12142_v25  ;;  %v12205_v8 = vcombine.high %v7397_v31, %v7401_v63  ;;  %v12207_v25 = vcombine.high %v7398_v60, %v7402_v35 }
 0x61b   : > { %10610 = vmatprep.subr.bf16.mxu0 %v12149_v40  ;;  %10774 = vmatprep.subr.bf16.mxu1 %v12151_v1  ;;  %v7405_v40 = vld [vmem:[%s12978_s19 + $0x7d0] sm:$0xff] }
 0x61c   : > { %v7409_v1 = vld [vmem:[%s12978_s19 + $0x7f0] sm:$0xff] }
 0x61d   : > { %v12212_v33 = vcombine.low %v7405_v40, %v7409_v1 }
 0x61e   : > { %10611 = vmatpush1.bf16.msra.mxu0 %v12148_v47  ;;  %10775 = vmatpush1.bf16.msra.mxu1 %v12150_v43  ;;  %v12213_v47 = vcombine.high %v7405_v40, %v7409_v1  ;;  %v12215_v43 = vcombine.high %v7406_v39, %v7410_v41 }
 0x61f   : > { %10612 = vmatprep.subr.bf16.mxu0 %v12157_v55  ;;  %10776 = vmatprep.subr.bf16.mxu1 %v12159_v48  ;;  %v7413_v55 = vld [vmem:[%s12978_s19 + $0x810] sm:$0xff] }
 0x620   : > { %v7417_v48 = vld [vmem:[%s12978_s19 + $0x830] sm:$0xff] }
 0x621   : > { %v12220_v4 = vcombine.low %v7413_v55, %v7417_v48 }
 0x622   : > { %10613 = vmatpush1.bf16.msra.mxu0 %v12156_v61  ;;  %10777 = vmatpush1.bf16.msra.mxu1 %v12158_v50  ;;  %v12221_v61 = vcombine.high %v7413_v55, %v7417_v48  ;;  %v12223_v50 = vcombine.high %v7414_v44, %v7418_v45 }
 0x623   : > { %10614 = vmatprep.subr.bf16.mxu0 %v12165_v49  ;;  %10778 = vmatprep.subr.bf16.mxu1 %v12167_v22  ;;  %v7421_v49 = vld [vmem:[%s12978_s19 + $0x850] sm:$0xff] }
 0x624   : > { %v7425_v22 = vld [vmem:[%s12978_s19 + $0x870] sm:$0xff] }
 0x625   : > { %v12228_v14 = vcombine.low %v7421_v49, %v7425_v22 }
 0x626   : > { %10615 = vmatpush1.bf16.msra.mxu0 %v12164_v54  ;;  %10779 = vmatpush1.bf16.msra.mxu1 %v12166_v56  ;;  %v12229_v54 = vcombine.high %v7421_v49, %v7425_v22  ;;  %v12231_v56 = vcombine.high %v7422_v0, %v7426_v26 }
 0x627   : > { %10616 = vmatprep.subr.bf16.mxu0 %v12173_v15  ;;  %10780 = vmatprep.subr.bf16.mxu1 %v12175_v59  ;;  %v7429_v15 = vld [vmem:[%s12978_s19 + $0x890] sm:$0xff] }
 0x628   : > { %v7433_v59 = vld [vmem:[%s12978_s19 + $0x8b0] sm:$0xff] }
 0x62a   : > { %10617 = vmatpush1.bf16.msra.mxu0 %v12172_v23  ;;  %10781 = vmatpush1.bf16.msra.mxu1 %v12174_v32  ;;  %v12237_v23 = vcombine.high %v7429_v15, %v7433_v59  ;;  %v12239_v32 = vcombine.high %v7430_v57, %v7434_v58 }
 0x62b   : > { %10618 = vmatprep.subr.bf16.mxu0 %v12181_v16  ;;  %10782 = vmatprep.subr.bf16.mxu1 %v12183_v5  ;;  %v7437_v16 = vld [vmem:[%s12978_s19 + $0x8d0] sm:$0xff] }
 0x62c   : > { %v7441_v5 = vld [vmem:[%s12978_s19 + $0x8f0] sm:$0xff] }
 0x62d   : > { %v12245_v11 = vcombine.high %v7437_v16, %v7441_v5  ;;  %v12244_v21 = vcombine.low %v7437_v16, %v7441_v5 }
 0x62e   : > { %10619 = vmatpush1.bf16.msra.mxu0 %v12180_v34  ;;  %10783 = vmatpush1.bf16.msra.mxu1 %v12182_v3  ;;  %v12247_v34 = vcombine.high %v7438_v6, %v7442_v7  ;;  %v7445_v3 = vld [vmem:[%s12978_s19 + $0x910] sm:$0xff] }
 0x62f   : > { %10620 = vmatprep.subr.bf16.mxu0 %v12189_v18  ;;  %10784 = vmatprep.subr.bf16.mxu1 %v12191_v19  ;;  %v7449_v18 = vld [vmem:[%s12978_s19 + $0x930] sm:$0xff]  ;;  %v7446_v19 = vld [vmem:[%s12978_s19 + $0x918] sm:$0xff] }
 0x630   : > { %v12253_v24 = vcombine.high %v7445_v3, %v7449_v18  ;;  %v12255_v9 = vcombine.high %v7446_v19, %v7450_v20  ;;  %v12252_v31 = vcombine.low %v7445_v3, %v7449_v18  ;;  %v12254_v63 = vcombine.low %v7446_v19, %v7450_v20 }
 0x632   : > { %10621 = vmatpush1.bf16.msra.mxu0 %v12188_v27  ;;  %10785 = vmatpush1.bf16.msra.mxu1 %v12190_v29  ;;  %v7453_v27 = vld [vmem:[%s12978_s19 + $0x950] sm:$0xff] }
 0x633   : > { %10622 = vmatprep.subr.bf16.mxu0 %v12197_v17  ;;  %10786 = vmatprep.subr.bf16.mxu1 %v12199_v30  ;;  %v7457_v29 = vld [vmem:[%s12978_s19 + $0x970] sm:$0xff]  ;;  %v7454_v17 = vld [vmem:[%s12978_s19 + $0x958] sm:$0xff] }
 0x634   : > { %v7458_v30 = vld [vmem:[%s12978_s19 + $0x978] sm:$0xff]  ;;  %v12261_v60 = vcombine.high %v7453_v27, %v7457_v29  ;;  %v12260_v40 = vcombine.low %v7453_v27, %v7457_v29 }
 0x635   : > { %v12263_v35 = vcombine.high %v7454_v17, %v7458_v30  ;;  %v12262_v1 = vcombine.low %v7454_v17, %v7458_v30 }
 0x636   : > { %10623 = vmatpush1.bf16.msra.mxu0 %v12196_v37  ;;  %10787 = vmatpush1.bf16.msra.mxu1 %v12198_v38  ;;  %v7461_v37 = vld [vmem:[%s12978_s19 + $0x990] sm:$0xff] }
 0x637   : > { %10624 = vmatprep.subr.bf16.mxu0 %v12205_v8  ;;  %10788 = vmatprep.subr.bf16.mxu1 %v12207_v25  ;;  %v7465_v38 = vld [vmem:[%s12978_s19 + $0x9b0] sm:$0xff]  ;;  %v7462_v8 = vld [vmem:[%s12978_s19 + $0x998] sm:$0xff] }
 0x638   : > { %v7466_v25 = vld [vmem:[%s12978_s19 + $0x9b8] sm:$0xff]  ;;  %v12269_v39 = vcombine.high %v7461_v37, %v7465_v38  ;;  %v12268_v55 = vcombine.low %v7461_v37, %v7465_v38 }
 0x639   : > { %v12271_v41 = vcombine.high %v7462_v8, %v7466_v25  ;;  %v12270_v48 = vcombine.low %v7462_v8, %v7466_v25 }
 0x63a   : > { %10625 = vmatpush1.bf16.msra.mxu0 %v12204_v46  ;;  %10789 = vmatpush1.bf16.msra.mxu1 %v12206_v42  ;;  %v7469_v46 = vld [vmem:[%s12978_s19 + $0x9d0] sm:$0xff] }
 0x63b   : > { %10626 = vmatprep.subr.bf16.mxu0 %v12213_v47  ;;  %10790 = vmatprep.subr.bf16.mxu1 %v12215_v43  ;;  %v7473_v42 = vld [vmem:[%s12978_s19 + $0x9f0] sm:$0xff]  ;;  %v7470_v47 = vld [vmem:[%s12978_s19 + $0x9d8] sm:$0xff] }
 0x63c   : > { %v7474_v43 = vld [vmem:[%s12978_s19 + $0x9f8] sm:$0xff]  ;;  %v12277_v44 = vcombine.high %v7469_v46, %v7473_v42  ;;  %v12276_v49 = vcombine.low %v7469_v46, %v7473_v42 }
 0x63d   : > { %v12279_v45 = vcombine.high %v7470_v47, %v7474_v43  ;;  %v12278_v22 = vcombine.low %v7470_v47, %v7474_v43 }
 0x63e   : > { %10627 = vmatpush1.bf16.msra.mxu0 %v12212_v33  ;;  %10791 = vmatpush1.bf16.msra.mxu1 %v12214_v36  ;;  %v7477_v33 = vld [vmem:[%s12978_s19 + $0xa10] sm:$0xff] }
 0x63f   : > { %10637 = vmatprep.subr.bf16.mxu0 %v12221_v61  ;;  %10801 = vmatprep.subr.bf16.mxu1 %v12223_v50  ;;  %v7481_v36 = vld [vmem:[%s12978_s19 + $0xa30] sm:$0xff]  ;;  %v7478_v61 = vld [vmem:[%s12978_s19 + $0xa18] sm:$0xff] }
 0x640   : > { %v7482_v50 = vld [vmem:[%s12978_s19 + $0xa38] sm:$0xff]  ;;  %v12285_v0 = vcombine.high %v7477_v33, %v7481_v36 }
 0x641   : > { %10629 = vmatmul.mubr.bf16.vlgmr.msra.gmra.mrb[4].mxu0 %v14294_v12  ;;  %10793 = vmatmul.mubr.bf16.vlgmr.msra.gmra.mrb[4].mxu1 %v14294_v12  ;;  %v12236_v12 = vcombine.low %v7429_v15, %v7433_v59  ;;  %v12287_v26 = vcombine.high %v7478_v61, %v7482_v50  ;;  %v12284_v15 = vcombine.low %v7477_v33, %v7481_v36 }
 0x642   : > { %10638 = vmatpush1.bf16.msra.mxu0 %v12220_v4  ;;  %10802 = vmatpush1.bf16.msra.mxu1 %v12222_v52  ;;  %v7485_v4 = vld [vmem:[%s12978_s19 + $0xa50] sm:$0xff]  ;;  %v12286_v59 = vcombine.low %v7478_v61, %v7482_v50 }
 0x643   : > { %10639 = vmatprep.subr.bf16.mxu0 %v12229_v54  ;;  %10803 = vmatprep.subr.bf16.mxu1 %v12231_v56  ;;  %v7489_v52 = vld [vmem:[%s12978_s19 + $0xa70] sm:$0xff]  ;;  %v7486_v54 = vld [vmem:[%s12978_s19 + $0xa58] sm:$0xff] }
 0x644   : > { %10669 = vmatprep.mubr.bf16.mxu0 %v14300_v51  ;;  %10833 = vmatprep.mubr.bf16.mxu1 %v14300_v51  ;;  %v12246_v51 = vcombine.low %v7438_v6, %v7442_v7  ;;  %v7490_v56 = vld [vmem:[%s12978_s19 + $0xa78] sm:$0xff]  ;;  %v12293_v57 = vcombine.high %v7485_v4, %v7489_v52  ;;  %v12292_v16 = vcombine.low %v7485_v4, %v7489_v52 }
 0x645   : > { %v12295_v58 = vcombine.high %v7486_v54, %v7490_v56  ;;  %v12294_v5 = vcombine.low %v7486_v54, %v7490_v56 }
 0x646   : > { %10640 = vmatpush1.bf16.msra.mxu0 %v12228_v14  ;;  %10804 = vmatpush1.bf16.msra.mxu1 %v12230_v2  ;;  %v7493_v14 = vld [vmem:[%s12978_s19 + $0xa90] sm:$0xff] }
 0x647   : > { %10641 = vmatprep.subr.bf16.mxu0 %v12237_v23  ;;  %10805 = vmatprep.subr.bf16.mxu1 %v12239_v32  ;;  %v7497_v2 = vld [vmem:[%s12978_s19 + $0xab0] sm:$0xff]  ;;  %v7494_v23 = vld [vmem:[%s12978_s19 + $0xa98] sm:$0xff] }
 0x648   : > { %v7498_v32 = vld [vmem:[%s12978_s19 + $0xab8] sm:$0xff]  ;;  %v12301_v6 = vcombine.high %v7493_v14, %v7497_v2  ;;  %v12300_v3 = vcombine.low %v7493_v14, %v7497_v2 }
 0x649   : > { %v12303_v7 = vcombine.high %v7494_v23, %v7498_v32  ;;  %v12302_v18 = vcombine.low %v7494_v23, %v7498_v32 }
 0x64a   : > { %10642 = vmatpush1.bf16.msra.mxu0 %v12236_v12  ;;  %10806 = vmatpush1.bf16.msra.mxu1 %v12238_v10  ;;  %v7501_v12 = vld [vmem:[%s12978_s19 + $0xad0] sm:$0xff] }
 0x64b   : > { %10643 = vmatprep.subr.bf16.mxu0 %v12245_v11  ;;  %10807 = vmatprep.subr.bf16.mxu1 %v12247_v34  ;;  %v7505_v10 = vld [vmem:[%s12978_s19 + $0xaf0] sm:$0xff]  ;;  %v7502_v11 = vld [vmem:[%s12978_s19 + $0xad8] sm:$0xff] }
 0x64c   : > { %v7506_v34 = vld [vmem:[%s12978_s19 + $0xaf8] sm:$0xff]  ;;  %v12309_v19 = vcombine.high %v7501_v12, %v7505_v10  ;;  %v12308_v27 = vcombine.low %v7501_v12, %v7505_v10 }
 0x64d   : > { %v12311_v20 = vcombine.high %v7502_v11, %v7506_v34  ;;  %v12310_v29 = vcombine.low %v7502_v11, %v7506_v34 }
 0x64e   : > { %10644 = vmatpush1.bf16.msra.mxu0 %v12244_v21  ;;  %10808 = vmatpush1.bf16.msra.mxu1 %v12246_v51  ;;  %v7509_v21 = vld [vmem:[%s12978_s19 + $0xb10] sm:$0xff] }
 0x64f   : > { %10645 = vmatprep.subr.bf16.mxu0 %v12253_v24  ;;  %10809 = vmatprep.subr.bf16.mxu1 %v12255_v9  ;;  %v7513_v51 = vld [vmem:[%s12978_s19 + $0xb30] sm:$0xff]  ;;  %v7510_v24 = vld [vmem:[%s12978_s19 + $0xb18] sm:$0xff] }
 0x650   : > { %v7514_v9 = vld [vmem:[%s12978_s19 + $0xb38] sm:$0xff]  ;;  %v12317_v17 = vcombine.high %v7509_v21, %v7513_v51  ;;  %v12316_v37 = vcombine.low %v7509_v21, %v7513_v51 }
 0x651   : > { %v12319_v30 = vcombine.high %v7510_v24, %v7514_v9  ;;  %v12318_v38 = vcombine.low %v7510_v24, %v7514_v9  ;;  %v7573_v9 = vld [vmem:[%s12978_s19 + $0xd10] sm:$0xff] }
 0x652   : > { %10646 = vmatpush1.bf16.msra.mxu0 %v12252_v31  ;;  %10810 = vmatpush1.bf16.msra.mxu1 %v12254_v63  ;;  %v7517_v31 = vld [vmem:[%s12978_s19 + $0xb50] sm:$0xff] }
 0x653   : > { %10647 = vmatprep.subr.bf16.mxu0 %v12261_v60  ;;  %10811 = vmatprep.subr.bf16.mxu1 %v12263_v35  ;;  %v7521_v63 = vld [vmem:[%s12978_s19 + $0xb70] sm:$0xff]  ;;  %v7518_v60 = vld [vmem:[%s12978_s19 + $0xb58] sm:$0xff] }
 0x654   : > { %v7522_v35 = vld [vmem:[%s12978_s19 + $0xb78] sm:$0xff]  ;;  %v12325_v8 = vcombine.high %v7517_v31, %v7521_v63  ;;  %v12324_v46 = vcombine.low %v7517_v31, %v7521_v63 }
 0x655   : > { %v12327_v25 = vcombine.high %v7518_v60, %v7522_v35  ;;  %v12326_v42 = vcombine.low %v7518_v60, %v7522_v35  ;;  %v7581_v60 = vld [vmem:[%s12978_s19 + $0xd50] sm:$0xff] }
 0x656   : > { %10648 = vmatpush1.bf16.msra.mxu0 %v12260_v40  ;;  %10812 = vmatpush1.bf16.msra.mxu1 %v12262_v1  ;;  %v7525_v40 = vld [vmem:[%s12978_s19 + $0xb90] sm:$0xff] }
 0x657   : > { %10649 = vmatprep.subr.bf16.mxu0 %v12269_v39  ;;  %10813 = vmatprep.subr.bf16.mxu1 %v12271_v41  ;;  %v7529_v1 = vld [vmem:[%s12978_s19 + $0xbb0] sm:$0xff]  ;;  %v7526_v39 = vld [vmem:[%s12978_s19 + $0xb98] sm:$0xff] }
 0x658   : > { %v7530_v41 = vld [vmem:[%s12978_s19 + $0xbb8] sm:$0xff]  ;;  %v12333_v47 = vcombine.high %v7525_v40, %v7529_v1  ;;  %v12332_v33 = vcombine.low %v7525_v40, %v7529_v1  ;;  %v7585_v35 = vld [vmem:[%s12978_s19 + $0xd70] sm:$0xff] }
 0x659   : > { %v12335_v43 = vcombine.high %v7526_v39, %v7530_v41  ;;  %v12334_v36 = vcombine.low %v7526_v39, %v7530_v41  ;;  %v12389_v40 = vcombine.high %v7581_v60, %v7585_v35  ;;  %v7589_v39 = vld [vmem:[%s12978_s19 + $0xd90] sm:$0xff] }
 0x65a   : > { %10650 = vmatpush1.bf16.msra.mxu0 %v12268_v55  ;;  %10814 = vmatpush1.bf16.msra.mxu1 %v12270_v48  ;;  %v7533_v55 = vld [vmem:[%s12978_s19 + $0xbd0] sm:$0xff] }
 0x65b   : > { %10651 = vmatprep.subr.bf16.mxu0 %v12277_v44  ;;  %10815 = vmatprep.subr.bf16.mxu1 %v12279_v45  ;;  %v7537_v48 = vld [vmem:[%s12978_s19 + $0xbf0] sm:$0xff]  ;;  %v7534_v44 = vld [vmem:[%s12978_s19 + $0xbd8] sm:$0xff] }
 0x65c   : > { %v7538_v45 = vld [vmem:[%s12978_s19 + $0xbf8] sm:$0xff]  ;;  %v12341_v61 = vcombine.high %v7533_v55, %v7537_v48  ;;  %v12340_v4 = vcombine.low %v7533_v55, %v7537_v48  ;;  %v7593_v41 = vld [vmem:[%s12978_s19 + $0xdb0] sm:$0xff] }
 0x65d   : > { %v12343_v50 = vcombine.high %v7534_v44, %v7538_v45  ;;  %v12342_v52 = vcombine.low %v7534_v44, %v7538_v45  ;;  %v12397_v55 = vcombine.high %v7589_v39, %v7593_v41  ;;  %v7597_v45 = vld [vmem:[%s12978_s19 + $0xdd0] sm:$0xff] }
 0x65e   : > { %10652 = vmatpush1.bf16.msra.mxu0 %v12276_v49  ;;  %10816 = vmatpush1.bf16.msra.mxu1 %v12278_v22  ;;  %v7541_v49 = vld [vmem:[%s12978_s19 + $0xc10] sm:$0xff] }
 0x65f   : > { %10653 = vmatprep.subr.bf16.mxu0 %v12285_v0  ;;  %10817 = vmatprep.subr.bf16.mxu1 %v12287_v26  ;;  %v7545_v22 = vld [vmem:[%s12978_s19 + $0xc30] sm:$0xff]  ;;  %v7542_v0 = vld [vmem:[%s12978_s19 + $0xc18] sm:$0xff] }
 0x660   : > { %v7546_v26 = vld [vmem:[%s12978_s19 + $0xc38] sm:$0xff]  ;;  %v12349_v54 = vcombine.high %v7541_v49, %v7545_v22  ;;  %v12348_v14 = vcombine.low %v7541_v49, %v7545_v22 }
 0x661   : > { %v12351_v56 = vcombine.high %v7542_v0, %v7546_v26  ;;  %v12350_v2 = vcombine.low %v7542_v0, %v7546_v26  ;;  %v7602_v49 = vld [vmem:[%s12978_s19 + $0xdf8] sm:$0xff] }
 0x662   : > { %10654 = vmatpush1.bf16.msra.mxu0 %v12284_v15  ;;  %10818 = vmatpush1.bf16.msra.mxu1 %v12286_v59  ;;  %v7549_v15 = vld [vmem:[%s12978_s19 + $0xc50] sm:$0xff] }
 0x663   : > { %10655 = vmatprep.subr.bf16.mxu0 %v12293_v57  ;;  %10819 = vmatprep.subr.bf16.mxu1 %v12295_v58  ;;  %v7553_v59 = vld [vmem:[%s12978_s19 + $0xc70] sm:$0xff]  ;;  %v7550_v57 = vld [vmem:[%s12978_s19 + $0xc58] sm:$0xff] }
 0x664   : > { %v7554_v58 = vld [vmem:[%s12978_s19 + $0xc78] sm:$0xff]  ;;  %v12357_v23 = vcombine.high %v7549_v15, %v7553_v59  ;;  %v12356_v12 = vcombine.low %v7549_v15, %v7553_v59 }
 0x665   : > { %v12359_v32 = vcombine.high %v7550_v57, %v7554_v58  ;;  %v12358_v10 = vcombine.low %v7550_v57, %v7554_v58 }
 0x666   : > { %10656 = vmatpush1.bf16.msra.mxu0 %v12292_v16  ;;  %10820 = vmatpush1.bf16.msra.mxu1 %v12294_v5  ;;  %v7557_v16 = vld [vmem:[%s12978_s19 + $0xc90] sm:$0xff] }
 0x667   : > { %10657 = vmatprep.subr.bf16.mxu0 %v12301_v6  ;;  %10821 = vmatprep.subr.bf16.mxu1 %v12303_v7  ;;  %v7561_v5 = vld [vmem:[%s12978_s19 + $0xcb0] sm:$0xff]  ;;  %v7558_v6 = vld [vmem:[%s12978_s19 + $0xc98] sm:$0xff] }
 0x668   : > { %v7562_v7 = vld [vmem:[%s12978_s19 + $0xcb8] sm:$0xff]  ;;  %v12365_v11 = vcombine.high %v7557_v16, %v7561_v5 }
 0x669   : > { %v12367_v34 = vcombine.high %v7558_v6, %v7562_v7  ;;  %v12366_v21 = vcombine.low %v7558_v6, %v7562_v7 }
 0x66a   : > { %10658 = vmatpush1.bf16.msra.mxu0 %v12300_v3  ;;  %10822 = vmatpush1.bf16.msra.mxu1 %v12302_v18  ;;  %v7565_v3 = vld [vmem:[%s12978_s19 + $0xcd0] sm:$0xff] }
 0x66b   : > { %10659 = vmatprep.subr.bf16.mxu0 %v12309_v19  ;;  %10823 = vmatprep.subr.bf16.mxu1 %v12311_v20  ;;  %v7569_v18 = vld [vmem:[%s12978_s19 + $0xcf0] sm:$0xff]  ;;  %v7566_v19 = vld [vmem:[%s12978_s19 + $0xcd8] sm:$0xff] }
 0x66c   : > { %v7570_v20 = vld [vmem:[%s12978_s19 + $0xcf8] sm:$0xff]  ;;  %v12373_v51 = vcombine.high %v7565_v3, %v7569_v18 }
 0x66d   : > { %v12375_v24 = vcombine.high %v7566_v19, %v7570_v20 }
 0x66e   : > { %10660 = vmatpush1.bf16.msra.mxu0 %v12308_v27  ;;  %10824 = vmatpush1.bf16.msra.mxu1 %v12310_v29  ;;  %v7577_v27 = vld [vmem:[%s12978_s19 + $0xd30] sm:$0xff]  ;;  %v7574_v29 = vld [vmem:[%s12978_s19 + $0xd18] sm:$0xff] }
 0x66f   : > { %10661 = vmatprep.subr.bf16.mxu0 %v12317_v17  ;;  %10825 = vmatprep.subr.bf16.mxu1 %v12319_v30  ;;  %v7578_v17 = vld [vmem:[%s12978_s19 + $0xd38] sm:$0xff]  ;;  %v12372_v30 = vcombine.low %v7565_v3, %v7569_v18  ;;  %v12381_v31 = vcombine.high %v7573_v9, %v7577_v27  ;;  %v7617_v3 = vld [vmem:[%s12978_s19 + $0xe70] sm:$0xff] }
 0x670   : > { %v12383_v63 = vcombine.high %v7574_v29, %v7578_v17  ;;  %v7614_v18 = vld [vmem:[%s12978_s19 + $0xe58] sm:$0xff] }
 0x672   : > { %10662 = vmatpush1.bf16.msra.mxu0 %v12316_v37  ;;  %10826 = vmatpush1.bf16.msra.mxu1 %v12318_v38  ;;  %v7582_v37 = vld [vmem:[%s12978_s19 + $0xd58] sm:$0xff] }
 0x673   : > { %10663 = vmatprep.subr.bf16.mxu0 %v12325_v8  ;;  %10827 = vmatprep.subr.bf16.mxu1 %v12327_v25  ;;  %v7586_v38 = vld [vmem:[%s12978_s19 + $0xd78] sm:$0xff]  ;;  %v12380_v8 = vcombine.low %v7573_v9, %v7577_v27  ;;  %v12382_v25 = vcombine.low %v7574_v29, %v7578_v17  ;;  %v7625_v9 = vld [vmem:[%s12978_s19 + $0xeb0] sm:$0xff] }
 0x674   : > { %v12391_v1 = vcombine.high %v7582_v37, %v7586_v38  ;;  %v7622_v27 = vld [vmem:[%s12978_s19 + $0xe98] sm:$0xff] }
 0x675   : > { %v7626_v29 = vld [vmem:[%s12978_s19 + $0xeb8] sm:$0xff] }
 0x676   : > { %10664 = vmatpush1.bf16.msra.mxu0 %v12324_v46  ;;  %10828 = vmatpush1.bf16.msra.mxu1 %v12326_v42  ;;  %v7590_v46 = vld [vmem:[%s12978_s19 + $0xd98] sm:$0xff] }
 0x677   : > { %10665 = vmatprep.subr.bf16.mxu0 %v12333_v47  ;;  %10829 = vmatprep.subr.bf16.mxu1 %v12335_v43  ;;  %v7594_v42 = vld [vmem:[%s12978_s19 + $0xdb8] sm:$0xff]  ;;  %v12388_v47 = vcombine.low %v7581_v60, %v7585_v35  ;;  %v12390_v43 = vcombine.low %v7582_v37, %v7586_v38  ;;  %v7633_v60 = vld [vmem:[%s12978_s19 + $0xef0] sm:$0xff] }
 0x678   : > { %v12399_v44 = vcombine.high %v7590_v46, %v7594_v42  ;;  %v12398_v15 = vcombine.low %v7590_v46, %v7594_v42  ;;  %v7630_v35 = vld [vmem:[%s12978_s19 + $0xed8] sm:$0xff] }
 0x679   : > { %v7634_v37 = vld [vmem:[%s12978_s19 + $0xef8] sm:$0xff] }
 0x67a   : > { %10666 = vmatpush1.bf16.msra.mxu0 %v12332_v33  ;;  %10830 = vmatpush1.bf16.msra.mxu1 %v12334_v36  ;;  %v7601_v33 = vld [vmem:[%s12978_s19 + $0xdf0] sm:$0xff]  ;;  %v7642_v46 = vld [vmem:[%s12978_s19 + $0xf38] sm:$0xff] }
 0x67b   : > { %10667 = vmatprep.subr.bf16.mxu0 %v12341_v61  ;;  %10831 = vmatprep.subr.bf16.mxu1 %v12343_v50  ;;  %v7598_v50 = vld [vmem:[%s12978_s19 + $0xdd8] sm:$0xff]  ;;  %v12405_v59 = vcombine.high %v7597_v45, %v7601_v33  ;;  %v12404_v6 = vcombine.low %v7597_v45, %v7601_v33 }
 0x67c   : > { %v7646_v45 = vld [vmem:[%s12978_s19 + $0xf58] sm:$0xff] }
 0x67d   : > { %v7650_v33 = vld [vmem:[%s12978_s19 + $0xf78] sm:$0xff] }
 0x67e   : > { %10668 = vmatpush1.bf16.msra.mxu0 %v12340_v4  ;;  %10832 = vmatpush1.bf16.msra.mxu1 %v12342_v52  ;;  %v12396_v4 = vcombine.low %v7589_v39, %v7593_v41  ;;  %v7641_v39 = vld [vmem:[%s12978_s19 + $0xf30] sm:$0xff]  ;;  %v7638_v41 = vld [vmem:[%s12978_s19 + $0xf18] sm:$0xff] }
 0x67f   : > { %10678 = vmatprep.subr.bf16.mxu0 %v12349_v54  ;;  %10842 = vmatprep.subr.bf16.mxu1 %v12351_v56 }
 0x681   : > { %10670 = vmatmul.mubr.bf16.vlgmr.msra.gmra.mrb[4].mxu0 %v14375_v62  ;;  %10834 = vmatmul.mubr.bf16.vlgmr.msra.gmra.mrb[4].mxu1 %v14375_v62  ;;  %v12364_v62 = vcombine.low %v7557_v16, %v7561_v5  ;;  %v7606_v16 = vld [vmem:[%s12978_s19 + $0xe18] sm:$0xff] }
 0x682   : > { %10679 = vmatpush1.bf16.msra.mxu0 %v12348_v14  ;;  %10843 = vmatpush1.bf16.msra.mxu1 %v12350_v2  ;;  %v12407_v14 = vcombine.high %v7598_v50, %v7602_v49  ;;  %v7605_v2 = vld [vmem:[%s12978_s19 + $0xe10] sm:$0xff]  ;;  %v7610_v5 = vld [vmem:[%s12978_s19 + $0xe38] sm:$0xff] }
 0x683   : > { %10680 = vmatprep.subr.bf16.mxu0 %v12357_v23  ;;  %10844 = vmatprep.subr.bf16.mxu1 %v12359_v32  ;;  %v7609_v23 = vld [vmem:[%s12978_s19 + $0xe30] sm:$0xff] }
 0x684   : > { %10710 = vmatprep.mubr.bf16.mxu0 %v14381_v13  ;;  %10874 = vmatprep.mubr.bf16.mxu1 %v14381_v13  ;;  %v12374_v13 = vcombine.low %v7566_v19, %v7570_v20  ;;  %v7618_v19 = vld [vmem:[%s12978_s19 + $0xe78] sm:$0xff]  ;;  %v12412_v20 = vcombine.low %v7605_v2, %v7609_v23 }
 0x686   : > { %10681 = vmatpush1.bf16.msra.mxu0 %v12356_v12  ;;  %10845 = vmatpush1.bf16.msra.mxu1 %v12358_v10  ;;  %v12406_v12 = vcombine.low %v7598_v50, %v7602_v49  ;;  %v12413_v10 = vcombine.high %v7605_v2, %v7609_v23  ;;  %v12455_v49 = vcombine.high %v7646_v45, %v7650_v33 }
 0x687   : > { %10682 = vmatprep.subr.bf16.mxu0 %v12365_v11  ;;  %10846 = vmatprep.subr.bf16.mxu1 %v12367_v34  ;;  %v12415_v11 = vcombine.high %v7606_v16, %v7610_v5  ;;  %v7613_v34 = vld [vmem:[%s12978_s19 + $0xe50] sm:$0xff] }
 0x688   : > { %v12420_v17 = vcombine.low %v7613_v34, %v7617_v3 }
 0x68a   : > { %10683 = vmatpush1.bf16.msra.mxu0 %v12364_v62  ;;  %10847 = vmatpush1.bf16.msra.mxu1 %v12366_v21  ;;  %v12414_v62 = vcombine.low %v7606_v16, %v7610_v5  ;;  %v12421_v21 = vcombine.high %v7613_v34, %v7617_v3 }
 0x68b   : > { %10684 = vmatprep.subr.bf16.mxu0 %v12373_v51  ;;  %10848 = vmatprep.subr.bf16.mxu1 %v12375_v24  ;;  %v12423_v51 = vcombine.high %v7614_v18, %v7618_v19  ;;  %v7621_v24 = vld [vmem:[%s12978_s19 + $0xe90] sm:$0xff] }
 0x68c   : > { %v12428_v38 = vcombine.low %v7621_v24, %v7625_v9 }
 0x68e   : > { %10685 = vmatpush1.bf16.msra.mxu0 %v12372_v30  ;;  %10849 = vmatpush1.bf16.msra.mxu1 %v12374_v13  ;;  %v12422_v30 = vcombine.low %v7614_v18, %v7618_v19  ;;  %v12429_v13 = vcombine.high %v7621_v24, %v7625_v9 }
 0x68f   : > { %10686 = vmatprep.subr.bf16.mxu0 %v12381_v31  ;;  %10850 = vmatprep.subr.bf16.mxu1 %v12383_v63  ;;  %v12431_v31 = vcombine.high %v7622_v27, %v7626_v29  ;;  %v7629_v63 = vld [vmem:[%s12978_s19 + $0xed0] sm:$0xff] }
 0x690   : > { %v12436_v42 = vcombine.low %v7629_v63, %v7633_v60 }
 0x692   : > { %10687 = vmatpush1.bf16.msra.mxu0 %v12380_v8  ;;  %10851 = vmatpush1.bf16.msra.mxu1 %v12382_v25  ;;  %v12430_v8 = vcombine.low %v7622_v27, %v7626_v29  ;;  %v12437_v25 = vcombine.high %v7629_v63, %v7633_v60 }
 0x693   : > { %10688 = vmatprep.subr.bf16.mxu0 %v12389_v40  ;;  %10852 = vmatprep.subr.bf16.mxu1 %v12391_v1  ;;  %v12439_v40 = vcombine.high %v7630_v35, %v7634_v37  ;;  %v7637_v1 = vld [vmem:[%s12978_s19 + $0xf10] sm:$0xff] }
 0x694   : > { %v10384_v48 = vpop.f32.mrb[0].mxu0  ;;  %v10548_v36 = vpop.f32.mrb[0].mxu1 }
 0x695   : > { %v10386_v61 = vpop.f32.mrb[1].mxu0  ;;  %v10550_v0 = vpop.f32.mrb[1].mxu1 }
 0x696   : > { %v10891_v22 = vcombine.low %v10384_v48, %v10386_v61  ;;  %v10388_v26 = vpop.f32.mrb[2].mxu0  ;;  %10689 = vmatpush1.bf16.msra.mxu0 %v12388_v47  ;;  %v10892_v52 = vcombine.low %v10548_v36, %v10550_v0  ;;  %v10552_v54 = vpop.f32.mrb[2].mxu1  ;;  %10853 = vmatpush1.bf16.msra.mxu1 %v12390_v43  ;;  %v12438_v47 = vcombine.low %v7630_v35, %v7634_v37  ;;  %v7645_v48 = vld [vmem:[%s12978_s19 + $0xf50] sm:$0xff] }
 0x697   : > { %v10389_v56 = vpop.f32.mrb[3].mxu0  ;;  %10690 = vmatprep.subr.bf16.mxu0 %v12397_v55  ;;  %v10553_v58 = vpop.f32.mrb[3].mxu1  ;;  %10854 = vmatprep.subr.bf16.mxu1 %v12399_v44  ;;  %v12445_v43 = vcombine.high %v7637_v1, %v7641_v39  ;;  %v12447_v55 = vcombine.high %v7638_v41, %v7642_v46  ;;  %v7649_v44 = vld [vmem:[%s12978_s19 + $0xf70] sm:$0xff]  ;;  %v12444_v36 = vcombine.low %v7637_v1, %v7641_v39  ;;  %v7654_v26 = vld [vmem:[%s12978_s19 + $0xf98] sm:$0xff] }
 0x698   : > { %v10899_v57 = vrot.slane %v10891_v22, %v13015_v53  ;;  %v10906_v32 = vrot.slane %v10892_v52, %v13015_v53  ;;  %v12446_v61 = vcombine.low %v7638_v41, %v7642_v46  ;;  %v12453_v50 = vcombine.high %v7645_v48, %v7649_v44  ;;  %v7653_v22 = vld [vmem:[%s12978_s19 + $0xf90] sm:$0xff]  ;;  %v7662_v58 = vld [vmem:[%s12978_s19 + $0xfd8] sm:$0xff] }
 0x699   : > { %v7657_v0 = vld [vmem:[%s12978_s19 + $0xfb0] sm:$0xff]  ;;  %v12452_v52 = vcombine.low %v7645_v48, %v7649_v44  ;;  %v12454_v54 = vcombine.low %v7646_v45, %v7650_v33 }
 0x69a   : > { %10691 = vmatpush1.bf16.msra.mxu0 %v12396_v4  ;;  %v10907_v7 = vcombine.low %v10899_v57, %v10906_v32  ;;  %10855 = vmatpush1.bf16.msra.mxu1 %v12398_v15  ;;  %v7658_v4 = vld [vmem:[%s12978_s19 + $0xfb8] sm:$0xff]  ;;  %v12461_v56 = vcombine.high %v7653_v22, %v7657_v0  ;;  %v7665_v57 = vld [vmem:[%s12978_s19 + $0xff0] sm:$0xff]  ;;  %v12460_v2 = vcombine.low %v7653_v22, %v7657_v0 }
 0x69b   : > { %10692 = vmatprep.subr.bf16.mxu0 %v12405_v59  ;;  %10856 = vmatprep.subr.bf16.mxu1 %v12407_v14  ;;  %v12463_v15 = vcombine.high %v7654_v26, %v7658_v4  ;;  %v7661_v59 = vld [vmem:[%s12978_s19 + $0xfd0] sm:$0xff]  ;;  %v7666_v14 = vld [vmem:[%s12978_s19 + $0xff8] sm:$0xff]  ;;  %v12462_v23 = vcombine.low %v7654_v26, %v7658_v4 }
 0x69c   : > { %10927 = vst [vmem:[%s12996_s8] sm:$0xff] %v10907_v7  ;;  %v12469_v32 = vcombine.high %v7661_v59, %v7665_v57  ;;  %v12471_v16 = vcombine.high %v7662_v58, %v7666_v14  ;;  %v12468_v5 = vcombine.low %v7661_v59, %v7665_v57 }
 0x69e   : > { %10693 = vmatpush1.bf16.msra.mxu0 %v12404_v6  ;;  %10857 = vmatpush1.bf16.msra.mxu1 %v12406_v12  ;;  %v12470_v6 = vcombine.low %v7662_v58, %v7666_v14 }
 0x69f   : > { %10694 = vmatprep.subr.bf16.mxu0 %v12413_v10  ;;  %10858 = vmatprep.subr.bf16.mxu1 %v12415_v11 }
 0x6a2   : > { %10695 = vmatpush1.bf16.msra.mxu0 %v12412_v20  ;;  %10859 = vmatpush1.bf16.msra.mxu1 %v12414_v62 }
 0x6a3   : > { %10696 = vmatprep.subr.bf16.mxu0 %v12421_v21  ;;  %10860 = vmatprep.subr.bf16.mxu1 %v12423_v51 }
 0x6a6   : > { %10697 = vmatpush1.bf16.msra.mxu0 %v12420_v17  ;;  %10861 = vmatpush1.bf16.msra.mxu1 %v12422_v30 }
 0x6a7   : > { %10698 = vmatprep.subr.bf16.mxu0 %v12429_v13  ;;  %10862 = vmatprep.subr.bf16.mxu1 %v12431_v31 }
 0x6aa   : > { %10699 = vmatpush1.bf16.msra.mxu0 %v12428_v38  ;;  %10863 = vmatpush1.bf16.msra.mxu1 %v12430_v8 }
 0x6ab   : > { %10700 = vmatprep.subr.bf16.mxu0 %v12437_v25  ;;  %10864 = vmatprep.subr.bf16.mxu1 %v12439_v40 }
 0x6ae   : > { %10701 = vmatpush1.bf16.msra.mxu0 %v12436_v42  ;;  %10865 = vmatpush1.bf16.msra.mxu1 %v12438_v47 }
 0x6af   : > { %10702 = vmatprep.subr.bf16.mxu0 %v12445_v43  ;;  %10866 = vmatprep.subr.bf16.mxu1 %v12447_v55 }
 0x6b2   : > { %10703 = vmatpush1.bf16.msra.mxu0 %v12444_v36  ;;  %10867 = vmatpush1.bf16.msra.mxu1 %v12446_v61 }
 0x6b3   : > { %10704 = vmatprep.subr.bf16.mxu0 %v12453_v50  ;;  %10868 = vmatprep.subr.bf16.mxu1 %v12455_v49 }
 0x6b6   : > { %10705 = vmatpush1.bf16.msra.mxu0 %v12452_v52  ;;  %10869 = vmatpush1.bf16.msra.mxu1 %v12454_v54 }
 0x6b7   : > { %10706 = vmatprep.subr.bf16.mxu0 %v12461_v56  ;;  %10870 = vmatprep.subr.bf16.mxu1 %v12463_v15 }
 0x6ba   : > { %10707 = vmatpush1.bf16.msra.mxu0 %v12460_v2  ;;  %10871 = vmatpush1.bf16.msra.mxu1 %v12462_v23 }
 0x6bb   : > { %10708 = vmatprep.subr.bf16.mxu0 %v12469_v32  ;;  %10872 = vmatprep.subr.bf16.mxu1 %v12471_v16 }
 0x6be   : > { %10709 = vmatpush1.bf16.msra.mxu0 %v12468_v5  ;;  %10873 = vmatpush1.bf16.msra.mxu1 %v12470_v6 }
 0x6c1   : > { %10711 = vmatmul.mubr.bf16.vlgmr.msra.gmra.mrb[4].mxu0 %v14449_v28  ;;  %10875 = vmatmul.mubr.bf16.vlgmr.msra.gmra.mrb[4].mxu1 %v14449_v28 }
 0x794   : > { %v10712_v7 = vpop.f32.mrb[4].mxu0  ;;  %v10876_v12 = vpop.f32.mrb[4].mxu1 }
 0x795   : > { %v10714_v10 = vpop.f32.mrb[5].mxu0  ;;  %v10878_v34 = vpop.f32.mrb[5].mxu1 }
 0x796   : > { %v10908_v11 = vcombine.low %v10712_v7, %v10714_v10  ;;  %v10716_v3 = vpop.f32.mrb[6].mxu0  ;;  %v10909_v18 = vcombine.low %v10876_v12, %v10878_v34  ;;  %v10880_v19 = vpop.f32.mrb[6].mxu1 }
 0x797   : > { %v10717_v20 = vpop.f32.mrb[7].mxu0  ;;  %v10881_v21 = vpop.f32.mrb[7].mxu1 }
 0x798   : > { %v10916_v62 = vrot.slane %v10908_v11, %v13015_v53  ;;  %v10923_v28 = vrot.slane %v10909_v18, %v13015_v53 }
 0x79a   : > { %v10924_v51 = vcombine.low %v10916_v62, %v10923_v28 }
 0x79c   : > { %10935 = vst.msk [vmem:[%s12996_s8 + $0x8] sm:$0xff] %vm10934_vm8, %v10924_v51 }
 0x79d PF: > { %s19_s28 = sadd.s32 1, %s12798_s28   ;;  %s14761_s7 = sld [smem:[#allocation6_spill]] }
 0x79e   : > { %p16_p11 = scmp.ge.s32.totalorder %s19_s28, 8   ;;  %s14762_s21 = smov %s12774_s22 }
 0x79f   : > { %s14763_s22 = smov %s12778_s23  ;;  %s14764_s23 = smov %s12907_s17 }
 0x7a0   : > { %s14765_s24 = smov %s12790_s26  ;;  %s14766_s25 = smov %s12794_s27 }
 0x7a1   : > { %s14767_s26 = smov %s14770_s30  ;;  %18 = sbr.rel (!%p16_p11) target bundleno = 5 (0x5), region = 104 }
 0x7a3   : > { %s14768_s27 = smov %s14761_s7 }
 0x7a8   :  { %10957 = vsyncpa [#allocation4], 1 }
 0x7a9   :  { %10959 = vsyncpa [#allocation4 + $0x1], 1 }

</bundles_post_ra>
